<compile_context>
chip_gen: v6e
topology: v6e:2x2x1
jax: 0.10.0
libtpu: 0.0.40
codegen_flags: <defaults>
</compile_context>

<pallas_src>
import jax
import jax.numpy as jnp
from jax import lax
from jax.experimental import pallas as pl
from jax.experimental.pallas import tpu as pltpu

COMPUTE_DTYPE = jnp.bfloat16   # MXU operand dtype; accumulation stays float32


def _round_up(a, b):
    return (a + b - 1) // b * b


def _pick_tm(m, tm_default):
    """Largest row tile <= tm_default, keeping >= 2 grid steps (v7x megacore)."""
    mp = _round_up(m, 8)
    tm = min(tm_default, mp)
    if mp // tm < 2 and mp >= 16:
        tm = _round_up(mp // 2, 8)
    return max(tm, 8)


def fold_conv_bn(w, b, gamma, beta, mean, var, eps=1e-5):
    """Fold eval-mode BatchNorm into the conv weights / bias (host-side)."""
    s = gamma / jnp.sqrt(var + eps)             # (Cout,)
    return w * s, (b - mean) * s + beta         # w is HWIO -> broadcast on Cout


def _phase_decompose(x_nhwc, pad, dtype):
    """Zero-pad by `pad`, then split into the four (row-parity, col-parity)
    phase images of a stride-2 grid:

        xph[2a + b, n, h, w, c] = x_pad[n, 2h + a, 2w + b, c]

    Window taps of any k x k / stride-2 conv or pool become *unit-stride*
    slices of these phase images, so no k*k-expanded im2col copy is needed.
    """
    N, H, W, C = x_nhwc.shape
    Hp = _round_up(H + 2 * pad, 2)
    Wp = _round_up(W + 2 * pad, 2)
    xp = jnp.pad(x_nhwc.astype(dtype),
                 ((0, 0), (pad, Hp - H - pad), (pad, Wp - W - pad), (0, 0)))
    Hh, Wh = Hp // 2, Wp // 2
    xph = xp.reshape(N, Hh, 2, Wh, 2, C).transpose(2, 4, 0, 1, 3, 5)
    return xph.reshape(4, N, Hh, Wh, C)


# ----------------------------------------------------------------------------
# Pallas kernels
# ----------------------------------------------------------------------------
def _conv1x1_dual_kernel(x_ref, w2_ref, b2_ref, w3_ref, b3_ref, h2_ref, h3_ref):
    """Fused branch2a / branch3a 1x1 convs: one input read, two bf16 outputs."""
    xv = x_ref[...].astype(COMPUTE_DTYPE)
    y2 = jnp.dot(xv, w2_ref[...], preferred_element_type=jnp.float32) + b2_ref[...]
    h2_ref[...] = jnp.maximum(y2, 0.0).astype(h2_ref.dtype)
    y3 = jnp.dot(xv, w3_ref[...], preferred_element_type=jnp.float32) + b3_ref[...]
    h3_ref[...] = jnp.maximum(y3, 0.0).astype(h3_ref.dtype)


def _conv_from_phases(ph_ref, w_ref, k, ho, wo):
    """sum_{di,dj} taps(di,dj) @ w[di,dj]: taps are unit-stride slices of the
    stride-2 phase images; all k*k matmuls accumulate in-register (f32)."""
    acc = None
    for di in range(k):
        for dj in range(k):
            phase = (di % 2) * 2 + (dj % 2)
            hs, ws = di // 2, dj // 2
            tap = ph_ref[phase, 0, hs:hs + ho, ws:ws + wo, :]       # (ho,wo,Cr)
            t2 = tap.reshape(ho * wo, tap.shape[-1])
            c = jnp.dot(t2, w_ref[di * k + dj],
                        preferred_element_type=jnp.float32)
            acc = c if acc is None else acc + c
    return acc                                                      # (ho*wo, Cout) f32


def _make_branch_kernel(H, W, ho, wo):
    """Per-image fused kernel: max-pool + 3x3/s2 conv + 5x5/s2 conv + avg-pool,
    written as one channel-concatenated NHWC block."""

    def kernel(xph_ref, h2ph_ref, h3ph_ref, w3_ref, b3_ref, w5_ref, b5_ref, o_ref):
        c3 = w3_ref.shape[-1]
        c5 = w5_ref.shape[-1]

        # ---- branch1 / branch4: fused 3x3 s2 p1 max & avg pool (f32) --------
        oh = lax.broadcasted_iota(jnp.int32, (ho, wo, 1), 0)
        ow = lax.broadcasted_iota(jnp.int32, (ho, wo, 1), 1)
        mx = sm = cnt = None
        for di in range(3):
            for dj in range(3):
                phase = (di % 2) * 2 + (dj % 2)
                hs, ws = di // 2, dj // 2
                tap = xph_ref[phase, 0, hs:hs + ho, ws:ws + wo, :]  # zero-padded
                ih = 2 * oh + (di - 1)
                iw = 2 * ow + (dj - 1)
                valid = (ih >= 0) & (ih < H) & (iw >= 0) & (iw < W)  # (ho,wo,1)
                vtap = jnp.where(valid, tap, -jnp.inf)
                vf = valid.astype(jnp.float32)
                if mx is None:
                    mx, sm, cnt = vtap, tap, vf
                else:
                    mx = jnp.maximum(mx, vtap)
                    sm = sm + tap       # zero-padded taps contribute 0 when invalid
                    cnt = cnt + vf
        avg = sm * (1.0 / cnt)          # count_include_pad=False

        # ---- branch2: 3x3 / s2 / p1 conv on h2 (bf16 operands, f32 accum) ---
        acc2 = _conv_from_phases(h2ph_ref, w3_ref, 3, ho, wo)
        b2 = jnp.maximum(acc2 + b3_ref[...], 0.0).reshape(ho, wo, c3)

        # ---- branch3: 5x5 / s2 / p2 conv on h3 ------------------------------
        acc3 = _conv_from_phases(h3ph_ref, w5_ref, 5, ho, wo)
        b3 = jnp.maximum(acc3 + b5_ref[...], 0.0).reshape(ho, wo, c5)

        # ---- channel concat written directly: no XLA concatenate pass -------
        o_ref[0] = jnp.concatenate([mx, b2, b3, avg], axis=-1)

    return kernel


# ----------------------------------------------------------------------------
# Wrappers
# ----------------------------------------------------------------------------
def conv1x1_dual_relu(x_nhwc, w2, bias2, w3, bias3, *, tm_default=512):
    """relu(x @ w2 + b2), relu(x @ w3 + b3) with one shared input read."""
    N, H, W, Cin = x_nhwc.shape
    cr3, cr5 = w2.shape[-1], w3.shape[-1]
    M = N * H * W
    x2d = x_nhwc.reshape(M, Cin)

    tm = _pick_tm(M, tm_default)
    Mp = _round_up(M, tm)
    if Mp != M:
        x2d = jnp.pad(x2d, ((0, Mp - M), (0, 0)))

    w2m = w2.reshape(Cin, cr3).astype(COMPUTE_DTYPE)
    w3m = w3.reshape(Cin, cr5).astype(COMPUTE_DTYPE)
    b2m = bias2.reshape(1, cr3).astype(jnp.float32)
    b3m = bias3.reshape(1, cr5).astype(jnp.float32)

    h2, h3 = pl.pallas_call(
        _conv1x1_dual_kernel,
        out_shape=(jax.ShapeDtypeStruct((Mp, cr3), COMPUTE_DTYPE),
                   jax.ShapeDtypeStruct((Mp, cr5), COMPUTE_DTYPE)),
        grid=(Mp // tm,),
        in_specs=[
            pl.BlockSpec((tm, Cin), lambda i: (i, 0)),
            pl.BlockSpec((Cin, cr3), lambda i: (0, 0)),    # resident weights
            pl.BlockSpec((1, cr3), lambda i: (0, 0)),
            pl.BlockSpec((Cin, cr5), lambda i: (0, 0)),    # resident weights
            pl.BlockSpec((1, cr5), lambda i: (0, 0)),
        ],
        out_specs=(pl.BlockSpec((tm, cr3), lambda i: (i, 0)),
                   pl.BlockSpec((tm, cr5), lambda i: (i, 0))),
        compiler_params=pltpu.CompilerParams(
            dimension_semantics=("parallel",),
            vmem_limit_bytes=32 * 1024 * 1024,
        ),
    )(x2d, w2m, b2m, w3m, b3m)
    return (h2[:M].reshape(N, H, W, cr3), h3[:M].reshape(N, H, W, cr5))


def fused_branches(x_nhwc, h2, h3, w3x3, bias3x3, w5x5, bias5x5):
    """branch1 (max-pool) + branch2b (3x3/s2) + branch3b (5x5/s2) + branch4
    (avg-pool), emitted as one channel-concatenated NHWC tensor."""
    N, H, W, Cin = x_nhwc.shape
    ho = (H + 2 - 3) // 2 + 1
    wo = (W + 2 - 3) // 2 + 1
    cr3, cr5 = h2.shape[-1], h3.shape[-1]
    c3, c5 = w3x3.shape[-1], w5x5.shape[-1]
    ctot = Cin + c3 + c5 + Cin

    xph = _phase_decompose(x_nhwc, pad=1, dtype=jnp.float32)   # pools stay f32
    h2ph = _phase_decompose(h2, pad=1, dtype=COMPUTE_DTYPE)
    h3ph = _phase_decompose(h3, pad=2, dtype=COMPUTE_DTYPE)
    _, _, Hh1, Wh1, _ = xph.shape
    _, _, Hh2, Wh2, _ = h3ph.shape

    w3r = w3x3.reshape(9, cr3, c3).astype(COMPUTE_DTYPE)
    w5r = w5x5.reshape(25, cr5, c5).astype(COMPUTE_DTYPE)
    b3r = bias3x3.reshape(1, c3).astype(jnp.float32)
    b5r = bias5x5.reshape(1, c5).astype(jnp.float32)

    kernel = _make_branch_kernel(H, W, ho, wo)
    return pl.pallas_call(
        kernel,
        out_shape=jax.ShapeDtypeStruct((N, ho, wo, ctot), jnp.float32),
        grid=(N,),
        in_specs=[
            pl.BlockSpec((4, 1, Hh1, Wh1, Cin), lambda n: (0, n, 0, 0, 0)),
            pl.BlockSpec((4, 1, Hh1, Wh1, cr3), lambda n: (0, n, 0, 0, 0)),
            pl.BlockSpec((4, 1, Hh2, Wh2, cr5), lambda n: (0, n, 0, 0, 0)),
            pl.BlockSpec((9, cr3, c3), lambda n: (0, 0, 0)),       # resident
            pl.BlockSpec((1, c3), lambda n: (0, 0)),
            pl.BlockSpec((25, cr5, c5), lambda n: (0, 0, 0)),      # resident
            pl.BlockSpec((1, c5), lambda n: (0, 0)),
        ],
        out_specs=pl.BlockSpec((1, ho, wo, ctot), lambda n: (n, 0, 0, 0)),
        compiler_params=pltpu.CompilerParams(
            dimension_semantics=("parallel",),
            vmem_limit_bytes=32 * 1024 * 1024,
        ),
    )(xph, h2ph, h3ph, w3r, b3r, w5r, b5r)


def reduction_a_forward(x_nchw, p):
    x = jnp.transpose(x_nchw, (0, 2, 3, 1))   # NCHW -> NHWC (channels on lanes)

    w2a, bias2a = fold_conv_bn(p["w2a"], p["b2a"], p["g2a"], p["be2a"], p["m2a"], p["v2a"])
    w3a, bias3a = fold_conv_bn(p["w3a"], p["b3a"], p["g3a"], p["be3a"], p["m3a"], p["v3a"])
    w2b, bias2b = fold_conv_bn(p["w2b"], p["b2b"], p["g2b"], p["be2b"], p["m2b"], p["v2b"])
    w3b, bias3b = fold_conv_bn(p["w3b"], p["b3b"], p["g3b"], p["be3b"], p["m3b"], p["v3b"])

    h2, h3 = conv1x1_dual_relu(x, w2a, bias2a, w3a, bias3a)       # bf16 intermediates
    out_nhwc = fused_branches(x, h2, h3, w2b, bias2b, w3b, bias3b)

    # TODO(synk): callers able to consume NHWC should skip this final relayout.
    return jnp.transpose(out_nhwc, (0, 3, 1, 2))


# ----------------------------------------------------------------------------
# Pure-JAX references (independent code paths) for self-check
# ----------------------------------------------------------------------------
def _ref_pools(x):
    pad_cfg = [(0, 0), (1, 1), (1, 1), (0, 0)]
    b1 = lax.reduce_window(x, -jnp.inf, lax.max, (1, 3, 3, 1), (1, 2, 2, 1), pad_cfg)
    s4 = lax.reduce_window(x, 0.0, lax.add, (1, 3, 3, 1), (1, 2, 2, 1), pad_cfg)
    c4 = lax.reduce_window(jnp.ones_like(x[..., :1]), 0.0, lax.add,
                           (1, 3, 3, 1), (1, 2, 2, 1), pad_cfg)
    return b1, s4 / c4


def _mirror_conv(x, w_scaled, bias, stride, pad):
    """Same precision choices as the Pallas path (bf16 operands, f32 accum)."""
    y = lax.conv_general_dilated(
        x.astype(COMPUTE_DTYPE), w_scaled.astype(COMPUTE_DTYPE),
        (stride, stride), [(pad, pad), (pad, pad)],
        dimension_numbers=("NHWC", "HWIO", "NHWC"),
        preferred_element_type=jnp.float32)
    return jnp.maximum(y + bias, 0.0)


def _ref_forward_mirror(x_nchw, p):
    x = jnp.transpose(x_nchw, (0, 2, 3, 1))
    b1, b4 = _ref_pools(x)
    w2a, bias2a = fold_conv_bn(p["w2a"], p["b2a"], p["g2a"], p["be2a"], p["m2a"], p["v2a"])
    w3a, bias3a = fold_conv_bn(p["w3a"], p["b3a"], p["g3a"], p["be3a"], p["m3a"], p["v3a"])
    h2 = _mirror_conv(x, w2a, bias2a, 1, 0).astype(COMPUTE_DTYPE)   # bf16, like the kernel
    h3 = _mirror_conv(x, w3a, bias3a, 1, 0).astype(COMPUTE_DTYPE)
    w2b, bias2b = fold_conv_bn(p["w2b"], p["b2b"], p["g2b"], p["be2b"], p["m2b"], p["v2b"])
    w3b, bias3b = fold_conv_bn(p["w3b"], p["b3b"], p["g3b"], p["be3b"], p["m3b"], p["v3b"])
    b2 = _mirror_conv(h2, w2b, bias2b, 2, 1)
    b3 = _mirror_conv(h3, w3b, bias3b, 2, 2)
    out = jnp.concatenate([b1, b2, b3, b4], axis=-1)
    return jnp.transpose(out, (0, 3, 1, 2))


def _ref_conv_bn_relu_f32(x, w, b, g, be, m, v, stride, pad, eps=1e-5):
    y = lax.conv_general_dilated(
        x, w, (stride, stride), [(pad, pad), (pad, pad)],
        dimension_numbers=("NHWC", "HWIO", "NHWC"))
    y = y + b
    y = (y - m) / jnp.sqrt(v + eps) * g + be
    return jnp.maximum(y, 0.0)


def _ref_forward_f32(x_nchw, p):
    x = jnp.transpose(x_nchw, (0, 2, 3, 1))
    b1, b4 = _ref_pools(x)
    h2 = _ref_conv_bn_relu_f32(x, p["w2a"], p["b2a"], p["g2a"], p["be2a"], p["m2a"], p["v2a"], 1, 0)
    b2 = _ref_conv_bn_relu_f32(h2, p["w2b"], p["b2b"], p["g2b"], p["be2b"], p["m2b"], p["v2b"], 2, 1)
    h3 = _ref_conv_bn_relu_f32(x, p["w3a"], p["b3a"], p["g3a"], p["be3a"], p["m3a"], p["v3a"], 1, 0)
    b3 = _ref_conv_bn_relu_f32(h3, p["w3b"], p["b3b"], p["g3b"], p["be3b"], p["m3b"], p["v3b"], 2, 2)
    out = jnp.concatenate([b1, b2, b3, b4], axis=-1)
    return jnp.transpose(out, (0, 3, 1, 2))


# ----------------------------------------------------------------------------
# Deterministic parameter construction
# ----------------------------------------------------------------------------
def _make_params(key, cin, cr3, c3, cr5, c5):
    ks = jax.random.split(key, 24)
    it = iter(ks)

    def conv_bn(k, cin_, cout_):
        return dict(
            w=jax.random.normal(next(it), (k, k, cin_, cout_), jnp.float32) * 0.1,
            b=jax.random.normal(next(it), (cout_,), jnp.float32) * 0.1,
            g=1.0 + 0.1 * jax.random.normal(next(it), (cout_,), jnp.float32),
            be=0.1 * jax.random.normal(next(it), (cout_,), jnp.float32),
            m=0.05 * jax.random.normal(next(it), (cout_,), jnp.float32),
            v=0.5 + jax.random.uniform(next(it), (cout_,), jnp.float32),
        )

    p2a = conv_bn(1, cin, cr3)
    p2b = conv_bn(3, cr3, c3)
    p3a = conv_bn(1, cin, cr5)
    p3b = conv_bn(5, cr5, c5)
    p = {}
    for tag, d in (("2a", p2a), ("2b", p2b), ("3a", p3a), ("3b", p3b)):
        p["w" + tag] = d["w"]; p["b" + tag] = d["b"]
        p["g" + tag] = d["g"]; p["be" + tag] = d["be"]
        p["m" + tag] = d["m"]; p["v" + tag] = d["v"]
    return p


if __name__ == "__main__":
    key = jax.random.PRNGKey(0)
    k_x, k_p = jax.random.split(key)

    # Small shapes consistent with the module: N=2, C_in=8, H=W=16
    N, C_in, H, W = 2, 8, 16, 16
    conv3x3_reduce, conv3x3 = 8, 16
    conv5x5_reduce, conv5x5 = 8, 16
    # pool_channels argument is unused by the PyTorch module (branch4 has no conv).

    x = jax.random.normal(k_x, (N, C_in, H, W), jnp.float32)
    params = _make_params(k_p, C_in, conv3x3_reduce, conv3x3, conv5x5_reduce, conv5x5)

    fwd = jax.jit(reduction_a_forward)
    out = jax.block_until_ready(fwd(x, params))

    expected_shape = (N, C_in + conv3x3 + conv5x5 + C_in, H // 2, W // 2)
    assert out.shape == expected_shape, (out.shape, expected_shape)

    # Tight check: lax reference with the same folded-BN / bf16-operand choices.
    ref_m = jax.block_until_ready(_ref_forward_mirror(x, params))
    err_m = float(jnp.max(jnp.abs(out - ref_m)))
    assert jnp.allclose(out, ref_m, atol=5e-3, rtol=5e-3), err_m

    # Loose check: raw float32 conv + unfused BatchNorm semantics.
    ref_f = jax.block_until_ready(_ref_forward_f32(x, params))
    err_f = float(jnp.max(jnp.abs(out - ref_f)))
    assert jnp.allclose(out, ref_f, atol=5e-2, rtol=5e-2), err_f

    print("KERNEL_OK")
</pallas_src>

<mosaic_0001>
module attributes {stable_mosaic.version = 11 : i64} {
  func.func @_conv1x1_dual_kernel(%arg0: i32, %arg1: memref<256x8xf32, #tpu.memory_space<vmem>>, %arg2: memref<8x8xbf16, #tpu.memory_space<vmem>>, %arg3: memref<1x8xf32, #tpu.memory_space<vmem>>, %arg4: memref<8x8xbf16, #tpu.memory_space<vmem>>, %arg5: memref<1x8xf32, #tpu.memory_space<vmem>>, %arg6: memref<256x8xbf16, #tpu.memory_space<vmem>>, %arg7: memref<256x8xbf16, #tpu.memory_space<vmem>>) attributes {dimension_semantics = [#tpu.dimension_semantics<parallel>], iteration_bounds = array<i64: 2>, scalar_prefetch = 0 : i64, scratch_operands = 0 : i64, tpu.core_type = #tpu.core_type<tc>, window_params = [{transform_indices = @transform_0, window_bounds = array<i64: 256, 8>}, {pipeline_mode = #tpu.pipeline_mode<synchronous>, transform_indices = @transform_1, window_bounds = array<i64: 8, 8>}, {pipeline_mode = #tpu.pipeline_mode<synchronous>, transform_indices = @transform_2, window_bounds = array<i64: 1, 8>}, {pipeline_mode = #tpu.pipeline_mode<synchronous>, transform_indices = @transform_3, window_bounds = array<i64: 8, 8>}, {pipeline_mode = #tpu.pipeline_mode<synchronous>, transform_indices = @transform_4, window_bounds = array<i64: 1, 8>}, {transform_indices = @transform_5, window_bounds = array<i64: 256, 8>}, {transform_indices = @transform_6, window_bounds = array<i64: 256, 8>}]} {
    %c0 = arith.constant 0 : index
    %c0_0 = arith.constant 0 : index
    %0 = vector.load %arg1[%c0, %c0_0] : memref<256x8xf32, #tpu.memory_space<vmem>>, vector<256x8xf32>
    %1 = arith.truncf %0 : vector<256x8xf32> to vector<256x8xbf16>
    %c0_1 = arith.constant 0 : index
    %c0_2 = arith.constant 0 : index
    %2 = vector.load %arg2[%c0_1, %c0_2] : memref<8x8xbf16, #tpu.memory_space<vmem>>, vector<8x8xbf16>
    %cst = arith.constant dense<0.000000e+00> : vector<256x8xf32>
    %3 = tpu.matmul %1, %2, %cst {dimension_numbers = #tpu.dot_dimension_numbers<[1], [0], [0], [1], [0, 0, 1, 1], [], []>} : vector<256x8xbf16>, vector<8x8xbf16>, vector<256x8xf32> -> vector<256x8xf32>
    %c0_3 = arith.constant 0 : index
    %c0_4 = arith.constant 0 : index
    %4 = vector.load %arg3[%c0_3, %c0_4] : memref<1x8xf32, #tpu.memory_space<vmem>>, vector<1x8xf32>
    %5 = vector.broadcast %4 : vector<1x8xf32> to vector<256x8xf32>
    %6 = arith.addf %3, %5 : vector<256x8xf32>
    %cst_5 = arith.constant 0.000000e+00 : f32
    %7 = vector.broadcast %cst_5 : f32 to vector<256x8xf32>
    %8 = arith.maximumf %6, %7 : vector<256x8xf32>
    %9 = arith.truncf %8 : vector<256x8xf32> to vector<256x8xbf16>
    %c0_6 = arith.constant 0 : index
    %c0_7 = arith.constant 0 : index
    %10 = vector.load %arg6[%c0_6, %c0_7] : memref<256x8xbf16, #tpu.memory_space<vmem>>, vector<256x8xbf16>
    tpu.vector_store %arg6[%c0_6, %c0_7], %9 {strides = array<i32>} : memref<256x8xbf16, #tpu.memory_space<vmem>>, vector<256x8xbf16>,
    %c0_8 = arith.constant 0 : index
    %c0_9 = arith.constant 0 : index
    %11 = vector.load %arg4[%c0_8, %c0_9] : memref<8x8xbf16, #tpu.memory_space<vmem>>, vector<8x8xbf16>
    %cst_10 = arith.constant dense<0.000000e+00> : vector<256x8xf32>
    %12 = tpu.matmul %1, %11, %cst_10 {dimension_numbers = #tpu.dot_dimension_numbers<[1], [0], [0], [1], [0, 0, 1, 1], [], []>} : vector<256x8xbf16>, vector<8x8xbf16>, vector<256x8xf32> -> vector<256x8xf32>
    %c0_11 = arith.constant 0 : index
    %c0_12 = arith.constant 0 : index
    %13 = vector.load %arg5[%c0_11, %c0_12] : memref<1x8xf32, #tpu.memory_space<vmem>>, vector<1x8xf32>
    %14 = vector.broadcast %13 : vector<1x8xf32> to vector<256x8xf32>
    %15 = arith.addf %12, %14 : vector<256x8xf32>
    %cst_13 = arith.constant 0.000000e+00 : f32
    %16 = vector.broadcast %cst_13 : f32 to vector<256x8xf32>
    %17 = arith.maximumf %15, %16 : vector<256x8xf32>
    %18 = arith.truncf %17 : vector<256x8xf32> to vector<256x8xbf16>
    %c0_14 = arith.constant 0 : index
    %c0_15 = arith.constant 0 : index
    %19 = vector.load %arg7[%c0_14, %c0_15] : memref<256x8xbf16, #tpu.memory_space<vmem>>, vector<256x8xbf16>
    tpu.vector_store %arg7[%c0_14, %c0_15], %18 {strides = array<i32>} : memref<256x8xbf16, #tpu.memory_space<vmem>>, vector<256x8xbf16>,
    return
  }
  func.func @transform_0(%arg0: i32) -> (i32, i32) {
    %c0_i32 = arith.constant 0 : i32
    %c0_i32_0 = arith.constant 0 : i32
    return %arg0, %c0_i32 : i32, i32
  }
  func.func @transform_1(%arg0: i32) -> (i32, i32) {
    %c0_i32 = arith.constant 0 : i32
    %c0_i32_0 = arith.constant 0 : i32
    %c0_i32_1 = arith.constant 0 : i32
    return %c0_i32, %c0_i32_0 : i32, i32
  }
  func.func @transform_2(%arg0: i32) -> (i32, i32) {
    %c0_i32 = arith.constant 0 : i32
    %c0_i32_0 = arith.constant 0 : i32
    %c0_i32_1 = arith.constant 0 : i32
    return %c0_i32, %c0_i32_0 : i32, i32
  }
  func.func @transform_3(%arg0: i32) -> (i32, i32) {
    %c0_i32 = arith.constant 0 : i32
    %c0_i32_0 = arith.constant 0 : i32
    %c0_i32_1 = arith.constant 0 : i32
    return %c0_i32, %c0_i32_0 : i32, i32
  }
  func.func @transform_4(%arg0: i32) -> (i32, i32) {
    %c0_i32 = arith.constant 0 : i32
    %c0_i32_0 = arith.constant 0 : i32
    %c0_i32_1 = arith.constant 0 : i32
    return %c0_i32, %c0_i32_0 : i32, i32
  }
  func.func @transform_5(%arg0: i32) -> (i32, i32) {
    %c0_i32 = arith.constant 0 : i32
    %c0_i32_0 = arith.constant 0 : i32
    return %arg0, %c0_i32 : i32, i32
  }
  func.func @transform_6(%arg0: i32) -> (i32, i32) {
    %c0_i32 = arith.constant 0 : i32
    %c0_i32_0 = arith.constant 0 : i32
    return %arg0, %c0_i32 : i32, i32
  }
}

module attributes {stable_mosaic.version = 11 : i64} {
  func.func @kernel(%arg0: i32, %arg1: memref<4x1x9x9x8xf32, #tpu.memory_space<vmem>>, %arg2: memref<4x1x9x9x8xbf16, #tpu.memory_space<vmem>>, %arg3: memref<4x1x10x10x8xbf16, #tpu.memory_space<vmem>>, %arg4: memref<9x8x16xbf16, #tpu.memory_space<vmem>>, %arg5: memref<1x16xf32, #tpu.memory_space<vmem>>, %arg6: memref<25x8x16xbf16, #tpu.memory_space<vmem>>, %arg7: memref<1x16xf32, #tpu.memory_space<vmem>>, %arg8: memref<1x8x8x48xf32, #tpu.memory_space<vmem>>) attributes {dimension_semantics = [#tpu.dimension_semantics<parallel>], iteration_bounds = array<i64: 2>, scalar_prefetch = 0 : i64, scratch_operands = 0 : i64, tpu.core_type = #tpu.core_type<tc>, window_params = [{transform_indices = @transform_0, window_bounds = array<i64: 4, 1, 9, 9, 8>}, {transform_indices = @transform_1, window_bounds = array<i64: 4, 1, 9, 9, 8>}, {transform_indices = @transform_2, window_bounds = array<i64: 4, 1, 10, 10, 8>}, {pipeline_mode = #tpu.pipeline_mode<synchronous>, transform_indices = @transform_3, window_bounds = array<i64: 9, 8, 16>}, {pipeline_mode = #tpu.pipeline_mode<synchronous>, transform_indices = @transform_4, window_bounds = array<i64: 1, 16>}, {pipeline_mode = #tpu.pipeline_mode<synchronous>, transform_indices = @transform_5, window_bounds = array<i64: 25, 8, 16>}, {pipeline_mode = #tpu.pipeline_mode<synchronous>, transform_indices = @transform_6, window_bounds = array<i64: 1, 16>}, {transform_indices = @transform_7, window_bounds = array<i64: 1, 8, 8, 48>}]} {
    %0 = tpu.iota {dimensions = array<i32: 0>} : vector<8x8x1xi32>
    %1 = tpu.iota {dimensions = array<i32: 1>} : vector<8x8x1xi32>
    %c0 = arith.constant 0 : index
    %c0_0 = arith.constant 0 : index
    %c0_1 = arith.constant 0 : index
    %c0_2 = arith.constant 0 : index
    %c0_3 = arith.constant 0 : index
    %2 = vector.load %arg1[%c0, %c0_0, %c0_1, %c0_2, %c0_3] : memref<4x1x9x9x8xf32, #tpu.memory_space<vmem>>, vector<1x1x8x8x8xf32>
    %3 = vector.shape_cast %2 : vector<1x1x8x8x8xf32> to vector<8x8x8xf32>
    %c2_i32 = arith.constant 2 : i32
    %4 = vector.broadcast %c2_i32 : i32 to vector<8x8x1xi32>
    %5 = arith.muli %4, %0 : vector<8x8x1xi32>
    %c-1_i32 = arith.constant -1 : i32
    %6 = vector.broadcast %c-1_i32 : i32 to vector<8x8x1xi32>
    %7 = arith.addi %5, %6 : vector<8x8x1xi32>
    %c2_i32_4 = arith.constant 2 : i32
    %8 = vector.broadcast %c2_i32_4 : i32 to vector<8x8x1xi32>
    %9 = arith.muli %8, %1 : vector<8x8x1xi32>
    %c-1_i32_5 = arith.constant -1 : i32
    %10 = vector.broadcast %c-1_i32_5 : i32 to vector<8x8x1xi32>
    %11 = arith.addi %9, %10 : vector<8x8x1xi32>
    %c0_i32 = arith.constant 0 : i32
    %12 = vector.broadcast %c0_i32 : i32 to vector<8x8x1xi32>
    %13 = arith.cmpi sge, %7, %12 : vector<8x8x1xi32>
    %c16_i32 = arith.constant 16 : i32
    %14 = vector.broadcast %c16_i32 : i32 to vector<8x8x1xi32>
    %15 = arith.cmpi slt, %7, %14 : vector<8x8x1xi32>
    %16 = arith.andi %13, %15 : vector<8x8x1xi1>
    %c0_i32_6 = arith.constant 0 : i32
    %17 = vector.broadcast %c0_i32_6 : i32 to vector<8x8x1xi32>
    %18 = arith.cmpi sge, %11, %17 : vector<8x8x1xi32>
    %19 = arith.andi %16, %18 : vector<8x8x1xi1>
    %c16_i32_7 = arith.constant 16 : i32
    %20 = vector.broadcast %c16_i32_7 : i32 to vector<8x8x1xi32>
    %21 = arith.cmpi slt, %11, %20 : vector<8x8x1xi32>
    %22 = arith.andi %19, %21 : vector<8x8x1xi1>
    %cst = arith.constant 0xFF800000 : f32
    %23 = vector.shape_cast %22 : vector<8x8x1xi1> to vector<8x8x1xi1>
    %24 = vector.broadcast %23 : vector<8x8x1xi1> to vector<8x8x8xi1>
    %25 = vector.broadcast %cst : f32 to vector<8x8x8xf32>
    %26 = arith.select %24, %3, %25 : vector<8x8x8xi1>, vector<8x8x8xf32>
    %27 = arith.extui %22 : vector<8x8x1xi1> to vector<8x8x1xi32>
    %28 = arith.sitofp %27 : vector<8x8x1xi32> to vector<8x8x1xf32>
    %c1 = arith.constant 1 : index
    %c0_8 = arith.constant 0 : index
    %c0_9 = arith.constant 0 : index
    %c0_10 = arith.constant 0 : index
    %c0_11 = arith.constant 0 : index
    %29 = vector.load %arg1[%c1, %c0_8, %c0_9, %c0_10, %c0_11] : memref<4x1x9x9x8xf32, #tpu.memory_space<vmem>>, vector<1x1x8x8x8xf32>
    %30 = vector.shape_cast %29 : vector<1x1x8x8x8xf32> to vector<8x8x8xf32>
    %c2_i32_12 = arith.constant 2 : i32
    %31 = vector.broadcast %c2_i32_12 : i32 to vector<8x8x1xi32>
    %32 = arith.muli %31, %0 : vector<8x8x1xi32>
    %c-1_i32_13 = arith.constant -1 : i32
    %33 = vector.broadcast %c-1_i32_13 : i32 to vector<8x8x1xi32>
    %34 = arith.addi %32, %33 : vector<8x8x1xi32>
    %c2_i32_14 = arith.constant 2 : i32
    %35 = vector.broadcast %c2_i32_14 : i32 to vector<8x8x1xi32>
    %36 = arith.muli %35, %1 : vector<8x8x1xi32>
    %c0_i32_15 = arith.constant 0 : i32
    %37 = vector.broadcast %c0_i32_15 : i32 to vector<8x8x1xi32>
    %38 = arith.addi %36, %37 : vector<8x8x1xi32>
    %c0_i32_16 = arith.constant 0 : i32
    %39 = vector.broadcast %c0_i32_16 : i32 to vector<8x8x1xi32>
    %40 = arith.cmpi sge, %34, %39 : vector<8x8x1xi32>
    %c16_i32_17 = arith.constant 16 : i32
    %41 = vector.broadcast %c16_i32_17 : i32 to vector<8x8x1xi32>
    %42 = arith.cmpi slt, %34, %41 : vector<8x8x1xi32>
    %43 = arith.andi %40, %42 : vector<8x8x1xi1>
    %c0_i32_18 = arith.constant 0 : i32
    %44 = vector.broadcast %c0_i32_18 : i32 to vector<8x8x1xi32>
    %45 = arith.cmpi sge, %38, %44 : vector<8x8x1xi32>
    %46 = arith.andi %43, %45 : vector<8x8x1xi1>
    %c16_i32_19 = arith.constant 16 : i32
    %47 = vector.broadcast %c16_i32_19 : i32 to vector<8x8x1xi32>
    %48 = arith.cmpi slt, %38, %47 : vector<8x8x1xi32>
    %49 = arith.andi %46, %48 : vector<8x8x1xi1>
    %cst_20 = arith.constant 0xFF800000 : f32
    %50 = vector.shape_cast %49 : vector<8x8x1xi1> to vector<8x8x1xi1>
    %51 = vector.broadcast %50 : vector<8x8x1xi1> to vector<8x8x8xi1>
    %52 = vector.broadcast %cst_20 : f32 to vector<8x8x8xf32>
    %53 = arith.select %51, %30, %52 : vector<8x8x8xi1>, vector<8x8x8xf32>
    %54 = arith.extui %49 : vector<8x8x1xi1> to vector<8x8x1xi32>
    %55 = arith.sitofp %54 : vector<8x8x1xi32> to vector<8x8x1xf32>
    %56 = arith.maximumf %26, %53 : vector<8x8x8xf32>
    %57 = arith.addf %3, %30 : vector<8x8x8xf32>
    %58 = arith.addf %28, %55 : vector<8x8x1xf32>
    %c0_21 = arith.constant 0 : index
    %c0_22 = arith.constant 0 : index
    %c0_23 = arith.constant 0 : index
    %c1_24 = arith.constant 1 : index
    %c0_25 = arith.constant 0 : index
    %59 = vector.load %arg1[%c0_21, %c0_22, %c0_23, %c1_24, %c0_25] : memref<4x1x9x9x8xf32, #tpu.memory_space<vmem>>, vector<1x1x8x8x8xf32>
    %60 = vector.shape_cast %59 : vector<1x1x8x8x8xf32> to vector<8x8x8xf32>
    %c2_i32_26 = arith.constant 2 : i32
    %61 = vector.broadcast %c2_i32_26 : i32 to vector<8x8x1xi32>
    %62 = arith.muli %61, %0 : vector<8x8x1xi32>
    %c-1_i32_27 = arith.constant -1 : i32
    %63 = vector.broadcast %c-1_i32_27 : i32 to vector<8x8x1xi32>
    %64 = arith.addi %62, %63 : vector<8x8x1xi32>
    %c2_i32_28 = arith.constant 2 : i32
    %65 = vector.broadcast %c2_i32_28 : i32 to vector<8x8x1xi32>
    %66 = arith.muli %65, %1 : vector<8x8x1xi32>
    %c1_i32 = arith.constant 1 : i32
    %67 = vector.broadcast %c1_i32 : i32 to vector<8x8x1xi32>
    %68 = arith.addi %66, %67 : vector<8x8x1xi32>
    %c0_i32_29 = arith.constant 0 : i32
    %69 = vector.broadcast %c0_i32_29 : i32 to vector<8x8x1xi32>
    %70 = arith.cmpi sge, %64, %69 : vector<8x8x1xi32>
    %c16_i32_30 = arith.constant 16 : i32
    %71 = vector.broadcast %c16_i32_30 : i32 to vector<8x8x1xi32>
    %72 = arith.cmpi slt, %64, %71 : vector<8x8x1xi32>
    %73 = arith.andi %70, %72 : vector<8x8x1xi1>
    %c0_i32_31 = arith.constant 0 : i32
    %74 = vector.broadcast %c0_i32_31 : i32 to vector<8x8x1xi32>
    %75 = arith.cmpi sge, %68, %74 : vector<8x8x1xi32>
    %76 = arith.andi %73, %75 : vector<8x8x1xi1>
    %c16_i32_32 = arith.constant 16 : i32
    %77 = vector.broadcast %c16_i32_32 : i32 to vector<8x8x1xi32>
    %78 = arith.cmpi slt, %68, %77 : vector<8x8x1xi32>
    %79 = arith.andi %76, %78 : vector<8x8x1xi1>
    %cst_33 = arith.constant 0xFF800000 : f32
    %80 = vector.shape_cast %79 : vector<8x8x1xi1> to vector<8x8x1xi1>
    %81 = vector.broadcast %80 : vector<8x8x1xi1> to vector<8x8x8xi1>
    %82 = vector.broadcast %cst_33 : f32 to vector<8x8x8xf32>
    %83 = arith.select %81, %60, %82 : vector<8x8x8xi1>, vector<8x8x8xf32>
    %84 = arith.extui %79 : vector<8x8x1xi1> to vector<8x8x1xi32>
    %85 = arith.sitofp %84 : vector<8x8x1xi32> to vector<8x8x1xf32>
    %86 = arith.maximumf %56, %83 : vector<8x8x8xf32>
    %87 = arith.addf %57, %60 : vector<8x8x8xf32>
    %88 = arith.addf %58, %85 : vector<8x8x1xf32>
    %c2 = arith.constant 2 : index
    %c0_34 = arith.constant 0 : index
    %c0_35 = arith.constant 0 : index
    %c0_36 = arith.constant 0 : index
    %c0_37 = arith.constant 0 : index
    %89 = vector.load %arg1[%c2, %c0_34, %c0_35, %c0_36, %c0_37] : memref<4x1x9x9x8xf32, #tpu.memory_space<vmem>>, vector<1x1x8x8x8xf32>
    %90 = vector.shape_cast %89 : vector<1x1x8x8x8xf32> to vector<8x8x8xf32>
    %c2_i32_38 = arith.constant 2 : i32
    %91 = vector.broadcast %c2_i32_38 : i32 to vector<8x8x1xi32>
    %92 = arith.muli %91, %0 : vector<8x8x1xi32>
    %c0_i32_39 = arith.constant 0 : i32
    %93 = vector.broadcast %c0_i32_39 : i32 to vector<8x8x1xi32>
    %94 = arith.addi %92, %93 : vector<8x8x1xi32>
    %c2_i32_40 = arith.constant 2 : i32
    %95 = vector.broadcast %c2_i32_40 : i32 to vector<8x8x1xi32>
    %96 = arith.muli %95, %1 : vector<8x8x1xi32>
    %c-1_i32_41 = arith.constant -1 : i32
    %97 = vector.broadcast %c-1_i32_41 : i32 to vector<8x8x1xi32>
    %98 = arith.addi %96, %97 : vector<8x8x1xi32>
    %c0_i32_42 = arith.constant 0 : i32
    %99 = vector.broadcast %c0_i32_42 : i32 to vector<8x8x1xi32>
    %100 = arith.cmpi sge, %94, %99 : vector<8x8x1xi32>
    %c16_i32_43 = arith.constant 16 : i32
    %101 = vector.broadcast %c16_i32_43 : i32 to vector<8x8x1xi32>
    %102 = arith.cmpi slt, %94, %101 : vector<8x8x1xi32>
    %103 = arith.andi %100, %102 : vector<8x8x1xi1>
    %c0_i32_44 = arith.constant 0 : i32
    %104 = vector.broadcast %c0_i32_44 : i32 to vector<8x8x1xi32>
    %105 = arith.cmpi sge, %98, %104 : vector<8x8x1xi32>
    %106 = arith.andi %103, %105 : vector<8x8x1xi1>
    %c16_i32_45 = arith.constant 16 : i32
    %107 = vector.broadcast %c16_i32_45 : i32 to vector<8x8x1xi32>
    %108 = arith.cmpi slt, %98, %107 : vector<8x8x1xi32>
    %109 = arith.andi %106, %108 : vector<8x8x1xi1>
    %cst_46 = arith.constant 0xFF800000 : f32
    %110 = vector.shape_cast %109 : vector<8x8x1xi1> to vector<8x8x1xi1>
    %111 = vector.broadcast %110 : vector<8x8x1xi1> to vector<8x8x8xi1>
    %112 = vector.broadcast %cst_46 : f32 to vector<8x8x8xf32>
    %113 = arith.select %111, %90, %112 : vector<8x8x8xi1>, vector<8x8x8xf32>
    %114 = arith.extui %109 : vector<8x8x1xi1> to vector<8x8x1xi32>
    %115 = arith.sitofp %114 : vector<8x8x1xi32> to vector<8x8x1xf32>
    %116 = arith.maximumf %86, %113 : vector<8x8x8xf32>
    %117 = arith.addf %87, %90 : vector<8x8x8xf32>
    %118 = arith.addf %88, %115 : vector<8x8x1xf32>
    %c3 = arith.constant 3 : index
    %c0_47 = arith.constant 0 : index
    %c0_48 = arith.constant 0 : index
    %c0_49 = arith.constant 0 : index
    %c0_50 = arith.constant 0 : index
    %119 = vector.load %arg1[%c3, %c0_47, %c0_48, %c0_49, %c0_50] : memref<4x1x9x9x8xf32, #tpu.memory_space<vmem>>, vector<1x1x8x8x8xf32>
    %120 = vector.shape_cast %119 : vector<1x1x8x8x8xf32> to vector<8x8x8xf32>
    %c2_i32_51 = arith.constant 2 : i32
    %121 = vector.broadcast %c2_i32_51 : i32 to vector<8x8x1xi32>
    %122 = arith.muli %121, %0 : vector<8x8x1xi32>
    %c0_i32_52 = arith.constant 0 : i32
    %123 = vector.broadcast %c0_i32_52 : i32 to vector<8x8x1xi32>
    %124 = arith.addi %122, %123 : vector<8x8x1xi32>
    %c2_i32_53 = arith.constant 2 : i32
    %125 = vector.broadcast %c2_i32_53 : i32 to vector<8x8x1xi32>
    %126 = arith.muli %125, %1 : vector<8x8x1xi32>
    %c0_i32_54 = arith.constant 0 : i32
    %127 = vector.broadcast %c0_i32_54 : i32 to vector<8x8x1xi32>
    %128 = arith.addi %126, %127 : vector<8x8x1xi32>
    %c0_i32_55 = arith.constant 0 : i32
    %129 = vector.broadcast %c0_i32_55 : i32 to vector<8x8x1xi32>
    %130 = arith.cmpi sge, %124, %129 : vector<8x8x1xi32>
    %c16_i32_56 = arith.constant 16 : i32
    %131 = vector.broadcast %c16_i32_56 : i32 to vector<8x8x1xi32>
    %132 = arith.cmpi slt, %124, %131 : vector<8x8x1xi32>
    %133 = arith.andi %130, %132 : vector<8x8x1xi1>
    %c0_i32_57 = arith.constant 0 : i32
    %134 = vector.broadcast %c0_i32_57 : i32 to vector<8x8x1xi32>
    %135 = arith.cmpi sge, %128, %134 : vector<8x8x1xi32>
    %136 = arith.andi %133, %135 : vector<8x8x1xi1>
    %c16_i32_58 = arith.constant 16 : i32
    %137 = vector.broadcast %c16_i32_58 : i32 to vector<8x8x1xi32>
    %138 = arith.cmpi slt, %128, %137 : vector<8x8x1xi32>
    %139 = arith.andi %136, %138 : vector<8x8x1xi1>
    %cst_59 = arith.constant 0xFF800000 : f32
    %140 = vector.shape_cast %139 : vector<8x8x1xi1> to vector<8x8x1xi1>
    %141 = vector.broadcast %140 : vector<8x8x1xi1> to vector<8x8x8xi1>
    %142 = vector.broadcast %cst_59 : f32 to vector<8x8x8xf32>
    %143 = arith.select %141, %120, %142 : vector<8x8x8xi1>, vector<8x8x8xf32>
    %144 = arith.extui %139 : vector<8x8x1xi1> to vector<8x8x1xi32>
    %145 = arith.sitofp %144 : vector<8x8x1xi32> to vector<8x8x1xf32>
    %146 = arith.maximumf %116, %143 : vector<8x8x8xf32>
    %147 = arith.addf %117, %120 : vector<8x8x8xf32>
    %148 = arith.addf %118, %145 : vector<8x8x1xf32>
    %c2_60 = arith.constant 2 : index
    %c0_61 = arith.constant 0 : index
    %c0_62 = arith.constant 0 : index
    %c1_63 = arith.constant 1 : index
    %c0_64 = arith.constant 0 : index
    %149 = vector.load %arg1[%c2_60, %c0_61, %c0_62, %c1_63, %c0_64] : memref<4x1x9x9x8xf32, #tpu.memory_space<vmem>>, vector<1x1x8x8x8xf32>
    %150 = vector.shape_cast %149 : vector<1x1x8x8x8xf32> to vector<8x8x8xf32>
    %c2_i32_65 = arith.constant 2 : i32
    %151 = vector.broadcast %c2_i32_65 : i32 to vector<8x8x1xi32>
    %152 = arith.muli %151, %0 : vector<8x8x1xi32>
    %c0_i32_66 = arith.constant 0 : i32
    %153 = vector.broadcast %c0_i32_66 : i32 to vector<8x8x1xi32>
    %154 = arith.addi %152, %153 : vector<8x8x1xi32>
    %c2_i32_67 = arith.constant 2 : i32
    %155 = vector.broadcast %c2_i32_67 : i32 to vector<8x8x1xi32>
    %156 = arith.muli %155, %1 : vector<8x8x1xi32>
    %c1_i32_68 = arith.constant 1 : i32
    %157 = vector.broadcast %c1_i32_68 : i32 to vector<8x8x1xi32>
    %158 = arith.addi %156, %157 : vector<8x8x1xi32>
    %c0_i32_69 = arith.constant 0 : i32
    %159 = vector.broadcast %c0_i32_69 : i32 to vector<8x8x1xi32>
    %160 = arith.cmpi sge, %154, %159 : vector<8x8x1xi32>
    %c16_i32_70 = arith.constant 16 : i32
    %161 = vector.broadcast %c16_i32_70 : i32 to vector<8x8x1xi32>
    %162 = arith.cmpi slt, %154, %161 : vector<8x8x1xi32>
    %163 = arith.andi %160, %162 : vector<8x8x1xi1>
    %c0_i32_71 = arith.constant 0 : i32
    %164 = vector.broadcast %c0_i32_71 : i32 to vector<8x8x1xi32>
    %165 = arith.cmpi sge, %158, %164 : vector<8x8x1xi32>
    %166 = arith.andi %163, %165 : vector<8x8x1xi1>
    %c16_i32_72 = arith.constant 16 : i32
    %167 = vector.broadcast %c16_i32_72 : i32 to vector<8x8x1xi32>
    %168 = arith.cmpi slt, %158, %167 : vector<8x8x1xi32>
    %169 = arith.andi %166, %168 : vector<8x8x1xi1>
    %cst_73 = arith.constant 0xFF800000 : f32
    %170 = vector.shape_cast %169 : vector<8x8x1xi1> to vector<8x8x1xi1>
    %171 = vector.broadcast %170 : vector<8x8x1xi1> to vector<8x8x8xi1>
    %172 = vector.broadcast %cst_73 : f32 to vector<8x8x8xf32>
    %173 = arith.select %171, %150, %172 : vector<8x8x8xi1>, vector<8x8x8xf32>
    %174 = arith.extui %169 : vector<8x8x1xi1> to vector<8x8x1xi32>
    %175 = arith.sitofp %174 : vector<8x8x1xi32> to vector<8x8x1xf32>
    %176 = arith.maximumf %146, %173 : vector<8x8x8xf32>
    %177 = arith.addf %147, %150 : vector<8x8x8xf32>
    %178 = arith.addf %148, %175 : vector<8x8x1xf32>
    %c0_74 = arith.constant 0 : index
    %c0_75 = arith.constant 0 : index
    %c1_76 = arith.constant 1 : index
    %c0_77 = arith.constant 0 : index
    %c0_78 = arith.constant 0 : index
    %179 = vector.load %arg1[%c0_74, %c0_75, %c1_76, %c0_77, %c0_78] : memref<4x1x9x9x8xf32, #tpu.memory_space<vmem>>, vector<1x1x8x8x8xf32>
    %180 = vector.shape_cast %179 : vector<1x1x8x8x8xf32> to vector<8x8x8xf32>
    %c2_i32_79 = arith.constant 2 : i32
    %181 = vector.broadcast %c2_i32_79 : i32 to vector<8x8x1xi32>
    %182 = arith.muli %181, %0 : vector<8x8x1xi32>
    %c1_i32_80 = arith.constant 1 : i32
    %183 = vector.broadcast %c1_i32_80 : i32 to vector<8x8x1xi32>
    %184 = arith.addi %182, %183 : vector<8x8x1xi32>
    %c2_i32_81 = arith.constant 2 : i32
    %185 = vector.broadcast %c2_i32_81 : i32 to vector<8x8x1xi32>
    %186 = arith.muli %185, %1 : vector<8x8x1xi32>
    %c-1_i32_82 = arith.constant -1 : i32
    %187 = vector.broadcast %c-1_i32_82 : i32 to vector<8x8x1xi32>
    %188 = arith.addi %186, %187 : vector<8x8x1xi32>
    %c0_i32_83 = arith.constant 0 : i32
    %189 = vector.broadcast %c0_i32_83 : i32 to vector<8x8x1xi32>
    %190 = arith.cmpi sge, %184, %189 : vector<8x8x1xi32>
    %c16_i32_84 = arith.constant 16 : i32
    %191 = vector.broadcast %c16_i32_84 : i32 to vector<8x8x1xi32>
    %192 = arith.cmpi slt, %184, %191 : vector<8x8x1xi32>
    %193 = arith.andi %190, %192 : vector<8x8x1xi1>
    %c0_i32_85 = arith.constant 0 : i32
    %194 = vector.broadcast %c0_i32_85 : i32 to vector<8x8x1xi32>
    %195 = arith.cmpi sge, %188, %194 : vector<8x8x1xi32>
    %196 = arith.andi %193, %195 : vector<8x8x1xi1>
    %c16_i32_86 = arith.constant 16 : i32
    %197 = vector.broadcast %c16_i32_86 : i32 to vector<8x8x1xi32>
    %198 = arith.cmpi slt, %188, %197 : vector<8x8x1xi32>
    %199 = arith.andi %196, %198 : vector<8x8x1xi1>
    %cst_87 = arith.constant 0xFF800000 : f32
    %200 = vector.shape_cast %199 : vector<8x8x1xi1> to vector<8x8x1xi1>
    %201 = vector.broadcast %200 : vector<8x8x1xi1> to vector<8x8x8xi1>
    %202 = vector.broadcast %cst_87 : f32 to vector<8x8x8xf32>
    %203 = arith.select %201, %180, %202 : vector<8x8x8xi1>, vector<8x8x8xf32>
    %204 = arith.extui %199 : vector<8x8x1xi1> to vector<8x8x1xi32>
    %205 = arith.sitofp %204 : vector<8x8x1xi32> to vector<8x8x1xf32>
    %206 = arith.maximumf %176, %203 : vector<8x8x8xf32>
    %207 = arith.addf %177, %180 : vector<8x8x8xf32>
    %208 = arith.addf %178, %205 : vector<8x8x1xf32>
    %c1_88 = arith.constant 1 : index
    %c0_89 = arith.constant 0 : index
    %c1_90 = arith.constant 1 : index
    %c0_91 = arith.constant 0 : index
    %c0_92 = arith.constant 0 : index
    %209 = vector.load %arg1[%c1_88, %c0_89, %c1_90, %c0_91, %c0_92] : memref<4x1x9x9x8xf32, #tpu.memory_space<vmem>>, vector<1x1x8x8x8xf32>
    %210 = vector.shape_cast %209 : vector<1x1x8x8x8xf32> to vector<8x8x8xf32>
    %c2_i32_93 = arith.constant 2 : i32
    %211 = vector.broadcast %c2_i32_93 : i32 to vector<8x8x1xi32>
    %212 = arith.muli %211, %0 : vector<8x8x1xi32>
    %c1_i32_94 = arith.constant 1 : i32
    %213 = vector.broadcast %c1_i32_94 : i32 to vector<8x8x1xi32>
    %214 = arith.addi %212, %213 : vector<8x8x1xi32>
    %c2_i32_95 = arith.constant 2 : i32
    %215 = vector.broadcast %c2_i32_95 : i32 to vector<8x8x1xi32>
    %216 = arith.muli %215, %1 : vector<8x8x1xi32>
    %c0_i32_96 = arith.constant 0 : i32
    %217 = vector.broadcast %c0_i32_96 : i32 to vector<8x8x1xi32>
    %218 = arith.addi %216, %217 : vector<8x8x1xi32>
    %c0_i32_97 = arith.constant 0 : i32
    %219 = vector.broadcast %c0_i32_97 : i32 to vector<8x8x1xi32>
    %220 = arith.cmpi sge, %214, %219 : vector<8x8x1xi32>
    %c16_i32_98 = arith.constant 16 : i32
    %221 = vector.broadcast %c16_i32_98 : i32 to vector<8x8x1xi32>
    %222 = arith.cmpi slt, %214, %221 : vector<8x8x1xi32>
    %223 = arith.andi %220, %222 : vector<8x8x1xi1>
    %c0_i32_99 = arith.constant 0 : i32
    %224 = vector.broadcast %c0_i32_99 : i32 to vector<8x8x1xi32>
    %225 = arith.cmpi sge, %218, %224 : vector<8x8x1xi32>
    %226 = arith.andi %223, %225 : vector<8x8x1xi1>
    %c16_i32_100 = arith.constant 16 : i32
    %227 = vector.broadcast %c16_i32_100 : i32 to vector<8x8x1xi32>
    %228 = arith.cmpi slt, %218, %227 : vector<8x8x1xi32>
    %229 = arith.andi %226, %228 : vector<8x8x1xi1>
    %cst_101 = arith.constant 0xFF800000 : f32
    %230 = vector.shape_cast %229 : vector<8x8x1xi1> to vector<8x8x1xi1>
    %231 = vector.broadcast %230 : vector<8x8x1xi1> to vector<8x8x8xi1>
    %232 = vector.broadcast %cst_101 : f32 to vector<8x8x8xf32>
    %233 = arith.select %231, %210, %232 : vector<8x8x8xi1>, vector<8x8x8xf32>
    %234 = arith.extui %229 : vector<8x8x1xi1> to vector<8x8x1xi32>
    %235 = arith.sitofp %234 : vector<8x8x1xi32> to vector<8x8x1xf32>
    %236 = arith.maximumf %206, %233 : vector<8x8x8xf32>
    %237 = arith.addf %207, %210 : vector<8x8x8xf32>
    %238 = arith.addf %208, %235 : vector<8x8x1xf32>
    %c0_102 = arith.constant 0 : index
    %c0_103 = arith.constant 0 : index
    %c1_104 = arith.constant 1 : index
    %c1_105 = arith.constant 1 : index
    %c0_106 = arith.constant 0 : index
    %239 = vector.load %arg1[%c0_102, %c0_103, %c1_104, %c1_105, %c0_106] : memref<4x1x9x9x8xf32, #tpu.memory_space<vmem>>, vector<1x1x8x8x8xf32>
    %240 = vector.shape_cast %239 : vector<1x1x8x8x8xf32> to vector<8x8x8xf32>
    %c2_i32_107 = arith.constant 2 : i32
    %241 = vector.broadcast %c2_i32_107 : i32 to vector<8x8x1xi32>
    %242 = arith.muli %241, %0 : vector<8x8x1xi32>
    %c1_i32_108 = arith.constant 1 : i32
    %243 = vector.broadcast %c1_i32_108 : i32 to vector<8x8x1xi32>
    %244 = arith.addi %242, %243 : vector<8x8x1xi32>
    %c2_i32_109 = arith.constant 2 : i32
    %245 = vector.broadcast %c2_i32_109 : i32 to vector<8x8x1xi32>
    %246 = arith.muli %245, %1 : vector<8x8x1xi32>
    %c1_i32_110 = arith.constant 1 : i32
    %247 = vector.broadcast %c1_i32_110 : i32 to vector<8x8x1xi32>
    %248 = arith.addi %246, %247 : vector<8x8x1xi32>
    %c0_i32_111 = arith.constant 0 : i32
    %249 = vector.broadcast %c0_i32_111 : i32 to vector<8x8x1xi32>
    %250 = arith.cmpi sge, %244, %249 : vector<8x8x1xi32>
    %c16_i32_112 = arith.constant 16 : i32
    %251 = vector.broadcast %c16_i32_112 : i32 to vector<8x8x1xi32>
    %252 = arith.cmpi slt, %244, %251 : vector<8x8x1xi32>
    %253 = arith.andi %250, %252 : vector<8x8x1xi1>
    %c0_i32_113 = arith.constant 0 : i32
    %254 = vector.broadcast %c0_i32_113 : i32 to vector<8x8x1xi32>
    %255 = arith.cmpi sge, %248, %254 : vector<8x8x1xi32>
    %256 = arith.andi %253, %255 : vector<8x8x1xi1>
    %c16_i32_114 = arith.constant 16 : i32
    %257 = vector.broadcast %c16_i32_114 : i32 to vector<8x8x1xi32>
    %258 = arith.cmpi slt, %248, %257 : vector<8x8x1xi32>
    %259 = arith.andi %256, %258 : vector<8x8x1xi1>
    %cst_115 = arith.constant 0xFF800000 : f32
    %260 = vector.shape_cast %259 : vector<8x8x1xi1> to vector<8x8x1xi1>
    %261 = vector.broadcast %260 : vector<8x8x1xi1> to vector<8x8x8xi1>
    %262 = vector.broadcast %cst_115 : f32 to vector<8x8x8xf32>
    %263 = arith.select %261, %240, %262 : vector<8x8x8xi1>, vector<8x8x8xf32>
    %264 = arith.extui %259 : vector<8x8x1xi1> to vector<8x8x1xi32>
    %265 = arith.sitofp %264 : vector<8x8x1xi32> to vector<8x8x1xf32>
    %266 = arith.maximumf %236, %263 : vector<8x8x8xf32>
    %267 = arith.addf %237, %240 : vector<8x8x8xf32>
    %268 = arith.addf %238, %265 : vector<8x8x1xf32>
    %cst_116 = arith.constant 1.000000e+00 : f32
    %269 = vector.broadcast %cst_116 : f32 to vector<8x8x1xf32>
    %270 = arith.divf %269, %268 : vector<8x8x1xf32>
    %271 = vector.broadcast %270 : vector<8x8x1xf32> to vector<8x8x8xf32>
    %272 = arith.mulf %267, %271 : vector<8x8x8xf32>
    %c0_117 = arith.constant 0 : index
    %c0_118 = arith.constant 0 : index
    %c0_119 = arith.constant 0 : index
    %c0_120 = arith.constant 0 : index
    %c0_121 = arith.constant 0 : index
    %273 = vector.load %arg2[%c0_117, %c0_118, %c0_119, %c0_120, %c0_121] : memref<4x1x9x9x8xbf16, #tpu.memory_space<vmem>>, vector<1x1x8x8x8xbf16>
    %274 = vector.shape_cast %273 : vector<1x1x8x8x8xbf16> to vector<8x8x8xbf16>
    %275 = vector.shape_cast %274 : vector<8x8x8xbf16> to vector<64x8xbf16>
    %c0_122 = arith.constant 0 : index
    %c0_123 = arith.constant 0 : index
    %c0_124 = arith.constant 0 : index
    %276 = vector.load %arg4[%c0_122, %c0_123, %c0_124] : memref<9x8x16xbf16, #tpu.memory_space<vmem>>, vector<1x8x16xbf16>
    %277 = vector.shape_cast %276 : vector<1x8x16xbf16> to vector<8x16xbf16>
    %cst_125 = arith.constant dense<0.000000e+00> : vector<64x16xf32>
    %278 = tpu.matmul %275, %277, %cst_125 {dimension_numbers = #tpu.dot_dimension_numbers<[1], [0], [0], [1], [0, 0, 1, 1], [], []>} : vector<64x8xbf16>, vector<8x16xbf16>, vector<64x16xf32> -> vector<64x16xf32>
    %c1_126 = arith.constant 1 : index
    %c0_127 = arith.constant 0 : index
    %c0_128 = arith.constant 0 : index
    %c0_129 = arith.constant 0 : index
    %c0_130 = arith.constant 0 : index
    %279 = vector.load %arg2[%c1_126, %c0_127, %c0_128, %c0_129, %c0_130] : memref<4x1x9x9x8xbf16, #tpu.memory_space<vmem>>, vector<1x1x8x8x8xbf16>
    %280 = vector.shape_cast %279 : vector<1x1x8x8x8xbf16> to vector<8x8x8xbf16>
    %281 = vector.shape_cast %280 : vector<8x8x8xbf16> to vector<64x8xbf16>
    %c1_131 = arith.constant 1 : index
    %c0_132 = arith.constant 0 : index
    %c0_133 = arith.constant 0 : index
    %282 = vector.load %arg4[%c1_131, %c0_132, %c0_133] : memref<9x8x16xbf16, #tpu.memory_space<vmem>>, vector<1x8x16xbf16>
    %283 = vector.shape_cast %282 : vector<1x8x16xbf16> to vector<8x16xbf16>
    %cst_134 = arith.constant dense<0.000000e+00> : vector<64x16xf32>
    %284 = tpu.matmul %281, %283, %cst_134 {dimension_numbers = #tpu.dot_dimension_numbers<[1], [0], [0], [1], [0, 0, 1, 1], [], []>} : vector<64x8xbf16>, vector<8x16xbf16>, vector<64x16xf32> -> vector<64x16xf32>
    %285 = arith.addf %278, %284 : vector<64x16xf32>
    %c0_135 = arith.constant 0 : index
    %c0_136 = arith.constant 0 : index
    %c0_137 = arith.constant 0 : index
    %c1_138 = arith.constant 1 : index
    %c0_139 = arith.constant 0 : index
    %286 = vector.load %arg2[%c0_135, %c0_136, %c0_137, %c1_138, %c0_139] : memref<4x1x9x9x8xbf16, #tpu.memory_space<vmem>>, vector<1x1x8x8x8xbf16>
    %287 = vector.shape_cast %286 : vector<1x1x8x8x8xbf16> to vector<8x8x8xbf16>
    %288 = vector.shape_cast %287 : vector<8x8x8xbf16> to vector<64x8xbf16>
    %c2_140 = arith.constant 2 : index
    %c0_141 = arith.constant 0 : index
    %c0_142 = arith.constant 0 : index
    %289 = vector.load %arg4[%c2_140, %c0_141, %c0_142] : memref<9x8x16xbf16, #tpu.memory_space<vmem>>, vector<1x8x16xbf16>
    %290 = vector.shape_cast %289 : vector<1x8x16xbf16> to vector<8x16xbf16>
    %cst_143 = arith.constant dense<0.000000e+00> : vector<64x16xf32>
    %291 = tpu.matmul %288, %290, %cst_143 {dimension_numbers = #tpu.dot_dimension_numbers<[1], [0], [0], [1], [0, 0, 1, 1], [], []>} : vector<64x8xbf16>, vector<8x16xbf16>, vector<64x16xf32> -> vector<64x16xf32>
    %292 = arith.addf %285, %291 : vector<64x16xf32>
    %c2_144 = arith.constant 2 : index
    %c0_145 = arith.constant 0 : index
    %c0_146 = arith.constant 0 : index
    %c0_147 = arith.constant 0 : index
    %c0_148 = arith.constant 0 : index
    %293 = vector.load %arg2[%c2_144, %c0_145, %c0_146, %c0_147, %c0_148] : memref<4x1x9x9x8xbf16, #tpu.memory_space<vmem>>, vector<1x1x8x8x8xbf16>
    %294 = vector.shape_cast %293 : vector<1x1x8x8x8xbf16> to vector<8x8x8xbf16>
    %295 = vector.shape_cast %294 : vector<8x8x8xbf16> to vector<64x8xbf16>
    %c3_149 = arith.constant 3 : index
    %c0_150 = arith.constant 0 : index
    %c0_151 = arith.constant 0 : index
    %296 = vector.load %arg4[%c3_149, %c0_150, %c0_151] : memref<9x8x16xbf16, #tpu.memory_space<vmem>>, vector<1x8x16xbf16>
    %297 = vector.shape_cast %296 : vector<1x8x16xbf16> to vector<8x16xbf16>
    %cst_152 = arith.constant dense<0.000000e+00> : vector<64x16xf32>
    %298 = tpu.matmul %295, %297, %cst_152 {dimension_numbers = #tpu.dot_dimension_numbers<[1], [0], [0], [1], [0, 0, 1, 1], [], []>} : vector<64x8xbf16>, vector<8x16xbf16>, vector<64x16xf32> -> vector<64x16xf32>
    %299 = arith.addf %292, %298 : vector<64x16xf32>
    %c3_153 = arith.constant 3 : index
    %c0_154 = arith.constant 0 : index
    %c0_155 = arith.constant 0 : index
    %c0_156 = arith.constant 0 : index
    %c0_157 = arith.constant 0 : index
    %300 = vector.load %arg2[%c3_153, %c0_154, %c0_155, %c0_156, %c0_157] : memref<4x1x9x9x8xbf16, #tpu.memory_space<vmem>>, vector<1x1x8x8x8xbf16>
    %301 = vector.shape_cast %300 : vector<1x1x8x8x8xbf16> to vector<8x8x8xbf16>
    %302 = vector.shape_cast %301 : vector<8x8x8xbf16> to vector<64x8xbf16>
    %c4 = arith.constant 4 : index
    %c0_158 = arith.constant 0 : index
    %c0_159 = arith.constant 0 : index
    %303 = vector.load %arg4[%c4, %c0_158, %c0_159] : memref<9x8x16xbf16, #tpu.memory_space<vmem>>, vector<1x8x16xbf16>
    %304 = vector.shape_cast %303 : vector<1x8x16xbf16> to vector<8x16xbf16>
    %cst_160 = arith.constant dense<0.000000e+00> : vector<64x16xf32>
    %305 = tpu.matmul %302, %304, %cst_160 {dimension_numbers = #tpu.dot_dimension_numbers<[1], [0], [0], [1], [0, 0, 1, 1], [], []>} : vector<64x8xbf16>, vector<8x16xbf16>, vector<64x16xf32> -> vector<64x16xf32>
    %306 = arith.addf %299, %305 : vector<64x16xf32>
    %c2_161 = arith.constant 2 : index
    %c0_162 = arith.constant 0 : index
    %c0_163 = arith.constant 0 : index
    %c1_164 = arith.constant 1 : index
    %c0_165 = arith.constant 0 : index
    %307 = vector.load %arg2[%c2_161, %c0_162, %c0_163, %c1_164, %c0_165] : memref<4x1x9x9x8xbf16, #tpu.memory_space<vmem>>, vector<1x1x8x8x8xbf16>
    %308 = vector.shape_cast %307 : vector<1x1x8x8x8xbf16> to vector<8x8x8xbf16>
    %309 = vector.shape_cast %308 : vector<8x8x8xbf16> to vector<64x8xbf16>
    %c5 = arith.constant 5 : index
    %c0_166 = arith.constant 0 : index
    %c0_167 = arith.constant 0 : index
    %310 = vector.load %arg4[%c5, %c0_166, %c0_167] : memref<9x8x16xbf16, #tpu.memory_space<vmem>>, vector<1x8x16xbf16>
    %311 = vector.shape_cast %310 : vector<1x8x16xbf16> to vector<8x16xbf16>
    %cst_168 = arith.constant dense<0.000000e+00> : vector<64x16xf32>
    %312 = tpu.matmul %309, %311, %cst_168 {dimension_numbers = #tpu.dot_dimension_numbers<[1], [0], [0], [1], [0, 0, 1, 1], [], []>} : vector<64x8xbf16>, vector<8x16xbf16>, vector<64x16xf32> -> vector<64x16xf32>
    %313 = arith.addf %306, %312 : vector<64x16xf32>
    %c0_169 = arith.constant 0 : index
    %c0_170 = arith.constant 0 : index
    %c1_171 = arith.constant 1 : index
    %c0_172 = arith.constant 0 : index
    %c0_173 = arith.constant 0 : index
    %314 = vector.load %arg2[%c0_169, %c0_170, %c1_171, %c0_172, %c0_173] : memref<4x1x9x9x8xbf16, #tpu.memory_space<vmem>>, vector<1x1x8x8x8xbf16>
    %315 = vector.shape_cast %314 : vector<1x1x8x8x8xbf16> to vector<8x8x8xbf16>
    %316 = vector.shape_cast %315 : vector<8x8x8xbf16> to vector<64x8xbf16>
    %c6 = arith.constant 6 : index
    %c0_174 = arith.constant 0 : index
    %c0_175 = arith.constant 0 : index
    %317 = vector.load %arg4[%c6, %c0_174, %c0_175] : memref<9x8x16xbf16, #tpu.memory_space<vmem>>, vector<1x8x16xbf16>
    %318 = vector.shape_cast %317 : vector<1x8x16xbf16> to vector<8x16xbf16>
    %cst_176 = arith.constant dense<0.000000e+00> : vector<64x16xf32>
    %319 = tpu.matmul %316, %318, %cst_176 {dimension_numbers = #tpu.dot_dimension_numbers<[1], [0], [0], [1], [0, 0, 1, 1], [], []>} : vector<64x8xbf16>, vector<8x16xbf16>, vector<64x16xf32> -> vector<64x16xf32>
    %320 = arith.addf %313, %319 : vector<64x16xf32>
    %c1_177 = arith.constant 1 : index
    %c0_178 = arith.constant 0 : index
    %c1_179 = arith.constant 1 : index
    %c0_180 = arith.constant 0 : index
    %c0_181 = arith.constant 0 : index
    %321 = vector.load %arg2[%c1_177, %c0_178, %c1_179, %c0_180, %c0_181] : memref<4x1x9x9x8xbf16, #tpu.memory_space<vmem>>, vector<1x1x8x8x8xbf16>
    %322 = vector.shape_cast %321 : vector<1x1x8x8x8xbf16> to vector<8x8x8xbf16>
    %323 = vector.shape_cast %322 : vector<8x8x8xbf16> to vector<64x8xbf16>
    %c7 = arith.constant 7 : index
    %c0_182 = arith.constant 0 : index
    %c0_183 = arith.constant 0 : index
    %324 = vector.load %arg4[%c7, %c0_182, %c0_183] : memref<9x8x16xbf16, #tpu.memory_space<vmem>>, vector<1x8x16xbf16>
    %325 = vector.shape_cast %324 : vector<1x8x16xbf16> to vector<8x16xbf16>
    %cst_184 = arith.constant dense<0.000000e+00> : vector<64x16xf32>
    %326 = tpu.matmul %323, %325, %cst_184 {dimension_numbers = #tpu.dot_dimension_numbers<[1], [0], [0], [1], [0, 0, 1, 1], [], []>} : vector<64x8xbf16>, vector<8x16xbf16>, vector<64x16xf32> -> vector<64x16xf32>
    %327 = arith.addf %320, %326 : vector<64x16xf32>
    %c0_185 = arith.constant 0 : index
    %c0_186 = arith.constant 0 : index
    %c1_187 = arith.constant 1 : index
    %c1_188 = arith.constant 1 : index
    %c0_189 = arith.constant 0 : index
    %328 = vector.load %arg2[%c0_185, %c0_186, %c1_187, %c1_188, %c0_189] : memref<4x1x9x9x8xbf16, #tpu.memory_space<vmem>>, vector<1x1x8x8x8xbf16>
    %329 = vector.shape_cast %328 : vector<1x1x8x8x8xbf16> to vector<8x8x8xbf16>
    %330 = vector.shape_cast %329 : vector<8x8x8xbf16> to vector<64x8xbf16>
    %c8 = arith.constant 8 : index
    %c0_190 = arith.constant 0 : index
    %c0_191 = arith.constant 0 : index
    %331 = vector.load %arg4[%c8, %c0_190, %c0_191] : memref<9x8x16xbf16, #tpu.memory_space<vmem>>, vector<1x8x16xbf16>
    %332 = vector.shape_cast %331 : vector<1x8x16xbf16> to vector<8x16xbf16>
    %cst_192 = arith.constant dense<0.000000e+00> : vector<64x16xf32>
    %333 = tpu.matmul %330, %332, %cst_192 {dimension_numbers = #tpu.dot_dimension_numbers<[1], [0], [0], [1], [0, 0, 1, 1], [], []>} : vector<64x8xbf16>, vector<8x16xbf16>, vector<64x16xf32> -> vector<64x16xf32>
    %334 = arith.addf %327, %333 : vector<64x16xf32>
    %c0_193 = arith.constant 0 : index
    %c0_194 = arith.constant 0 : index
    %335 = vector.load %arg5[%c0_193, %c0_194] : memref<1x16xf32, #tpu.memory_space<vmem>>, vector<1x16xf32>
    %336 = vector.broadcast %335 : vector<1x16xf32> to vector<64x16xf32>
    %337 = arith.addf %334, %336 : vector<64x16xf32>
    %cst_195 = arith.constant 0.000000e+00 : f32
    %338 = vector.broadcast %cst_195 : f32 to vector<64x16xf32>
    %339 = arith.maximumf %337, %338 : vector<64x16xf32>
    %340 = vector.shape_cast %339 : vector<64x16xf32> to vector<8x8x16xf32>
    %c0_196 = arith.constant 0 : index
    %c0_197 = arith.constant 0 : index
    %c0_198 = arith.constant 0 : index
    %c0_199 = arith.constant 0 : index
    %c0_200 = arith.constant 0 : index
    %341 = vector.load %arg3[%c0_196, %c0_197, %c0_198, %c0_199, %c0_200] : memref<4x1x10x10x8xbf16, #tpu.memory_space<vmem>>, vector<1x1x8x8x8xbf16>
    %342 = vector.shape_cast %341 : vector<1x1x8x8x8xbf16> to vector<8x8x8xbf16>
    %343 = vector.shape_cast %342 : vector<8x8x8xbf16> to vector<64x8xbf16>
    %c0_201 = arith.constant 0 : index
    %c0_202 = arith.constant 0 : index
    %c0_203 = arith.constant 0 : index
    %344 = vector.load %arg6[%c0_201, %c0_202, %c0_203] : memref<25x8x16xbf16, #tpu.memory_space<vmem>>, vector<1x8x16xbf16>
    %345 = vector.shape_cast %344 : vector<1x8x16xbf16> to vector<8x16xbf16>
    %cst_204 = arith.constant dense<0.000000e+00> : vector<64x16xf32>
    %346 = tpu.matmul %343, %345, %cst_204 {dimension_numbers = #tpu.dot_dimension_numbers<[1], [0], [0], [1], [0, 0, 1, 1], [], []>} : vector<64x8xbf16>, vector<8x16xbf16>, vector<64x16xf32> -> vector<64x16xf32>
    %c1_205 = arith.constant 1 : index
    %c0_206 = arith.constant 0 : index
    %c0_207 = arith.constant 0 : index
    %c0_208 = arith.constant 0 : index
    %c0_209 = arith.constant 0 : index
    %347 = vector.load %arg3[%c1_205, %c0_206, %c0_207, %c0_208, %c0_209] : memref<4x1x10x10x8xbf16, #tpu.memory_space<vmem>>, vector<1x1x8x8x8xbf16>
    %348 = vector.shape_cast %347 : vector<1x1x8x8x8xbf16> to vector<8x8x8xbf16>
    %349 = vector.shape_cast %348 : vector<8x8x8xbf16> to vector<64x8xbf16>
    %c1_210 = arith.constant 1 : index
    %c0_211 = arith.constant 0 : index
    %c0_212 = arith.constant 0 : index
    %350 = vector.load %arg6[%c1_210, %c0_211, %c0_212] : memref<25x8x16xbf16, #tpu.memory_space<vmem>>, vector<1x8x16xbf16>
    %351 = vector.shape_cast %350 : vector<1x8x16xbf16> to vector<8x16xbf16>
    %cst_213 = arith.constant dense<0.000000e+00> : vector<64x16xf32>
    %352 = tpu.matmul %349, %351, %cst_213 {dimension_numbers = #tpu.dot_dimension_numbers<[1], [0], [0], [1], [0, 0, 1, 1], [], []>} : vector<64x8xbf16>, vector<8x16xbf16>, vector<64x16xf32> -> vector<64x16xf32>
    %353 = arith.addf %346, %352 : vector<64x16xf32>
    %c0_214 = arith.constant 0 : index
    %c0_215 = arith.constant 0 : index
    %c0_216 = arith.constant 0 : index
    %c1_217 = arith.constant 1 : index
    %c0_218 = arith.constant 0 : index
    %354 = vector.load %arg3[%c0_214, %c0_215, %c0_216, %c1_217, %c0_218] : memref<4x1x10x10x8xbf16, #tpu.memory_space<vmem>>, vector<1x1x8x8x8xbf16>
    %355 = vector.shape_cast %354 : vector<1x1x8x8x8xbf16> to vector<8x8x8xbf16>
    %356 = vector.shape_cast %355 : vector<8x8x8xbf16> to vector<64x8xbf16>
    %c2_219 = arith.constant 2 : index
    %c0_220 = arith.constant 0 : index
    %c0_221 = arith.constant 0 : index
    %357 = vector.load %arg6[%c2_219, %c0_220, %c0_221] : memref<25x8x16xbf16, #tpu.memory_space<vmem>>, vector<1x8x16xbf16>
    %358 = vector.shape_cast %357 : vector<1x8x16xbf16> to vector<8x16xbf16>
    %cst_222 = arith.constant dense<0.000000e+00> : vector<64x16xf32>
    %359 = tpu.matmul %356, %358, %cst_222 {dimension_numbers = #tpu.dot_dimension_numbers<[1], [0], [0], [1], [0, 0, 1, 1], [], []>} : vector<64x8xbf16>, vector<8x16xbf16>, vector<64x16xf32> -> vector<64x16xf32>
    %360 = arith.addf %353, %359 : vector<64x16xf32>
    %c1_223 = arith.constant 1 : index
    %c0_224 = arith.constant 0 : index
    %c0_225 = arith.constant 0 : index
    %c1_226 = arith.constant 1 : index
    %c0_227 = arith.constant 0 : index
    %361 = vector.load %arg3[%c1_223, %c0_224, %c0_225, %c1_226, %c0_227] : memref<4x1x10x10x8xbf16, #tpu.memory_space<vmem>>, vector<1x1x8x8x8xbf16>
    %362 = vector.shape_cast %361 : vector<1x1x8x8x8xbf16> to vector<8x8x8xbf16>
    %363 = vector.shape_cast %362 : vector<8x8x8xbf16> to vector<64x8xbf16>
    %c3_228 = arith.constant 3 : index
    %c0_229 = arith.constant 0 : index
    %c0_230 = arith.constant 0 : index
    %364 = vector.load %arg6[%c3_228, %c0_229, %c0_230] : memref<25x8x16xbf16, #tpu.memory_space<vmem>>, vector<1x8x16xbf16>
    %365 = vector.shape_cast %364 : vector<1x8x16xbf16> to vector<8x16xbf16>
    %cst_231 = arith.constant dense<0.000000e+00> : vector<64x16xf32>
    %366 = tpu.matmul %363, %365, %cst_231 {dimension_numbers = #tpu.dot_dimension_numbers<[1], [0], [0], [1], [0, 0, 1, 1], [], []>} : vector<64x8xbf16>, vector<8x16xbf16>, vector<64x16xf32> -> vector<64x16xf32>
    %367 = arith.addf %360, %366 : vector<64x16xf32>
    %c0_232 = arith.constant 0 : index
    %c0_233 = arith.constant 0 : index
    %c0_234 = arith.constant 0 : index
    %c2_235 = arith.constant 2 : index
    %c0_236 = arith.constant 0 : index
    %368 = vector.load %arg3[%c0_232, %c0_233, %c0_234, %c2_235, %c0_236] : memref<4x1x10x10x8xbf16, #tpu.memory_space<vmem>>, vector<1x1x8x8x8xbf16>
    %369 = vector.shape_cast %368 : vector<1x1x8x8x8xbf16> to vector<8x8x8xbf16>
    %370 = vector.shape_cast %369 : vector<8x8x8xbf16> to vector<64x8xbf16>
    %c4_237 = arith.constant 4 : index
    %c0_238 = arith.constant 0 : index
    %c0_239 = arith.constant 0 : index
    %371 = vector.load %arg6[%c4_237, %c0_238, %c0_239] : memref<25x8x16xbf16, #tpu.memory_space<vmem>>, vector<1x8x16xbf16>
    %372 = vector.shape_cast %371 : vector<1x8x16xbf16> to vector<8x16xbf16>
    %cst_240 = arith.constant dense<0.000000e+00> : vector<64x16xf32>
    %373 = tpu.matmul %370, %372, %cst_240 {dimension_numbers = #tpu.dot_dimension_numbers<[1], [0], [0], [1], [0, 0, 1, 1], [], []>} : vector<64x8xbf16>, vector<8x16xbf16>, vector<64x16xf32> -> vector<64x16xf32>
    %374 = arith.addf %367, %373 : vector<64x16xf32>
    %c2_241 = arith.constant 2 : index
    %c0_242 = arith.constant 0 : index
    %c0_243 = arith.constant 0 : index
    %c0_244 = arith.constant 0 : index
    %c0_245 = arith.constant 0 : index
    %375 = vector.load %arg3[%c2_241, %c0_242, %c0_243, %c0_244, %c0_245] : memref<4x1x10x10x8xbf16, #tpu.memory_space<vmem>>, vector<1x1x8x8x8xbf16>
    %376 = vector.shape_cast %375 : vector<1x1x8x8x8xbf16> to vector<8x8x8xbf16>
    %377 = vector.shape_cast %376 : vector<8x8x8xbf16> to vector<64x8xbf16>
    %c5_246 = arith.constant 5 : index
    %c0_247 = arith.constant 0 : index
    %c0_248 = arith.constant 0 : index
    %378 = vector.load %arg6[%c5_246, %c0_247, %c0_248] : memref<25x8x16xbf16, #tpu.memory_space<vmem>>, vector<1x8x16xbf16>
    %379 = vector.shape_cast %378 : vector<1x8x16xbf16> to vector<8x16xbf16>
    %cst_249 = arith.constant dense<0.000000e+00> : vector<64x16xf32>
    %380 = tpu.matmul %377, %379, %cst_249 {dimension_numbers = #tpu.dot_dimension_numbers<[1], [0], [0], [1], [0, 0, 1, 1], [], []>} : vector<64x8xbf16>, vector<8x16xbf16>, vector<64x16xf32> -> vector<64x16xf32>
    %381 = arith.addf %374, %380 : vector<64x16xf32>
    %c3_250 = arith.constant 3 : index
    %c0_251 = arith.constant 0 : index
    %c0_252 = arith.constant 0 : index
    %c0_253 = arith.constant 0 : index
    %c0_254 = arith.constant 0 : index
    %382 = vector.load %arg3[%c3_250, %c0_251, %c0_252, %c0_253, %c0_254] : memref<4x1x10x10x8xbf16, #tpu.memory_space<vmem>>, vector<1x1x8x8x8xbf16>
    %383 = vector.shape_cast %382 : vector<1x1x8x8x8xbf16> to vector<8x8x8xbf16>
    %384 = vector.shape_cast %383 : vector<8x8x8xbf16> to vector<64x8xbf16>
    %c6_255 = arith.constant 6 : index
    %c0_256 = arith.constant 0 : index
    %c0_257 = arith.constant 0 : index
    %385 = vector.load %arg6[%c6_255, %c0_256, %c0_257] : memref<25x8x16xbf16, #tpu.memory_space<vmem>>, vector<1x8x16xbf16>
    %386 = vector.shape_cast %385 : vector<1x8x16xbf16> to vector<8x16xbf16>
    %cst_258 = arith.constant dense<0.000000e+00> : vector<64x16xf32>
    %387 = tpu.matmul %384, %386, %cst_258 {dimension_numbers = #tpu.dot_dimension_numbers<[1], [0], [0], [1], [0, 0, 1, 1], [], []>} : vector<64x8xbf16>, vector<8x16xbf16>, vector<64x16xf32> -> vector<64x16xf32>
    %388 = arith.addf %381, %387 : vector<64x16xf32>
    %c2_259 = arith.constant 2 : index
    %c0_260 = arith.constant 0 : index
    %c0_261 = arith.constant 0 : index
    %c1_262 = arith.constant 1 : index
    %c0_263 = arith.constant 0 : index
    %389 = vector.load %arg3[%c2_259, %c0_260, %c0_261, %c1_262, %c0_263] : memref<4x1x10x10x8xbf16, #tpu.memory_space<vmem>>, vector<1x1x8x8x8xbf16>
    %390 = vector.shape_cast %389 : vector<1x1x8x8x8xbf16> to vector<8x8x8xbf16>
    %391 = vector.shape_cast %390 : vector<8x8x8xbf16> to vector<64x8xbf16>
    %c7_264 = arith.constant 7 : index
    %c0_265 = arith.constant 0 : index
    %c0_266 = arith.constant 0 : index
    %392 = vector.load %arg6[%c7_264, %c0_265, %c0_266] : memref<25x8x16xbf16, #tpu.memory_space<vmem>>, vector<1x8x16xbf16>
    %393 = vector.shape_cast %392 : vector<1x8x16xbf16> to vector<8x16xbf16>
    %cst_267 = arith.constant dense<0.000000e+00> : vector<64x16xf32>
    %394 = tpu.matmul %391, %393, %cst_267 {dimension_numbers = #tpu.dot_dimension_numbers<[1], [0], [0], [1], [0, 0, 1, 1], [], []>} : vector<64x8xbf16>, vector<8x16xbf16>, vector<64x16xf32> -> vector<64x16xf32>
    %395 = arith.addf %388, %394 : vector<64x16xf32>
    %c3_268 = arith.constant 3 : index
    %c0_269 = arith.constant 0 : index
    %c0_270 = arith.constant 0 : index
    %c1_271 = arith.constant 1 : index
    %c0_272 = arith.constant 0 : index
    %396 = vector.load %arg3[%c3_268, %c0_269, %c0_270, %c1_271, %c0_272] : memref<4x1x10x10x8xbf16, #tpu.memory_space<vmem>>, vector<1x1x8x8x8xbf16>
    %397 = vector.shape_cast %396 : vector<1x1x8x8x8xbf16> to vector<8x8x8xbf16>
    %398 = vector.shape_cast %397 : vector<8x8x8xbf16> to vector<64x8xbf16>
    %c8_273 = arith.constant 8 : index
    %c0_274 = arith.constant 0 : index
    %c0_275 = arith.constant 0 : index
    %399 = vector.load %arg6[%c8_273, %c0_274, %c0_275] : memref<25x8x16xbf16, #tpu.memory_space<vmem>>, vector<1x8x16xbf16>
    %400 = vector.shape_cast %399 : vector<1x8x16xbf16> to vector<8x16xbf16>
    %cst_276 = arith.constant dense<0.000000e+00> : vector<64x16xf32>
    %401 = tpu.matmul %398, %400, %cst_276 {dimension_numbers = #tpu.dot_dimension_numbers<[1], [0], [0], [1], [0, 0, 1, 1], [], []>} : vector<64x8xbf16>, vector<8x16xbf16>, vector<64x16xf32> -> vector<64x16xf32>
    %402 = arith.addf %395, %401 : vector<64x16xf32>
    %c2_277 = arith.constant 2 : index
    %c0_278 = arith.constant 0 : index
    %c0_279 = arith.constant 0 : index
    %c2_280 = arith.constant 2 : index
    %c0_281 = arith.constant 0 : index
    %403 = vector.load %arg3[%c2_277, %c0_278, %c0_279, %c2_280, %c0_281] : memref<4x1x10x10x8xbf16, #tpu.memory_space<vmem>>, vector<1x1x8x8x8xbf16>
    %404 = vector.shape_cast %403 : vector<1x1x8x8x8xbf16> to vector<8x8x8xbf16>
    %405 = vector.shape_cast %404 : vector<8x8x8xbf16> to vector<64x8xbf16>
    %c9 = arith.constant 9 : index
    %c0_282 = arith.constant 0 : index
    %c0_283 = arith.constant 0 : index
    %406 = vector.load %arg6[%c9, %c0_282, %c0_283] : memref<25x8x16xbf16, #tpu.memory_space<vmem>>, vector<1x8x16xbf16>
    %407 = vector.shape_cast %406 : vector<1x8x16xbf16> to vector<8x16xbf16>
    %cst_284 = arith.constant dense<0.000000e+00> : vector<64x16xf32>
    %408 = tpu.matmul %405, %407, %cst_284 {dimension_numbers = #tpu.dot_dimension_numbers<[1], [0], [0], [1], [0, 0, 1, 1], [], []>} : vector<64x8xbf16>, vector<8x16xbf16>, vector<64x16xf32> -> vector<64x16xf32>
    %409 = arith.addf %402, %408 : vector<64x16xf32>
    %c0_285 = arith.constant 0 : index
    %c0_286 = arith.constant 0 : index
    %c1_287 = arith.constant 1 : index
    %c0_288 = arith.constant 0 : index
    %c0_289 = arith.constant 0 : index
    %410 = vector.load %arg3[%c0_285, %c0_286, %c1_287, %c0_288, %c0_289] : memref<4x1x10x10x8xbf16, #tpu.memory_space<vmem>>, vector<1x1x8x8x8xbf16>
    %411 = vector.shape_cast %410 : vector<1x1x8x8x8xbf16> to vector<8x8x8xbf16>
    %412 = vector.shape_cast %411 : vector<8x8x8xbf16> to vector<64x8xbf16>
    %c10 = arith.constant 10 : index
    %c0_290 = arith.constant 0 : index
    %c0_291 = arith.constant 0 : index
    %413 = vector.load %arg6[%c10, %c0_290, %c0_291] : memref<25x8x16xbf16, #tpu.memory_space<vmem>>, vector<1x8x16xbf16>
    %414 = vector.shape_cast %413 : vector<1x8x16xbf16> to vector<8x16xbf16>
    %cst_292 = arith.constant dense<0.000000e+00> : vector<64x16xf32>
    %415 = tpu.matmul %412, %414, %cst_292 {dimension_numbers = #tpu.dot_dimension_numbers<[1], [0], [0], [1], [0, 0, 1, 1], [], []>} : vector<64x8xbf16>, vector<8x16xbf16>, vector<64x16xf32> -> vector<64x16xf32>
    %416 = arith.addf %409, %415 : vector<64x16xf32>
    %c1_293 = arith.constant 1 : index
    %c0_294 = arith.constant 0 : index
    %c1_295 = arith.constant 1 : index
    %c0_296 = arith.constant 0 : index
    %c0_297 = arith.constant 0 : index
    %417 = vector.load %arg3[%c1_293, %c0_294, %c1_295, %c0_296, %c0_297] : memref<4x1x10x10x8xbf16, #tpu.memory_space<vmem>>, vector<1x1x8x8x8xbf16>
    %418 = vector.shape_cast %417 : vector<1x1x8x8x8xbf16> to vector<8x8x8xbf16>
    %419 = vector.shape_cast %418 : vector<8x8x8xbf16> to vector<64x8xbf16>
    %c11 = arith.constant 11 : index
    %c0_298 = arith.constant 0 : index
    %c0_299 = arith.constant 0 : index
    %420 = vector.load %arg6[%c11, %c0_298, %c0_299] : memref<25x8x16xbf16, #tpu.memory_space<vmem>>, vector<1x8x16xbf16>
    %421 = vector.shape_cast %420 : vector<1x8x16xbf16> to vector<8x16xbf16>
    %cst_300 = arith.constant dense<0.000000e+00> : vector<64x16xf32>
    %422 = tpu.matmul %419, %421, %cst_300 {dimension_numbers = #tpu.dot_dimension_numbers<[1], [0], [0], [1], [0, 0, 1, 1], [], []>} : vector<64x8xbf16>, vector<8x16xbf16>, vector<64x16xf32> -> vector<64x16xf32>
    %423 = arith.addf %416, %422 : vector<64x16xf32>
    %c0_301 = arith.constant 0 : index
    %c0_302 = arith.constant 0 : index
    %c1_303 = arith.constant 1 : index
    %c1_304 = arith.constant 1 : index
    %c0_305 = arith.constant 0 : index
    %424 = vector.load %arg3[%c0_301, %c0_302, %c1_303, %c1_304, %c0_305] : memref<4x1x10x10x8xbf16, #tpu.memory_space<vmem>>, vector<1x1x8x8x8xbf16>
    %425 = vector.shape_cast %424 : vector<1x1x8x8x8xbf16> to vector<8x8x8xbf16>
    %426 = vector.shape_cast %425 : vector<8x8x8xbf16> to vector<64x8xbf16>
    %c12 = arith.constant 12 : index
    %c0_306 = arith.constant 0 : index
    %c0_307 = arith.constant 0 : index
    %427 = vector.load %arg6[%c12, %c0_306, %c0_307] : memref<25x8x16xbf16, #tpu.memory_space<vmem>>, vector<1x8x16xbf16>
    %428 = vector.shape_cast %427 : vector<1x8x16xbf16> to vector<8x16xbf16>
    %cst_308 = arith.constant dense<0.000000e+00> : vector<64x16xf32>
    %429 = tpu.matmul %426, %428, %cst_308 {dimension_numbers = #tpu.dot_dimension_numbers<[1], [0], [0], [1], [0, 0, 1, 1], [], []>} : vector<64x8xbf16>, vector<8x16xbf16>, vector<64x16xf32> -> vector<64x16xf32>
    %430 = arith.addf %423, %429 : vector<64x16xf32>
    %c1_309 = arith.constant 1 : index
    %c0_310 = arith.constant 0 : index
    %c1_311 = arith.constant 1 : index
    %c1_312 = arith.constant 1 : index
    %c0_313 = arith.constant 0 : index
    %431 = vector.load %arg3[%c1_309, %c0_310, %c1_311, %c1_312, %c0_313] : memref<4x1x10x10x8xbf16, #tpu.memory_space<vmem>>, vector<1x1x8x8x8xbf16>
    %432 = vector.shape_cast %431 : vector<1x1x8x8x8xbf16> to vector<8x8x8xbf16>
    %433 = vector.shape_cast %432 : vector<8x8x8xbf16> to vector<64x8xbf16>
    %c13 = arith.constant 13 : index
    %c0_314 = arith.constant 0 : index
    %c0_315 = arith.constant 0 : index
    %434 = vector.load %arg6[%c13, %c0_314, %c0_315] : memref<25x8x16xbf16, #tpu.memory_space<vmem>>, vector<1x8x16xbf16>
    %435 = vector.shape_cast %434 : vector<1x8x16xbf16> to vector<8x16xbf16>
    %cst_316 = arith.constant dense<0.000000e+00> : vector<64x16xf32>
    %436 = tpu.matmul %433, %435, %cst_316 {dimension_numbers = #tpu.dot_dimension_numbers<[1], [0], [0], [1], [0, 0, 1, 1], [], []>} : vector<64x8xbf16>, vector<8x16xbf16>, vector<64x16xf32> -> vector<64x16xf32>
    %437 = arith.addf %430, %436 : vector<64x16xf32>
    %c0_317 = arith.constant 0 : index
    %c0_318 = arith.constant 0 : index
    %c1_319 = arith.constant 1 : index
    %c2_320 = arith.constant 2 : index
    %c0_321 = arith.constant 0 : index
    %438 = vector.load %arg3[%c0_317, %c0_318, %c1_319, %c2_320, %c0_321] : memref<4x1x10x10x8xbf16, #tpu.memory_space<vmem>>, vector<1x1x8x8x8xbf16>
    %439 = vector.shape_cast %438 : vector<1x1x8x8x8xbf16> to vector<8x8x8xbf16>
    %440 = vector.shape_cast %439 : vector<8x8x8xbf16> to vector<64x8xbf16>
    %c14 = arith.constant 14 : index
    %c0_322 = arith.constant 0 : index
    %c0_323 = arith.constant 0 : index
    %441 = vector.load %arg6[%c14, %c0_322, %c0_323] : memref<25x8x16xbf16, #tpu.memory_space<vmem>>, vector<1x8x16xbf16>
    %442 = vector.shape_cast %441 : vector<1x8x16xbf16> to vector<8x16xbf16>
    %cst_324 = arith.constant dense<0.000000e+00> : vector<64x16xf32>
    %443 = tpu.matmul %440, %442, %cst_324 {dimension_numbers = #tpu.dot_dimension_numbers<[1], [0], [0], [1], [0, 0, 1, 1], [], []>} : vector<64x8xbf16>, vector<8x16xbf16>, vector<64x16xf32> -> vector<64x16xf32>
    %444 = arith.addf %437, %443 : vector<64x16xf32>
    %c2_325 = arith.constant 2 : index
    %c0_326 = arith.constant 0 : index
    %c1_327 = arith.constant 1 : index
    %c0_328 = arith.constant 0 : index
    %c0_329 = arith.constant 0 : index
    %445 = vector.load %arg3[%c2_325, %c0_326, %c1_327, %c0_328, %c0_329] : memref<4x1x10x10x8xbf16, #tpu.memory_space<vmem>>, vector<1x1x8x8x8xbf16>
    %446 = vector.shape_cast %445 : vector<1x1x8x8x8xbf16> to vector<8x8x8xbf16>
    %447 = vector.shape_cast %446 : vector<8x8x8xbf16> to vector<64x8xbf16>
    %c15 = arith.constant 15 : index
    %c0_330 = arith.constant 0 : index
    %c0_331 = arith.constant 0 : index
    %448 = vector.load %arg6[%c15, %c0_330, %c0_331] : memref<25x8x16xbf16, #tpu.memory_space<vmem>>, vector<1x8x16xbf16>
    %449 = vector.shape_cast %448 : vector<1x8x16xbf16> to vector<8x16xbf16>
    %cst_332 = arith.constant dense<0.000000e+00> : vector<64x16xf32>
    %450 = tpu.matmul %447, %449, %cst_332 {dimension_numbers = #tpu.dot_dimension_numbers<[1], [0], [0], [1], [0, 0, 1, 1], [], []>} : vector<64x8xbf16>, vector<8x16xbf16>, vector<64x16xf32> -> vector<64x16xf32>
    %451 = arith.addf %444, %450 : vector<64x16xf32>
    %c3_333 = arith.constant 3 : index
    %c0_334 = arith.constant 0 : index
    %c1_335 = arith.constant 1 : index
    %c0_336 = arith.constant 0 : index
    %c0_337 = arith.constant 0 : index
    %452 = vector.load %arg3[%c3_333, %c0_334, %c1_335, %c0_336, %c0_337] : memref<4x1x10x10x8xbf16, #tpu.memory_space<vmem>>, vector<1x1x8x8x8xbf16>
    %453 = vector.shape_cast %452 : vector<1x1x8x8x8xbf16> to vector<8x8x8xbf16>
    %454 = vector.shape_cast %453 : vector<8x8x8xbf16> to vector<64x8xbf16>
    %c16 = arith.constant 16 : index
    %c0_338 = arith.constant 0 : index
    %c0_339 = arith.constant 0 : index
    %455 = vector.load %arg6[%c16, %c0_338, %c0_339] : memref<25x8x16xbf16, #tpu.memory_space<vmem>>, vector<1x8x16xbf16>
    %456 = vector.shape_cast %455 : vector<1x8x16xbf16> to vector<8x16xbf16>
    %cst_340 = arith.constant dense<0.000000e+00> : vector<64x16xf32>
    %457 = tpu.matmul %454, %456, %cst_340 {dimension_numbers = #tpu.dot_dimension_numbers<[1], [0], [0], [1], [0, 0, 1, 1], [], []>} : vector<64x8xbf16>, vector<8x16xbf16>, vector<64x16xf32> -> vector<64x16xf32>
    %458 = arith.addf %451, %457 : vector<64x16xf32>
    %c2_341 = arith.constant 2 : index
    %c0_342 = arith.constant 0 : index
    %c1_343 = arith.constant 1 : index
    %c1_344 = arith.constant 1 : index
    %c0_345 = arith.constant 0 : index
    %459 = vector.load %arg3[%c2_341, %c0_342, %c1_343, %c1_344, %c0_345] : memref<4x1x10x10x8xbf16, #tpu.memory_space<vmem>>, vector<1x1x8x8x8xbf16>
    %460 = vector.shape_cast %459 : vector<1x1x8x8x8xbf16> to vector<8x8x8xbf16>
    %461 = vector.shape_cast %460 : vector<8x8x8xbf16> to vector<64x8xbf16>
    %c17 = arith.constant 17 : index
    %c0_346 = arith.constant 0 : index
    %c0_347 = arith.constant 0 : index
    %462 = vector.load %arg6[%c17, %c0_346, %c0_347] : memref<25x8x16xbf16, #tpu.memory_space<vmem>>, vector<1x8x16xbf16>
    %463 = vector.shape_cast %462 : vector<1x8x16xbf16> to vector<8x16xbf16>
    %cst_348 = arith.constant dense<0.000000e+00> : vector<64x16xf32>
    %464 = tpu.matmul %461, %463, %cst_348 {dimension_numbers = #tpu.dot_dimension_numbers<[1], [0], [0], [1], [0, 0, 1, 1], [], []>} : vector<64x8xbf16>, vector<8x16xbf16>, vector<64x16xf32> -> vector<64x16xf32>
    %465 = arith.addf %458, %464 : vector<64x16xf32>
    %c3_349 = arith.constant 3 : index
    %c0_350 = arith.constant 0 : index
    %c1_351 = arith.constant 1 : index
    %c1_352 = arith.constant 1 : index
    %c0_353 = arith.constant 0 : index
    %466 = vector.load %arg3[%c3_349, %c0_350, %c1_351, %c1_352, %c0_353] : memref<4x1x10x10x8xbf16, #tpu.memory_space<vmem>>, vector<1x1x8x8x8xbf16>
    %467 = vector.shape_cast %466 : vector<1x1x8x8x8xbf16> to vector<8x8x8xbf16>
    %468 = vector.shape_cast %467 : vector<8x8x8xbf16> to vector<64x8xbf16>
    %c18 = arith.constant 18 : index
    %c0_354 = arith.constant 0 : index
    %c0_355 = arith.constant 0 : index
    %469 = vector.load %arg6[%c18, %c0_354, %c0_355] : memref<25x8x16xbf16, #tpu.memory_space<vmem>>, vector<1x8x16xbf16>
    %470 = vector.shape_cast %469 : vector<1x8x16xbf16> to vector<8x16xbf16>
    %cst_356 = arith.constant dense<0.000000e+00> : vector<64x16xf32>
    %471 = tpu.matmul %468, %470, %cst_356 {dimension_numbers = #tpu.dot_dimension_numbers<[1], [0], [0], [1], [0, 0, 1, 1], [], []>} : vector<64x8xbf16>, vector<8x16xbf16>, vector<64x16xf32> -> vector<64x16xf32>
    %472 = arith.addf %465, %471 : vector<64x16xf32>
    %c2_357 = arith.constant 2 : index
    %c0_358 = arith.constant 0 : index
    %c1_359 = arith.constant 1 : index
    %c2_360 = arith.constant 2 : index
    %c0_361 = arith.constant 0 : index
    %473 = vector.load %arg3[%c2_357, %c0_358, %c1_359, %c2_360, %c0_361] : memref<4x1x10x10x8xbf16, #tpu.memory_space<vmem>>, vector<1x1x8x8x8xbf16>
    %474 = vector.shape_cast %473 : vector<1x1x8x8x8xbf16> to vector<8x8x8xbf16>
    %475 = vector.shape_cast %474 : vector<8x8x8xbf16> to vector<64x8xbf16>
    %c19 = arith.constant 19 : index
    %c0_362 = arith.constant 0 : index
    %c0_363 = arith.constant 0 : index
    %476 = vector.load %arg6[%c19, %c0_362, %c0_363] : memref<25x8x16xbf16, #tpu.memory_space<vmem>>, vector<1x8x16xbf16>
    %477 = vector.shape_cast %476 : vector<1x8x16xbf16> to vector<8x16xbf16>
    %cst_364 = arith.constant dense<0.000000e+00> : vector<64x16xf32>
    %478 = tpu.matmul %475, %477, %cst_364 {dimension_numbers = #tpu.dot_dimension_numbers<[1], [0], [0], [1], [0, 0, 1, 1], [], []>} : vector<64x8xbf16>, vector<8x16xbf16>, vector<64x16xf32> -> vector<64x16xf32>
    %479 = arith.addf %472, %478 : vector<64x16xf32>
    %c0_365 = arith.constant 0 : index
    %c0_366 = arith.constant 0 : index
    %c2_367 = arith.constant 2 : index
    %c0_368 = arith.constant 0 : index
    %c0_369 = arith.constant 0 : index
    %480 = vector.load %arg3[%c0_365, %c0_366, %c2_367, %c0_368, %c0_369] : memref<4x1x10x10x8xbf16, #tpu.memory_space<vmem>>, vector<1x1x8x8x8xbf16>
    %481 = vector.shape_cast %480 : vector<1x1x8x8x8xbf16> to vector<8x8x8xbf16>
    %482 = vector.shape_cast %481 : vector<8x8x8xbf16> to vector<64x8xbf16>
    %c20 = arith.constant 20 : index
    %c0_370 = arith.constant 0 : index
    %c0_371 = arith.constant 0 : index
    %483 = vector.load %arg6[%c20, %c0_370, %c0_371] : memref<25x8x16xbf16, #tpu.memory_space<vmem>>, vector<1x8x16xbf16>
    %484 = vector.shape_cast %483 : vector<1x8x16xbf16> to vector<8x16xbf16>
    %cst_372 = arith.constant dense<0.000000e+00> : vector<64x16xf32>
    %485 = tpu.matmul %482, %484, %cst_372 {dimension_numbers = #tpu.dot_dimension_numbers<[1], [0], [0], [1], [0, 0, 1, 1], [], []>} : vector<64x8xbf16>, vector<8x16xbf16>, vector<64x16xf32> -> vector<64x16xf32>
    %486 = arith.addf %479, %485 : vector<64x16xf32>
    %c1_373 = arith.constant 1 : index
    %c0_374 = arith.constant 0 : index
    %c2_375 = arith.constant 2 : index
    %c0_376 = arith.constant 0 : index
    %c0_377 = arith.constant 0 : index
    %487 = vector.load %arg3[%c1_373, %c0_374, %c2_375, %c0_376, %c0_377] : memref<4x1x10x10x8xbf16, #tpu.memory_space<vmem>>, vector<1x1x8x8x8xbf16>
    %488 = vector.shape_cast %487 : vector<1x1x8x8x8xbf16> to vector<8x8x8xbf16>
    %489 = vector.shape_cast %488 : vector<8x8x8xbf16> to vector<64x8xbf16>
    %c21 = arith.constant 21 : index
    %c0_378 = arith.constant 0 : index
    %c0_379 = arith.constant 0 : index
    %490 = vector.load %arg6[%c21, %c0_378, %c0_379] : memref<25x8x16xbf16, #tpu.memory_space<vmem>>, vector<1x8x16xbf16>
    %491 = vector.shape_cast %490 : vector<1x8x16xbf16> to vector<8x16xbf16>
    %cst_380 = arith.constant dense<0.000000e+00> : vector<64x16xf32>
    %492 = tpu.matmul %489, %491, %cst_380 {dimension_numbers = #tpu.dot_dimension_numbers<[1], [0], [0], [1], [0, 0, 1, 1], [], []>} : vector<64x8xbf16>, vector<8x16xbf16>, vector<64x16xf32> -> vector<64x16xf32>
    %493 = arith.addf %486, %492 : vector<64x16xf32>
    %c0_381 = arith.constant 0 : index
    %c0_382 = arith.constant 0 : index
    %c2_383 = arith.constant 2 : index
    %c1_384 = arith.constant 1 : index
    %c0_385 = arith.constant 0 : index
    %494 = vector.load %arg3[%c0_381, %c0_382, %c2_383, %c1_384, %c0_385] : memref<4x1x10x10x8xbf16, #tpu.memory_space<vmem>>, vector<1x1x8x8x8xbf16>
    %495 = vector.shape_cast %494 : vector<1x1x8x8x8xbf16> to vector<8x8x8xbf16>
    %496 = vector.shape_cast %495 : vector<8x8x8xbf16> to vector<64x8xbf16>
    %c22 = arith.constant 22 : index
    %c0_386 = arith.constant 0 : index
    %c0_387 = arith.constant 0 : index
    %497 = vector.load %arg6[%c22, %c0_386, %c0_387] : memref<25x8x16xbf16, #tpu.memory_space<vmem>>, vector<1x8x16xbf16>
    %498 = vector.shape_cast %497 : vector<1x8x16xbf16> to vector<8x16xbf16>
    %cst_388 = arith.constant dense<0.000000e+00> : vector<64x16xf32>
    %499 = tpu.matmul %496, %498, %cst_388 {dimension_numbers = #tpu.dot_dimension_numbers<[1], [0], [0], [1], [0, 0, 1, 1], [], []>} : vector<64x8xbf16>, vector<8x16xbf16>, vector<64x16xf32> -> vector<64x16xf32>
    %500 = arith.addf %493, %499 : vector<64x16xf32>
    %c1_389 = arith.constant 1 : index
    %c0_390 = arith.constant 0 : index
    %c2_391 = arith.constant 2 : index
    %c1_392 = arith.constant 1 : index
    %c0_393 = arith.constant 0 : index
    %501 = vector.load %arg3[%c1_389, %c0_390, %c2_391, %c1_392, %c0_393] : memref<4x1x10x10x8xbf16, #tpu.memory_space<vmem>>, vector<1x1x8x8x8xbf16>
    %502 = vector.shape_cast %501 : vector<1x1x8x8x8xbf16> to vector<8x8x8xbf16>
    %503 = vector.shape_cast %502 : vector<8x8x8xbf16> to vector<64x8xbf16>
    %c23 = arith.constant 23 : index
    %c0_394 = arith.constant 0 : index
    %c0_395 = arith.constant 0 : index
    %504 = vector.load %arg6[%c23, %c0_394, %c0_395] : memref<25x8x16xbf16, #tpu.memory_space<vmem>>, vector<1x8x16xbf16>
    %505 = vector.shape_cast %504 : vector<1x8x16xbf16> to vector<8x16xbf16>
    %cst_396 = arith.constant dense<0.000000e+00> : vector<64x16xf32>
    %506 = tpu.matmul %503, %505, %cst_396 {dimension_numbers = #tpu.dot_dimension_numbers<[1], [0], [0], [1], [0, 0, 1, 1], [], []>} : vector<64x8xbf16>, vector<8x16xbf16>, vector<64x16xf32> -> vector<64x16xf32>
    %507 = arith.addf %500, %506 : vector<64x16xf32>
    %c0_397 = arith.constant 0 : index
    %c0_398 = arith.constant 0 : index
    %c2_399 = arith.constant 2 : index
    %c2_400 = arith.constant 2 : index
    %c0_401 = arith.constant 0 : index
    %508 = vector.load %arg3[%c0_397, %c0_398, %c2_399, %c2_400, %c0_401] : memref<4x1x10x10x8xbf16, #tpu.memory_space<vmem>>, vector<1x1x8x8x8xbf16>
    %509 = vector.shape_cast %508 : vector<1x1x8x8x8xbf16> to vector<8x8x8xbf16>
    %510 = vector.shape_cast %509 : vector<8x8x8xbf16> to vector<64x8xbf16>
    %c24 = arith.constant 24 : index
    %c0_402 = arith.constant 0 : index
    %c0_403 = arith.constant 0 : index
    %511 = vector.load %arg6[%c24, %c0_402, %c0_403] : memref<25x8x16xbf16, #tpu.memory_space<vmem>>, vector<1x8x16xbf16>
    %512 = vector.shape_cast %511 : vector<1x8x16xbf16> to vector<8x16xbf16>
    %cst_404 = arith.constant dense<0.000000e+00> : vector<64x16xf32>
    %513 = tpu.matmul %510, %512, %cst_404 {dimension_numbers = #tpu.dot_dimension_numbers<[1], [0], [0], [1], [0, 0, 1, 1], [], []>} : vector<64x8xbf16>, vector<8x16xbf16>, vector<64x16xf32> -> vector<64x16xf32>
    %514 = arith.addf %507, %513 : vector<64x16xf32>
    %c0_405 = arith.constant 0 : index
    %c0_406 = arith.constant 0 : index
    %515 = vector.load %arg7[%c0_405, %c0_406] : memref<1x16xf32, #tpu.memory_space<vmem>>, vector<1x16xf32>
    %516 = vector.broadcast %515 : vector<1x16xf32> to vector<64x16xf32>
    %517 = arith.addf %514, %516 : vector<64x16xf32>
    %cst_407 = arith.constant 0.000000e+00 : f32
    %518 = vector.broadcast %cst_407 : f32 to vector<64x16xf32>
    %519 = arith.maximumf %517, %518 : vector<64x16xf32>
    %520 = vector.shape_cast %519 : vector<64x16xf32> to vector<8x8x16xf32>
    %521 = tpu.concatenate %266, %340, %520, %272 in 2 : vector<8x8x8xf32>, vector<8x8x16xf32>, vector<8x8x16xf32>, vector<8x8x8xf32> -> vector<8x8x48xf32>
    %c0_408 = arith.constant 0 : index
    %c0_409 = arith.constant 0 : index
    %c0_410 = arith.constant 0 : index
    %c0_411 = arith.constant 0 : index
    %522 = vector.load %arg8[%c0_408, %c0_409, %c0_410, %c0_411] : memref<1x8x8x48xf32, #tpu.memory_space<vmem>>, vector<1x8x8x48xf32>
    %523 = vector.shape_cast %522 : vector<1x8x8x48xf32> to vector<8x8x48xf32>
    %524 = vector.shape_cast %521 : vector<8x8x48xf32> to vector<1x8x8x48xf32>
    tpu.vector_store %arg8[%c0_408, %c0_409, %c0_410, %c0_411], %524 {strides = array<i32>} : memref<1x8x8x48xf32, #tpu.memory_space<vmem>>, vector<1x8x8x48xf32>,
    return
  }
  func.func @transform_0(%arg0: i32) -> (i32, i32, i32, i32, i32) {
    %c0_i32 = arith.constant 0 : i32
    %c0_i32_0 = arith.constant 0 : i32
    %c0_i32_1 = arith.constant 0 : i32
    %c0_i32_2 = arith.constant 0 : i32
    %c0_i32_3 = arith.constant 0 : i32
    return %c0_i32, %arg0, %c0_i32_0, %c0_i32_1, %c0_i32_2 : i32, i32, i32, i32, i32
  }
  func.func @transform_1(%arg0: i32) -> (i32, i32, i32, i32, i32) {
    %c0_i32 = arith.constant 0 : i32
    %c0_i32_0 = arith.constant 0 : i32
    %c0_i32_1 = arith.constant 0 : i32
    %c0_i32_2 = arith.constant 0 : i32
    %c0_i32_3 = arith.constant 0 : i32
    return %c0_i32, %arg0, %c0_i32_0, %c0_i32_1, %c0_i32_2 : i32, i32, i32, i32, i32
  }
  func.func @transform_2(%arg0: i32) -> (i32, i32, i32, i32, i32) {
    %c0_i32 = arith.constant 0 : i32
    %c0_i32_0 = arith.constant 0 : i32
    %c0_i32_1 = arith.constant 0 : i32
    %c0_i32_2 = arith.constant 0 : i32
    %c0_i32_3 = arith.constant 0 : i32
    return %c0_i32, %arg0, %c0_i32_0, %c0_i32_1, %c0_i32_2 : i32, i32, i32, i32, i32
  }
  func.func @transform_3(%arg0: i32) -> (i32, i32, i32) {
    %c0_i32 = arith.constant 0 : i32
    %c0_i32_0 = arith.constant 0 : i32
    %c0_i32_1 = arith.constant 0 : i32
    %c0_i32_2 = arith.constant 0 : i32
    return %c0_i32, %c0_i32_0, %c0_i32_1 : i32, i32, i32
  }
  func.func @transform_4(%arg0: i32) -> (i32, i32) {
    %c0_i32 = arith.constant 0 : i32
    %c0_i32_0 = arith.constant 0 : i32
    %c0_i32_1 = arith.constant 0 : i32
    return %c0_i32, %c0_i32_0 : i32, i32
  }
  func.func @transform_5(%arg0: i32) -> (i32, i32, i32) {
    %c0_i32 = arith.constant 0 : i32
    %c0_i32_0 = arith.constant 0 : i32
    %c0_i32_1 = arith.constant 0 : i32
    %c0_i32_2 = arith.constant 0 : i32
    return %c0_i32, %c0_i32_0, %c0_i32_1 : i32, i32, i32
  }
  func.func @transform_6(%arg0: i32) -> (i32, i32) {
    %c0_i32 = arith.constant 0 : i32
    %c0_i32_0 = arith.constant 0 : i32
    %c0_i32_1 = arith.constant 0 : i32
    return %c0_i32, %c0_i32_0 : i32, i32
  }
  func.func @transform_7(%arg0: i32) -> (i32, i32, i32, i32) {
    %c0_i32 = arith.constant 0 : i32
    %c0_i32_0 = arith.constant 0 : i32
    %c0_i32_1 = arith.constant 0 : i32
    %c0_i32_2 = arith.constant 0 : i32
    return %arg0, %c0_i32, %c0_i32_0, %c0_i32_1 : i32, i32, i32, i32
  }
}

</mosaic_0001>

<bundles_post_ra>
// kernel: reduction_a_forward.2
= control target key start
LH: loop header
LB: loop body
LE: loop exit
PB: predicated region body
PF: predicated region fallthrough
CT: control target
= control target key end

     0   :  { %s1517_s21 = smov 0   ;;  %s1819_s0 = inlined_call_operand.vmem [shape: f32[512,8], index: 0, kind: input, shape index: {}]   ;;  %s1820_s1 = inlined_call_operand.vmem [shape: bf16[8,8], index: 1, kind: input, shape index: {}]   ;;  %s1821_s2 = inlined_call_operand.vmem [shape: f32[1,8], index: 2, kind: input, shape index: {}]   ;;  %s1822_s3 = inlined_call_operand.vmem [shape: bf16[8,8], index: 3, kind: input, shape index: {}]   ;;  %s1823_s4 = inlined_call_operand.vmem [shape: f32[1,8], index: 4, kind: input, shape index: {}]   ;;  %s1824_s5 = inlined_call_operand.vmem [shape: bf16[512,8], index: 5, kind: output, shape index: {0}]   ;;  %s1825_s6 = inlined_call_operand.vmem [shape: bf16[512,8], index: 6, kind: output, shape index: {1}]  }
   0x1 LB: > { %s1187_s22 = sadd.s32 4294967295, %s1480_s21   ;;  %p1191_p0 = scmp.ge.s32.totalorder %s1480_s21, 1  ;;  %s1480_s21 = sphi %s1517_s21, %s17_s21  }
   0x2   : > { %p216_p1 = scmp.lt.s32.totalorder %s1480_s21, 3 }
   0x4   : > { %p217_p2 = pnand %p1191_p0, %p216_p1 }
   0x5   : > { %s1192_s27 = sshll.u32 (!%p217_p2), %s1187_s22, 5 }
   0x6   : > { %220 = sbr.rel (%p217_p2) target bundleno = 280 (0x118), region = 40  ;;  %p252_p3 = scmp.lt.s32.totalorder (!%p217_p2), %s1192_s27, 63 }
   0xb   : > { %v318_v0 = vld [vmem:[%s1820_s1] sm:$0xf]  ;;  %vm375_vm0 = vcmask 1043456   ;;  %s1827_s27 = smov (!%p252_p3, %s1192_s27), 63  ;;  %vm326_vm1 = vcmask 64512   ;;  %vm700_vm2 = vcmask 60416  }
   0xc   : > { %v733_v1 = vld [vmem:[%s1822_s3] sm:$0xf]  ;;  %1464 = vmatprep.subr.msk.bf16.mxu0 %vm375_vm0, %v318_v0  ;;  %v377_v2 = vsel %vm375_vm0, %v318_v0, 0  ;;  %s1193_s28 = sshll.u32 %s1827_s27, 3  ;;  %s1195_s12 = sshll.u32 %s1827_s27, 2 }
   0xd   : > { %1465 = vmatprep.subr.msk.bf16.mxu1 %vm375_vm0, %v733_v1  ;;  %v742_v3 = vsel %vm375_vm0, %v733_v1, 0  ;;  %1397 = vmatpush3.bf16.msra.mxu0 %v377_v2  ;;  %s1537_s7 = scalar_lea.vmem %s1819_s0, %s1193_s28  ;;  %v1606_v52 = vld [vmem:[%s1821_s2] ss:$0 sm:$0xff]  ;;  %s1621_s15 = scalar_lea.vmem %s1824_s5, %s1195_s12 }
   0xe   : > { %1431 = vmatpush3.bf16.msra.mxu1 %v742_v3  ;;  %v270_v4 = vld [vmem:[%s1537_s7] sm:$0xff]  ;;  %v271_v5 = vld [vmem:[%s1537_s7 + $0x8] sm:$0xff]  ;;  %v272_v6 = vld [vmem:[%s1537_s7 + $0x10] sm:$0xff]  ;;  %s1626_s18 = scalar_lea.vmem %s1825_s6, %s1195_s12 }
   0xf   : > { %v302_v7 = vpack.c.bf16 %v271_v5, %v270_v4  ;;  %v273_v8 = vld [vmem:[%s1537_s7 + $0x18] sm:$0xff]  ;;  %v274_v9 = vld [vmem:[%s1537_s7 + $0x20] sm:$0xff]  ;;  %v275_v10 = vld [vmem:[%s1537_s7 + $0x28] sm:$0xff] }
  0x10   : > { %v303_v11 = vpack.c.bf16 %v273_v8, %v272_v6  ;;  %v304_v12 = vpack.c.bf16 %v275_v10, %v274_v9  ;;  %v276_v13 = vld [vmem:[%s1537_s7 + $0x30] sm:$0xff]  ;;  %v277_v14 = vld [vmem:[%s1537_s7 + $0x38] sm:$0xff]  ;;  %v278_v15 = vld [vmem:[%s1537_s7 + $0x40] sm:$0xff] }
  0x11   : > { %1398 = vmatprep.mubr.msk.bf16.mxu0 %vm326_vm1, %v302_v7  ;;  %1432 = vmatprep.mubr.msk.bf16.mxu1 %vm326_vm1, %v302_v7  ;;  %v279_v16 = vld [vmem:[%s1537_s7 + $0x48] sm:$0xff]  ;;  %v305_v17 = vpack.c.bf16 %v277_v14, %v276_v13  ;;  %v280_v19 = vld [vmem:[%s1537_s7 + $0x50] sm:$0xff]  ;;  %v281_v20 = vld [vmem:[%s1537_s7 + $0x58] sm:$0xff] }
  0x12   : > { %1399 = vmatmul.mubr.msk.bf16.vlgmr.msra.gmra.mxu0 %vm326_vm1, %v303_v11  ;;  %1433 = vmatmul.mubr.msk.bf16.vlgmr.msra.gmra.mxu1 %vm326_vm1, %v303_v11  ;;  %v306_v18 = vpack.c.bf16 %v279_v16, %v278_v15  ;;  %v282_v21 = vld [vmem:[%s1537_s7 + $0x60] sm:$0xff]  ;;  %v283_v22 = vld [vmem:[%s1537_s7 + $0x68] sm:$0xff]  ;;  %v307_v23 = vpack.c.bf16 %v281_v20, %v280_v19  ;;  %v284_v25 = vld [vmem:[%s1537_s7 + $0x70] sm:$0xff] }
  0x13   : > { %1402 = vmatprep.mubr.msk.bf16.mxu0 %vm326_vm1, %v304_v12  ;;  %1436 = vmatprep.mubr.msk.bf16.mxu1 %vm326_vm1, %v304_v12  ;;  %v308_v24 = vpack.c.bf16 %v283_v22, %v282_v21  ;;  %v285_v26 = vld [vmem:[%s1537_s7 + $0x78] sm:$0xff]  ;;  %v286_v27 = vld [vmem:[%s1537_s7 + $0x80] sm:$0xff]  ;;  %v287_v28 = vld [vmem:[%s1537_s7 + $0x88] sm:$0xff] }
  0x14   : > { %v309_v29 = vpack.c.bf16 %v285_v26, %v284_v25  ;;  %v310_v30 = vpack.c.bf16 %v287_v28, %v286_v27  ;;  %v288_v31 = vld [vmem:[%s1537_s7 + $0x90] sm:$0xff]  ;;  %v289_v32 = vld [vmem:[%s1537_s7 + $0x98] sm:$0xff]  ;;  %v290_v33 = vld [vmem:[%s1537_s7 + $0xa0] sm:$0xff] }
  0x15   : > { %v291_v34 = vld [vmem:[%s1537_s7 + $0xa8] sm:$0xff]  ;;  %v311_v35 = vpack.c.bf16 %v289_v32, %v288_v31  ;;  %v292_v37 = vld [vmem:[%s1537_s7 + $0xb0] sm:$0xff]  ;;  %v293_v38 = vld [vmem:[%s1537_s7 + $0xb8] sm:$0xff] }
  0x16   : > { %v312_v36 = vpack.c.bf16 %v291_v34, %v290_v33  ;;  %v294_v39 = vld [vmem:[%s1537_s7 + $0xc0] sm:$0xff]  ;;  %v295_v40 = vld [vmem:[%s1537_s7 + $0xc8] sm:$0xff]  ;;  %v313_v41 = vpack.c.bf16 %v293_v38, %v292_v37  ;;  %v296_v43 = vld [vmem:[%s1537_s7 + $0xd0] sm:$0xff] }
  0x17   : > { %v314_v42 = vpack.c.bf16 %v295_v40, %v294_v39  ;;  %v297_v44 = vld [vmem:[%s1537_s7 + $0xd8] sm:$0xff]  ;;  %v298_v45 = vld [vmem:[%s1537_s7 + $0xe0] sm:$0xff]  ;;  %v299_v46 = vld [vmem:[%s1537_s7 + $0xe8] sm:$0xff] }
  0x18   : > { %v315_v47 = vpack.c.bf16 %v297_v44, %v296_v43  ;;  %v316_v48 = vpack.c.bf16 %v299_v46, %v298_v45  ;;  %v300_v49 = vld [vmem:[%s1537_s7 + $0xf0] sm:$0xff]  ;;  %v301_v50 = vld [vmem:[%s1537_s7 + $0xf8] sm:$0xff]  ;;  %v1611_v53 = vld [vmem:[%s1823_s4] ss:$0 sm:$0xff] }
  0x19   : > { %v317_v51 = vpack.c.bf16 %v301_v50, %v300_v49 }
  0x1a   : > { %1403 = vmatmul.mubr.msk.bf16.gmra.mxu0 %vm326_vm1, %v305_v17  ;;  %1437 = vmatmul.mubr.msk.bf16.gmra.mxu1 %vm326_vm1, %v305_v17 }
  0x1b   : > { %1406 = vmatprep.mubr.msk.bf16.mxu0 %vm326_vm1, %v306_v18  ;;  %1440 = vmatprep.mubr.msk.bf16.mxu1 %vm326_vm1, %v306_v18 }
  0x22   : > { %1407 = vmatmul.mubr.msk.bf16.gmra.mxu0 %vm326_vm1, %v307_v23  ;;  %1441 = vmatmul.mubr.msk.bf16.gmra.mxu1 %vm326_vm1, %v307_v23 }
  0x23   : > { %1410 = vmatprep.mubr.msk.bf16.mxu0 %vm326_vm1, %v308_v24  ;;  %1444 = vmatprep.mubr.msk.bf16.mxu1 %vm326_vm1, %v308_v24 }
  0x2a   : > { %1411 = vmatmul.mubr.msk.bf16.gmra.mxu0 %vm326_vm1, %v309_v29  ;;  %1445 = vmatmul.mubr.msk.bf16.gmra.mxu1 %vm326_vm1, %v309_v29 }
  0x2b   : > { %1414 = vmatprep.mubr.msk.bf16.mxu0 %vm326_vm1, %v310_v30  ;;  %1448 = vmatprep.mubr.msk.bf16.mxu1 %vm326_vm1, %v310_v30 }
  0x32   : > { %1415 = vmatmul.mubr.msk.bf16.gmra.mxu0 %vm326_vm1, %v311_v35  ;;  %1449 = vmatmul.mubr.msk.bf16.gmra.mxu1 %vm326_vm1, %v311_v35 }
  0x33   : > { %1418 = vmatprep.mubr.msk.bf16.mxu0 %vm326_vm1, %v312_v36  ;;  %1452 = vmatprep.mubr.msk.bf16.mxu1 %vm326_vm1, %v312_v36 }
  0x3a   : > { %1419 = vmatmul.mubr.msk.bf16.gmra.mxu0 %vm326_vm1, %v313_v41  ;;  %1453 = vmatmul.mubr.msk.bf16.gmra.mxu1 %vm326_vm1, %v313_v41 }
  0x3b   : > { %1422 = vmatprep.mubr.msk.bf16.mxu0 %vm326_vm1, %v314_v42  ;;  %1456 = vmatprep.mubr.msk.bf16.mxu1 %vm326_vm1, %v314_v42 }
  0x42   : > { %1423 = vmatmul.mubr.msk.bf16.gmra.mxu0 %vm326_vm1, %v315_v47  ;;  %1457 = vmatmul.mubr.msk.bf16.gmra.mxu1 %vm326_vm1, %v315_v47 }
  0x43   : > { %1426 = vmatprep.mubr.msk.bf16.mxu0 %vm326_vm1, %v316_v48  ;;  %1460 = vmatprep.mubr.msk.bf16.mxu1 %vm326_vm1, %v316_v48 }
  0x4a   : > { %1427 = vmatmul.mubr.msk.bf16.gmra.mxu0 %vm326_vm1, %v317_v51  ;;  %1461 = vmatmul.mubr.msk.bf16.gmra.mxu1 %vm326_vm1, %v317_v51 }
  0xd2   : > { %v1400_v54 = vpop.f32.mrf.mxu0  ;;  %v1434_v55 = vpop.f32.mrf.mxu1 }
  0xd3   : > { %v422_v56 = vadd.f32 %v1400_v54, %v1606_v52  ;;  %v787_v57 = vadd.f32 %v1434_v55, %v1611_v53 }
  0xd4   : > { %v413_v58 = vpop.f32.mrf.mxu0  ;;  %v778_v59 = vpop.f32.mrf.mxu1 }
  0xd5   : > { %v542_v60 = vmax.f32 %v422_v56, 0.0  ;;  %v907_v61 = vmax.f32 %v787_v57, 0.0  ;;  %v414_v62 = vadd.f32 %v1606_v52, %v413_v58  ;;  %v779_v63 = vadd.f32 %v1611_v53, %v778_v59 }
  0xd6   : > { %v1401_v0 = vpop.f32.mrf.mxu0  ;;  %v1435_v1 = vpop.f32.mrf.mxu1 }
  0xd7   : > { %v1300_v2 = vpack.c.bf16 %v542_v60, %v542_v60  ;;  %v1332_v3 = vpack.c.bf16 %v907_v61, %v907_v61  ;;  %v540_v4 = vmax.f32 %v414_v62, 0.0  ;;  %v905_v5 = vmax.f32 %v779_v63, 0.0 }
  0xd8   : > { %v425_v6 = vadd.f32 %v1401_v0, %v1606_v52  ;;  %v790_v7 = vadd.f32 %v1435_v1, %v1611_v53  ;;  %v416_v8 = vpop.f32.mrf.mxu0  ;;  %v781_v9 = vpop.f32.mrf.mxu1 }
  0xd9   : > { %703 = vst.msk [vmem:[%s1621_s15 + $0x8] sm:$0xf] %vm700_vm2, %v1300_v2  ;;  %1067 = vst.msk [vmem:[%s1626_s18 + $0x8] sm:$0xf] %vm700_vm2, %v1332_v3  ;;  %v1298_v10 = vpack.c.bf16 %v540_v4, %v540_v4  ;;  %v1330_v11 = vpack.c.bf16 %v905_v5, %v905_v5  ;;  %v417_v12 = vadd.f32 %v1606_v52, %v416_v8 }
  0xda   : > { %v782_v13 = vadd.f32 %v1611_v53, %v781_v9  ;;  %v543_v14 = vmax.f32 %v425_v6, 0.0  ;;  %v908_v15 = vmax.f32 %v790_v7, 0.0  ;;  %v1404_v16 = vpop.f32.mrf.mxu0  ;;  %v1438_v17 = vpop.f32.mrf.mxu1 }
  0xdb   : > { %701 = vst.msk [vmem:[%s1621_s15] sm:$0xf] %vm700_vm2, %v1298_v10  ;;  %1065 = vst.msk [vmem:[%s1626_s18] sm:$0xf] %vm700_vm2, %v1330_v11  ;;  %v541_v18 = vmax.f32 %v417_v12, 0.0  ;;  %v438_v20 = vadd.f32 %v1404_v16, %v1606_v52  ;;  %v803_v21 = vadd.f32 %v1438_v17, %v1611_v53 }
  0xdc   : > { %v906_v19 = vmax.f32 %v782_v13, 0.0  ;;  %v1301_v22 = vpack.c.bf16 %v543_v14, %v543_v14  ;;  %v1333_v23 = vpack.c.bf16 %v908_v15, %v908_v15  ;;  %v429_v24 = vpop.f32.mrf.mxu0  ;;  %v794_v25 = vpop.f32.mrf.mxu1 }
  0xdd   : > { %v1299_v26 = vpack.c.bf16 %v541_v18, %v541_v18  ;;  %v546_v28 = vmax.f32 %v438_v20, 0.0  ;;  %v911_v29 = vmax.f32 %v803_v21, 0.0  ;;  %v430_v30 = vadd.f32 %v1606_v52, %v429_v24 }
  0xde   : > { %v1331_v27 = vpack.c.bf16 %v906_v19, %v906_v19  ;;  %704 = vst.msk [vmem:[%s1621_s15 + $0xc] sm:$0xf] %vm700_vm2, %v1301_v22  ;;  %1068 = vst.msk [vmem:[%s1626_s18 + $0xc] sm:$0xf] %vm700_vm2, %v1333_v23  ;;  %v795_v31 = vadd.f32 %v1611_v53, %v794_v25  ;;  %v1405_v32 = vpop.f32.mrf.mxu0  ;;  %v1439_v33 = vpop.f32.mrf.mxu1 }
  0xdf   : > { %702 = vst.msk [vmem:[%s1621_s15 + $0x4] sm:$0xf] %vm700_vm2, %v1299_v26  ;;  %v1304_v34 = vpack.c.bf16 %v546_v28, %v546_v28  ;;  %v1336_v35 = vpack.c.bf16 %v911_v29, %v911_v29  ;;  %v441_v36 = vadd.f32 %v1405_v32, %v1606_v52  ;;  %v806_v37 = vadd.f32 %v1439_v33, %v1611_v53 }
  0xe0   : > { %1066 = vst.msk [vmem:[%s1626_s18 + $0x4] sm:$0xf] %vm700_vm2, %v1331_v27  ;;  %v544_v38 = vmax.f32 %v430_v30, 0.0  ;;  %v909_v39 = vmax.f32 %v795_v31, 0.0  ;;  %v432_v40 = vpop.f32.mrf.mxu0  ;;  %v797_v41 = vpop.f32.mrf.mxu1 }
  0xe1   : > { %707 = vst.msk [vmem:[%s1621_s15 + $0x18] sm:$0xf] %vm700_vm2, %v1304_v34  ;;  %1071 = vst.msk [vmem:[%s1626_s18 + $0x18] sm:$0xf] %vm700_vm2, %v1336_v35  ;;  %v547_v42 = vmax.f32 %v441_v36, 0.0  ;;  %v912_v43 = vmax.f32 %v806_v37, 0.0  ;;  %v433_v44 = vadd.f32 %v1606_v52, %v432_v40  ;;  %v798_v45 = vadd.f32 %v1611_v53, %v797_v41 }
  0xe2   : > { %v1302_v46 = vpack.c.bf16 %v544_v38, %v544_v38  ;;  %v1334_v47 = vpack.c.bf16 %v909_v39, %v909_v39  ;;  %v1408_v48 = vpop.f32.mrf.mxu0  ;;  %v1442_v49 = vpop.f32.mrf.mxu1 }
  0xe3   : > { %v1305_v50 = vpack.c.bf16 %v547_v42, %v547_v42  ;;  %v1337_v51 = vpack.c.bf16 %v912_v43, %v912_v43  ;;  %v545_v54 = vmax.f32 %v433_v44, 0.0  ;;  %v910_v55 = vmax.f32 %v798_v45, 0.0 }
  0xe4   : > { %705 = vst.msk [vmem:[%s1621_s15 + $0x10] sm:$0xf] %vm700_vm2, %v1302_v46  ;;  %1069 = vst.msk [vmem:[%s1626_s18 + $0x10] sm:$0xf] %vm700_vm2, %v1334_v47  ;;  %v454_v56 = vadd.f32 %v1408_v48, %v1606_v52  ;;  %v819_v57 = vadd.f32 %v1442_v49, %v1611_v53  ;;  %v445_v58 = vpop.f32.mrf.mxu0  ;;  %v810_v59 = vpop.f32.mrf.mxu1 }
  0xe5   : > { %708 = vst.msk [vmem:[%s1621_s15 + $0x1c] sm:$0xf] %vm700_vm2, %v1305_v50  ;;  %1072 = vst.msk [vmem:[%s1626_s18 + $0x1c] sm:$0xf] %vm700_vm2, %v1337_v51  ;;  %v1303_v60 = vpack.c.bf16 %v545_v54, %v545_v54  ;;  %v1335_v61 = vpack.c.bf16 %v910_v55, %v910_v55  ;;  %v446_v62 = vadd.f32 %v1606_v52, %v445_v58 }
  0xe6   : > { %v811_v63 = vadd.f32 %v1611_v53, %v810_v59  ;;  %v550_v0 = vmax.f32 %v454_v56, 0.0  ;;  %v915_v1 = vmax.f32 %v819_v57, 0.0  ;;  %v1409_v2 = vpop.f32.mrf.mxu0  ;;  %v1443_v3 = vpop.f32.mrf.mxu1 }
  0xe7   : > { %706 = vst.msk [vmem:[%s1621_s15 + $0x14] sm:$0xf] %vm700_vm2, %v1303_v60  ;;  %1070 = vst.msk [vmem:[%s1626_s18 + $0x14] sm:$0xf] %vm700_vm2, %v1335_v61  ;;  %v548_v4 = vmax.f32 %v446_v62, 0.0  ;;  %v457_v6 = vadd.f32 %v1409_v2, %v1606_v52  ;;  %v822_v7 = vadd.f32 %v1443_v3, %v1611_v53 }
  0xe8   : > { %v913_v5 = vmax.f32 %v811_v63, 0.0  ;;  %v1308_v8 = vpack.c.bf16 %v550_v0, %v550_v0  ;;  %v1340_v9 = vpack.c.bf16 %v915_v1, %v915_v1  ;;  %v448_v10 = vpop.f32.mrf.mxu0  ;;  %v813_v11 = vpop.f32.mrf.mxu1 }
  0xe9   : > { %v1306_v12 = vpack.c.bf16 %v548_v4, %v548_v4  ;;  %v551_v14 = vmax.f32 %v457_v6, 0.0  ;;  %v916_v15 = vmax.f32 %v822_v7, 0.0  ;;  %v449_v16 = vadd.f32 %v1606_v52, %v448_v10 }
  0xea   : > { %v1338_v13 = vpack.c.bf16 %v913_v5, %v913_v5  ;;  %711 = vst.msk [vmem:[%s1621_s15 + $0x28] sm:$0xf] %vm700_vm2, %v1308_v8  ;;  %1075 = vst.msk [vmem:[%s1626_s18 + $0x28] sm:$0xf] %vm700_vm2, %v1340_v9  ;;  %v814_v17 = vadd.f32 %v1611_v53, %v813_v11  ;;  %v1412_v18 = vpop.f32.mrf.mxu0  ;;  %v1446_v19 = vpop.f32.mrf.mxu1 }
  0xeb   : > { %709 = vst.msk [vmem:[%s1621_s15 + $0x20] sm:$0xf] %vm700_vm2, %v1306_v12  ;;  %v1309_v20 = vpack.c.bf16 %v551_v14, %v551_v14  ;;  %v1341_v21 = vpack.c.bf16 %v916_v15, %v916_v15  ;;  %v470_v22 = vadd.f32 %v1412_v18, %v1606_v52  ;;  %v835_v23 = vadd.f32 %v1446_v19, %v1611_v53 }
  0xec   : > { %1073 = vst.msk [vmem:[%s1626_s18 + $0x20] sm:$0xf] %vm700_vm2, %v1338_v13  ;;  %v549_v24 = vmax.f32 %v449_v16, 0.0  ;;  %v914_v25 = vmax.f32 %v814_v17, 0.0  ;;  %v461_v26 = vpop.f32.mrf.mxu0  ;;  %v826_v27 = vpop.f32.mrf.mxu1 }
  0xed   : > { %712 = vst.msk [vmem:[%s1621_s15 + $0x2c] sm:$0xf] %vm700_vm2, %v1309_v20  ;;  %1076 = vst.msk [vmem:[%s1626_s18 + $0x2c] sm:$0xf] %vm700_vm2, %v1341_v21  ;;  %v554_v28 = vmax.f32 %v470_v22, 0.0  ;;  %v919_v29 = vmax.f32 %v835_v23, 0.0  ;;  %v462_v30 = vadd.f32 %v1606_v52, %v461_v26  ;;  %v827_v31 = vadd.f32 %v1611_v53, %v826_v27 }
  0xee   : > { %v1307_v32 = vpack.c.bf16 %v549_v24, %v549_v24  ;;  %v1339_v33 = vpack.c.bf16 %v914_v25, %v914_v25  ;;  %v1413_v34 = vpop.f32.mrf.mxu0  ;;  %v1447_v35 = vpop.f32.mrf.mxu1 }
  0xef   : > { %v1312_v36 = vpack.c.bf16 %v554_v28, %v554_v28  ;;  %v1344_v37 = vpack.c.bf16 %v919_v29, %v919_v29  ;;  %v552_v38 = vmax.f32 %v462_v30, 0.0  ;;  %v917_v39 = vmax.f32 %v827_v31, 0.0 }
  0xf0   : > { %710 = vst.msk [vmem:[%s1621_s15 + $0x24] sm:$0xf] %vm700_vm2, %v1307_v32  ;;  %1074 = vst.msk [vmem:[%s1626_s18 + $0x24] sm:$0xf] %vm700_vm2, %v1339_v33  ;;  %v473_v40 = vadd.f32 %v1413_v34, %v1606_v52  ;;  %v838_v41 = vadd.f32 %v1447_v35, %v1611_v53  ;;  %v464_v42 = vpop.f32.mrf.mxu0  ;;  %v829_v43 = vpop.f32.mrf.mxu1 }
  0xf1   : > { %715 = vst.msk [vmem:[%s1621_s15 + $0x38] sm:$0xf] %vm700_vm2, %v1312_v36  ;;  %1079 = vst.msk [vmem:[%s1626_s18 + $0x38] sm:$0xf] %vm700_vm2, %v1344_v37  ;;  %v1310_v44 = vpack.c.bf16 %v552_v38, %v552_v38  ;;  %v1342_v45 = vpack.c.bf16 %v917_v39, %v917_v39  ;;  %v465_v46 = vadd.f32 %v1606_v52, %v464_v42 }
  0xf2   : > { %v830_v47 = vadd.f32 %v1611_v53, %v829_v43  ;;  %v555_v48 = vmax.f32 %v473_v40, 0.0  ;;  %v920_v49 = vmax.f32 %v838_v41, 0.0  ;;  %v1416_v50 = vpop.f32.mrf.mxu0  ;;  %v1450_v51 = vpop.f32.mrf.mxu1 }
  0xf3   : > { %713 = vst.msk [vmem:[%s1621_s15 + $0x30] sm:$0xf] %vm700_vm2, %v1310_v44  ;;  %1077 = vst.msk [vmem:[%s1626_s18 + $0x30] sm:$0xf] %vm700_vm2, %v1342_v45  ;;  %v553_v54 = vmax.f32 %v465_v46, 0.0  ;;  %v486_v56 = vadd.f32 %v1416_v50, %v1606_v52  ;;  %v851_v57 = vadd.f32 %v1450_v51, %v1611_v53 }
  0xf4   : > { %v918_v55 = vmax.f32 %v830_v47, 0.0  ;;  %v1313_v58 = vpack.c.bf16 %v555_v48, %v555_v48  ;;  %v1345_v59 = vpack.c.bf16 %v920_v49, %v920_v49  ;;  %v477_v60 = vpop.f32.mrf.mxu0  ;;  %v842_v61 = vpop.f32.mrf.mxu1 }
  0xf5   : > { %v1311_v62 = vpack.c.bf16 %v553_v54, %v553_v54  ;;  %v558_v0 = vmax.f32 %v486_v56, 0.0  ;;  %v923_v1 = vmax.f32 %v851_v57, 0.0  ;;  %v478_v2 = vadd.f32 %v1606_v52, %v477_v60 }
  0xf6   : > { %v1343_v63 = vpack.c.bf16 %v918_v55, %v918_v55  ;;  %716 = vst.msk [vmem:[%s1621_s15 + $0x3c] sm:$0xf] %vm700_vm2, %v1313_v58  ;;  %1080 = vst.msk [vmem:[%s1626_s18 + $0x3c] sm:$0xf] %vm700_vm2, %v1345_v59  ;;  %v843_v3 = vadd.f32 %v1611_v53, %v842_v61  ;;  %v1417_v4 = vpop.f32.mrf.mxu0  ;;  %v1451_v5 = vpop.f32.mrf.mxu1 }
  0xf7   : > { %714 = vst.msk [vmem:[%s1621_s15 + $0x34] sm:$0xf] %vm700_vm2, %v1311_v62  ;;  %v1316_v6 = vpack.c.bf16 %v558_v0, %v558_v0  ;;  %v1348_v7 = vpack.c.bf16 %v923_v1, %v923_v1  ;;  %v489_v8 = vadd.f32 %v1417_v4, %v1606_v52  ;;  %v854_v9 = vadd.f32 %v1451_v5, %v1611_v53 }
  0xf8   : > { %1078 = vst.msk [vmem:[%s1626_s18 + $0x34] sm:$0xf] %vm700_vm2, %v1343_v63  ;;  %v556_v10 = vmax.f32 %v478_v2, 0.0  ;;  %v921_v11 = vmax.f32 %v843_v3, 0.0  ;;  %v480_v12 = vpop.f32.mrf.mxu0  ;;  %v845_v13 = vpop.f32.mrf.mxu1 }
  0xf9   : > { %719 = vst.msk [vmem:[%s1621_s15 + $0x48] sm:$0xf] %vm700_vm2, %v1316_v6  ;;  %1083 = vst.msk [vmem:[%s1626_s18 + $0x48] sm:$0xf] %vm700_vm2, %v1348_v7  ;;  %v559_v14 = vmax.f32 %v489_v8, 0.0  ;;  %v924_v15 = vmax.f32 %v854_v9, 0.0  ;;  %v481_v16 = vadd.f32 %v1606_v52, %v480_v12  ;;  %v846_v17 = vadd.f32 %v1611_v53, %v845_v13 }
  0xfa   : > { %v1314_v18 = vpack.c.bf16 %v556_v10, %v556_v10  ;;  %v1346_v19 = vpack.c.bf16 %v921_v11, %v921_v11  ;;  %v1420_v20 = vpop.f32.mrf.mxu0  ;;  %v1454_v21 = vpop.f32.mrf.mxu1 }
  0xfb   : > { %v1317_v22 = vpack.c.bf16 %v559_v14, %v559_v14  ;;  %v1349_v23 = vpack.c.bf16 %v924_v15, %v924_v15  ;;  %v557_v24 = vmax.f32 %v481_v16, 0.0  ;;  %v922_v25 = vmax.f32 %v846_v17, 0.0 }
  0xfc   : > { %717 = vst.msk [vmem:[%s1621_s15 + $0x40] sm:$0xf] %vm700_vm2, %v1314_v18  ;;  %1081 = vst.msk [vmem:[%s1626_s18 + $0x40] sm:$0xf] %vm700_vm2, %v1346_v19  ;;  %v502_v26 = vadd.f32 %v1420_v20, %v1606_v52  ;;  %v867_v27 = vadd.f32 %v1454_v21, %v1611_v53  ;;  %v493_v28 = vpop.f32.mrf.mxu0  ;;  %v858_v29 = vpop.f32.mrf.mxu1 }
  0xfd   : > { %720 = vst.msk [vmem:[%s1621_s15 + $0x4c] sm:$0xf] %vm700_vm2, %v1317_v22  ;;  %1084 = vst.msk [vmem:[%s1626_s18 + $0x4c] sm:$0xf] %vm700_vm2, %v1349_v23  ;;  %v1315_v30 = vpack.c.bf16 %v557_v24, %v557_v24  ;;  %v1347_v31 = vpack.c.bf16 %v922_v25, %v922_v25  ;;  %v494_v32 = vadd.f32 %v1606_v52, %v493_v28 }
  0xfe   : > { %v859_v33 = vadd.f32 %v1611_v53, %v858_v29  ;;  %v562_v34 = vmax.f32 %v502_v26, 0.0  ;;  %v927_v35 = vmax.f32 %v867_v27, 0.0  ;;  %v1421_v36 = vpop.f32.mrf.mxu0  ;;  %v1455_v37 = vpop.f32.mrf.mxu1 }
  0xff   : > { %718 = vst.msk [vmem:[%s1621_s15 + $0x44] sm:$0xf] %vm700_vm2, %v1315_v30  ;;  %1082 = vst.msk [vmem:[%s1626_s18 + $0x44] sm:$0xf] %vm700_vm2, %v1347_v31  ;;  %v560_v38 = vmax.f32 %v494_v32, 0.0  ;;  %v505_v40 = vadd.f32 %v1421_v36, %v1606_v52  ;;  %v870_v41 = vadd.f32 %v1455_v37, %v1611_v53 }
 0x100   : > { %v925_v39 = vmax.f32 %v859_v33, 0.0  ;;  %v1320_v42 = vpack.c.bf16 %v562_v34, %v562_v34  ;;  %v1352_v43 = vpack.c.bf16 %v927_v35, %v927_v35  ;;  %v496_v44 = vpop.f32.mrf.mxu0  ;;  %v861_v45 = vpop.f32.mrf.mxu1 }
 0x101   : > { %v1318_v46 = vpack.c.bf16 %v560_v38, %v560_v38  ;;  %v563_v48 = vmax.f32 %v505_v40, 0.0  ;;  %v928_v49 = vmax.f32 %v870_v41, 0.0  ;;  %v497_v50 = vadd.f32 %v1606_v52, %v496_v44 }
 0x102   : > { %v1350_v47 = vpack.c.bf16 %v925_v39, %v925_v39  ;;  %723 = vst.msk [vmem:[%s1621_s15 + $0x58] sm:$0xf] %vm700_vm2, %v1320_v42  ;;  %1087 = vst.msk [vmem:[%s1626_s18 + $0x58] sm:$0xf] %vm700_vm2, %v1352_v43  ;;  %v862_v51 = vadd.f32 %v1611_v53, %v861_v45  ;;  %v1424_v54 = vpop.f32.mrf.mxu0  ;;  %v1458_v55 = vpop.f32.mrf.mxu1 }
 0x103   : > { %721 = vst.msk [vmem:[%s1621_s15 + $0x50] sm:$0xf] %vm700_vm2, %v1318_v46  ;;  %v1321_v56 = vpack.c.bf16 %v563_v48, %v563_v48  ;;  %v1353_v57 = vpack.c.bf16 %v928_v49, %v928_v49  ;;  %v518_v58 = vadd.f32 %v1424_v54, %v1606_v52  ;;  %v883_v59 = vadd.f32 %v1458_v55, %v1611_v53 }
 0x104   : > { %1085 = vst.msk [vmem:[%s1626_s18 + $0x50] sm:$0xf] %vm700_vm2, %v1350_v47  ;;  %v561_v60 = vmax.f32 %v497_v50, 0.0  ;;  %v926_v61 = vmax.f32 %v862_v51, 0.0  ;;  %v509_v62 = vpop.f32.mrf.mxu0  ;;  %v874_v63 = vpop.f32.mrf.mxu1 }
 0x105   : > { %724 = vst.msk [vmem:[%s1621_s15 + $0x5c] sm:$0xf] %vm700_vm2, %v1321_v56  ;;  %1088 = vst.msk [vmem:[%s1626_s18 + $0x5c] sm:$0xf] %vm700_vm2, %v1353_v57  ;;  %v566_v0 = vmax.f32 %v518_v58, 0.0  ;;  %v931_v1 = vmax.f32 %v883_v59, 0.0  ;;  %v510_v2 = vadd.f32 %v1606_v52, %v509_v62  ;;  %v875_v3 = vadd.f32 %v1611_v53, %v874_v63 }
 0x106   : > { %v1319_v4 = vpack.c.bf16 %v561_v60, %v561_v60  ;;  %v1351_v5 = vpack.c.bf16 %v926_v61, %v926_v61  ;;  %v1425_v6 = vpop.f32.mrf.mxu0  ;;  %v1459_v7 = vpop.f32.mrf.mxu1 }
 0x107   : > { %v1324_v8 = vpack.c.bf16 %v566_v0, %v566_v0  ;;  %v1356_v9 = vpack.c.bf16 %v931_v1, %v931_v1  ;;  %v564_v10 = vmax.f32 %v510_v2, 0.0  ;;  %v929_v11 = vmax.f32 %v875_v3, 0.0 }
 0x108   : > { %722 = vst.msk [vmem:[%s1621_s15 + $0x54] sm:$0xf] %vm700_vm2, %v1319_v4  ;;  %1086 = vst.msk [vmem:[%s1626_s18 + $0x54] sm:$0xf] %vm700_vm2, %v1351_v5  ;;  %v521_v12 = vadd.f32 %v1425_v6, %v1606_v52  ;;  %v886_v13 = vadd.f32 %v1459_v7, %v1611_v53  ;;  %v512_v14 = vpop.f32.mrf.mxu0  ;;  %v877_v15 = vpop.f32.mrf.mxu1 }
 0x109   : > { %727 = vst.msk [vmem:[%s1621_s15 + $0x68] sm:$0xf] %vm700_vm2, %v1324_v8  ;;  %1091 = vst.msk [vmem:[%s1626_s18 + $0x68] sm:$0xf] %vm700_vm2, %v1356_v9  ;;  %v1322_v16 = vpack.c.bf16 %v564_v10, %v564_v10  ;;  %v1354_v17 = vpack.c.bf16 %v929_v11, %v929_v11  ;;  %v513_v18 = vadd.f32 %v1606_v52, %v512_v14 }
 0x10a   : > { %v878_v19 = vadd.f32 %v1611_v53, %v877_v15  ;;  %v567_v20 = vmax.f32 %v521_v12, 0.0  ;;  %v932_v21 = vmax.f32 %v886_v13, 0.0  ;;  %v1428_v22 = vpop.f32.mrf.mxu0  ;;  %v1462_v23 = vpop.f32.mrf.mxu1 }
 0x10b   : > { %725 = vst.msk [vmem:[%s1621_s15 + $0x60] sm:$0xf] %vm700_vm2, %v1322_v16  ;;  %1089 = vst.msk [vmem:[%s1626_s18 + $0x60] sm:$0xf] %vm700_vm2, %v1354_v17  ;;  %v565_v24 = vmax.f32 %v513_v18, 0.0  ;;  %v534_v26 = vadd.f32 %v1428_v22, %v1606_v52  ;;  %v899_v27 = vadd.f32 %v1462_v23, %v1611_v53 }
 0x10c   : > { %v930_v25 = vmax.f32 %v878_v19, 0.0  ;;  %v1325_v28 = vpack.c.bf16 %v567_v20, %v567_v20  ;;  %v1357_v29 = vpack.c.bf16 %v932_v21, %v932_v21  ;;  %v525_v30 = vpop.f32.mrf.mxu0  ;;  %v890_v31 = vpop.f32.mrf.mxu1 }
 0x10d   : > { %v1323_v32 = vpack.c.bf16 %v565_v24, %v565_v24  ;;  %v570_v34 = vmax.f32 %v534_v26, 0.0  ;;  %v935_v35 = vmax.f32 %v899_v27, 0.0  ;;  %v526_v36 = vadd.f32 %v1606_v52, %v525_v30 }
 0x10e   : > { %v1355_v33 = vpack.c.bf16 %v930_v25, %v930_v25  ;;  %728 = vst.msk [vmem:[%s1621_s15 + $0x6c] sm:$0xf] %vm700_vm2, %v1325_v28  ;;  %1092 = vst.msk [vmem:[%s1626_s18 + $0x6c] sm:$0xf] %vm700_vm2, %v1357_v29  ;;  %v891_v37 = vadd.f32 %v1611_v53, %v890_v31  ;;  %v1429_v38 = vpop.f32.mrf.mxu0  ;;  %v1463_v39 = vpop.f32.mrf.mxu1 }
 0x10f   : > { %726 = vst.msk [vmem:[%s1621_s15 + $0x64] sm:$0xf] %vm700_vm2, %v1323_v32  ;;  %v1328_v40 = vpack.c.bf16 %v570_v34, %v570_v34  ;;  %v1360_v41 = vpack.c.bf16 %v935_v35, %v935_v35  ;;  %v537_v42 = vadd.f32 %v1429_v38, %v1606_v52  ;;  %v902_v43 = vadd.f32 %v1463_v39, %v1611_v53 }
 0x110   : > { %1090 = vst.msk [vmem:[%s1626_s18 + $0x64] sm:$0xf] %vm700_vm2, %v1355_v33  ;;  %v568_v44 = vmax.f32 %v526_v36, 0.0  ;;  %v933_v45 = vmax.f32 %v891_v37, 0.0  ;;  %v528_v46 = vpop.f32.mrf.mxu0  ;;  %v893_v47 = vpop.f32.mrf.mxu1 }
 0x111   : > { %731 = vst.msk [vmem:[%s1621_s15 + $0x78] sm:$0xf] %vm700_vm2, %v1328_v40  ;;  %1095 = vst.msk [vmem:[%s1626_s18 + $0x78] sm:$0xf] %vm700_vm2, %v1360_v41  ;;  %v571_v48 = vmax.f32 %v537_v42, 0.0  ;;  %v936_v49 = vmax.f32 %v902_v43, 0.0  ;;  %v529_v50 = vadd.f32 %v1606_v52, %v528_v46  ;;  %v894_v51 = vadd.f32 %v1611_v53, %v893_v47 }
 0x112   : > { %v1326_v54 = vpack.c.bf16 %v568_v44, %v568_v44  ;;  %v1358_v55 = vpack.c.bf16 %v933_v45, %v933_v45 }
 0x113   : > { %v1329_v56 = vpack.c.bf16 %v571_v48, %v571_v48  ;;  %v1361_v57 = vpack.c.bf16 %v936_v49, %v936_v49  ;;  %v569_v58 = vmax.f32 %v529_v50, 0.0  ;;  %v934_v59 = vmax.f32 %v894_v51, 0.0 }
 0x114   : > { %729 = vst.msk [vmem:[%s1621_s15 + $0x70] sm:$0xf] %vm700_vm2, %v1326_v54  ;;  %1093 = vst.msk [vmem:[%s1626_s18 + $0x70] sm:$0xf] %vm700_vm2, %v1358_v55 }
 0x115   : > { %732 = vst.msk [vmem:[%s1621_s15 + $0x7c] sm:$0xf] %vm700_vm2, %v1329_v56  ;;  %1096 = vst.msk [vmem:[%s1626_s18 + $0x7c] sm:$0xf] %vm700_vm2, %v1361_v57  ;;  %v1327_v60 = vpack.c.bf16 %v569_v58, %v569_v58  ;;  %v1359_v61 = vpack.c.bf16 %v934_v59, %v934_v59 }
 0x117   : > { %730 = vst.msk [vmem:[%s1621_s15 + $0x74] sm:$0xf] %vm700_vm2, %v1327_v60  ;;  %1094 = vst.msk [vmem:[%s1626_s18 + $0x74] sm:$0xf] %vm700_vm2, %v1359_v61 }
 0x118 PF: > { %s17_s21 = sadd.s32 1, %s1480_s21  }
 0x119   : > { %p14_p4 = scmp.ge.s32.totalorder %s17_s21, 4  }
 0x11b   :  { %16 = sbr.rel (!%p14_p4) target bundleno = 1 (0x1), region = 82 }

// kernel: reduction_a_forward.3
= control target key start
LH: loop header
LB: loop body
LE: loop exit
PB: predicated region body
PF: predicated region fallthrough
CT: control target
= control target key end

     0   :  { %12 = vsyncpa [#allocation6], 0  ;;  %s12034_s0 = inlined_call_operand.vmem [shape: f32[4,2,9,9,8], index: 0, kind: input, shape index: {}]   ;;  %s12035_s1 = inlined_call_operand.vmem [shape: bf16[4,2,9,9,8], index: 1, kind: input, shape index: {}]   ;;  %s12036_s2 = inlined_call_operand.vmem [shape: bf16[4,2,10,10,8], index: 2, kind: input, shape index: {}]   ;;  %s12037_s3 = inlined_call_operand.vmem [shape: bf16[9,8,16], index: 3, kind: input, shape index: {}]   ;;  %s12038_s4 = inlined_call_operand.vmem [shape: f32[1,16], index: 4, kind: input, shape index: {}]   ;;  %s12039_s5 = inlined_call_operand.vmem [shape: bf16[25,8,16], index: 5, kind: input, shape index: {}]   ;;  %s12040_s6 = inlined_call_operand.vmem [shape: f32[1,16], index: 6, kind: input, shape index: {}]   ;;  %s12041_s7 = inlined_call_operand.hbm [shape: f32[2,8,8,48], index: 7, kind: output, shape index: {}]  }
   0x1   :  { %14 = vsyncpa [#allocation6 + $0x1], 0  ;;  %s9143_s24 = smov 0   ;;  %s9145_s25 = smov 0  }
   0x2   :  { %s9147_s26 = smov 0   ;;  %s9149_s27 = smov 0  }
   0x3 LB: > { %s7622_s28 = sadd.s32 4294967295, %s9095_s27   ;;  %s7623_s29 = sadd.s32 4294967294, %s9095_s27   ;;  %s9095_s27 = sphi %s9149_s27, %s12383_s27   ;;  %s9091_s26 = sphi %s9147_s26, %s12382_s26   ;;  %s9087_s25 = sphi %s9145_s25, %s12381_s25   ;;  %s9083_s24 = sphi %s9143_s24, %s12380_s24  }
   0x4   : > { %s9166_s30 = sadd.s32 1, %s9095_s27   ;;  %s27_s8 = sadd.s32 1, %s9091_s26 }
   0x5   : > { %s24_s9 = ssub.s32 %s9095_s27, %s9166_s30  ;;  %p34_p0 = scmp.ne.s32.totalorder %s9091_s26, %s9087_s25 }
   0x6   : > { %p25_p1 = scmp.eq.s32.totalorder %s24_s9, 0  ;;  %p35_p2 = scmp.eq.s32.totalorder %s9095_s27, 0 }
   0x7   : > { %p200_p3 = scmp.eq.s32.totalorder %s7622_s28, 1  ;;  %p205_p4 = scmp.ne.s32.totalorder %s9087_s25, %s9083_s24 }
   0x8   : > { %s9179_s10 = scalar_select %p25_p1, %s9091_s26, %s27_s8  }
   0x9   : > { %p9181_p5 = por %p35_p2, %p34_p0  ;;  %p9185_p6 = por %p200_p3, %p34_p0 }
   0xa   : > { %p206_p7 = scmp.eq.s32.totalorder %s7623_s29, 1  ;;  %p7625_p9 = scmp.ge.s32.totalorder %s9095_s27, 2 }
   0xc   : > { %p9189_p8 = por %p206_p7, %p205_p4  ;;  %234 = sbr.rel (%p7625_p9) target bundleno = 106 (0x6a), region = 32 }
  0x11   : > { %237 = sbr.rel (!%p9181_p5) target bundleno = 58 (0x3a), region = 36  ;;  %s239_s14 = sand.u32 (%p9181_p5), 1, %s9091_s26  }
  0x12   : > { %s8907_s15 = smul.u32 (%p9181_p5), 144, %s9095_s27 }
  0x13   : > { %s8906_s16 = smul.u32 (%p9181_p5), 576, %s239_s14 }
  0x14   : > { %s9203_s19 = scalar_lea.vmem (%p9181_p5), %s12034_s0, %s8907_s15 }
  0x15   : > { %v415_v0 = vld [vmem:[%s9203_s19] sm:$0xff] (%p9181_p5)  ;;  %v417_v1 = vld [vmem:[%s9203_s19 + $0x8] sm:$0xff] (%p9181_p5)  ;;  %v419_v2 = vld [vmem:[%s9203_s19 + $0x10] sm:$0xff] (%p9181_p5)  ;;  %s9208_s20 = scalar_lea.vmem (%p9181_p5), [#allocation2], %s8906_s16 }
  0x16   : > { %416 = vst [vmem:[%s9208_s20] sm:$0xff] %v415_v0  ;;  %418 = vst [vmem:[%s9208_s20 + $0x8] sm:$0xff] %v417_v1  ;;  %v421_v3 = vld [vmem:[%s9203_s19 + $0x18] sm:$0xff]  ;;  %v423_v4 = vld [vmem:[%s9203_s19 + $0x20] sm:$0xff] }
  0x17   : > { %420 = vst [vmem:[%s9208_s20 + $0x10] sm:$0xff] %v419_v2  ;;  %v425_v5 = vld [vmem:[%s9203_s19 + $0x28] sm:$0xff]  ;;  %422 = vst [vmem:[%s9208_s20 + $0x18] sm:$0xff] %v421_v3  ;;  %v427_v6 = vld [vmem:[%s9203_s19 + $0x30] sm:$0xff] }
  0x18   : > { %424 = vst [vmem:[%s9208_s20 + $0x20] sm:$0xff] %v423_v4  ;;  %426 = vst [vmem:[%s9208_s20 + $0x28] sm:$0xff] %v425_v5  ;;  %v429_v7 = vld [vmem:[%s9203_s19 + $0x38] sm:$0xff]  ;;  %v431_v8 = vld [vmem:[%s9203_s19 + $0x40] sm:$0xff] }
  0x19   : > { %428 = vst [vmem:[%s9208_s20 + $0x30] sm:$0xff] %v427_v6  ;;  %430 = vst [vmem:[%s9208_s20 + $0x38] sm:$0xff] %v429_v7  ;;  %v433_v9 = vld [vmem:[%s9203_s19 + $0x48] sm:$0xff]  ;;  %v435_v10 = vld [vmem:[%s9203_s19 + $0x50] sm:$0xff] }
  0x1a   : > { %432 = vst [vmem:[%s9208_s20 + $0x40] sm:$0xff] %v431_v8  ;;  %v437_v11 = vld [vmem:[%s9203_s19 + $0x58] sm:$0xff]  ;;  %434 = vst [vmem:[%s9208_s20 + $0x48] sm:$0xff] %v433_v9  ;;  %v439_v12 = vld [vmem:[%s9203_s19 + $0x60] sm:$0xff] }
  0x1b   : > { %436 = vst [vmem:[%s9208_s20 + $0x50] sm:$0xff] %v435_v10  ;;  %438 = vst [vmem:[%s9208_s20 + $0x58] sm:$0xff] %v437_v11  ;;  %v441_v13 = vld [vmem:[%s9203_s19 + $0x68] sm:$0xff]  ;;  %v443_v14 = vld [vmem:[%s9203_s19 + $0x70] sm:$0xff] }
  0x1c   : > { %440 = vst [vmem:[%s9208_s20 + $0x60] sm:$0xff] %v439_v12  ;;  %442 = vst [vmem:[%s9208_s20 + $0x68] sm:$0xff] %v441_v13  ;;  %v445_v15 = vld [vmem:[%s9203_s19 + $0x78] sm:$0xff]  ;;  %v447_v16 = vld [vmem:[%s9203_s19 + $0x80] sm:$0xff] }
  0x1d   : > { %444 = vst [vmem:[%s9208_s20 + $0x70] sm:$0xff] %v443_v14  ;;  %v449_v17 = vld [vmem:[%s9203_s19 + $0x88] sm:$0xff]  ;;  %446 = vst [vmem:[%s9208_s20 + $0x78] sm:$0xff] %v445_v15  ;;  %v451_v18 = vld [vmem:[%s9203_s19 + $0x120] sm:$0xff] }
  0x1e   : > { %448 = vst [vmem:[%s9208_s20 + $0x80] sm:$0xff] %v447_v16  ;;  %450 = vst [vmem:[%s9208_s20 + $0x88] sm:$0xff] %v449_v17  ;;  %v453_v19 = vld [vmem:[%s9203_s19 + $0x128] sm:$0xff]  ;;  %v455_v20 = vld [vmem:[%s9203_s19 + $0x130] sm:$0xff] }
  0x1f   : > { %452 = vst [vmem:[%s9208_s20 + $0x90] sm:$0xff] %v451_v18  ;;  %454 = vst [vmem:[%s9208_s20 + $0x98] sm:$0xff] %v453_v19  ;;  %v457_v21 = vld [vmem:[%s9203_s19 + $0x138] sm:$0xff]  ;;  %v459_v22 = vld [vmem:[%s9203_s19 + $0x140] sm:$0xff] }
  0x20   : > { %456 = vst [vmem:[%s9208_s20 + $0xa0] sm:$0xff] %v455_v20  ;;  %v461_v23 = vld [vmem:[%s9203_s19 + $0x148] sm:$0xff]  ;;  %458 = vst [vmem:[%s9208_s20 + $0xa8] sm:$0xff] %v457_v21  ;;  %v463_v24 = vld [vmem:[%s9203_s19 + $0x150] sm:$0xff] }
  0x21   : > { %460 = vst [vmem:[%s9208_s20 + $0xb0] sm:$0xff] %v459_v22  ;;  %462 = vst [vmem:[%s9208_s20 + $0xb8] sm:$0xff] %v461_v23  ;;  %v465_v25 = vld [vmem:[%s9203_s19 + $0x158] sm:$0xff]  ;;  %v467_v26 = vld [vmem:[%s9203_s19 + $0x160] sm:$0xff] }
  0x22   : > { %464 = vst [vmem:[%s9208_s20 + $0xc0] sm:$0xff] %v463_v24  ;;  %466 = vst [vmem:[%s9208_s20 + $0xc8] sm:$0xff] %v465_v25  ;;  %v469_v27 = vld [vmem:[%s9203_s19 + $0x168] sm:$0xff]  ;;  %v471_v28 = vld [vmem:[%s9203_s19 + $0x170] sm:$0xff] }
  0x23   : > { %468 = vst [vmem:[%s9208_s20 + $0xd0] sm:$0xff] %v467_v26  ;;  %v473_v29 = vld [vmem:[%s9203_s19 + $0x178] sm:$0xff]  ;;  %470 = vst [vmem:[%s9208_s20 + $0xd8] sm:$0xff] %v469_v27  ;;  %v475_v30 = vld [vmem:[%s9203_s19 + $0x180] sm:$0xff] }
  0x24   : > { %472 = vst [vmem:[%s9208_s20 + $0xe0] sm:$0xff] %v471_v28  ;;  %474 = vst [vmem:[%s9208_s20 + $0xe8] sm:$0xff] %v473_v29  ;;  %v477_v31 = vld [vmem:[%s9203_s19 + $0x188] sm:$0xff]  ;;  %v479_v32 = vld [vmem:[%s9203_s19 + $0x190] sm:$0xff] }
  0x25   : > { %476 = vst [vmem:[%s9208_s20 + $0xf0] sm:$0xff] %v475_v30  ;;  %478 = vst [vmem:[%s9208_s20 + $0xf8] sm:$0xff] %v477_v31  ;;  %v481_v33 = vld [vmem:[%s9203_s19 + $0x198] sm:$0xff]  ;;  %v483_v34 = vld [vmem:[%s9203_s19 + $0x1a0] sm:$0xff] }
  0x26   : > { %480 = vst [vmem:[%s9208_s20 + $0x100] sm:$0xff] %v479_v32  ;;  %v485_v35 = vld [vmem:[%s9203_s19 + $0x1a8] sm:$0xff]  ;;  %482 = vst [vmem:[%s9208_s20 + $0x108] sm:$0xff] %v481_v33  ;;  %v487_v36 = vld [vmem:[%s9203_s19 + $0x240] sm:$0xff] }
  0x27   : > { %484 = vst [vmem:[%s9208_s20 + $0x110] sm:$0xff] %v483_v34  ;;  %486 = vst [vmem:[%s9208_s20 + $0x118] sm:$0xff] %v485_v35  ;;  %v489_v37 = vld [vmem:[%s9203_s19 + $0x248] sm:$0xff]  ;;  %v491_v38 = vld [vmem:[%s9203_s19 + $0x250] sm:$0xff] }
  0x28   : > { %488 = vst [vmem:[%s9208_s20 + $0x120] sm:$0xff] %v487_v36  ;;  %490 = vst [vmem:[%s9208_s20 + $0x128] sm:$0xff] %v489_v37  ;;  %v493_v39 = vld [vmem:[%s9203_s19 + $0x258] sm:$0xff]  ;;  %v495_v40 = vld [vmem:[%s9203_s19 + $0x260] sm:$0xff] }
  0x29   : > { %492 = vst [vmem:[%s9208_s20 + $0x130] sm:$0xff] %v491_v38  ;;  %v497_v41 = vld [vmem:[%s9203_s19 + $0x268] sm:$0xff]  ;;  %494 = vst [vmem:[%s9208_s20 + $0x138] sm:$0xff] %v493_v39  ;;  %v499_v42 = vld [vmem:[%s9203_s19 + $0x270] sm:$0xff] }
  0x2a   : > { %496 = vst [vmem:[%s9208_s20 + $0x140] sm:$0xff] %v495_v40  ;;  %498 = vst [vmem:[%s9208_s20 + $0x148] sm:$0xff] %v497_v41  ;;  %v501_v43 = vld [vmem:[%s9203_s19 + $0x278] sm:$0xff]  ;;  %v503_v44 = vld [vmem:[%s9203_s19 + $0x280] sm:$0xff] }
  0x2b   : > { %500 = vst [vmem:[%s9208_s20 + $0x150] sm:$0xff] %v499_v42  ;;  %502 = vst [vmem:[%s9208_s20 + $0x158] sm:$0xff] %v501_v43  ;;  %v505_v45 = vld [vmem:[%s9203_s19 + $0x288] sm:$0xff]  ;;  %v507_v46 = vld [vmem:[%s9203_s19 + $0x290] sm:$0xff] }
  0x2c   : > { %504 = vst [vmem:[%s9208_s20 + $0x160] sm:$0xff] %v503_v44  ;;  %v509_v47 = vld [vmem:[%s9203_s19 + $0x298] sm:$0xff]  ;;  %506 = vst [vmem:[%s9208_s20 + $0x168] sm:$0xff] %v505_v45  ;;  %v511_v48 = vld [vmem:[%s9203_s19 + $0x2a0] sm:$0xff] }
  0x2d   : > { %508 = vst [vmem:[%s9208_s20 + $0x170] sm:$0xff] %v507_v46  ;;  %510 = vst [vmem:[%s9208_s20 + $0x178] sm:$0xff] %v509_v47  ;;  %v513_v49 = vld [vmem:[%s9203_s19 + $0x2a8] sm:$0xff]  ;;  %v515_v50 = vld [vmem:[%s9203_s19 + $0x2b0] sm:$0xff] }
  0x2e   : > { %512 = vst [vmem:[%s9208_s20 + $0x180] sm:$0xff] %v511_v48  ;;  %514 = vst [vmem:[%s9208_s20 + $0x188] sm:$0xff] %v513_v49  ;;  %v517_v51 = vld [vmem:[%s9203_s19 + $0x2b8] sm:$0xff]  ;;  %v519_v52 = vld [vmem:[%s9203_s19 + $0x2c0] sm:$0xff] }
  0x2f   : > { %516 = vst [vmem:[%s9208_s20 + $0x190] sm:$0xff] %v515_v50  ;;  %v521_v53 = vld [vmem:[%s9203_s19 + $0x2c8] sm:$0xff]  ;;  %518 = vst [vmem:[%s9208_s20 + $0x198] sm:$0xff] %v517_v51  ;;  %v523_v54 = vld [vmem:[%s9203_s19 + $0x360] sm:$0xff] }
  0x30   : > { %520 = vst [vmem:[%s9208_s20 + $0x1a0] sm:$0xff] %v519_v52  ;;  %522 = vst [vmem:[%s9208_s20 + $0x1a8] sm:$0xff] %v521_v53  ;;  %v525_v55 = vld [vmem:[%s9203_s19 + $0x368] sm:$0xff]  ;;  %v527_v56 = vld [vmem:[%s9203_s19 + $0x370] sm:$0xff] }
  0x31   : > { %524 = vst [vmem:[%s9208_s20 + $0x1b0] sm:$0xff] %v523_v54  ;;  %526 = vst [vmem:[%s9208_s20 + $0x1b8] sm:$0xff] %v525_v55  ;;  %v529_v57 = vld [vmem:[%s9203_s19 + $0x378] sm:$0xff]  ;;  %v531_v58 = vld [vmem:[%s9203_s19 + $0x380] sm:$0xff] }
  0x32   : > { %528 = vst [vmem:[%s9208_s20 + $0x1c0] sm:$0xff] %v527_v56  ;;  %v533_v59 = vld [vmem:[%s9203_s19 + $0x388] sm:$0xff]  ;;  %530 = vst [vmem:[%s9208_s20 + $0x1c8] sm:$0xff] %v529_v57  ;;  %v535_v60 = vld [vmem:[%s9203_s19 + $0x390] sm:$0xff] }
  0x33   : > { %532 = vst [vmem:[%s9208_s20 + $0x1d0] sm:$0xff] %v531_v58  ;;  %534 = vst [vmem:[%s9208_s20 + $0x1d8] sm:$0xff] %v533_v59  ;;  %v537_v61 = vld [vmem:[%s9203_s19 + $0x398] sm:$0xff]  ;;  %v539_v62 = vld [vmem:[%s9203_s19 + $0x3a0] sm:$0xff] }
  0x34   : > { %536 = vst [vmem:[%s9208_s20 + $0x1e0] sm:$0xff] %v535_v60  ;;  %538 = vst [vmem:[%s9208_s20 + $0x1e8] sm:$0xff] %v537_v61  ;;  %v541_v63 = vld [vmem:[%s9203_s19 + $0x3a8] sm:$0xff]  ;;  %v543_v0 = vld [vmem:[%s9203_s19 + $0x3b0] sm:$0xff] }
  0x35   : > { %540 = vst [vmem:[%s9208_s20 + $0x1f0] sm:$0xff] %v539_v62  ;;  %v545_v1 = vld [vmem:[%s9203_s19 + $0x3b8] sm:$0xff]  ;;  %542 = vst [vmem:[%s9208_s20 + $0x1f8] sm:$0xff] %v541_v63  ;;  %v547_v2 = vld [vmem:[%s9203_s19 + $0x3c0] sm:$0xff] }
  0x36   : > { %544 = vst [vmem:[%s9208_s20 + $0x200] sm:$0xff] %v543_v0  ;;  %546 = vst [vmem:[%s9208_s20 + $0x208] sm:$0xff] %v545_v1  ;;  %v549_v3 = vld [vmem:[%s9203_s19 + $0x3c8] sm:$0xff]  ;;  %v551_v4 = vld [vmem:[%s9203_s19 + $0x3d0] sm:$0xff] }
  0x37   : > { %548 = vst [vmem:[%s9208_s20 + $0x210] sm:$0xff] %v547_v2  ;;  %550 = vst [vmem:[%s9208_s20 + $0x218] sm:$0xff] %v549_v3  ;;  %v553_v5 = vld [vmem:[%s9203_s19 + $0x3d8] sm:$0xff]  ;;  %v555_v6 = vld [vmem:[%s9203_s19 + $0x3e0] sm:$0xff] }
  0x38   : > { %552 = vst [vmem:[%s9208_s20 + $0x220] sm:$0xff] %v551_v4  ;;  %v557_v7 = vld [vmem:[%s9203_s19 + $0x3e8] sm:$0xff]  ;;  %554 = vst [vmem:[%s9208_s20 + $0x228] sm:$0xff] %v553_v5 }
  0x39   : > { %556 = vst [vmem:[%s9208_s20 + $0x230] sm:$0xff] %v555_v6  ;;  %558 = vst [vmem:[%s9208_s20 + $0x238] sm:$0xff] %v557_v7 }
  0x3a PF: > { %564 = sbr.rel (!%p9181_p5) target bundleno = 81 (0x51), region = 74  ;;  %s566_s21 = sand.u32 (%p9181_p5), 1, %s9091_s26  }
  0x3b   : > { %s8909_s22 = smul.u32 (%p9181_p5), 72, %s9095_s27 }
  0x3c   : > { %s8908_s23 = smul.u32 (%p9181_p5), 288, %s566_s21 }
  0x3d   : > { %s9358_s9 = scalar_lea.vmem (%p9181_p5), %s12035_s1, %s8909_s22 }
  0x3e   : > { %v588_v8 = vld [vmem:[%s9358_s9] sm:$0xff] (%p9181_p5)   ;;  %v592_v9 = vld [vmem:[%s9358_s9 + $0x8] sm:$0xff] (%p9181_p5)   ;;  %v596_v10 = vld [vmem:[%s9358_s9 + $0x10] sm:$0xff] (%p9181_p5)   ;;  %s9363_s14 = scalar_lea.vmem (%p9181_p5), [#allocation3], %s8908_s23 }
  0x3f   : > { %589 = vst [vmem:[%s9363_s14] sm:$0xff] %v588_v8   ;;  %593 = vst [vmem:[%s9363_s14 + $0x8] sm:$0xff] %v592_v9   ;;  %v600_v11 = vld [vmem:[%s9358_s9 + $0x18] sm:$0xff]   ;;  %v604_v12 = vld [vmem:[%s9358_s9 + $0x20] sm:$0xff]  }
  0x40   : > { %597 = vst [vmem:[%s9363_s14 + $0x10] sm:$0xff] %v596_v10   ;;  %v608_v13 = vld [vmem:[%s9358_s9 + $0x28] sm:$0xff]   ;;  %601 = vst [vmem:[%s9363_s14 + $0x18] sm:$0xff] %v600_v11   ;;  %v612_v14 = vld [vmem:[%s9358_s9 + $0x30] sm:$0xff]  }
  0x41   : > { %605 = vst [vmem:[%s9363_s14 + $0x20] sm:$0xff] %v604_v12   ;;  %609 = vst [vmem:[%s9363_s14 + $0x28] sm:$0xff] %v608_v13   ;;  %v616_v15 = vld [vmem:[%s9358_s9 + $0x38] sm:$0xff]   ;;  %v620_v16 = vld [vmem:[%s9358_s9 + $0x40] sm:$0xff]  }
  0x42   : > { %613 = vst [vmem:[%s9363_s14 + $0x30] sm:$0xff] %v612_v14   ;;  %617 = vst [vmem:[%s9363_s14 + $0x38] sm:$0xff] %v616_v15   ;;  %v624_v17 = vld [vmem:[%s9358_s9 + $0x90] sm:$0xff]   ;;  %v628_v18 = vld [vmem:[%s9358_s9 + $0x98] sm:$0xff]  }
  0x43   : > { %621 = vst [vmem:[%s9363_s14 + $0x40] sm:$0xff] %v620_v16   ;;  %v632_v19 = vld [vmem:[%s9358_s9 + $0xa0] sm:$0xff]   ;;  %625 = vst [vmem:[%s9363_s14 + $0x48] sm:$0xff] %v624_v17   ;;  %v636_v20 = vld [vmem:[%s9358_s9 + $0xa8] sm:$0xff]  }
  0x44   : > { %629 = vst [vmem:[%s9363_s14 + $0x50] sm:$0xff] %v628_v18   ;;  %633 = vst [vmem:[%s9363_s14 + $0x58] sm:$0xff] %v632_v19   ;;  %v640_v21 = vld [vmem:[%s9358_s9 + $0xb0] sm:$0xff]   ;;  %v644_v22 = vld [vmem:[%s9358_s9 + $0xb8] sm:$0xff]  }
  0x45   : > { %637 = vst [vmem:[%s9363_s14 + $0x60] sm:$0xff] %v636_v20   ;;  %641 = vst [vmem:[%s9363_s14 + $0x68] sm:$0xff] %v640_v21   ;;  %v648_v23 = vld [vmem:[%s9358_s9 + $0xc0] sm:$0xff]   ;;  %v652_v24 = vld [vmem:[%s9358_s9 + $0xc8] sm:$0xff]  }
  0x46   : > { %645 = vst [vmem:[%s9363_s14 + $0x70] sm:$0xff] %v644_v22   ;;  %v656_v25 = vld [vmem:[%s9358_s9 + $0xd0] sm:$0xff]   ;;  %649 = vst [vmem:[%s9363_s14 + $0x78] sm:$0xff] %v648_v23   ;;  %v660_v26 = vld [vmem:[%s9358_s9 + $0x120] sm:$0xff]  }
  0x47   : > { %653 = vst [vmem:[%s9363_s14 + $0x80] sm:$0xff] %v652_v24   ;;  %657 = vst [vmem:[%s9363_s14 + $0x88] sm:$0xff] %v656_v25   ;;  %v664_v27 = vld [vmem:[%s9358_s9 + $0x128] sm:$0xff]   ;;  %v668_v28 = vld [vmem:[%s9358_s9 + $0x130] sm:$0xff]  }
  0x48   : > { %661 = vst [vmem:[%s9363_s14 + $0x90] sm:$0xff] %v660_v26   ;;  %665 = vst [vmem:[%s9363_s14 + $0x98] sm:$0xff] %v664_v27   ;;  %v672_v29 = vld [vmem:[%s9358_s9 + $0x138] sm:$0xff]   ;;  %v676_v30 = vld [vmem:[%s9358_s9 + $0x140] sm:$0xff]  }
  0x49   : > { %669 = vst [vmem:[%s9363_s14 + $0xa0] sm:$0xff] %v668_v28   ;;  %v680_v31 = vld [vmem:[%s9358_s9 + $0x148] sm:$0xff]   ;;  %673 = vst [vmem:[%s9363_s14 + $0xa8] sm:$0xff] %v672_v29   ;;  %v684_v32 = vld [vmem:[%s9358_s9 + $0x150] sm:$0xff]  }
  0x4a   : > { %677 = vst [vmem:[%s9363_s14 + $0xb0] sm:$0xff] %v676_v30   ;;  %681 = vst [vmem:[%s9363_s14 + $0xb8] sm:$0xff] %v680_v31   ;;  %v688_v33 = vld [vmem:[%s9358_s9 + $0x158] sm:$0xff]   ;;  %v692_v34 = vld [vmem:[%s9358_s9 + $0x160] sm:$0xff]  }
  0x4b   : > { %685 = vst [vmem:[%s9363_s14 + $0xc0] sm:$0xff] %v684_v32   ;;  %689 = vst [vmem:[%s9363_s14 + $0xc8] sm:$0xff] %v688_v33   ;;  %v696_v35 = vld [vmem:[%s9358_s9 + $0x1b0] sm:$0xff]   ;;  %v700_v36 = vld [vmem:[%s9358_s9 + $0x1b8] sm:$0xff]  }
  0x4c   : > { %693 = vst [vmem:[%s9363_s14 + $0xd0] sm:$0xff] %v692_v34   ;;  %v704_v37 = vld [vmem:[%s9358_s9 + $0x1c0] sm:$0xff]   ;;  %697 = vst [vmem:[%s9363_s14 + $0xd8] sm:$0xff] %v696_v35   ;;  %v708_v38 = vld [vmem:[%s9358_s9 + $0x1c8] sm:$0xff]  }
  0x4d   : > { %701 = vst [vmem:[%s9363_s14 + $0xe0] sm:$0xff] %v700_v36   ;;  %705 = vst [vmem:[%s9363_s14 + $0xe8] sm:$0xff] %v704_v37   ;;  %v712_v39 = vld [vmem:[%s9358_s9 + $0x1d0] sm:$0xff]   ;;  %v716_v40 = vld [vmem:[%s9358_s9 + $0x1d8] sm:$0xff]  }
  0x4e   : > { %709 = vst [vmem:[%s9363_s14 + $0xf0] sm:$0xff] %v708_v38   ;;  %713 = vst [vmem:[%s9363_s14 + $0xf8] sm:$0xff] %v712_v39   ;;  %v720_v41 = vld [vmem:[%s9358_s9 + $0x1e0] sm:$0xff]   ;;  %v724_v42 = vld [vmem:[%s9358_s9 + $0x1e8] sm:$0xff]  }
  0x4f   : > { %717 = vst [vmem:[%s9363_s14 + $0x100] sm:$0xff] %v716_v40   ;;  %v728_v43 = vld [vmem:[%s9358_s9 + $0x1f0] sm:$0xff]   ;;  %721 = vst [vmem:[%s9363_s14 + $0x108] sm:$0xff] %v720_v41  }
  0x50   : > { %725 = vst [vmem:[%s9363_s14 + $0x110] sm:$0xff] %v724_v42   ;;  %729 = vst [vmem:[%s9363_s14 + $0x118] sm:$0xff] %v728_v43  }
  0x51 PF: > { %899 = sbr.rel (!%p9181_p5) target bundleno = 106 (0x6a), region = 115  ;;  %s901_s15 = sand.u32 (%p9181_p5), 1, %s9091_s26  }
  0x52   : > { %s8911_s16 = smul.u32 (%p9181_p5), 80, %s9095_s27 }
  0x53   : > { %s8910_s17 = smul.u32 (%p9181_p5), 320, %s901_s15 }
  0x54   : > { %s9441_s20 = scalar_lea.vmem (%p9181_p5), %s12036_s2, %s8911_s16 }
  0x55   : > { %v923_v44 = vld [vmem:[%s9441_s20] sm:$0xff] (%p9181_p5)   ;;  %v927_v45 = vld [vmem:[%s9441_s20 + $0x8] sm:$0xff] (%p9181_p5)   ;;  %v931_v46 = vld [vmem:[%s9441_s20 + $0x10] sm:$0xff] (%p9181_p5)   ;;  %s9446_s11 = scalar_lea.vmem (%p9181_p5), [#allocation4], %s8910_s17 }
  0x56   : > { %924 = vst [vmem:[%s9446_s11] sm:$0xff] %v923_v44   ;;  %928 = vst [vmem:[%s9446_s11 + $0x8] sm:$0xff] %v927_v45   ;;  %v935_v47 = vld [vmem:[%s9441_s20 + $0x18] sm:$0xff]   ;;  %v939_v48 = vld [vmem:[%s9441_s20 + $0x20] sm:$0xff]  }
  0x57   : > { %932 = vst [vmem:[%s9446_s11 + $0x10] sm:$0xff] %v931_v46   ;;  %v943_v49 = vld [vmem:[%s9441_s20 + $0x28] sm:$0xff]   ;;  %936 = vst [vmem:[%s9446_s11 + $0x18] sm:$0xff] %v935_v47   ;;  %v947_v50 = vld [vmem:[%s9441_s20 + $0x30] sm:$0xff]  }
  0x58   : > { %940 = vst [vmem:[%s9446_s11 + $0x20] sm:$0xff] %v939_v48   ;;  %944 = vst [vmem:[%s9446_s11 + $0x28] sm:$0xff] %v943_v49   ;;  %v951_v51 = vld [vmem:[%s9441_s20 + $0x38] sm:$0xff]   ;;  %v955_v52 = vld [vmem:[%s9441_s20 + $0x40] sm:$0xff]  }
  0x59   : > { %948 = vst [vmem:[%s9446_s11 + $0x30] sm:$0xff] %v947_v50   ;;  %952 = vst [vmem:[%s9446_s11 + $0x38] sm:$0xff] %v951_v51   ;;  %v959_v53 = vld [vmem:[%s9441_s20 + $0x48] sm:$0xff]   ;;  %v963_v54 = vld [vmem:[%s9441_s20 + $0xa0] sm:$0xff]  }
  0x5a   : > { %956 = vst [vmem:[%s9446_s11 + $0x40] sm:$0xff] %v955_v52   ;;  %v967_v55 = vld [vmem:[%s9441_s20 + $0xa8] sm:$0xff]   ;;  %960 = vst [vmem:[%s9446_s11 + $0x48] sm:$0xff] %v959_v53   ;;  %v971_v56 = vld [vmem:[%s9441_s20 + $0xb0] sm:$0xff]  }
  0x5b   : > { %964 = vst [vmem:[%s9446_s11 + $0x50] sm:$0xff] %v963_v54   ;;  %968 = vst [vmem:[%s9446_s11 + $0x58] sm:$0xff] %v967_v55   ;;  %v975_v57 = vld [vmem:[%s9441_s20 + $0xb8] sm:$0xff]   ;;  %v979_v58 = vld [vmem:[%s9441_s20 + $0xc0] sm:$0xff]  }
  0x5c   : > { %972 = vst [vmem:[%s9446_s11 + $0x60] sm:$0xff] %v971_v56   ;;  %976 = vst [vmem:[%s9446_s11 + $0x68] sm:$0xff] %v975_v57   ;;  %v983_v59 = vld [vmem:[%s9441_s20 + $0xc8] sm:$0xff]   ;;  %v987_v60 = vld [vmem:[%s9441_s20 + $0xd0] sm:$0xff]  }
  0x5d   : > { %980 = vst [vmem:[%s9446_s11 + $0x70] sm:$0xff] %v979_v58   ;;  %v991_v61 = vld [vmem:[%s9441_s20 + $0xd8] sm:$0xff]   ;;  %984 = vst [vmem:[%s9446_s11 + $0x78] sm:$0xff] %v983_v59   ;;  %v995_v62 = vld [vmem:[%s9441_s20 + $0xe0] sm:$0xff]  }
  0x5e   : > { %988 = vst [vmem:[%s9446_s11 + $0x80] sm:$0xff] %v987_v60   ;;  %992 = vst [vmem:[%s9446_s11 + $0x88] sm:$0xff] %v991_v61   ;;  %v999_v63 = vld [vmem:[%s9441_s20 + $0xe8] sm:$0xff]   ;;  %v1003_v0 = vld [vmem:[%s9441_s20 + $0x140] sm:$0xff]  }
  0x5f   : > { %996 = vst [vmem:[%s9446_s11 + $0x90] sm:$0xff] %v995_v62   ;;  %1000 = vst [vmem:[%s9446_s11 + $0x98] sm:$0xff] %v999_v63   ;;  %v1007_v1 = vld [vmem:[%s9441_s20 + $0x148] sm:$0xff]   ;;  %v1011_v2 = vld [vmem:[%s9441_s20 + $0x150] sm:$0xff]  }
  0x60   : > { %1004 = vst [vmem:[%s9446_s11 + $0xa0] sm:$0xff] %v1003_v0   ;;  %v1015_v3 = vld [vmem:[%s9441_s20 + $0x158] sm:$0xff]   ;;  %1008 = vst [vmem:[%s9446_s11 + $0xa8] sm:$0xff] %v1007_v1   ;;  %v1019_v4 = vld [vmem:[%s9441_s20 + $0x160] sm:$0xff]  }
  0x61   : > { %1012 = vst [vmem:[%s9446_s11 + $0xb0] sm:$0xff] %v1011_v2   ;;  %1016 = vst [vmem:[%s9446_s11 + $0xb8] sm:$0xff] %v1015_v3   ;;  %v1023_v5 = vld [vmem:[%s9441_s20 + $0x168] sm:$0xff]   ;;  %v1027_v6 = vld [vmem:[%s9441_s20 + $0x170] sm:$0xff]  }
  0x62   : > { %1020 = vst [vmem:[%s9446_s11 + $0xc0] sm:$0xff] %v1019_v4   ;;  %1024 = vst [vmem:[%s9446_s11 + $0xc8] sm:$0xff] %v1023_v5   ;;  %v1031_v7 = vld [vmem:[%s9441_s20 + $0x178] sm:$0xff]   ;;  %v1035_v8 = vld [vmem:[%s9441_s20 + $0x180] sm:$0xff]  }
  0x63   : > { %1028 = vst [vmem:[%s9446_s11 + $0xd0] sm:$0xff] %v1027_v6   ;;  %v1039_v9 = vld [vmem:[%s9441_s20 + $0x188] sm:$0xff]   ;;  %1032 = vst [vmem:[%s9446_s11 + $0xd8] sm:$0xff] %v1031_v7   ;;  %v1043_v10 = vld [vmem:[%s9441_s20 + $0x1e0] sm:$0xff]  }
  0x64   : > { %1036 = vst [vmem:[%s9446_s11 + $0xe0] sm:$0xff] %v1035_v8   ;;  %1040 = vst [vmem:[%s9446_s11 + $0xe8] sm:$0xff] %v1039_v9   ;;  %v1047_v11 = vld [vmem:[%s9441_s20 + $0x1e8] sm:$0xff]   ;;  %v1051_v12 = vld [vmem:[%s9441_s20 + $0x1f0] sm:$0xff]  }
  0x65   : > { %1044 = vst [vmem:[%s9446_s11 + $0xf0] sm:$0xff] %v1043_v10   ;;  %1048 = vst [vmem:[%s9446_s11 + $0xf8] sm:$0xff] %v1047_v11   ;;  %v1055_v13 = vld [vmem:[%s9441_s20 + $0x1f8] sm:$0xff]   ;;  %v1059_v14 = vld [vmem:[%s9441_s20 + $0x200] sm:$0xff]  }
  0x66   : > { %1052 = vst [vmem:[%s9446_s11 + $0x100] sm:$0xff] %v1051_v12   ;;  %v1063_v15 = vld [vmem:[%s9441_s20 + $0x208] sm:$0xff]   ;;  %1056 = vst [vmem:[%s9446_s11 + $0x108] sm:$0xff] %v1055_v13   ;;  %v1067_v16 = vld [vmem:[%s9441_s20 + $0x210] sm:$0xff]  }
  0x67   : > { %1060 = vst [vmem:[%s9446_s11 + $0x110] sm:$0xff] %v1059_v14   ;;  %1064 = vst [vmem:[%s9446_s11 + $0x118] sm:$0xff] %v1063_v15   ;;  %v1071_v17 = vld [vmem:[%s9441_s20 + $0x218] sm:$0xff]   ;;  %v1075_v18 = vld [vmem:[%s9441_s20 + $0x220] sm:$0xff]  }
  0x68   : > { %1068 = vst [vmem:[%s9446_s11 + $0x120] sm:$0xff] %v1067_v16   ;;  %1072 = vst [vmem:[%s9446_s11 + $0x128] sm:$0xff] %v1071_v17   ;;  %v1079_v19 = vld [vmem:[%s9441_s20 + $0x228] sm:$0xff]  }
  0x69   : > { %1076 = vst [vmem:[%s9446_s11 + $0x130] sm:$0xff] %v1075_v18   ;;  %1080 = vst [vmem:[%s9446_s11 + $0x138] sm:$0xff] %v1079_v19  }
  0x6a PF: > { %p7629_p10 = scmp.ge.s32.totalorder %s9095_s27, 1  ;;  %p1265_p11 = scmp.lt.s32.totalorder %s9095_s27, 3 }
  0x6c   : > { %p1266_p12 = pnand %p7629_p10, %p1265_p11 }
  0x6e   : > { %1269 = sbr.rel (%p1266_p12) target bundleno = 820 (0x334), region = 156 }
  0x73   : > { %v7698_v20 = vld [vmem:[%s12037_s3 + $0x4] sm:$0xf]  ;;  %vm1725_vm0 = vcmask 1043456   ;;  %v1680_v21 = vld [vmem:[%s12037_s3] sm:$0xf]  ;;  %s9534_s8 = sand.u32 1, %s9087_s25  }
  0x74   : > { %8872 = vmatprep.subr.msk.bf16.mxu0 %vm1725_vm0, %v7698_v20  ;;  %v1727_v22 = vsel %vm1725_vm0, %v7698_v20, 0  ;;  %8873 = vmatprep.subr.msk.bf16.mxu1 %vm1725_vm0, %v1680_v21  ;;  %v1827_v23 = vsel %vm1725_vm0, %v1680_v21, 0  ;;  %s8913_s9 = smul.u32 288, %s9534_s8  ;;  %v7715_v24 = vld [vmem:[%s12037_s3 + $0x8] sm:$0xf]  ;;  %vm1712_vm1 = vcmask 64512  }
  0x75   : > { %8533 = vmatpush3.bf16.msra.mxu0 %v1727_v22  ;;  %8543 = vmatpush3.bf16.msra.mxu1 %v1827_v23  ;;  %v7732_v25 = vld [vmem:[%s12037_s3 + $0xc] sm:$0xf]  ;;  %v2052_v26 = vsel %vm1725_vm0, %v7715_v24, 0  ;;  %vm1910_vm2 = vsmask.f32 3328  ;;  %s8914_s14 = smul.u32 320, %s9534_s8 }
  0x76   : > { %8874 = vmatprep.subr.msk.bf16.mxu0 %vm1725_vm0, %v7715_v24  ;;  %8875 = vmatprep.subr.msk.bf16.mxu1 %vm1725_vm0, %v7732_v25  ;;  %s9549_s18 = scalar_lea.vmem [#allocation3], %s8913_s9  ;;  %v2171_v27 = vsel %vm1725_vm0, %v7732_v25, 0  ;;  %vm1911_vm3 = vsmask.f32 7440  ;;  %v9560_v31 = vld [vmem:[%s12037_s3 + $0x10] sm:$0xf] }
  0x77   : > { %v8959_v28 = vld [vmem:[%s9549_s18 + $0x48] ss:$8 sps:$4 sm:$0xff]   ;;  %v8961_v30 = vld [vmem:[%s9549_s18 + $0x58] ss:$8 sps:$4 sm:$0xff]   ;;  %v1895_v38 = vld [vmem:[%s9549_s18 + $0x4] sm:$0x1] }
  0x78   : > { %v8960_v29 = vld [vmem:[%s9549_s18] ss:$8 sps:$4 sm:$0xff]   ;;  %8534 = vmatprep.mubr.msk.bf16.mxu0 %vm1712_vm1, %v8959_v28  ;;  %v8962_v32 = vld [vmem:[%s9549_s18 + $0x10] ss:$8 sps:$4 sm:$0xff]   ;;  %v1897_v40 = vld [vmem:[%s9549_s18 + $0xc] sm:$0x1] }
  0x79   : > { %8544 = vmatprep.mubr.msk.bf16.mxu1 %vm1712_vm1, %v8960_v29  ;;  %8535 = vmatmul.mubr.msk.bf16.vlgmr.msra.gmra.mxu0 %vm1712_vm1, %v8961_v30  ;;  %v8963_v33 = vld [vmem:[%s9549_s18 + $0x68] ss:$8 sps:$4 sm:$0xff]   ;;  %v8965_v35 = vld [vmem:[%s9549_s18 + $0x78] ss:$8 sps:$4 sm:$0xff]   ;;  %v1923_v43 = vshll.u32 %v1895_v38, 16  ;;  %v1937_v46 = vshll.u32 %v1897_v40, 16  ;;  %vm9587_vm4 = vmor %vm1910_vm2, %vm1911_vm3 }
  0x7a   : > { %8545 = vmatmul.mubr.msk.bf16.vlgmr.msra.gmra.mxu1 %vm1712_vm1, %v8962_v32  ;;  %8553 = vmatpush3.bf16.msra.mxu0 %v2052_v26  ;;  %v8964_v34 = vld [vmem:[%s9549_s18 + $0x20] ss:$8 sps:$4 sm:$0xff]   ;;  %v8966_v36 = vld [vmem:[%s9549_s18 + $0x30] ss:$8 sps:$4 sm:$0xff]   ;;  %v1899_v56 = vld [vmem:[%s9549_s18 + $0x14] sm:$0x1] }
  0x7b   : > { %8563 = vmatpush3.bf16.msra.mxu1 %v2171_v27  ;;  %8538 = vmatprep.mubr.msk.bf16.mxu0 %vm1712_vm1, %v8963_v33  ;;  %v1894_v37 = vld [vmem:[%s9549_s18] sm:$0xf]  ;;  %v1896_v39 = vld [vmem:[%s9549_s18 + $0x8] sm:$0xf]  ;;  %v8967_v49 = vld [vmem:[%s9549_s18 + $0x90] ss:$8 sps:$4 sm:$0xff]  }
  0x7c   : > { %8548 = vmatprep.mubr.msk.bf16.mxu1 %vm1712_vm1, %v8964_v34  ;;  %8876 = vmatprep.subr.msk.bf16.mxu0 %vm1725_vm0, %v9560_v31  ;;  %v1914_v41 = vshrl.u32 %v1894_v37, 16  ;;  %v1917_v42 = vshll.u32 %v1894_v37, 16  ;;  %v1928_v44 = vshrl.u32 %v1896_v39, 16  ;;  %v1931_v45 = vshll.u32 %v1896_v39, 16  ;;  %v1898_v54 = vld [vmem:[%s9549_s18 + $0x10] sm:$0xf] }
  0x7d   : > { %v1925_v50 = vrot.slane %v1923_v43, 5  ;;  %v1939_v53 = vrot.slane %v1937_v46, 5  ;;  %v1900_v57 = vld [vmem:[%s9549_s18 + $0x18] sm:$0xf]  ;;  %v1901_v58 = vld [vmem:[%s9549_s18 + $0x1c] sm:$0x1] }
  0x7e   : > { %v1916_v47 = vrot.slane %v1914_v41, 4  ;;  %v1919_v48 = vrot.slane %v1917_v42, 5  ;;  %v1930_v51 = vrot.slane %v1928_v44, 4  ;;  %v1933_v52 = vrot.slane %v1931_v45, 5  ;;  %v8968_v11 = vld [vmem:[%s9549_s18 + $0xa0] ss:$8 sps:$4 sm:$0xff]  }
  0x7f   : > { %v1942_v61 = vshrl.u32 %v1898_v54, 16  ;;  %v1945_v62 = vshll.u32 %v1898_v54, 16  ;;  %v1951_v63 = vshll.u32 %v1899_v56, 16  ;;  %v1956_v1 = vshrl.u32 %v1900_v57, 16  ;;  %v7774_v12 = vld [vmem:[%s12037_s3 + $0x14] sm:$0xf] }
  0x80   : > { %v1920_v55 = vor.u32 %v1919_v48, %v1916_v47  ;;  %v1934_v60 = vor.u32 %v1933_v52, %v1930_v51  ;;  %v1959_v2 = vshll.u32 %v1900_v57, 16  ;;  %v1965_v3 = vshll.u32 %v1901_v58, 16  ;;  %8877 = vmatprep.subr.msk.bf16.mxu1 %vm1725_vm0, %v7774_v12  ;;  %v1902_v17 = vld [vmem:[%s9549_s18 + $0x20] sm:$0xf]  ;;  %v1903_v18 = vld [vmem:[%s9549_s18 + $0x24] sm:$0x1] }
  0x81   : > { %8539 = vmatmul.mubr.msk.bf16.gmra.mxu0 %vm1712_vm1, %v8965_v35  ;;  %v1944_v5 = vrot.slane %v1942_v61, 4  ;;  %v1947_v6 = vrot.slane %v1945_v62, 5  ;;  %v1953_v7 = vrot.slane %v1951_v63, 5  ;;  %v1958_v9 = vrot.slane %v1956_v1, 4  ;;  %v1904_v21 = vld [vmem:[%s9549_s18 + $0x28] sm:$0xf] }
  0x82   : > { %8549 = vmatmul.mubr.msk.bf16.gmra.mxu1 %vm1712_vm1, %v8966_v36  ;;  %v1921_v0 = vrot.slane %v1920_v55, 4  ;;  %v1935_v4 = vrot.slane %v1934_v60, 4  ;;  %v1961_v10 = vrot.slane %v1959_v2, 5  ;;  %v1967_v15 = vrot.slane %v1965_v3, 5  ;;  %v1905_v22 = vld [vmem:[%s9549_s18 + $0x2c] sm:$0x1] }
  0x83   : > { %8564 = vmatprep.mubr.msk.bf16.mxu1 %vm1712_vm1, %v8967_v49  ;;  %v1948_v14 = vor.u32 %v1947_v6, %v1944_v5  ;;  %v2520_v16 = vsel %vm1725_vm0, %v7774_v12, 0  ;;  %v1970_v23 = vshrl.u32 %v1902_v17, 16  ;;  %v1973_v24 = vshll.u32 %v1902_v17, 16  ;;  %v8969_v38 = vld [vmem:[%s9549_s18 + $0xb0] ss:$8 sps:$4 sm:$0xff]   ;;  %s9714_s20 = scalar_lea.vmem [#allocation4], %s8914_s14 }
  0x84   : > { %v1926_v8 = vsel %vm9587_vm4, %v1921_v0, %v1925_v50  ;;  %v1940_v13 = vsel %vm9587_vm4, %v1935_v4, %v1939_v53  ;;  %v1962_v20 = vor.u32 %v1961_v10, %v1958_v9  ;;  %v1979_v26 = vshll.u32 %v1903_v18, 16  ;;  %v1906_v43 = vld [vmem:[%s9549_s18 + $0x30] sm:$0xf]  ;;  %v1907_v44 = vld [vmem:[%s9549_s18 + $0x34] sm:$0x1]  ;;  %s8912_s22 = smul.u32 576, %s9534_s8 }
  0x85   : > { %v7716_v19 = vcombine.low %v1926_v8, %v1940_v13  ;;  %v1949_v25 = vrot.slane %v1948_v14, 4  ;;  %v1984_v27 = vshrl.u32 %v1904_v21, 16  ;;  %v1987_v28 = vshll.u32 %v1904_v21, 16  ;;  %v1908_v47 = vld [vmem:[%s9549_s18 + $0x38] sm:$0xf]  ;;  %s9098_s9 = smov 40  }
  0x86   : > { %v1963_v29 = vrot.slane %v1962_v20, 4  ;;  %v1972_v30 = vrot.slane %v1970_v23, 4  ;;  %v1975_v32 = vrot.slane %v1973_v24, 5  ;;  %v1993_v33 = vshll.u32 %v1905_v22, 16  ;;  %v1909_v48 = vld [vmem:[%s9549_s18 + $0x3c] sm:$0x1] }
  0x87   : > { %8554 = vmatprep.mubr.msk.bf16.mxu0 %vm1712_vm1, %v7716_v19  ;;  %v1954_v34 = vsel %vm9587_vm4, %v1949_v25, %v1953_v7  ;;  %v2290_v35 = vsel %vm1725_vm0, %v9560_v31, 0  ;;  %v1986_v36 = vrot.slane %v1984_v27, 4  ;;  %v1989_v37 = vrot.slane %v1987_v28, 5  ;;  %v8970_v62 = vld [vmem:[%s9549_s18 + $0xc0] ss:$8 sps:$4 sm:$0xff]   ;;  %s10192_s29 = scalar_lea.vmem [#allocation2], %s8912_s22 }
  0x88   : > { %v1968_v39 = vsel %vm9587_vm4, %v1963_v29, %v1967_v15  ;;  %v1976_v40 = vor.u32 %v1975_v32, %v1972_v30  ;;  %v1981_v41 = vrot.slane %v1979_v26, 5  ;;  %v1995_v42 = vrot.slane %v1993_v33, 5  ;;  %v7758_v5 = vld [vmem:[%s9549_s18 + $0x90] sm:$0xf]  ;;  %v7759_v6 = vld [vmem:[%s9549_s18 + $0x94] sm:$0x1] }
  0x89   : > { %v7717_v45 = vcombine.low %v1954_v34, %v1968_v39  ;;  %v1990_v46 = vor.u32 %v1989_v37, %v1986_v36  ;;  %v1998_v31 = vshrl.u32 %v1906_v43, 16  ;;  %v2001_v49 = vshll.u32 %v1906_v43, 16  ;;  %v7760_v8 = vld [vmem:[%s9549_s18 + $0x98] sm:$0xf]  ;;  %v7761_v9 = vld [vmem:[%s9549_s18 + $0x9c] sm:$0x1] }
  0x8a   : > { %8565 = vmatmul.mubr.msk.bf16.vlgmr.msra.gmra.mxu1 %vm1712_vm1, %v8968_v11  ;;  %v1977_v50 = vrot.slane %v1976_v40, 4  ;;  %v2007_v51 = vshll.u32 %v1907_v44, 16  ;;  %v2012_v52 = vshrl.u32 %v1908_v47, 16  ;;  %v2015_v53 = vshll.u32 %v1908_v47, 16  ;;  %v7791_v15 = vld [vmem:[%s12037_s3 + $0x18] sm:$0xf] }
  0x8b   : > { %8583 = vmatpush3.bf16.msra.mxu1 %v2520_v16  ;;  %8568 = vmatprep.mubr.msk.bf16.mxu1 %vm1712_vm1, %v8969_v38  ;;  %v1991_v54 = vrot.slane %v1990_v46, 4  ;;  %v2000_v55 = vrot.slane %v1998_v31, 4  ;;  %v2003_v56 = vrot.slane %v2001_v49, 5  ;;  %v2021_v57 = vshll.u32 %v1909_v48, 16  ;;  %v8971_v21 = vld [vmem:[%s9549_s18 + $0xd8] ss:$8 sps:$4 sm:$0xff]  }
  0x8c   : > { %8555 = vmatmul.mubr.msk.bf16.vlgmr.msra.gmra.mxu0 %vm1712_vm1, %v7717_v45  ;;  %v1982_v58 = vsel %vm9587_vm4, %v1977_v50, %v1981_v41  ;;  %v2014_v60 = vrot.slane %v2012_v52, 4  ;;  %v2017_v61 = vrot.slane %v2015_v53, 5  ;;  %v2009_v1 = vrot.slane %v2007_v51, 5  ;;  %v7762_v28 = vld [vmem:[%s9549_s18 + $0xa0] sm:$0xf]  ;;  %s9100_s16 = smov 24  }
  0x8d   : > { %8573 = vmatpush3.bf16.msra.mxu0 %v2290_v35  ;;  %v1996_v63 = vsel %vm9587_vm4, %v1991_v54, %v1995_v42  ;;  %v2004_v0 = vor.u32 %v2003_v56, %v2000_v55  ;;  %v2023_v4 = vrot.slane %v2021_v57, 5  ;;  %v2382_v10 = vshrl.u32 %v7758_v5, 16  ;;  %v7763_v30 = vld [vmem:[%s9549_s18 + $0xa4] sm:$0x1]  ;;  %v7764_v32 = vld [vmem:[%s9549_s18 + $0xa8] sm:$0xf] }
  0x8e   : > { %v7718_v2 = vcombine.low %v1982_v58, %v1996_v63  ;;  %v2018_v3 = vor.u32 %v2017_v61, %v2014_v60  ;;  %v2385_v12 = vshll.u32 %v7758_v5, 16  ;;  %v2391_v13 = vshll.u32 %v7759_v6, 16  ;;  %8878 = vmatprep.subr.msk.bf16.mxu0 %vm1725_vm0, %v7791_v15  ;;  %v7765_v33 = vld [vmem:[%s9549_s18 + $0xac] sm:$0x1]  ;;  %v7808_v38 = vld [vmem:[%s12037_s3 + $0x1c] sm:$0xf] }
  0x8f   : > { %v2005_v7 = vrot.slane %v2004_v0, 4  ;;  %v2396_v14 = vshrl.u32 %v7760_v8, 16  ;;  %v2384_v17 = vrot.slane %v2382_v10, 4  ;;  %v2399_v18 = vshll.u32 %v7760_v8, 16  ;;  %8879 = vmatprep.subr.msk.bf16.mxu1 %vm1725_vm0, %v7808_v38  ;;  %v8972_v44 = vld [vmem:[%s9549_s18 + $0xe8] ss:$8 sps:$4 sm:$0xff]  }
  0x90   : > { %8558 = vmatprep.mubr.msk.bf16.mxu0 %vm1712_vm1, %v7718_v2  ;;  %v2019_v11 = vrot.slane %v2018_v3, 4  ;;  %v2405_v19 = vshll.u32 %v7761_v9, 16  ;;  %v2387_v22 = vrot.slane %v2385_v12, 5  ;;  %v2393_v25 = vrot.slane %v2391_v13, 5  ;;  %v8973_v50 = vld [vmem:[%s9549_s18 + $0xf8] ss:$8 sps:$4 sm:$0xff]  }
  0x91   : > { %v2010_v16 = vsel %vm9587_vm4, %v2005_v7, %v2009_v1  ;;  %v2398_v23 = vrot.slane %v2396_v14, 4  ;;  %v2401_v26 = vrot.slane %v2399_v18, 5  ;;  %v2410_v35 = vshrl.u32 %v7762_v28, 16  ;;  %v7766_v55 = vld [vmem:[%s9549_s18 + $0xb0] sm:$0xf]  ;;  %s7630_s17 = sshll.u32 %s9534_s8, 6 }
  0x92   : > { %8569 = vmatmul.mubr.msk.bf16.gmra.mxu1 %vm1712_vm1, %v8970_v62  ;;  %v2024_v20 = vsel %vm9587_vm4, %v2019_v11, %v2023_v4  ;;  %v2407_v27 = vrot.slane %v2405_v19, 5  ;;  %v2388_v29 = vor.u32 %v2387_v22, %v2384_v17  ;;  %v2413_v36 = vshll.u32 %v7762_v28, 16  ;;  %v7767_v56 = vld [vmem:[%s9549_s18 + $0xb4] sm:$0x1]  ;;  %v7768_v60 = vld [vmem:[%s9549_s18 + $0xb8] sm:$0xf] }
  0x93   : > { %v7719_v24 = vcombine.low %v2010_v16, %v2024_v20  ;;  %v2402_v34 = vor.u32 %v2401_v26, %v2398_v23  ;;  %v2419_v37 = vshll.u32 %v7763_v30, 16  ;;  %v2424_v40 = vshrl.u32 %v7764_v32, 16  ;;  %v7769_v61 = vld [vmem:[%s9549_s18 + $0xbc] sm:$0x1]  ;;  %v7770_v16 = vld [vmem:[%s9549_s18 + $0xc0] sm:$0xf] }
  0x94   : > { %v2389_v39 = vrot.slane %v2388_v29, 4  ;;  %v2427_v41 = vshll.u32 %v7764_v32, 16  ;;  %v2433_v42 = vshll.u32 %v7765_v33, 16  ;;  %v2412_v45 = vrot.slane %v2410_v35, 4  ;;  %v7771_v17 = vld [vmem:[%s9549_s18 + $0xc4] sm:$0x1] }
  0x95   : > { %8559 = vmatmul.mubr.msk.bf16.gmra.mxu0 %vm1712_vm1, %v7719_v24  ;;  %v2403_v43 = vrot.slane %v2402_v34, 4  ;;  %v2415_v46 = vrot.slane %v2413_v36, 5  ;;  %v2421_v48 = vrot.slane %v2419_v37, 5  ;;  %v2426_v31 = vrot.slane %v2424_v40, 4  ;;  %v8974_v20 = vld [vmem:[%s9549_s18 + $0x108] ss:$8 sps:$4 sm:$0xff]  }
  0x96   : > { %8574 = vmatprep.mubr.msk.bf16.mxu0 %vm1712_vm1, %v8971_v21  ;;  %v2394_v47 = vsel %vm9587_vm4, %v2389_v39, %v2393_v25  ;;  %v2429_v49 = vrot.slane %v2427_v41, 5  ;;  %v2435_v53 = vrot.slane %v2433_v42, 5  ;;  %v2639_v54 = vsel %vm1725_vm0, %v7791_v15, 0  ;;  %v7772_v21 = vld [vmem:[%s9549_s18 + $0xc8] sm:$0xf]  ;;  %s11914_s19 = scalar_lea.vmem [#allocation5], %s7630_s17 }
  0x97   : > { %v2408_v51 = vsel %vm9587_vm4, %v2403_v43, %v2407_v27  ;;  %v2416_v52 = vor.u32 %v2415_v46, %v2412_v45  ;;  %v2438_v62 = vshrl.u32 %v7766_v55, 16  ;;  %v2441_v63 = vshll.u32 %v7766_v55, 16  ;;  %v7773_v22 = vld [vmem:[%s9549_s18 + $0xcc] sm:$0x1]  ;;  %v8975_v37 = vld [vmem:[%s9549_s18 + $0x8] ss:$8 sps:$4 sm:$0xff]  }
  0x98   : > { %v7775_v57 = vcombine.low %v2394_v47, %v2408_v51  ;;  %v2430_v58 = vor.u32 %v2429_v49, %v2426_v31  ;;  %v2447_v1 = vshll.u32 %v7767_v56, 16  ;;  %v2452_v2 = vshrl.u32 %v7768_v60, 16  ;;  %v8976_v49 = vld [vmem:[%s9549_s18 + $0x50] ss:$8 sps:$4 sm:$0xff]   ;;  %v7817_v55 = vld [vmem:[%s9549_s18 + $0x8] sm:$0xf] }
  0x99   : > { %v2417_v0 = vrot.slane %v2416_v52, 4  ;;  %v2455_v3 = vshll.u32 %v7768_v60, 16  ;;  %v2440_v5 = vrot.slane %v2438_v62, 4  ;;  %v2443_v6 = vrot.slane %v2441_v63, 5  ;;  %v8977_v51 = vld [vmem:[%s9549_s18 + $0x18] ss:$8 sps:$4 sm:$0xff]  }
  0x9a   : > { %8584 = vmatprep.mubr.msk.bf16.mxu1 %vm1712_vm1, %v7775_v57  ;;  %v2431_v4 = vrot.slane %v2430_v58, 4  ;;  %v2461_v7 = vshll.u32 %v7769_v61, 16  ;;  %v2758_v9 = vsel %vm1725_vm0, %v7808_v38, 0  ;;  %v2454_v10 = vrot.slane %v2452_v2, 4  ;;  %v8979_v52 = vld [vmem:[%s9549_s18 + $0x28] ss:$8 sps:$4 sm:$0xff]  }
  0x9b   : > { %v2422_v8 = vsel %vm9587_vm4, %v2417_v0, %v2421_v48  ;;  %v2457_v11 = vrot.slane %v2455_v3, 5  ;;  %v2444_v13 = vor.u32 %v2443_v6, %v2440_v5  ;;  %v2449_v14 = vrot.slane %v2447_v1, 5  ;;  %v7851_v48 = vld [vmem:[%s12039_s5 + $0x4] sm:$0xf]  ;;  %v7818_v56 = vld [vmem:[%s9549_s18 + $0xc] sm:$0x1] }
  0x9c   : > { %v2436_v12 = vsel %vm9587_vm4, %v2431_v4, %v2435_v53  ;;  %v2463_v15 = vrot.slane %v2461_v7, 5  ;;  %v2466_v23 = vshrl.u32 %v7770_v16, 16  ;;  %v2469_v24 = vshll.u32 %v7770_v16, 16  ;;  %v7819_v57 = vld [vmem:[%s9549_s18 + $0x10] sm:$0xf]  ;;  %s7519_s11 = sshll.u32 %s11914_s19, 4  ;;  %s11987_s11 = int_to_ptr.vmem [resolvable:$true] %s7519_s11 }
  0x9d   : > { %8575 = vmatmul.mubr.msk.bf16.vlgmr.msra.gmra.mxu0 %vm1712_vm1, %v8972_v44  ;;  %v7776_v18 = vcombine.low %v2422_v8, %v2436_v12  ;;  %v2458_v19 = vor.u32 %v2457_v11, %v2454_v10  ;;  %v2445_v25 = vrot.slane %v2444_v13, 4  ;;  %v2475_v26 = vshll.u32 %v7771_v17, 16  ;;  %v7833_v44 = vld [vmem:[%s12037_s3 + $0x20] sm:$0xf]  ;;  %v7820_v60 = vld [vmem:[%s9549_s18 + $0x14] sm:$0x1] }
  0x9e   : > { %8593 = vmatpush3.bf16.msra.mxu0 %v2639_v54  ;;  %8578 = vmatprep.mubr.msk.bf16.mxu0 %vm1712_vm1, %v8973_v50  ;;  %v2480_v27 = vshrl.u32 %v7772_v21, 16  ;;  %v2483_v28 = vshll.u32 %v7772_v21, 16  ;;  %v2468_v30 = vrot.slane %v2466_v23, 4  ;;  %v2471_v32 = vrot.slane %v2469_v24, 5  ;;  %v8978_v58 = vld [vmem:[%s9549_s18 + $0x60] ss:$8 sps:$4 sm:$0xff]  }
  0x9f   : > { %8585 = vmatmul.mubr.msk.bf16.vlgmr.msra.gmra.mxu1 %vm1712_vm1, %v7776_v18  ;;  %v2459_v29 = vrot.slane %v2458_v19, 4  ;;  %v2489_v33 = vshll.u32 %v7773_v22, 16  ;;  %v2450_v34 = vsel %vm9587_vm4, %v2445_v25, %v2449_v14  ;;  %v2477_v40 = vrot.slane %v2475_v26, 5  ;;  %8880 = vmatprep.subr.msk.bf16.mxu0 %vm1725_vm0, %v7833_v44  ;;  %v8980_v1 = vld [vmem:[%s9549_s18 + $0x70] ss:$8 sps:$4 sm:$0xff]   ;;  %s7506_s23 = scalar_lea.sflag [#allocation6], %s9534_s8 }
  0xa0   : > { %8603 = vmatpush3.bf16.msra.mxu1 %v2758_v9  ;;  %v2482_v35 = vrot.slane %v2480_v27, 4  ;;  %v2485_v36 = vrot.slane %v2483_v28, 5  ;;  %v2472_v39 = vor.u32 %v2471_v32, %v2468_v30  ;;  %v2988_v53 = vsel %vm1725_vm0, %v7833_v44, 0  ;;  %v8981_v4 = vld [vmem:[%s9549_s18 + $0x38] ss:$8 sps:$4 sm:$0xff]  }
  0xa1   : > { %v2464_v38 = vsel %vm9587_vm4, %v2459_v29, %v2463_v15  ;;  %v2491_v43 = vrot.slane %v2489_v33, 5  ;;  %8881 = vmatprep.subr.msk.bf16.mxu1 %vm1725_vm0, %v7851_v48  ;;  %v3139_v54 = vsel %vm1725_vm0, %v7851_v48, 0  ;;  %v2850_v61 = vshrl.u32 %v7817_v55, 16  ;;  %v3094_v11 = vld [vmem:[%s12039_s5] sm:$0xf] }
  0xa2   : > { %v7777_v41 = vcombine.low %v2450_v34, %v2464_v38  ;;  %v2486_v42 = vor.u32 %v2485_v36, %v2482_v35  ;;  %v2473_v45 = vrot.slane %v2472_v39, 4  ;;  %v2853_v62 = vshll.u32 %v7817_v55, 16  ;;  %v7821_v12 = vld [vmem:[%s9549_s18 + $0x18] sm:$0xf]  ;;  %v7822_v14 = vld [vmem:[%s9549_s18 + $0x1c] sm:$0x1] }
  0xa3   : > { %v2859_v63 = vshll.u32 %v7818_v56, 16  ;;  %v2864_v0 = vshrl.u32 %v7819_v57, 16  ;;  %v2867_v2 = vshll.u32 %v7819_v57, 16  ;;  %v2873_v3 = vshll.u32 %v7820_v60, 16  ;;  %v7823_v15 = vld [vmem:[%s9549_s18 + $0x20] sm:$0xf] }
  0xa4   : > { %8588 = vmatprep.mubr.msk.bf16.mxu1 %vm1712_vm1, %v7777_v41  ;;  %v2487_v46 = vrot.slane %v2486_v42, 4  ;;  %v2478_v47 = vsel %vm9587_vm4, %v2473_v45, %v2477_v40  ;;  %v2852_v5 = vrot.slane %v2850_v61, 4  ;;  %v2855_v6 = vrot.slane %v2853_v62, 5  ;;  %v7824_v16 = vld [vmem:[%s9549_s18 + $0x24] sm:$0x1] }
  0xa5   : > { %8579 = vmatmul.mubr.msk.bf16.gmra.mxu0 %vm1712_vm1, %v8974_v20  ;;  %v2861_v7 = vrot.slane %v2859_v63, 5  ;;  %v2866_v8 = vrot.slane %v2864_v0, 4  ;;  %v2869_v9 = vrot.slane %v2867_v2, 5  ;;  %v2875_v10 = vrot.slane %v2873_v3, 5  ;;  %v8982_v28 = vld [vmem:[%s9549_s18 + $0x80] ss:$8 sps:$4 sm:$0xff]  }
  0xa6   : > { %8594 = vmatprep.mubr.msk.bf16.mxu0 %vm1712_vm1, %v8975_v37  ;;  %v2492_v31 = vsel %vm9587_vm4, %v2487_v46, %v2491_v43  ;;  %v2856_v13 = vor.u32 %v2855_v6, %v2852_v5  ;;  %v2878_v18 = vshrl.u32 %v7821_v12, 16  ;;  %v2881_v19 = vshll.u32 %v7821_v12, 16  ;;  %v7868_v33 = vld [vmem:[%s12039_s5 + $0x8] sm:$0xf]  ;;  %v8983_v35 = vld [vmem:[%s9714_s20 + $0x50] ss:$8 sps:$4 sm:$0xff]  }
  0xa7   : > { %v7778_v50 = vcombine.low %v2478_v47, %v2492_v31  ;;  %v2870_v17 = vor.u32 %v2869_v9, %v2866_v8  ;;  %v2887_v20 = vshll.u32 %v7822_v14, 16  ;;  %v2892_v22 = vshrl.u32 %v7823_v15, 16  ;;  %v7825_v39 = vld [vmem:[%s9549_s18 + $0x28] sm:$0xf]  ;;  %v7826_v40 = vld [vmem:[%s9549_s18 + $0x2c] sm:$0x1] }
  0xa8   : > { %v2857_v21 = vrot.slane %v2856_v13, 4  ;;  %v2895_v23 = vshll.u32 %v7823_v15, 16  ;;  %v2901_v24 = vshll.u32 %v7824_v16, 16  ;;  %v2880_v26 = vrot.slane %v2878_v18, 4  ;;  %v7827_v43 = vld [vmem:[%s9549_s18 + $0x30] sm:$0xf] }
  0xa9   : > { %8589 = vmatmul.mubr.msk.bf16.gmra.mxu1 %vm1712_vm1, %v7778_v50  ;;  %v2871_v25 = vrot.slane %v2870_v17, 4  ;;  %v2883_v27 = vrot.slane %v2881_v19, 5  ;;  %v2894_v30 = vrot.slane %v2892_v22, 4  ;;  %v2889_v37 = vrot.slane %v2887_v20, 5  ;;  %v7828_v44 = vld [vmem:[%s9549_s18 + $0x34] sm:$0x1] }
  0xaa   : > { %8604 = vmatprep.mubr.msk.bf16.mxu1 %vm1712_vm1, %v8976_v49  ;;  %v2862_v29 = vsel %vm9587_vm4, %v2857_v21, %v2861_v7  ;;  %v2897_v32 = vrot.slane %v2895_v23, 5  ;;  %v2903_v38 = vrot.slane %v2901_v24, 5  ;;  %v2906_v45 = vshrl.u32 %v7825_v39, 16  ;;  %v7829_v63 = vld [vmem:[%s9549_s18 + $0x38] sm:$0xf] }
  0xab   : > { %v2876_v34 = vsel %vm9587_vm4, %v2871_v25, %v2875_v10  ;;  %v2884_v36 = vor.u32 %v2883_v27, %v2880_v26  ;;  %v2909_v46 = vshll.u32 %v7825_v39, 16  ;;  %v2915_v48 = vshll.u32 %v7826_v40, 16  ;;  %v7830_v0 = vld [vmem:[%s9549_s18 + $0x3c] sm:$0x1]  ;;  %v7831_v3 = vld [vmem:[%s9549_s18 + $0x40] sm:$0xf] }
  0xac   : > { %v7834_v41 = vcombine.low %v2862_v29, %v2876_v34  ;;  %v2898_v42 = vor.u32 %v2897_v32, %v2894_v30  ;;  %v2920_v31 = vshrl.u32 %v7827_v43, 16  ;;  %v2923_v49 = vshll.u32 %v7827_v43, 16  ;;  %v8984_v15 = vld [vmem:[%s9714_s20 + $0x60] ss:$8 sps:$4 sm:$0xff]   ;;  %v8985_v17 = vld [vmem:[%s9714_s20 + $0x70] ss:$8 sps:$4 sm:$0xff]  }
  0xad   : > { %8595 = vmatmul.mubr.msk.bf16.vlgmr.msra.gmra.mxu0 %vm1712_vm1, %v8977_v51  ;;  %v2885_v47 = vrot.slane %v2884_v36, 4  ;;  %v2908_v51 = vrot.slane %v2906_v45, 4  ;;  %v3239_v55 = vsel %vm1725_vm0, %v3094_v11, 0  ;;  %v2917_v61 = vrot.slane %v2915_v48, 5  ;;  %v3306_v27 = vld [vmem:[%s9714_s20] sm:$0xf] }
  0xae   : > { %8613 = vmatpush3.bf16.msra.mxu0 %v2988_v53  ;;  %8598 = vmatprep.mubr.msk.bf16.mxu0 %vm1712_vm1, %v8979_v52  ;;  %v2899_v50 = vrot.slane %v2898_v42, 4  ;;  %v2911_v52 = vrot.slane %v2909_v46, 5  ;;  %v2929_v53 = vshll.u32 %v7828_v44, 16  ;;  %v2922_v56 = vrot.slane %v2920_v31, 4  ;;  %v3308_v30 = vld [vmem:[%s9714_s20 + $0x8] sm:$0xf] }
  0xaf   : > { %8882 = vmatprep.subr.msk.bf16.mxu0 %vm1725_vm0, %v3094_v11  ;;  %v2925_v57 = vrot.slane %v2923_v49, 5  ;;  %v2934_v5 = vshrl.u32 %v7829_v63, 16  ;;  %v2937_v6 = vshll.u32 %v7829_v63, 16  ;;  %v2943_v8 = vshll.u32 %v7830_v0, 16  ;;  %v9768_v32 = vld [vmem:[%s9714_s20 + $0xc] sm:$0x1] }
  0xb0   : > { %v2912_v60 = vor.u32 %v2911_v52, %v2908_v51  ;;  %v2931_v62 = vrot.slane %v2929_v53, 5  ;;  %v2948_v9 = vshrl.u32 %v7831_v3, 16  ;;  %v2951_v10 = vshll.u32 %v7831_v3, 16  ;;  %v8986_v44 = vld [vmem:[%s9714_s20 + $0x80] ss:$8 sps:$4 sm:$0xff]  }
  0xb1   : > { %8605 = vmatmul.mubr.msk.bf16.vlgmr.msra.gmra.mxu1 %vm1712_vm1, %v8978_v58  ;;  %v2904_v58 = vsel %vm9587_vm4, %v2899_v50, %v2903_v38  ;;  %v2926_v2 = vor.u32 %v2925_v57, %v2922_v56  ;;  %v2936_v12 = vrot.slane %v2934_v5, 4  ;;  %v2939_v13 = vrot.slane %v2937_v6, 5  ;;  %v7893_v38 = vld [vmem:[%s12039_s5 + $0xc] sm:$0xf]  ;;  %v8987_v45 = vld [vmem:[%s9714_s20] ss:$8 sps:$4 sm:$0xff]  }
  0xb2   : > { %8623 = vmatpush3.bf16.msra.mxu1 %v3139_v54  ;;  %8608 = vmatprep.mubr.msk.bf16.mxu1 %vm1712_vm1, %v8980_v1  ;;  %v2890_v54 = vsel %vm9587_vm4, %v2885_v47, %v2889_v37  ;;  %v2913_v7 = vrot.slane %v2912_v60, 4  ;;  %v2950_v18 = vrot.slane %v2948_v9, 4  ;;  %v2953_v19 = vrot.slane %v2951_v10, 5  ;;  %v3310_v51 = vld [vmem:[%s9714_s20 + $0x10] sm:$0xf] }
  0xb3   : > { %8883 = vmatprep.subr.msk.bf16.mxu1 %vm1725_vm0, %v7868_v33  ;;  %v7835_v1 = vcombine.low %v2890_v54, %v2904_v58  ;;  %v2927_v11 = vrot.slane %v2926_v2, 4  ;;  %v2940_v21 = vor.u32 %v2939_v13, %v2936_v12  ;;  %v2945_v22 = vrot.slane %v2943_v8, 5  ;;  %v9787_v53 = vld [vmem:[%s9714_s20 + $0x14] sm:$0x1]  ;;  %v3312_v54 = vld [vmem:[%s9714_s20 + $0x18] sm:$0xf] }
  0xb4   : > { %v2918_v16 = vsel %vm9587_vm4, %v2913_v7, %v2917_v61  ;;  %v3461_v23 = vsel %vm1725_vm0, %v7868_v33, 0  ;;  %v2954_v25 = vor.u32 %v2953_v19, %v2950_v18  ;;  %v3323_v34 = vshrl.u32 %v3306_v27, 16  ;;  %v7910_v61 = vld [vmem:[%s12039_s5 + $0x10] sm:$0xf] }
  0xb5   : > { %8599 = vmatmul.mubr.msk.bf16.gmra.mxu0 %vm1712_vm1, %v8981_v4  ;;  %v7832_v4 = vld [vmem:[%s9549_s18 + $0x44] sm:$0x1]  ;;  %v2932_v20 = vsel %vm9587_vm4, %v2927_v11, %v2931_v62  ;;  %v2941_v29 = vrot.slane %v2940_v21, 4  ;;  %v3326_v36 = vshll.u32 %v3306_v27, 16  ;;  %v3337_v37 = vshrl.u32 %v3308_v30, 16  ;;  %s9035_s18 = scalar_lea.vmem %s11987_s11, 1024 }
  0xb6   : > { %8614 = vmatprep.mubr.msk.bf16.mxu0 %vm1712_vm1, %v7834_v41  ;;  %v2957_v14 = vshll.u32 %v7832_v4, 16  ;;  %v7836_v24 = vcombine.low %v2918_v16, %v2932_v20  ;;  %v3325_v40 = vrot.slane %v3323_v34, 4  ;;  %v3340_v41 = vshll.u32 %v3308_v30, 16  ;;  %v8988_v3 = vld [vmem:[%s9714_s20 + $0x10] ss:$8 sps:$4 sm:$0xff]   ;;  %p9036_p13 = scmp.ne.s32.totalorder %s11987_s11, %s9035_s18 }
  0xb7   : > { %v2946_v39 = vsel %vm9587_vm4, %v2941_v29, %v2945_v22  ;;  %v3346_v42 = vshll.u32 %v9768_v32, 16  ;;  %v3328_v46 = vrot.slane %v3326_v36, 5  ;;  %v3339_v47 = vrot.slane %v3337_v37, 4  ;;  %v8989_v11 = vld [vmem:[%s9714_s20 + $0x20] ss:$8 sps:$4 sm:$0xff]  }
  0xb8   : > { %v2959_v26 = vrot.slane %v2957_v14, 5  ;;  %v3342_v49 = vrot.slane %v3340_v41, 5  ;;  %v3351_v57 = vshrl.u32 %v3310_v51, 16  ;;  %v3354_v58 = vshll.u32 %v3310_v51, 16  ;;  %v3314_v16 = vld [vmem:[%s9714_s20 + $0x20] sm:$0xf]  ;;  %p9037_p0 = pnand %p9036_p13, %p9185_p6 }
  0xb9   : > { %8609 = vmatmul.mubr.msk.bf16.gmra.mxu1 %vm1712_vm1, %v8982_v28  ;;  %v9764_v28 = vld [vmem:[%s9714_s20 + $0x4] sm:$0x1]  ;;  %v3348_v50 = vrot.slane %v3346_v42, 5  ;;  %v3329_v52 = vor.u32 %v3328_v46, %v3325_v40  ;;  %v3360_v60 = vshll.u32 %v9787_v53, 16  ;;  %v3365_v63 = vshrl.u32 %v3312_v54, 16 }
  0xba   : > { %8624 = vmatprep.mubr.msk.bf16.mxu1 %vm1712_vm1, %v8983_v35  ;;  %v2955_v35 = vrot.slane %v2954_v25, 4  ;;  %v3332_v33 = vshll.u32 %v9764_v28, 16  ;;  %v3343_v56 = vor.u32 %v3342_v49, %v3339_v47  ;;  %v3368_v0 = vshll.u32 %v3312_v54, 16  ;;  %v3316_v20 = vld [vmem:[%s9714_s20 + $0x28] sm:$0xf]  ;;  %p9038_p1 = pneg %p9037_p0 }
  0xbb   : > { %v3330_v62 = vrot.slane %v3329_v52, 4  ;;  %v3353_v4 = vrot.slane %v3351_v57, 4  ;;  %v3356_v5 = vrot.slane %v3354_v58, 5  ;;  %v3362_v6 = vrot.slane %v3360_v60, 5  ;;  %v9816_v21 = vld [vmem:[%s9714_s20 + $0x2c] sm:$0x1] }
  0xbc   : > { %v2960_v43 = vsel %vm9587_vm4, %v2955_v35, %v2959_v26  ;;  %v3334_v31 = vrot.slane %v3332_v33, 5  ;;  %v3344_v2 = vrot.slane %v3343_v56, 4  ;;  %v3367_v8 = vrot.slane %v3365_v63, 4  ;;  %v3318_v42 = vld [vmem:[%s9714_s20 + $0x30] sm:$0xf] }
  0xbd   : > { %8615 = vmatmul.mubr.msk.bf16.vlgmr.msra.gmra.mxu0 %vm1712_vm1, %v7835_v1  ;;  %v7837_v48 = vcombine.low %v2946_v39, %v2960_v43  ;;  %v3370_v9 = vrot.slane %v3368_v0, 5  ;;  %v3357_v13 = vor.u32 %v3356_v5, %v3353_v4  ;;  %v3691_v14 = vsel %vm1725_vm0, %v7893_v38, 0  ;;  %v9829_v43 = vld [vmem:[%s9714_s20 + $0x34] sm:$0x1]  ;;  %v8990_v47 = vld [vmem:[%s9714_s20 + $0x30] ss:$8 sps:$4 sm:$0xff]  }
  0xbe   : > { %8633 = vmatpush3.bf16.msra.mxu0 %v3239_v55  ;;  %8618 = vmatprep.mubr.msk.bf16.mxu0 %vm1712_vm1, %v7836_v24  ;;  %v9791_v55 = vld [vmem:[%s9714_s20 + $0x1c] sm:$0x1]  ;;  %v3335_v7 = vsel %vm9587_vm4, %v3330_v62, %v3334_v31  ;;  %v3349_v12 = vsel %vm9587_vm4, %v3344_v2, %v3348_v50  ;;  %v3379_v22 = vshrl.u32 %v3314_v16, 16  ;;  %v3393_v26 = vshrl.u32 %v3316_v20, 16  ;;  %v7877_v57 = vld [vmem:[%s9714_s20 + $0x50] sm:$0xf] }
  0xbf   : > { %8884 = vmatprep.subr.msk.bf16.mxu0 %vm1725_vm0, %v7893_v38  ;;  %v3374_v1 = vshll.u32 %v9791_v55, 16  ;;  %v7869_v18 = vcombine.low %v3335_v7, %v3349_v12  ;;  %v3371_v19 = vor.u32 %v3370_v9, %v3367_v8  ;;  %v3358_v24 = vrot.slane %v3357_v13, 4  ;;  %v9835_v31 = vld [vmem:[%s9714_s20 + $0x3c] sm:$0x1]  ;;  %v7878_v63 = vld [vmem:[%s9714_s20 + $0x54] sm:$0x1] }
  0xc0   : > { %v3396_v27 = vshll.u32 %v3316_v20, 16  ;;  %vm3790_vm5 = vcmask 1042432   ;;  %vm3791_vm6 = vcmask 1046532   ;;  %v3381_v30 = vrot.slane %v3379_v22, 4  ;;  %v7879_v4 = vld [vmem:[%s9714_s20 + $0x58] sm:$0xf] }
  0xc1   : > { %8625 = vmatmul.mubr.msk.bf16.vlgmr.msra.gmra.mxu1 %vm1712_vm1, %v8984_v15  ;;  %v3376_v10 = vrot.slane %v3374_v1, 5  ;;  %v3852_v15 = vsel %vm1725_vm0, %v7910_v61, 0  ;;  %v3372_v29 = vrot.slane %v3371_v19, 4  ;;  %v3402_v35 = vshll.u32 %v9816_v21, 16  ;;  %v7880_v8 = vld [vmem:[%s9714_s20 + $0x5c] sm:$0x1]  ;;  %vm9861_vm7 = vmor %vm3790_vm5, %vm3791_vm6 }
  0xc2   : > { %8643 = vmatpush3.bf16.msra.mxu1 %v3461_v23  ;;  %8628 = vmatprep.mubr.msk.bf16.mxu1 %vm1712_vm1, %v8985_v17  ;;  %v9812_v17 = vld [vmem:[%s9714_s20 + $0x24] sm:$0x1]  ;;  %v3382_v23 = vshll.u32 %v3314_v16, 16  ;;  %v3363_v36 = vsel %vm9587_vm4, %v3358_v24, %v3362_v6  ;;  %v3395_v37 = vrot.slane %v3393_v26, 4  ;;  %v3398_v38 = vrot.slane %v3396_v27, 5 }
  0xc3   : > { %8885 = vmatprep.subr.msk.bf16.mxu1 %vm1725_vm0, %v7910_v61  ;;  %v3388_v25 = vshll.u32 %v9812_v17, 16  ;;  %v3377_v39 = vsel %vm9587_vm4, %v3372_v29, %v3376_v10  ;;  %v3404_v41 = vrot.slane %v3402_v35, 5  ;;  %v3407_v49 = vshrl.u32 %v3318_v42, 16  ;;  %v3767_v22 = vld [vmem:[%s9714_s20 + $0x8] sm:$0xe] }
  0xc4   : > { %v3384_v34 = vrot.slane %v3382_v23, 5  ;;  %v3399_v46 = vor.u32 %v3398_v38, %v3395_v37  ;;  %v3410_v50 = vshll.u32 %v3318_v42, 16  ;;  %v3416_v52 = vshll.u32 %v9829_v43, 16  ;;  %v7881_v29 = vld [vmem:[%s9714_s20 + $0x60] sm:$0xf] }
  0xc5   : > { %8619 = vmatmul.mubr.msk.bf16.gmra.mxu0 %vm1712_vm1, %v7837_v48  ;;  %v3390_v33 = vrot.slane %v3388_v25, 5  ;;  %v3320_v48 = vld [vmem:[%s9714_s20 + $0x38] sm:$0xf]  ;;  %v3409_v60 = vrot.slane %v3407_v49, 4  ;;  %v3430_v62 = vshll.u32 %v9835_v31, 16  ;;  %v3553_v9 = vshrl.u32 %v7877_v57, 16 }
  0xc6   : > { %8634 = vmatprep.mubr.msk.bf16.mxu0 %vm1712_vm1, %v8987_v45  ;;  %v3385_v40 = vor.u32 %v3384_v34, %v3381_v30  ;;  %v7870_v45 = vcombine.low %v3363_v36, %v3377_v39  ;;  %v3421_v54 = vshrl.u32 %v3320_v48, 16  ;;  %v3424_v56 = vshll.u32 %v3320_v48, 16  ;;  %v7944_v48 = vld [vmem:[%s12039_s5 + $0x18] sm:$0xf] }
  0xc7   : > { %v3400_v58 = vrot.slane %v3399_v46, 4  ;;  %v3412_v61 = vrot.slane %v3410_v50, 5  ;;  %v3418_v1 = vrot.slane %v3416_v52, 5  ;;  %v3432_v7 = vrot.slane %v3430_v62, 5  ;;  %v7884_v50 = vld [vmem:[%s9714_s20 + $0x6c] sm:$0x1] }
  0xc8   : > { %v3386_v51 = vrot.slane %v3385_v40, 4  ;;  %v3423_v2 = vrot.slane %v3421_v54, 4  ;;  %v3556_v12 = vshll.u32 %v7877_v57, 16  ;;  %v3562_v13 = vshll.u32 %v7878_v63, 16  ;;  %v3768_v57 = vld [vmem:[%s9714_s20 + $0x10] sm:$0xe] }
  0xc9   : > { %8629 = vmatmul.mubr.msk.bf16.gmra.mxu1 %vm1712_vm1, %v8986_v44  ;;  %v3795_v44 = vrot.slane %v9764_v28, 5  ;;  %v3405_v5 = vsel %vm9587_vm4, %v3400_v58, %v3404_v41  ;;  %v3413_v6 = vor.u32 %v3412_v61, %v3409_v60  ;;  %v3567_v19 = vshrl.u32 %v7879_v4, 16  ;;  %v7883_v41 = vld [vmem:[%s9714_s20 + $0x68] sm:$0xf]  ;;  %v3769_v63 = vld [vmem:[%s9714_s20 + $0x18] sm:$0xe] }
  0xca   : > { %8644 = vmatprep.mubr.msk.bf16.mxu1 %vm1712_vm1, %v7869_v18  ;;  %v3391_v0 = vsel %vm9587_vm4, %v3386_v51, %v3390_v33  ;;  %v3555_v18 = vrot.slane %v3553_v9, 4  ;;  %v3570_v20 = vshll.u32 %v7879_v4, 16  ;;  %v3558_v24 = vrot.slane %v3556_v12, 5  ;;  %v7882_v33 = vld [vmem:[%s9714_s20 + $0x64] sm:$0x1] }
  0xcb   : > { %v7871_v10 = vcombine.low %v3391_v0, %v3405_v5  ;;  %v3414_v16 = vrot.slane %v3413_v6, 4  ;;  %v3564_v25 = vrot.slane %v3562_v13, 5  ;;  %v3576_v26 = vshll.u32 %v7880_v8, 16  ;;  %v7885_v8 = vld [vmem:[%s9714_s20 + $0x70] sm:$0xf] }
  0xcc   : > { %v3569_v34 = vrot.slane %v3567_v19, 4  ;;  %v3572_v35 = vrot.slane %v3570_v20, 5  ;;  %v3559_v38 = vor.u32 %v3558_v24, %v3555_v18  ;;  %v7903_v40 = vrot.slane %v3767_v22, 9  ;;  %v7886_v9 = vld [vmem:[%s9714_s20 + $0x74] sm:$0x1] }
  0xcd   : > { %8635 = vmatmul.mubr.msk.bf16.vlgmr.msra.gmra.mxu0 %vm1712_vm1, %v8988_v3  ;;  %v3426_v3 = vrot.slane %v3424_v56, 5  ;;  %v3419_v30 = vsel %vm9587_vm4, %v3414_v16, %v3418_v1  ;;  %v3578_v39 = vrot.slane %v3576_v26, 5  ;;  %v3581_v51 = vshrl.u32 %v7881_v29, 16  ;;  %v7888_v22 = vld [vmem:[%s9714_s20 + $0x7c] sm:$0x1] }
  0xce   : > { %8653 = vmatpush3.bf16.msra.mxu0 %v3691_v14  ;;  %8638 = vmatprep.mubr.msk.bf16.mxu0 %vm1712_vm1, %v8989_v11  ;;  %v3766_v14 = vld [vmem:[%s9714_s20] sm:$0xe]  ;;  %v3560_v49 = vrot.slane %v3559_v38, 4  ;;  %v3584_v52 = vshll.u32 %v7881_v29, 16  ;;  %v3590_v54 = vshll.u32 %v7882_v33, 16  ;;  %v3595_v56 = vshrl.u32 %v7883_v41, 16 }
  0xcf   : > { %v3427_v11 = vor.u32 %v3426_v3, %v3423_v2  ;;  %v7902_v36 = vrot.slane %v3766_v14, 9  ;;  %v3583_v61 = vrot.slane %v3581_v51, 4  ;;  %v3604_v6 = vshll.u32 %v7884_v50, 16  ;;  %v7887_v14 = vld [vmem:[%s9714_s20 + $0x78] sm:$0xf] }
  0xd0   : > { %v3565_v58 = vsel %vm9587_vm4, %v3560_v49, %v3564_v25  ;;  %v3586_v62 = vrot.slane %v3584_v52, 5  ;;  %v3592_v1 = vrot.slane %v3590_v54, 5  ;;  %v3597_v2 = vrot.slane %v3595_v56, 4  ;;  %v3770_v25 = vld [vmem:[%s9714_s20 + $0x20] sm:$0xe] }
  0xd1   : > { %8645 = vmatmul.mubr.msk.bf16.vlgmr.msra.gmra.mxu1 %vm1712_vm1, %v7870_v45  ;;  %v3428_v23 = vrot.slane %v3427_v11, 4  ;;  %v3573_v45 = vor.u32 %v3572_v35, %v3569_v34  ;;  %v3796_v46 = vsel %vm9861_vm7, %v7902_v36, %v3795_v44  ;;  %v3803_v11 = vrot.slane %v9787_v53, 5  ;;  %v3771_v26 = vld [vmem:[%s9714_s20 + $0x28] sm:$0xe]  ;;  %v7889_v35 = vld [vmem:[%s9714_s20 + $0x80] sm:$0xf] }
  0xd2   : > { %8663 = vmatpush3.bf16.msra.mxu1 %v3852_v15  ;;  %v9852_v15 = vld [vmem:[%s12039_s5 + $0x14] sm:$0xf]  ;;  %8648 = vmatprep.mubr.msk.bf16.mxu1 %vm1712_vm1, %v7871_v10  ;;  %v3587_v5 = vor.u32 %v3586_v62, %v3583_v61  ;;  %v7905_v12 = vrot.slane %v3769_v63, 9  ;;  %v3807_v13 = vrot.slane %v9791_v55, 5  ;;  %v3606_v18 = vrot.slane %v3604_v6, 5 }
  0xd3   : > { %8886 = vmatprep.subr.msk.bf16.mxu0 %vm1725_vm0, %v9852_v15  ;;  %v3433_v37 = vsel %vm9587_vm4, %v3428_v23, %v3432_v7  ;;  %8887 = vmatprep.subr.msk.bf16.mxu1 %vm1725_vm0, %v7944_v48  ;;  %v3574_v28 = vrot.slane %v3573_v45, 4  ;;  %v7904_v7 = vrot.slane %v3768_v57, 9  ;;  %v3971_v19 = vsel %vm1725_vm0, %v9852_v15, 0  ;;  %v3772_v56 = vld [vmem:[%s9714_s20 + $0x30] sm:$0xe] }
  0xd4   : > { %v7872_v42 = vcombine.low %v3419_v30, %v3433_v37  ;;  %v3588_v16 = vrot.slane %v3587_v5, 4  ;;  %v4090_v20 = vsel %vm1725_vm0, %v7944_v48, 0  ;;  %v3808_v55 = vsel %vm9861_vm7, %v7905_v12, %v3807_v13  ;;  %v3773_v61 = vld [vmem:[%s9714_s20 + $0x38] sm:$0xe] }
  0xd5   : > { %8639 = vmatmul.mubr.msk.bf16.gmra.mxu0 %vm1712_vm1, %v8990_v47  ;;  %v3799_v47 = vrot.slane %v9768_v32, 5  ;;  %v3598_v32 = vshll.u32 %v7883_v41, 16  ;;  %v3579_v0 = vsel %vm9587_vm4, %v3574_v28, %v3578_v39  ;;  %v3804_v53 = vsel %vm9861_vm7, %v7904_v7, %v3803_v11  ;;  %v7890_v39 = vld [vmem:[%s9714_s20 + $0x84] sm:$0x1] }
  0xd6   : > { %v7894_v4 = vcombine.low %v3565_v58, %v3579_v0  ;;  %v3609_v24 = vshrl.u32 %v7885_v8, 16  ;;  %v3593_v29 = vsel %vm9587_vm4, %v3588_v16, %v3592_v1  ;;  %v7912_v30 = vcombine.low %v3804_v53, %v3808_v55 }
  0xd7   : > { %v3800_v44 = vsel %vm9861_vm7, %v7903_v40, %v3799_v47  ;;  %v3600_v3 = vrot.slane %v3598_v32, 5  ;;  %v3612_v15 = vshll.u32 %v7885_v8, 16  ;;  %v3618_v34 = vshll.u32 %v7886_v9, 16 }
  0xd8   : > { %v7911_v60 = vcombine.low %v3796_v46, %v3800_v44  ;;  %8654 = vmatprep.mubr.msk.bf16.mxu0 %vm1712_vm1, %v7894_v4  ;;  %v3611_v33 = vrot.slane %v3609_v24, 4  ;;  %v3623_v37 = vshrl.u32 %v7887_v14, 16  ;;  %v3626_v38 = vshll.u32 %v7887_v14, 16  ;;  %v7891_v46 = vld [vmem:[%s9714_s20 + $0x88] sm:$0xf] }
  0xd9   : > { %8649 = vmatmul.mubr.msk.bf16.gmra.mxu1 %vm1712_vm1, %v7872_v42  ;;  %v3601_v10 = vor.u32 %v3600_v3, %v3597_v2  ;;  %v3614_v41 = vrot.slane %v3612_v15, 5  ;;  %v3620_v42 = vrot.slane %v3618_v34, 5  ;;  %v3632_v45 = vshll.u32 %v7888_v22, 16  ;;  %v7892_v44 = vld [vmem:[%s9714_s20 + $0x8c] sm:$0x1] }
  0xda   : > { %8664 = vmatprep.mubr.msk.bf16.mxu1 %vm1712_vm1, %v7911_v60  ;;  %v3625_v47 = vrot.slane %v3623_v37, 4  ;;  %v3628_v48 = vrot.slane %v3626_v38, 5  ;;  %v7906_v49 = vrot.slane %v3770_v25, 9  ;;  %v3811_v50 = vrot.slane %v9812_v17, 5  ;;  %v7969_v17 = vld [vmem:[%s12039_s5 + $0x1c] sm:$0xf] }
  0xdb   : > { %v3602_v23 = vrot.slane %v3601_v10, 4  ;;  %v3615_v51 = vor.u32 %v3614_v41, %v3611_v33  ;;  %v3634_v52 = vrot.slane %v3632_v45, 5  ;;  %v7907_v54 = vrot.slane %v3771_v26, 9  ;;  %v7994_v22 = vld [vmem:[%s12039_s5 + $0x20] sm:$0xf] }
  0xdc   : > { %v3815_v28 = vrot.slane %v9816_v21, 5  ;;  %v3629_v32 = vor.u32 %v3628_v48, %v3625_v47  ;;  %v3812_v57 = vsel %vm9861_vm7, %v7906_v49, %v3811_v50  ;;  %v3637_v58 = vshrl.u32 %v7889_v35, 16  ;;  %v9960_v33 = vld [vmem:[%s9714_s20 + $0xa4] sm:$0x1]  ;;  %v7955_v37 = vld [vmem:[%s9714_s20 + $0xa8] sm:$0xf] }
  0xdd   : > { %v3607_v36 = vsel %vm9587_vm4, %v3602_v23, %v3606_v18  ;;  %v3640_v60 = vshll.u32 %v7889_v35, 16  ;;  %v3616_v62 = vrot.slane %v3615_v51, 4  ;;  %v3646_v0 = vshll.u32 %v7890_v39, 16  ;;  %v7953_v35 = vld [vmem:[%s9714_s20 + $0xa0] sm:$0xf] }
  0xde   : > { %v7895_v40 = vcombine.low %v3593_v29, %v3607_v36  ;;  %v3816_v63 = vsel %vm9861_vm7, %v7907_v54, %v3815_v28  ;;  %v3651_v21 = vshrl.u32 %v7891_v46, 16  ;;  %v3630_v1 = vrot.slane %v3629_v32, 4  ;;  %v8991_v29 = vld [vmem:[%s9714_s20 + $0xa0] ss:$8 sps:$4 sm:$0xff]   ;;  %v9964_v38 = vld [vmem:[%s9714_s20 + $0xac] sm:$0x1] }
  0xdf   : > { %v7913_v2 = vcombine.low %v3812_v57, %v3816_v63  ;;  %v3639_v3 = vrot.slane %v3637_v58, 4  ;;  %v3642_v4 = vrot.slane %v3640_v60, 5  ;;  %v3621_v5 = vsel %vm9587_vm4, %v3616_v62, %v3620_v42  ;;  %v8994_v39 = vld [vmem:[%s9714_s20 + $0x100] ss:$8 sps:$4 sm:$0xff]   ;;  %v7979_v49 = vld [vmem:[%s9714_s20 + $0xf4] sm:$0x1] }
  0xe0   : > { %8655 = vmatmul.mubr.msk.bf16.vlgmr.msra.gmra.mxu0 %vm1712_vm1, %v7895_v40  ;;  %v3648_v6 = vrot.slane %v3646_v0, 5  ;;  %v3653_v7 = vrot.slane %v3651_v21, 4  ;;  %v3654_v8 = vshll.u32 %v7891_v46, 16  ;;  %v3635_v9 = vsel %vm9587_vm4, %v3630_v1, %v3634_v52  ;;  %v7978_v46 = vld [vmem:[%s9714_s20 + $0xf0] sm:$0xf] }
  0xe1   : > { %8665 = vmatmul.mubr.msk.bf16.vlgmr.msra.gmra.mxu1 %vm1712_vm1, %v7912_v30  ;;  %8673 = vmatpush3.bf16.msra.mxu0 %v3971_v19  ;;  %v3643_v10 = vor.u32 %v3642_v4, %v3639_v3  ;;  %v3660_v11 = vshll.u32 %v7892_v44, 16  ;;  %v7908_v12 = vrot.slane %v3772_v56, 9  ;;  %v7896_v13 = vcombine.low %v3621_v5, %v3635_v9  ;;  %v7980_v50 = vld [vmem:[%s9714_s20 + $0xf8] sm:$0xf]  ;;  %v7981_v44 = vld [vmem:[%s9714_s20 + $0xfc] sm:$0x1] }
  0xe2   : > { %8683 = vmatpush3.bf16.msra.mxu1 %v4090_v20  ;;  %8888 = vmatprep.subr.msk.bf16.mxu0 %vm1725_vm0, %v7969_v17  ;;  %v3656_v14 = vrot.slane %v3654_v8, 5  ;;  %v3819_v16 = vrot.slane %v9829_v43, 5  ;;  %v7909_v18 = vrot.slane %v3773_v61, 9  ;;  %v3823_v20 = vrot.slane %v9835_v31, 5  ;;  %v8992_v31 = vld [vmem:[%s9714_s20 + $0xf0] ss:$8 sps:$4 sm:$0xff]  }
  0xe3   : > { %8668 = vmatprep.mubr.msk.bf16.mxu1 %vm1712_vm1, %v7913_v2  ;;  %v3644_v19 = vrot.slane %v3643_v10, 4  ;;  %8658 = vmatprep.mubr.msk.bf16.mxu0 %vm1712_vm1, %v7896_v13  ;;  %v3662_v53 = vrot.slane %v3660_v11, 5  ;;  %v9954_v15 = vsel %vm1725_vm0, %v7969_v17, 0  ;;  %v4550_v34 = vsel %vm1725_vm0, %v7994_v22, 0  ;;  %v8993_v56 = vld [vmem:[%s9714_s20 + $0xb0] ss:$8 sps:$4 sm:$0xff]  }
  0xe4   : > { %v3657_v23 = vor.u32 %v3656_v14, %v3653_v7  ;;  %v3820_v55 = vsel %vm9861_vm7, %v7908_v12, %v3819_v16  ;;  %8889 = vmatprep.subr.msk.bf16.mxu1 %vm1725_vm0, %v7994_v22  ;;  %v3824_v43 = vsel %vm9861_vm7, %v7909_v18, %v3823_v20  ;;  %v4182_v40 = vshrl.u32 %v7953_v35, 16  ;;  %v8996_v32 = vld [vmem:[%s9714_s20 + $0x110] ss:$8 sps:$4 sm:$0xff]   ;;  %v8995_v17 = vld [vmem:[%s9714_s20 + $0xc0] ss:$8 sps:$4 sm:$0xff]  }
  0xe5   : > { %v3649_v24 = vsel %vm9587_vm4, %v3644_v19, %v3648_v6  ;;  %v7914_v26 = vcombine.low %v3820_v55, %v3824_v43  ;;  %v4185_v41 = vshll.u32 %v7953_v35, 16  ;;  %v4191_v42 = vshll.u32 %v9960_v33, 16  ;;  %v7957_v1 = vld [vmem:[%s9714_s20 + $0xb0] sm:$0xf]  ;;  %v9980_v6 = vld [vmem:[%s9714_s20 + $0xb4] sm:$0x1] }
  0xe6   : > { %v3658_v25 = vrot.slane %v3657_v23, 4  ;;  %v4196_v45 = vshrl.u32 %v7955_v37, 16  ;;  %v4199_v47 = vshll.u32 %v7955_v37, 16  ;;  %v4205_v48 = vshll.u32 %v9964_v38, 16  ;;  %v7959_v11 = vld [vmem:[%s9714_s20 + $0xb8] sm:$0xf] }
  0xe7   : > { %v4184_v51 = vrot.slane %v4182_v40, 4  ;;  %v4187_v52 = vrot.slane %v4185_v41, 5  ;;  %v4193_v54 = vrot.slane %v4191_v42, 5  ;;  %v4412_v60 = vshrl.u32 %v7978_v46, 16  ;;  %v8019_v16 = vld [vmem:[%s12039_s5 + $0x24] sm:$0xf] }
  0xe8   : > { %v3663_v30 = vsel %vm9587_vm4, %v3658_v25, %v3662_v53  ;;  %v4198_v28 = vrot.slane %v4196_v45, 4  ;;  %v4201_v57 = vrot.slane %v4199_v47, 5  ;;  %v4207_v58 = vrot.slane %v4205_v48, 5  ;;  %v8998_v19 = vld [vmem:[%s9714_s20 + $0x120] ss:$8 sps:$4 sm:$0xff]  }
  0xe9   : > { %8669 = vmatmul.mubr.msk.bf16.gmra.mxu1 %vm1712_vm1, %v7914_v26  ;;  %v7897_v36 = vcombine.low %v3649_v24, %v3663_v30  ;;  %v4415_v61 = vshll.u32 %v7978_v46, 16  ;;  %v4188_v62 = vor.u32 %v4187_v52, %v4184_v51  ;;  %v4421_v63 = vshll.u32 %v7979_v49, 16  ;;  %v9992_v23 = vld [vmem:[%s9714_s20 + $0xbc] sm:$0x1]  ;;  %v7982_v43 = vld [vmem:[%s9714_s20 + $0x100] sm:$0xf] }
  0xea   : > { %8684 = vmatprep.mubr.msk.bf16.mxu1 %vm1712_vm1, %v8992_v31  ;;  %v4426_v0 = vshrl.u32 %v7980_v50, 16  ;;  %v4429_v21 = vshll.u32 %v7980_v50, 16  ;;  %v4202_v2 = vor.u32 %v4201_v57, %v4198_v28  ;;  %v4414_v3 = vrot.slane %v4412_v60, 4  ;;  %v7984_v37 = vld [vmem:[%s9714_s20 + $0x108] sm:$0xf] }
  0xeb   : > { %8659 = vmatmul.mubr.msk.bf16.gmra.mxu0 %vm1712_vm1, %v7897_v36  ;;  %v4417_v4 = vrot.slane %v4415_v61, 5  ;;  %v4435_v5 = vshll.u32 %v7981_v44, 16  ;;  %v4189_v7 = vrot.slane %v4188_v62, 4  ;;  %v4423_v8 = vrot.slane %v4421_v63, 5  ;;  %v7985_v47 = vld [vmem:[%s9714_s20 + $0x10c] sm:$0x1] }
  0xec   : > { %8674 = vmatprep.mubr.msk.bf16.mxu0 %vm1712_vm1, %v8991_v29  ;;  %v4428_v9 = vrot.slane %v4426_v0, 4  ;;  %v4431_v10 = vrot.slane %v4429_v21, 5  ;;  %v4203_v12 = vrot.slane %v4202_v2, 4  ;;  %v4210_v18 = vshrl.u32 %v7957_v1, 16  ;;  %v7983_v29 = vld [vmem:[%s9714_s20 + $0x104] sm:$0x1] }
  0xed   : > { %v4418_v13 = vor.u32 %v4417_v4, %v4414_v3  ;;  %v4437_v14 = vrot.slane %v4435_v5, 5  ;;  %v4194_v20 = vsel %vm9587_vm4, %v4189_v7, %v4193_v54  ;;  %v4213_v53 = vshll.u32 %v7957_v1, 16  ;;  %v8997_v50 = vld [vmem:[%s9714_s20 + $0xd0] ss:$8 sps:$4 sm:$0xff]   ;;  %v10019_v63 = vld [vmem:[%s9714_s20 + $0xc4] sm:$0x1] }
  0xee   : > { %v4432_v22 = vor.u32 %v4431_v10, %v4428_v9  ;;  %v4219_v55 = vshll.u32 %v9980_v6, 16  ;;  %v4208_v31 = vsel %vm9587_vm4, %v4203_v12, %v4207_v58  ;;  %v4212_v25 = vrot.slane %v4210_v18, 4  ;;  %v7961_v58 = vld [vmem:[%s9714_s20 + $0xc0] sm:$0xf]  ;;  %v7963_v3 = vld [vmem:[%s9714_s20 + $0xc8] sm:$0xf] }
  0xef   : > { %v4419_v24 = vrot.slane %v4418_v13, 4  ;;  %v4224_v26 = vshrl.u32 %v7959_v11, 16  ;;  %v7970_v30 = vcombine.low %v4194_v20, %v4208_v31  ;;  %v4215_v35 = vrot.slane %v4213_v53, 5  ;;  %v7986_v20 = vld [vmem:[%s9714_s20 + $0x110] sm:$0xf] }
  0xf0   : > { %v4221_v36 = vrot.slane %v4219_v55, 5  ;;  %v4227_v41 = vshll.u32 %v7959_v11, 16  ;;  %v4233_v42 = vshll.u32 %v9992_v23, 16  ;;  %v4440_v48 = vshrl.u32 %v7982_v43, 16  ;;  %v7987_v31 = vld [vmem:[%s9714_s20 + $0x114] sm:$0x1] }
  0xf1   : > { %8685 = vmatmul.mubr.msk.bf16.vlgmr.msra.gmra.mxu1 %vm1712_vm1, %v8994_v39  ;;  %v4424_v39 = vsel %vm9587_vm4, %v4419_v24, %v4423_v8  ;;  %v4226_v40 = vrot.slane %v4224_v26, 4  ;;  %v4216_v46 = vor.u32 %v4215_v35, %v4212_v25  ;;  %v4443_v49 = vshll.u32 %v7982_v43, 16  ;;  %v7988_v24 = vld [vmem:[%s9714_s20 + $0x118] sm:$0xf] }
  0xf2   : > { %8703 = vmatpush3.bf16.msra.mxu1 %v4550_v34  ;;  %8688 = vmatprep.mubr.msk.bf16.mxu1 %vm1712_vm1, %v8996_v32  ;;  %v4433_v34 = vrot.slane %v4432_v22, 4  ;;  %v4229_v52 = vrot.slane %v4227_v41, 5  ;;  %v4235_v54 = vrot.slane %v4233_v42, 5  ;;  %v4449_v28 = vshll.u32 %v7983_v29, 16 }
  0xf3   : > { %8675 = vmatmul.mubr.msk.bf16.vlgmr.msra.gmra.mxu0 %vm1712_vm1, %v8993_v56  ;;  %v4217_v44 = vrot.slane %v4216_v46, 4  ;;  %v4442_v56 = vrot.slane %v4440_v48, 4  ;;  %v4445_v32 = vrot.slane %v4443_v49, 5  ;;  %v4454_v57 = vshrl.u32 %v7984_v37, 16  ;;  %v10045_v46 = vld [vmem:[%s9714_s20 + $0xd4] sm:$0x1] }
  0xf4   : > { %8693 = vmatpush3.bf16.msra.mxu0 %v9954_v15  ;;  %8678 = vmatprep.mubr.msk.bf16.mxu0 %vm1712_vm1, %v8995_v17  ;;  %v8036_v15 = vld [vmem:[%s12039_s5 + $0x28] sm:$0xf]  ;;  %v4438_v45 = vsel %vm9587_vm4, %v4433_v34, %v4437_v14  ;;  %v4230_v60 = vor.u32 %v4229_v52, %v4226_v40  ;;  %v4451_v61 = vrot.slane %v4449_v28, 5  ;;  %v4457_v17 = vshll.u32 %v7984_v37, 16 }
  0xf5   : > { %8890 = vmatprep.subr.msk.bf16.mxu0 %vm1725_vm0, %v8019_v16  ;;  %8891 = vmatprep.subr.msk.bf16.mxu1 %vm1725_vm0, %v8036_v15  ;;  %v7995_v51 = vcombine.low %v4424_v39, %v4438_v45  ;;  %v4463_v62 = vshll.u32 %v7985_v47, 16  ;;  %v4222_v0 = vsel %vm9587_vm4, %v4217_v44, %v4221_v36  ;;  %v4446_v21 = vor.u32 %v4445_v32, %v4442_v56  ;;  %v7989_v36 = vld [vmem:[%s9714_s20 + $0x11c] sm:$0x1]  ;;  %v7965_v45 = vld [vmem:[%s9714_s20 + $0xd0] sm:$0xf] }
  0xf6   : > { %v4456_v1 = vrot.slane %v4454_v57, 4  ;;  %v4708_v2 = vsel %vm1725_vm0, %v8019_v16, 0  ;;  %v4231_v4 = vrot.slane %v4230_v60, 4  ;;  %v4459_v5 = vrot.slane %v4457_v17, 5  ;;  %v10032_v16 = vld [vmem:[%s9714_s20 + $0xcc] sm:$0x1] }
  0xf7   : > { %v4465_v7 = vrot.slane %v4463_v62, 5  ;;  %v4827_v8 = vsel %vm1725_vm0, %v8036_v15, 0  ;;  %v4447_v9 = vrot.slane %v4446_v21, 4  ;;  %v4238_v10 = vshrl.u32 %v7961_v58, 16  ;;  %v10050_v56 = vld [vmem:[%s9714_s20 + $0xdc] sm:$0x1] }
  0xf8   : > { %v4241_v11 = vshll.u32 %v7961_v58, 16  ;;  %v4247_v12 = vshll.u32 %v10019_v63, 16  ;;  %v4236_v13 = vsel %vm9587_vm4, %v4231_v4, %v4235_v54  ;;  %v4460_v14 = vor.u32 %v4459_v5, %v4456_v1  ;;  %v7990_v21 = vld [vmem:[%s9714_s20 + $0x120] sm:$0xf]  ;;  %v10062_v1 = vld [vmem:[%s12039_s5 + $0x2c] sm:$0xf] }
  0xf9   : > { %8689 = vmatmul.mubr.msk.bf16.gmra.mxu1 %vm1712_vm1, %v8998_v19  ;;  %v4252_v18 = vshrl.u32 %v7963_v3, 16  ;;  %v4255_v19 = vshll.u32 %v7963_v3, 16  ;;  %v7971_v22 = vcombine.low %v4222_v0, %v4236_v13  ;;  %v4452_v53 = vsel %vm9587_vm4, %v4447_v9, %v4451_v61 }
  0xfa   : > { %8704 = vmatprep.mubr.msk.bf16.mxu1 %vm1712_vm1, %v7995_v51  ;;  %v4240_v55 = vrot.slane %v4238_v10, 4  ;;  %v4243_v43 = vrot.slane %v4241_v11, 5  ;;  %v4461_v25 = vrot.slane %v4460_v14, 4  ;;  %v4249_v26 = vrot.slane %v4247_v12, 5  ;;  %v7967_v51 = vld [vmem:[%s9714_s20 + $0xd8] sm:$0xf] }
  0xfb   : > { %8679 = vmatmul.mubr.msk.bf16.gmra.mxu0 %vm1712_vm1, %v8997_v50  ;;  %v4254_v29 = vrot.slane %v4252_v18, 4  ;;  %v4261_v35 = vshll.u32 %v10032_v16, 16  ;;  %v4468_v37 = vshrl.u32 %v7986_v20, 16  ;;  %v4471_v39 = vshll.u32 %v7986_v20, 16  ;;  %v7992_v12 = vld [vmem:[%s9714_s20 + $0x128] sm:$0xf] }
  0xfc   : > { %8694 = vmatprep.mubr.msk.bf16.mxu0 %vm1712_vm1, %v7970_v30  ;;  %v4257_v30 = vrot.slane %v4255_v19, 5  ;;  %v4244_v34 = vor.u32 %v4243_v43, %v4240_v55  ;;  %v4466_v40 = vsel %vm9587_vm4, %v4461_v25, %v4465_v7  ;;  %v4477_v42 = vshll.u32 %v7987_v31, 16  ;;  %v7991_v7 = vld [vmem:[%s9714_s20 + $0x124] sm:$0x1]  ;;  %v7993_v55 = vld [vmem:[%s9714_s20 + $0x12c] sm:$0x1] }
  0xfd   : > { %v4482_v15 = vshrl.u32 %v7988_v24, 16  ;;  %v7996_v47 = vcombine.low %v4452_v53, %v4466_v40  ;;  %v4263_v49 = vrot.slane %v4261_v35, 5  ;;  %v4470_v50 = vrot.slane %v4468_v37, 4  ;;  %v8003_v37 = vld [vmem:[%s9714_s20 + $0xa0] sm:$0xe] }
  0xfe   : > { %v4258_v41 = vor.u32 %v4257_v30, %v4254_v29  ;;  %v4245_v48 = vrot.slane %v4244_v34, 4  ;;  %v4473_v54 = vrot.slane %v4471_v39, 5  ;;  %v4479_v28 = vrot.slane %v4477_v42, 5  ;;  %v8078_v29 = vld [vmem:[%s12039_s5 + $0x30] sm:$0xf] }
  0xff   : > { %v4484_v44 = vrot.slane %v4482_v15, 4  ;;  %v4485_v57 = vshll.u32 %v7988_v24, 16  ;;  %v4491_v58 = vshll.u32 %v7989_v36, 16  ;;  %v4266_v60 = vshrl.u32 %v7965_v45, 16  ;;  %v8004_v15 = vld [vmem:[%s9714_s20 + $0xa8] sm:$0xe] }
 0x100   : > { %v4259_v52 = vrot.slane %v4258_v41, 4  ;;  %v4250_v32 = vsel %vm9587_vm4, %v4245_v48, %v4249_v26  ;;  %v4474_v17 = vor.u32 %v4473_v54, %v4470_v50  ;;  %v4269_v62 = vshll.u32 %v7965_v45, 16  ;;  %v8005_v50 = vld [vmem:[%s9714_s20 + $0xb0] sm:$0xe] }
 0x101   : > { %8705 = vmatmul.mubr.msk.bf16.vlgmr.msra.gmra.mxu1 %vm1712_vm1, %v7996_v47  ;;  %v4275_v0 = vshll.u32 %v10045_v46, 16  ;;  %v4487_v3 = vrot.slane %v4485_v57, 5  ;;  %v4493_v4 = vrot.slane %v4491_v58, 5  ;;  %v4268_v5 = vrot.slane %v4266_v60, 4 }
 0x102   : > { %8723 = vmatpush3.bf16.msra.mxu1 %v4827_v8  ;;  %v4264_v61 = vsel %vm9587_vm4, %v4259_v52, %v4263_v49  ;;  %v4475_v8 = vrot.slane %v4474_v17, 4  ;;  %v4271_v9 = vrot.slane %v4269_v62, 5  ;;  %v4280_v11 = vshrl.u32 %v7967_v51, 16 }
 0x103   : > { %8695 = vmatmul.mubr.msk.bf16.vlgmr.msra.gmra.mxu0 %vm1712_vm1, %v7971_v22  ;;  %v4277_v10 = vrot.slane %v4275_v0, 5  ;;  %v4488_v13 = vor.u32 %v4487_v3, %v4484_v44  ;;  %v4283_v14 = vshll.u32 %v7967_v51, 16  ;;  %v4289_v18 = vshll.u32 %v10050_v56, 16  ;;  %8893 = vmatprep.subr.msk.bf16.mxu1 %vm1725_vm0, %v8078_v29  ;;  %v8006_v44 = vld [vmem:[%s9714_s20 + $0xb8] sm:$0xe] }
 0x104   : > { %8713 = vmatpush3.bf16.msra.mxu0 %v4708_v2  ;;  %v7972_v2 = vcombine.low %v4250_v32, %v4264_v61  ;;  %v4496_v19 = vshrl.u32 %v7990_v21, 16  ;;  %v4480_v20 = vsel %vm9587_vm4, %v4475_v8, %v4479_v28  ;;  %v4272_v22 = vor.u32 %v4271_v9, %v4268_v5  ;;  %v8007_v61 = vld [vmem:[%s9714_s20 + $0xc0] sm:$0xe]  ;;  %v8008_v5 = vld [vmem:[%s9714_s20 + $0xc8] sm:$0xe] }
 0x105   : > { %8892 = vmatprep.subr.msk.bf16.mxu0 %vm1725_vm0, %v10062_v1  ;;  %v4282_v53 = vrot.slane %v4280_v11, 4  ;;  %v4499_v43 = vshll.u32 %v7990_v21, 16  ;;  %v4489_v31 = vrot.slane %v4488_v13, 4  ;;  %v4285_v24 = vrot.slane %v4283_v14, 5  ;;  %v8009_v14 = vld [vmem:[%s9714_s20 + $0xd0] sm:$0xe] }
 0x106   : > { %8698 = vmatprep.mubr.msk.bf16.mxu0 %vm1712_vm1, %v7972_v2  ;;  %v4291_v25 = vrot.slane %v4289_v18, 5  ;;  %v4498_v26 = vrot.slane %v4496_v19, 4  ;;  %v4273_v30 = vrot.slane %v4272_v22, 4  ;;  %v4505_v35 = vshll.u32 %v7991_v7, 16  ;;  %v8010_v18 = vld [vmem:[%s9714_s20 + $0xd8] sm:$0xe] }
 0x107   : > { %v4501_v34 = vrot.slane %v4499_v43, 5  ;;  %v4510_v36 = vshrl.u32 %v7992_v12, 16  ;;  %v4494_v39 = vsel %vm9587_vm4, %v4489_v31, %v4493_v4  ;;  %v4286_v40 = vor.u32 %v4285_v24, %v4282_v53  ;;  %v8062_v53 = vld [vmem:[%s9714_s20 + $0x8] sm:$0xf] }
 0x108   : > { %v4513_v41 = vshll.u32 %v7992_v12, 16  ;;  %v4519_v42 = vshll.u32 %v7993_v55, 16  ;;  %v7997_v45 = vcombine.low %v4480_v20, %v4494_v39  ;;  %v4278_v47 = vsel %vm9587_vm4, %v4273_v30, %v4277_v10  ;;  %v10118_v55 = vld [vmem:[%s9714_s20 + $0xc] sm:$0x1] }
 0x109   : > { %v4502_v48 = vor.u32 %v4501_v34, %v4498_v26  ;;  %v4507_v49 = vrot.slane %v4505_v35, 5  ;;  %v4287_v51 = vrot.slane %v4286_v40, 4  ;;  %v4512_v52 = vrot.slane %v4510_v36, 4  ;;  %v10124_v26 = vld [vmem:[%s9714_s20 + $0x14] sm:$0x1] }
 0x10a   : > { %v4515_v54 = vrot.slane %v4513_v41, 5  ;;  %v4521_v28 = vrot.slane %v4519_v42, 5  ;;  %8708 = vmatprep.mubr.msk.bf16.mxu1 %vm1712_vm1, %v7997_v45  ;;  %v8011_v57 = vrot.slane %v8003_v37, 9  ;;  %v4651_v58 = vrot.slane %v9960_v33, 5  ;;  %v8103_v42 = vld [vmem:[%s12039_s5 + $0x34] sm:$0xf] }
 0x10b   : > { %v4503_v32 = vrot.slane %v4502_v48, 4  ;;  %v8012_v60 = vrot.slane %v8004_v15, 9  ;;  %v4292_v17 = vsel %vm9587_vm4, %v4287_v51, %v4291_v25  ;;  %v4655_v0 = vrot.slane %v9964_v38, 5  ;;  %v8999_v38 = vld [vmem:[%s9714_s20 + $0x8] ss:$8 sps:$4 sm:$0xff]  }
 0x10c   : > { %v4516_v62 = vor.u32 %v4515_v54, %v4512_v52  ;;  %v8013_v21 = vrot.slane %v8005_v50, 9  ;;  %v7973_v2 = vcombine.low %v4278_v47, %v4292_v17  ;;  %v4652_v4 = vsel %vm9861_vm7, %v8011_v57, %v4651_v58  ;;  %v8064_v25 = vld [vmem:[%s9714_s20 + $0x10] sm:$0xf]  ;;  %v9000_v15 = vld [vmem:[%s9714_s20 + $0x18] ss:$8 sps:$4 sm:$0xff]  }
 0x10d   : > { %v4508_v3 = vsel %vm9587_vm4, %v4503_v32, %v4507_v49  ;;  %v4659_v33 = vrot.slane %v9980_v6, 5  ;;  %v4656_v8 = vsel %vm9861_vm7, %v8012_v60, %v4655_v0  ;;  %v8014_v9 = vrot.slane %v8006_v44, 9  ;;  %v10147_v50 = vld [vmem:[%s9714_s20 + $0x1c] sm:$0x1]  ;;  %v9001_v51 = vld [vmem:[%s9714_s20 + $0x28] ss:$8 sps:$4 sm:$0xff]  }
 0x10e   : > { %v4517_v7 = vrot.slane %v4516_v62, 4  ;;  %v4663_v10 = vrot.slane %v9992_v23, 5  ;;  %8699 = vmatmul.mubr.msk.bf16.gmra.mxu0 %vm1712_vm1, %v7973_v2  ;;  %v8020_v11 = vcombine.low %v4652_v4, %v4656_v8  ;;  %v4946_v6 = vsel %vm1725_vm0, %v10062_v1, 0  ;;  %v8068_v32 = vld [vmem:[%s9714_s20 + $0x20] sm:$0xf] }
 0x10f   : > { %v4660_v12 = vsel %vm9861_vm7, %v8013_v21, %v4659_v33  ;;  %v10107_v13 = vsel %vm1725_vm0, %v8078_v29, 0  ;;  %v8015_v20 = vrot.slane %v8007_v61, 9  ;;  %v4667_v22 = vrot.slane %v10019_v63, 5  ;;  %v10156_v60 = vld [vmem:[%s9714_s20 + $0x24] sm:$0x1] }
 0x110   : > { %v4522_v19 = vsel %vm9587_vm4, %v4517_v7, %v4521_v28  ;;  %v4664_v23 = vsel %vm9861_vm7, %v8014_v9, %v4663_v10  ;;  %8714 = vmatprep.mubr.msk.bf16.mxu0 %vm1712_vm1, %v8020_v11  ;;  %v8016_v31 = vrot.slane %v8008_v5, 9  ;;  %v4671_v24 = vrot.slane %v10032_v16, 5  ;;  %v9003_v11 = vld [vmem:[%s9714_s20 + $0x58] ss:$8 sps:$4 sm:$0xff]  }
 0x111   : > { %v7998_v43 = vcombine.low %v4508_v3, %v4522_v19  ;;  %v8021_v1 = vcombine.low %v4660_v12, %v4664_v23  ;;  %v4668_v29 = vsel %vm9861_vm7, %v8015_v20, %v4667_v22  ;;  %v8017_v30 = vrot.slane %v8009_v14, 9  ;;  %v8128_v3 = vld [vmem:[%s12039_s5 + $0x38] sm:$0xf]  ;;  %v8070_v19 = vld [vmem:[%s9714_s20 + $0x28] sm:$0xf] }
 0x112   : > { %v4675_v63 = vrot.slane %v10045_v46, 5  ;;  %v8018_v34 = vrot.slane %v8010_v18, 9  ;;  %v4672_v35 = vsel %vm9861_vm7, %v8016_v31, %v4671_v24  ;;  %v4679_v16 = vrot.slane %v10050_v56, 5  ;;  %v8066_v56 = vld [vmem:[%s9714_s20 + $0x18] sm:$0xf] }
 0x113   : > { %8709 = vmatmul.mubr.msk.bf16.gmra.mxu1 %vm1712_vm1, %v7998_v43  ;;  %v5038_v36 = vshrl.u32 %v8062_v53, 16  ;;  %v5041_v37 = vshll.u32 %v8062_v53, 16  ;;  %v8022_v39 = vcombine.low %v4668_v29, %v4672_v35  ;;  %v5047_v46 = vshll.u32 %v10118_v55, 16  ;;  %v10179_v53 = vld [vmem:[%s9714_s20 + $0x2c] sm:$0x1] }
 0x114   : > { %8724 = vmatprep.mubr.msk.bf16.mxu1 %vm1712_vm1, %v8999_v38  ;;  %v10136_v40 = vsel %vm9861_vm7, %v8017_v30, %v4675_v63  ;;  %v5052_v41 = vshrl.u32 %v8064_v25, 16  ;;  %v4680_v45 = vsel %vm9861_vm7, %v8018_v34, %v4679_v16  ;;  %v5055_v49 = vshll.u32 %v8064_v25, 16  ;;  %v8072_v43 = vld [vmem:[%s9714_s20 + $0x30] sm:$0xf]  ;;  %v10187_v25 = vld [vmem:[%s9714_s20 + $0x34] sm:$0x1] }
 0x115   : > { %v5040_v47 = vrot.slane %v5038_v36, 4  ;;  %v5043_v48 = vrot.slane %v5041_v37, 5  ;;  %v8023_v52 = vcombine.low %v10136_v40, %v4680_v45  ;;  %v5049_v54 = vrot.slane %v5047_v46, 5  ;;  %v1329_v16 = vld [vmem:[%s10192_s29 + $0x10] sm:$0xff]  ;;  %v7633_v46 = vld [vmem:[%s10192_s29 + $0xa0] sm:$0xff] }
 0x116   : > { %v5054_v28 = vrot.slane %v5052_v41, 4  ;;  %v5061_v44 = vshll.u32 %v10124_v26, 16  ;;  %8715 = vmatmul.mubr.msk.bf16.vlgmr.msra.gmra.mxu0 %vm1712_vm1, %v8021_v1  ;;  %v5057_v58 = vrot.slane %v5055_v49, 5  ;;  %v5066_v61 = vshrl.u32 %v8066_v56, 16  ;;  %v9002_v1 = vld [vmem:[%s9714_s20 + $0x38] ss:$8 sps:$4 sm:$0xff]  }
 0x117   : > { %v5044_v57 = vor.u32 %v5043_v48, %v5040_v47  ;;  %v5069_v17 = vshll.u32 %v8066_v56, 16  ;;  %8733 = vmatpush3.bf16.msra.mxu0 %v4946_v6  ;;  %8718 = vmatprep.mubr.msk.bf16.mxu0 %vm1712_vm1, %v8022_v39  ;;  %v5075_v0 = vshll.u32 %v10147_v50, 16  ;;  %v5080_v21 = vshrl.u32 %v8068_v32, 16  ;;  %v9004_v45 = vld [vmem:[%s9714_s20 + $0x68] ss:$8 sps:$4 sm:$0xff]  }
 0x118   : > { %v5063_v62 = vrot.slane %v5061_v44, 5  ;;  %v5083_v2 = vshll.u32 %v8068_v32, 16  ;;  %v5058_v33 = vor.u32 %v5057_v58, %v5054_v28  ;;  %8894 = vmatprep.subr.msk.bf16.mxu0 %vm1725_vm0, %v8103_v42  ;;  %v5068_v5 = vrot.slane %v5066_v61, 4  ;;  %v8074_v49 = vld [vmem:[%s9714_s20 + $0x38] sm:$0xf] }
 0x119   : > { %v5045_v4 = vrot.slane %v5044_v57, 4  ;;  %v5071_v7 = vrot.slane %v5069_v17, 5  ;;  %v5077_v8 = vrot.slane %v5075_v0, 5  ;;  %v5082_v38 = vrot.slane %v5080_v21, 4  ;;  %v9005_v44 = vld [vmem:[%s9714_s20 + $0x78] ss:$8 sps:$4 sm:$0xff]  }
 0x11a   : > { %v5085_v9 = vrot.slane %v5083_v2, 5  ;;  %v5089_v10 = vshll.u32 %v10156_v60, 16  ;;  %v5059_v6 = vrot.slane %v5058_v33, 4  ;;  %v10170_v18 = vsel %vm1725_vm0, %v8103_v42, 0  ;;  %v8076_v57 = vld [vmem:[%s9714_s20 + $0x40] sm:$0xf] }
 0x11b   : > { %8725 = vmatmul.mubr.msk.bf16.vlgmr.msra.gmra.mxu1 %vm1712_vm1, %v9000_v15  ;;  %v5050_v12 = vsel %vm9587_vm4, %v5045_v4, %v5049_v54  ;;  %v5072_v14 = vor.u32 %v5071_v7, %v5068_v5  ;;  %v10176_v22 = vsel %vm1725_vm0, %v8128_v3, 0  ;;  %v5097_v29 = vshll.u32 %v8070_v19, 16  ;;  %v10212_v58 = vld [vmem:[%s9714_s20 + $0x44] sm:$0x1] }
 0x11c   : > { %8743 = vmatpush3.bf16.msra.mxu1 %v10107_v13  ;;  %8728 = vmatprep.mubr.msk.bf16.mxu1 %vm1712_vm1, %v9001_v51  ;;  %v5086_v23 = vor.u32 %v5085_v9, %v5082_v38  ;;  %v5091_v20 = vrot.slane %v5089_v10, 5  ;;  %v5064_v31 = vsel %vm9587_vm4, %v5059_v6, %v5063_v62  ;;  %v5094_v13 = vshrl.u32 %v8070_v19, 16  ;;  %v10206_v51 = vld [vmem:[%s9714_s20 + $0x3c] sm:$0x1] }
 0x11d   : > { %v5073_v24 = vrot.slane %v5072_v14, 4  ;;  %8895 = vmatprep.subr.msk.bf16.mxu1 %vm1725_vm0, %v8128_v3  ;;  %v8079_v30 = vcombine.low %v5050_v12, %v5064_v31  ;;  %v5103_v34 = vshll.u32 %v10179_v53, 16  ;;  %v5108_v35 = vshrl.u32 %v8072_v43, 16  ;;  %v8087_v3 = vld [vmem:[%s9714_s20 + $0x58] sm:$0xf] }
 0x11e   : > { %v5087_v63 = vrot.slane %v5086_v23, 4  ;;  %8719 = vmatmul.mubr.msk.bf16.gmra.mxu0 %vm1712_vm1, %v8023_v52  ;;  %v5096_v37 = vrot.slane %v5094_v13, 4  ;;  %v5099_v39 = vrot.slane %v5097_v29, 5  ;;  %v5111_v40 = vshll.u32 %v8072_v43, 16  ;;  %v8089_v12 = vld [vmem:[%s9714_s20 + $0x60] sm:$0xf] }
 0x11f   : > { %v5078_v36 = vsel %vm9587_vm4, %v5073_v24, %v5077_v8  ;;  %8734 = vmatprep.mubr.msk.bf16.mxu0 %vm1712_vm1, %v9003_v11  ;;  %v5105_v42 = vrot.slane %v5103_v34, 5  ;;  %v5110_v56 = vrot.slane %v5108_v35, 4  ;;  %v5117_v15 = vshll.u32 %v10187_v25, 16  ;;  %v8088_v8 = vld [vmem:[%s9714_s20 + $0x5c] sm:$0x1] }
 0x120   : > { %v5092_v41 = vsel %vm9587_vm4, %v5087_v63, %v5091_v20  ;;  %v5100_v47 = vor.u32 %v5099_v39, %v5096_v37  ;;  %v5113_v48 = vrot.slane %v5111_v40, 5  ;;  %v5507_v52 = vrot.slane %v10118_v55, 5  ;;  %v8090_v24 = vld [vmem:[%s9714_s20 + $0x64] sm:$0x1]  ;;  %v8113_v37 = vld [vmem:[%s9714_s20 + $0x10] sm:$0xe] }
 0x121   : > { %v8080_v28 = vcombine.low %v5078_v36, %v5092_v41  ;;  %v5119_v32 = vrot.slane %v5117_v15, 5  ;;  %v5122_v61 = vshrl.u32 %v8074_v49, 16  ;;  %v10214_v17 = vadd.f32 %v7633_v46, %v1329_v16  ;;  %v10242_v39 = vld [vmem:[%s12039_s5 + $0x3c] sm:$0xf]  ;;  %v9006_v46 = vld [vmem:[%s9714_s20 + $0x88] ss:$8 sps:$4 sm:$0xff]  }
 0x122   : > { %v5101_v62 = vrot.slane %v5100_v47, 4  ;;  %v5114_v0 = vor.u32 %v5113_v48, %v5110_v56  ;;  %v5125_v21 = vshll.u32 %v8074_v49, 16  ;;  %v5131_v2 = vshll.u32 %v10206_v51, 16 }
 0x123   : > { %12110 = vst [vmem:[#allocation8_spill] sm:$0xff] %v10214_v17  ;;  %8729 = vmatmul.mubr.msk.bf16.gmra.mxu1 %vm1712_vm1, %v9002_v1  ;;  %v5124_v4 = vrot.slane %v5122_v61, 4  ;;  %v5136_v33 = vshrl.u32 %v8076_v57, 16  ;;  %v5139_v5 = vshll.u32 %v8076_v57, 16  ;;  %v5145_v7 = vshll.u32 %v10212_v58, 16 }
 0x124   : > { %8744 = vmatprep.mubr.msk.bf16.mxu1 %vm1712_vm1, %v8079_v30  ;;  %v5106_v38 = vsel %vm9587_vm4, %v5101_v62, %v5105_v42  ;;  %v5115_v9 = vrot.slane %v5114_v0, 4  ;;  %v5127_v10 = vrot.slane %v5125_v21, 5  ;;  %v5133_v11 = vrot.slane %v5131_v2, 5  ;;  %v8112_v30 = vld [vmem:[%s9714_s20 + $0x8] sm:$0xe] }
 0x125   : > { %v5138_v14 = vrot.slane %v5136_v33, 4  ;;  %v5141_v19 = vrot.slane %v5139_v5, 5  ;;  %v5147_v23 = vrot.slane %v5145_v7, 5  ;;  %v5268_v20 = vshrl.u32 %v8087_v3, 16  ;;  %v8092_v21 = vld [vmem:[%s9714_s20 + $0x6c] sm:$0x1] }
 0x126   : > { %8735 = vmatmul.mubr.msk.bf16.vlgmr.msra.gmra.mxu0 %vm1712_vm1, %v9004_v45  ;;  %v5120_v1 = vsel %vm9587_vm4, %v5115_v9, %v5119_v32  ;;  %v5128_v31 = vor.u32 %v5127_v10, %v5124_v4  ;;  %v5271_v13 = vshll.u32 %v8087_v3, 16  ;;  %v5277_v29 = vshll.u32 %v8088_v8, 16  ;;  %v8093_v2 = vld [vmem:[%s9714_s20 + $0x70] sm:$0xf]  ;;  %v8162_v7 = vld [vmem:[%s12039_s5 + $0x40] sm:$0xf] }
 0x127   : > { %8753 = vmatpush3.bf16.msra.mxu0 %v10170_v18  ;;  %8738 = vmatprep.mubr.msk.bf16.mxu0 %vm1712_vm1, %v9005_v44  ;;  %v8081_v34 = vcombine.low %v5106_v38, %v5120_v1  ;;  %v5142_v35 = vor.u32 %v5141_v19, %v5138_v14  ;;  %v5270_v16 = vrot.slane %v5268_v20, 4  ;;  %v5282_v36 = vshrl.u32 %v8089_v12, 16  ;;  %v8091_v44 = vld [vmem:[%s9714_s20 + $0x68] sm:$0xf]  ;;  %v8094_v10 = vld [vmem:[%s9714_s20 + $0x74] sm:$0x1] }
 0x128   : > { %v5129_v41 = vrot.slane %v5128_v31, 4  ;;  %v5273_v42 = vrot.slane %v5271_v13, 5  ;;  %v5279_v18 = vrot.slane %v5277_v29, 5  ;;  %v5285_v56 = vshll.u32 %v8089_v12, 16  ;;  %8896 = vmatprep.subr.msk.bf16.mxu0 %vm1725_vm0, %v10242_v39  ;;  %v8114_v19 = vld [vmem:[%s9714_s20 + $0x18] sm:$0xe] }
 0x129   : > { %v5143_v45 = vrot.slane %v5142_v35, 4  ;;  %v5284_v47 = vrot.slane %v5282_v36, 4  ;;  %v5291_v48 = vshll.u32 %v8090_v24, 16  ;;  %v8120_v49 = vrot.slane %v8112_v30, 9  ;;  %v8115_v13 = vld [vmem:[%s9714_s20 + $0x20] sm:$0xe] }
 0x12a   : > { %v5134_v57 = vsel %vm9587_vm4, %v5129_v41, %v5133_v11  ;;  %v5274_v61 = vor.u32 %v5273_v42, %v5270_v16  ;;  %v5287_v62 = vrot.slane %v5285_v56, 5  ;;  %v8121_v0 = vrot.slane %v8113_v37, 9 }
 0x12b   : > { %8745 = vmatmul.mubr.msk.bf16.vlgmr.msra.gmra.mxu1 %vm1712_vm1, %v8080_v28  ;;  %v5148_v4 = vsel %vm9587_vm4, %v5143_v45, %v5147_v23  ;;  %v5293_v33 = vrot.slane %v5291_v48, 5  ;;  %v5508_v28 = vsel %vm9861_vm7, %v8120_v49, %v5507_v52  ;;  %v5511_v5 = vrot.slane %v10124_v26, 5  ;;  %v8096_v49 = vld [vmem:[%s9714_s20 + $0x7c] sm:$0x1] }
 0x12c   : > { %8763 = vmatpush3.bf16.msra.mxu1 %v10176_v22  ;;  %8748 = vmatprep.mubr.msk.bf16.mxu1 %vm1712_vm1, %v8081_v34  ;;  %v8082_v22 = vcombine.low %v5134_v57, %v5148_v4  ;;  %v5275_v38 = vrot.slane %v5274_v61, 4  ;;  %v5288_v9 = vor.u32 %v5287_v62, %v5284_v47  ;;  %v5296_v11 = vshrl.u32 %v8091_v44, 16  ;;  %v8116_v4 = vld [vmem:[%s9714_s20 + $0x28] sm:$0xe] }
 0x12d   : > { %8897 = vmatprep.subr.msk.bf16.mxu1 %vm1725_vm0, %v8162_v7  ;;  %v5512_v52 = vsel %vm9861_vm7, %v8121_v0, %v5511_v5  ;;  %v5299_v26 = vshll.u32 %v8091_v44, 16  ;;  %v5305_v12 = vshll.u32 %v8092_v21, 16  ;;  %v5310_v14 = vshrl.u32 %v8093_v2, 16  ;;  %v8097_v44 = vld [vmem:[%s9714_s20 + $0x80] sm:$0xf] }
 0x12e   : > { %8739 = vmatmul.mubr.msk.bf16.gmra.mxu0 %vm1712_vm1, %v9006_v46  ;;  %v5280_v20 = vsel %vm9587_vm4, %v5275_v38, %v5279_v18  ;;  %v5289_v1 = vrot.slane %v5288_v9, 4  ;;  %v8129_v31 = vcombine.low %v5508_v28, %v5512_v52  ;;  %v5298_v24 = vrot.slane %v5296_v11, 4  ;;  %v8095_v18 = vld [vmem:[%s9714_s20 + $0x78] sm:$0xf]  ;;  %v8117_v38 = vld [vmem:[%s9714_s20 + $0x30] sm:$0xe] }
 0x12f   : > { %v5301_v30 = vrot.slane %v5299_v26, 5  ;;  %v5307_v34 = vrot.slane %v5305_v12, 5  ;;  %v5312_v35 = vrot.slane %v5310_v14, 4  ;;  %v5313_v16 = vshll.u32 %v8093_v2, 16  ;;  %v8098_v2 = vld [vmem:[%s9714_s20 + $0x84] sm:$0x1] }
 0x130   : > { %v5294_v37 = vsel %vm9587_vm4, %v5289_v1, %v5293_v33  ;;  %v5319_v46 = vshll.u32 %v8094_v10, 16  ;;  %v8122_v41 = vrot.slane %v8114_v19, 9  ;;  %v5515_v42 = vrot.slane %v10147_v50, 5  ;;  %v8099_v52 = vld [vmem:[%s9714_s20 + $0x88] sm:$0xf] }
 0x131   : > { %v8104_v56 = vcombine.low %v5280_v20, %v5294_v37  ;;  %v5302_v45 = vor.u32 %v5301_v30, %v5298_v24  ;;  %v5315_v47 = vrot.slane %v5313_v16, 5  ;;  %v8123_v48 = vrot.slane %v8115_v13, 9  ;;  %v8100_v20 = vld [vmem:[%s9714_s20 + $0x8c] sm:$0x1] }
 0x132   : > { %v5321_v62 = vrot.slane %v5319_v46, 5  ;;  %v5516_v0 = vsel %vm9861_vm7, %v8122_v41, %v5515_v42  ;;  %v5519_v50 = vrot.slane %v10156_v60, 5  ;;  %v5683_v21 = vsel %vm1725_vm0, %v10242_v39, 0 }
 0x133   : > { %8749 = vmatmul.mubr.msk.bf16.gmra.mxu1 %vm1712_vm1, %v8082_v22  ;;  %8754 = vmatprep.mubr.msk.bf16.mxu0 %vm1712_vm1, %v8104_v56  ;;  %v5303_v33 = vrot.slane %v5302_v45, 4  ;;  %v5316_v28 = vor.u32 %v5315_v47, %v5312_v35  ;;  %v5802_v5 = vsel %vm1725_vm0, %v8162_v7, 0  ;;  %v5324_v22 = vshrl.u32 %v8095_v18, 16  ;;  %v8101_v35 = vld [vmem:[%s9714_s20 + $0x90] sm:$0xf] }
 0x134   : > { %8764 = vmatprep.mubr.msk.bf16.mxu1 %vm1712_vm1, %v8129_v31  ;;  %v5520_v60 = vsel %vm9861_vm7, %v8123_v48, %v5519_v50  ;;  %v5327_v39 = vshll.u32 %v8095_v18, 16  ;;  %v5333_v10 = vshll.u32 %v8096_v49, 16  ;;  %v5338_v11 = vshrl.u32 %v8097_v44, 16  ;;  %v8102_v47 = vld [vmem:[%s9714_s20 + $0x94] sm:$0x1] }
 0x135   : > { %v5308_v26 = vsel %vm9587_vm4, %v5303_v33, %v5307_v34  ;;  %v5317_v12 = vrot.slane %v5316_v28, 4  ;;  %v8130_v14 = vcombine.low %v5516_v0, %v5520_v60  ;;  %v5326_v19 = vrot.slane %v5324_v22, 4  ;;  %v8118_v50 = vld [vmem:[%s9714_s20 + $0x38] sm:$0xe] }
 0x136   : > { %v5329_v31 = vrot.slane %v5327_v39, 5  ;;  %v5335_v24 = vrot.slane %v5333_v10, 5  ;;  %v5340_v13 = vrot.slane %v5338_v11, 4  ;;  %v5341_v30 = vshll.u32 %v8097_v44, 16 }
 0x137   : > { %v5322_v16 = vsel %vm9587_vm4, %v5317_v12, %v5321_v62  ;;  %v5347_v37 = vshll.u32 %v8098_v2, 16  ;;  %v8124_v34 = vrot.slane %v8116_v4, 9  ;;  %v5523_v46 = vrot.slane %v10179_v53, 5  ;;  %v8187_v62 = vld [vmem:[%s12039_s5 + $0x44] sm:$0xf] }
 0x138   : > { %v8105_v42 = vcombine.low %v5308_v26, %v5322_v16  ;;  %v5330_v18 = vor.u32 %v5329_v31, %v5326_v19  ;;  %v5343_v56 = vrot.slane %v5341_v30, 5  ;;  %v8125_v45 = vrot.slane %v8117_v38, 9  ;;  %v8119_v31 = vld [vmem:[%s9714_s20 + $0x40] sm:$0xe] }
 0x139   : > { %v10225_v6 = vpop.f32.mrf.mxu0  ;;  %v5349_v48 = vrot.slane %v5347_v37, 5  ;;  %v5524_v49 = vsel %vm9861_vm7, %v8124_v34, %v5523_v46  ;;  %v5527_v44 = vrot.slane %v10187_v25, 5  ;;  %v5352_v0 = vshrl.u32 %v8099_v52, 16  ;;  %v8212_v37 = vld [vmem:[%s12039_s5 + $0x48] sm:$0xf] }
 0x13a   : > { %v10227_v43 = vpop.f32.mrf.mxu1  ;;  %8755 = vmatmul.mubr.msk.bf16.vlgmr.msra.gmra.mxu0 %vm1712_vm1, %v8105_v42  ;;  %v5331_v4 = vrot.slane %v5330_v18, 4  ;;  %v5344_v33 = vor.u32 %v5343_v56, %v5340_v13  ;;  %v5355_v28 = vshll.u32 %v8099_v52, 16  ;;  %v5361_v22 = vshll.u32 %v8100_v20, 16 }
 0x13b   : > { %v10234_v63 = vpop.f32.mrf.mxu0  ;;  %8765 = vmatmul.mubr.msk.bf16.vlgmr.msra.gmra.mxu1 %vm1712_vm1, %v8130_v14  ;;  %8773 = vmatpush3.bf16.msra.mxu0 %v5683_v21  ;;  %v5528_v25 = vsel %vm9861_vm7, %v8125_v45, %v5527_v44  ;;  %v5354_v38 = vrot.slane %v5352_v0, 4  ;;  %v5366_v60 = vshrl.u32 %v8101_v35, 16  ;;  %v5369_v39 = vshll.u32 %v8101_v35, 16 }
 0x13c   : > { %v10244_v40 = vpop.f32.mrf.mxu1  ;;  %8783 = vmatpush3.bf16.msra.mxu1 %v5802_v5  ;;  %v5336_v26 = vsel %vm9587_vm4, %v5331_v4, %v5335_v24  ;;  %v5345_v12 = vrot.slane %v5344_v33, 4  ;;  %v8131_v14 = vcombine.low %v5524_v49, %v5528_v25  ;;  %v5357_v19 = vrot.slane %v5355_v28, 5  ;;  %8898 = vmatprep.subr.msk.bf16.mxu0 %vm1725_vm0, %v8187_v62  ;;  %v9007_v28 = vld [vmem:[%s9714_s20 + $0xa8] ss:$8 sps:$4 sm:$0xff]  }
 0x13d   : > { %v10249_v15 = vpop.f32.mrf.mxu0  ;;  %v5363_v21 = vrot.slane %v5361_v22, 5  ;;  %v5368_v5 = vrot.slane %v5366_v60, 4  ;;  %v5371_v52 = vrot.slane %v5369_v39, 5  ;;  %v5375_v20 = vshll.u32 %v8102_v47, 16  ;;  %8899 = vmatprep.subr.msk.bf16.mxu1 %vm1725_vm0, %v8212_v37  ;;  %v8171_v60 = vld [vmem:[%s9714_s20 + $0xa8] sm:$0xf] }
 0x13e   : > { %v10252_v32 = vpop.f32.mrf.mxu1  ;;  %v5350_v30 = vsel %vm9587_vm4, %v5345_v12, %v5349_v48  ;;  %8768 = vmatprep.mubr.msk.bf16.mxu1 %vm1712_vm1, %v8131_v14  ;;  %v5358_v35 = vor.u32 %v5357_v19, %v5354_v38  ;;  %v8126_v16 = vrot.slane %v8118_v50, 9  ;;  %v5531_v24 = vrot.slane %v10206_v51, 5  ;;  %v8196_v19 = vld [vmem:[%s9714_s20 + $0xf8] sm:$0xf] }
 0x13f   : > { %v10259_v3 = vpop.f32.mrf.mxu0  ;;  %v8106_v34 = vcombine.low %v5336_v26, %v5350_v30  ;;  %v5372_v46 = vor.u32 %v5371_v52, %v5368_v5  ;;  %v5377_v42 = vrot.slane %v5375_v20, 5  ;;  %v8127_v18 = vrot.slane %v8119_v31, 9  ;;  %v8197_v5 = vld [vmem:[%s9714_s20 + $0xfc] sm:$0x1]  ;;  %v8198_v52 = vld [vmem:[%s9714_s20 + $0x100] sm:$0xf] }
 0x140   : > { %v10273_v8 = vpop.f32.mrf.mxu1  ;;  %v5359_v47 = vrot.slane %v5358_v35, 4  ;;  %v5532_v51 = vsel %vm9861_vm7, %v8126_v16, %v5531_v24  ;;  %v5535_v48 = vrot.slane %v10212_v58, 5  ;;  %v1872_v49 = vadd.f32 %v10227_v43, %v10225_v6  ;;  %v9008_v6 = vld [vmem:[%s9714_s20 + $0xf8] ss:$8 sps:$4 sm:$0xff]  }
 0x141   : > { %v10277_v55 = vpop.f32.mrf.mxu0  ;;  %8758 = vmatprep.mubr.msk.bf16.mxu0 %vm1712_vm1, %v8106_v34  ;;  %v5373_v44 = vrot.slane %v5372_v46, 4  ;;  %v10373_v0 = vsel %vm1725_vm0, %v8187_v62, 0  ;;  %v1864_v50 = vadd.f32 %v10244_v40, %v10234_v63  ;;  %v10378_v4 = vsel %vm1725_vm0, %v8212_v37, 0  ;;  %v9009_v16 = vld [vmem:[%s9714_s20 + $0xb8] ss:$8 sps:$4 sm:$0xff]  }
 0x142   : > { %v10282_v23 = vpop.f32.mrf.mxu1  ;;  %v5364_v33 = vsel %vm9587_vm4, %v5359_v47, %v5363_v21  ;;  %v5536_v58 = vsel %vm9861_vm7, %v8127_v18, %v5535_v48  ;;  %v1875_v43 = vadd.f32 %v10252_v32, %v10249_v15  ;;  %v10389_v62 = vadd.f32 %v10273_v8, %v10259_v3  ;;  %v9011_v18 = vld [vmem:[%s9714_s20 + $0xc8] ss:$8 sps:$4 sm:$0xff]  }
 0x143   : > { %v10288_v29 = vpop.f32.mrf.mxu0  ;;  %v5378_v63 = vsel %vm9587_vm4, %v5373_v44, %v5377_v42  ;;  %v8132_v40 = vcombine.low %v5532_v51, %v5536_v58  ;;  %v10396_v22 = vadd.f32 %v10282_v23, %v10277_v55  ;;  %v10416_v55 = vld [vmem:[%s9714_s20 + $0xac] sm:$0x1]  ;;  %v5894_v39 = vshrl.u32 %v8171_v60, 16  ;;  %v8199_v42 = vld [vmem:[%s9714_s20 + $0x104] sm:$0x1] }
 0x144   : > { %v10290_v36 = vpop.f32.mrf.mxu1  ;;  %v8107_v3 = vcombine.low %v5364_v33, %v5378_v63  ;;  %v6127_v51 = vshll.u32 %v8196_v19, 16  ;;  %v6133_v48 = vshll.u32 %v8197_v5, 16  ;;  %v6141_v33 = vshll.u32 %v8198_v52, 16 }
 0x145   : > { %v10298_v57 = vpop.f32.mrf.mxu0  ;;  %v10400_v25 = vadd.f32 %v10290_v36, %v10288_v29  ;;  %8769 = vmatmul.mubr.msk.bf16.gmra.mxu1 %vm1712_vm1, %v8132_v40  ;;  %v8173_v29 = vld [vmem:[%s9714_s20 + $0xb0] sm:$0xf]  ;;  %v10422_v36 = vld [vmem:[%s9714_s20 + $0xb4] sm:$0x1]  ;;  %v5896_v31 = vrot.slane %v5894_v39, 4  ;;  %v6147_v58 = vshll.u32 %v8199_v42, 16 }
 0x146   : > { %v10300_v61 = vpop.f32.mrf.mxu1  ;;  %8759 = vmatmul.mubr.msk.bf16.gmra.mxu0 %vm1712_vm1, %v8107_v3  ;;  %8784 = vmatprep.mubr.msk.bf16.mxu1 %vm1712_vm1, %v9008_v6  ;;  %v5911_v12 = vshll.u32 %v8173_v29, 16  ;;  %v5917_v14 = vshll.u32 %v10422_v36, 16  ;;  %v8175_v6 = vld [vmem:[%s9714_s20 + $0xb8] sm:$0xf]  ;;  %v6129_v40 = vrot.slane %v6127_v51, 5  ;;  %vm7478_vm2 = vcmask 195584  }
 0x147   : > { %v10322_v7 = vpop.f32.mrf.mxu0  ;;  %v10408_v8 = vadd.f32 %v10300_v61, %v10298_v57  ;;  %v5897_v57 = vshll.u32 %v8171_v60, 16  ;;  %8774 = vmatprep.mubr.msk.bf16.mxu0 %vm1712_vm1, %v9007_v28  ;;  %v6135_v28 = vrot.slane %v6133_v48, 5  ;;  %v10455_v3 = vld [vmem:[%s9714_s20 + $0xbc] sm:$0x1]  ;;  %v9013_v48 = vld [vmem:[%s9714_s20 + $0xd8] ss:$8 sps:$4 sm:$0xff]  }
 0x148   : > { %v10314_v9 = vpop.f32.mrf.mxu1  ;;  %v5913_v34 = vrot.slane %v5911_v12, 5  ;;  %v5919_v46 = vrot.slane %v5917_v14, 5  ;;  %v10468_v14 = vld [vmem:[%s12039_s5 + $0x4c] sm:$0xf]  ;;  %vm7487_vm3 = vcmask 326656  }
 0x149   : > { %v10412_v38 = vadd.f32 %v10314_v9, %v10322_v7  ;;  %v5903_v7 = vshll.u32 %v10416_v55, 16  ;;  %v5899_v21 = vrot.slane %v5897_v57, 5  ;;  %v6143_v57 = vrot.slane %v6141_v33, 5  ;;  %v8254_v33 = vld [vmem:[%s12039_s5 + $0x50] sm:$0xf] }
 0x14a   : > { %v10324_v1 = vpop.f32.mrf.mxu1 }
 0x14b   : > { %v5905_v24 = vrot.slane %v5903_v7, 5  ;;  %v5900_v47 = vor.u32 %v5899_v21, %v5896_v31  ;;  %v8177_v7 = vld [vmem:[%s9714_s20 + $0xc0] sm:$0xf]  ;;  %v5925_v31 = vshll.u32 %v8175_v6, 16 }
 0x14c   : > { %v10330_v41 = vpop.f32.mrf.mxu1  ;;  %v10340_v53 = vpop.f32.mrf.mxu0 }
 0x14d   : > { %v2121_v23 = vadd.f32 %v10340_v53, %v1872_v49  ;;  %v5908_v53 = vshrl.u32 %v8173_v29, 16 }
 0x14e   : > { %v10342_v2 = vpop.f32.mrf.mxu1  ;;  %v2088_v10 = vpop.f32.mrf.mxu0  ;;  %8775 = vmatmul.mubr.msk.bf16.vlgmr.msra.gmra.mxu0 %vm1712_vm1, %v9009_v16 }
 0x14f   : > { %v2119_v61 = vadd.f32 %v2088_v10, %v1864_v50  ;;  %v9010_v10 = vld [vmem:[%s9714_s20 + $0x108] ss:$8 sps:$4 sm:$0xff]   ;;  %v10438_v20 = vadd.f32 %v10324_v1, %v2121_v23  ;;  %v5910_v37 = vrot.slane %v5908_v53, 4  ;;  %v6124_v1 = vshrl.u32 %v8196_v19, 16  ;;  %8793 = vmatpush3.bf16.msra.mxu0 %v10373_v0  ;;  %8778 = vmatprep.mubr.msk.bf16.mxu0 %vm1712_vm1, %v9011_v18 }
 0x150   : > { %v10348_v11 = vpop.f32.mrf.mxu1  ;;  %v8557_v13 = vpop.f32.mrf.mxu0  ;;  %v6138_v50 = vshrl.u32 %v8198_v52, 16  ;;  %8785 = vmatmul.mubr.msk.bf16.vlgmr.msra.gmra.mxu1 %vm1712_vm1, %v9010_v10  ;;  %v5922_v19 = vshrl.u32 %v8175_v6, 16  ;;  %v10477_v52 = vld [vmem:[%s9714_s20 + $0xc4] sm:$0x1]  ;;  %8900 = vmatprep.subr.msk.bf16.mxu0 %vm1725_vm0, %v10468_v14 }
 0x151   : > { %v10424_v26 = vadd.f32 %v8557_v13, %v1875_v43  ;;  %v10441_v13 = vadd.f32 %v10330_v41, %v2119_v61  ;;  %v9012_v41 = vld [vmem:[%s9714_s20 + $0x118] ss:$8 sps:$4 sm:$0xff]   ;;  %v5914_v44 = vor.u32 %v5913_v34, %v5910_v37  ;;  %v5901_v43 = vrot.slane %v5900_v47, 4  ;;  %8803 = vmatpush3.bf16.msra.mxu1 %v10378_v4  ;;  %v9014_v34 = vld [vmem:[%s9714_s20 + $0x128] ss:$8 sps:$4 sm:$0xff]  }
 0x152   : > { %v10362_v56 = vpop.f32.mrf.mxu0  ;;  %v10364_v45 = vpop.f32.mrf.mxu1  ;;  %v6126_v63 = vrot.slane %v6124_v1, 4  ;;  %v6140_v39 = vrot.slane %v6138_v50, 4  ;;  %v6149_v61 = vrot.slane %v6147_v58, 5  ;;  %v5936_v37 = vshrl.u32 %v8177_v7, 16  ;;  %v8200_v4 = vld [vmem:[%s9714_s20 + $0x108] sm:$0xf]  ;;  %8788 = vmatprep.mubr.msk.bf16.mxu1 %vm1712_vm1, %v9012_v41  ;;  %8901 = vmatprep.subr.msk.bf16.mxu1 %vm1725_vm0, %v8254_v33 }
 0x153   : > { %v5915_v29 = vrot.slane %v5914_v44, 4  ;;  %v5906_v53 = vsel %vm9587_vm4, %v5901_v43, %v5905_v24  ;;  %v5931_v24 = vshll.u32 %v10455_v3, 16  ;;  %v5924_v16 = vrot.slane %v5922_v19, 4 }
 0x154   : > { %v10404_v32 = vpop.f32.mrf.mxu1  ;;  %v6130_v12 = vor.u32 %v6129_v40, %v6126_v63  ;;  %v6144_v5 = vor.u32 %v6143_v57, %v6140_v39  ;;  %v5927_v1 = vrot.slane %v5925_v31, 5  ;;  %v5938_v18 = vrot.slane %v5936_v37, 4  ;;  %v8201_v63 = vld [vmem:[%s9714_s20 + $0x10c] sm:$0x1]  ;;  %v8202_v40 = vld [vmem:[%s9714_s20 + $0x110] sm:$0xf] }
 0x155   : > { %v10402_v15 = vpop.f32.mrf.mxu0  ;;  %v5920_v10 = vsel %vm9587_vm4, %v5915_v29, %v5919_v46  ;;  %v5933_v0 = vrot.slane %v5931_v24, 5  ;;  %v5939_v50 = vshll.u32 %v8177_v7, 16  ;;  %v5945_v43 = vshll.u32 %v10477_v52, 16 }
 0x156   : > { %v10445_v35 = vpop.f32.mrf.mxu1  ;;  %v8188_v42 = vcombine.low %v5906_v53, %v5920_v10  ;;  %v6131_v47 = vrot.slane %v6130_v12, 4  ;;  %v6145_v44 = vrot.slane %v6144_v5, 4  ;;  %v5928_v6 = vor.u32 %v5927_v1, %v5924_v16  ;;  %8779 = vmatmul.mubr.msk.bf16.gmra.mxu0 %vm1712_vm1, %v9013_v48  ;;  %v8181_v48 = vld [vmem:[%s9714_s20 + $0xd0] sm:$0xf] }
 0x157   : > { %v10426_v9 = vpop.f32.mrf.mxu0  ;;  %v5941_v7 = vrot.slane %v5939_v50, 5  ;;  %v6152_v12 = vshrl.u32 %v8200_v4, 16  ;;  %v5947_v10 = vrot.slane %v5945_v43, 5  ;;  %v6155_v5 = vshll.u32 %v8200_v4, 16 }
 0x158   : > { %v10457_v60 = vpop.f32.mrf.mxu1  ;;  %v6136_v58 = vsel %vm9587_vm4, %v6131_v47, %v6135_v28  ;;  %v6150_v57 = vsel %vm9587_vm4, %v6145_v44, %v6149_v61  ;;  %v8203_v28 = vld [vmem:[%s9714_s20 + $0x114] sm:$0x1]  ;;  %v5929_v31 = vrot.slane %v5928_v6, 4  ;;  %v6161_v1 = vshll.u32 %v8201_v63, 16  ;;  %8789 = vmatmul.mubr.msk.bf16.gmra.mxu1 %vm1712_vm1, %v9014_v34  ;;  %v8179_v6 = vld [vmem:[%s9714_s20 + $0xc8] sm:$0xf]  ;;  %8794 = vmatprep.mubr.msk.bf16.mxu0 %vm1712_vm1, %v8188_v42 }
 0x159   : > { %v10443_v30 = vpop.f32.mrf.mxu0  ;;  %v8213_v19 = vcombine.low %v6136_v58, %v6150_v57  ;;  %v5942_v47 = vor.u32 %v5941_v7, %v5938_v18  ;;  %v6154_v16 = vrot.slane %v6152_v12, 4  ;;  %v6166_v54 = vshrl.u32 %v8202_v40, 16 }
 0x15a   : > { %v5934_v61 = vsel %vm9587_vm4, %v5929_v31, %v5933_v0  ;;  %v6157_v44 = vrot.slane %v6155_v5, 5  ;;  %v6169_v50 = vshll.u32 %v8202_v40, 16  ;;  %v6175_v58 = vshll.u32 %v8203_v28, 16  ;;  %v10527_v0 = vld [vmem:[%s9714_s20 + $0xcc] sm:$0x1] }
 0x15b   : > { %v10450_v49 = vpop.f32.mrf.mxu0  ;;  %8804 = vmatprep.mubr.msk.bf16.mxu1 %vm1712_vm1, %v8213_v19  ;;  %v5943_v18 = vrot.slane %v5942_v47, 4  ;;  %v6163_v63 = vrot.slane %v6161_v1, 5  ;;  %v6168_v57 = vrot.slane %v6166_v54, 4  ;;  %v6420_v34 = vsel %vm1725_vm0, %v10468_v14, 0  ;;  %v10543_v1 = vld [vmem:[%s9714_s20 + $0xd4] sm:$0x1] }
 0x15c   : > { %v6158_v40 = vor.u32 %v6157_v44, %v6154_v16  ;;  %v6171_v7 = vrot.slane %v6169_v50, 5  ;;  %v6177_v28 = vrot.slane %v6175_v58, 5  ;;  %v6539_v12 = vsel %vm1725_vm0, %v8254_v33, 0  ;;  %v8204_v44 = vld [vmem:[%s9714_s20 + $0x118] sm:$0xf] }
 0x15d   : > { %v10459_v23 = vpop.f32.mrf.mxu0  ;;  %v5948_v54 = vsel %vm9587_vm4, %v5943_v18, %v5947_v10  ;;  %v10538_v14 = vadd.f32 %v10342_v2, %v10424_v26  ;;  %v2120_v19 = vadd.f32 %v10362_v56, %v10389_v62  ;;  %v5950_v42 = vshrl.u32 %v8179_v6, 16 }
 0x15e   : > { %v8189_v5 = vcombine.low %v5934_v61, %v5948_v54  ;;  %v6159_v47 = vrot.slane %v6158_v40, 4  ;;  %v6172_v16 = vor.u32 %v6171_v7, %v6168_v57  ;;  %v5953_v33 = vshll.u32 %v8179_v6, 16  ;;  %v8205_v57 = vld [vmem:[%s9714_s20 + $0x11c] sm:$0x1] }
 0x15f   : > { %v10470_v21 = vpop.f32.mrf.mxu0  ;;  %v10484_v46 = vpop.f32.mrf.mxu1  ;;  %v10551_v2 = vadd.f32 %v10348_v11, %v2120_v19  ;;  %v5952_v26 = vrot.slane %v5950_v42, 4  ;;  %v5959_v56 = vshll.u32 %v10527_v0, 16  ;;  %v5964_v62 = vshrl.u32 %v8181_v48, 16  ;;  %v8206_v42 = vld [vmem:[%s9714_s20 + $0x120] sm:$0xf] }
 0x160   : > { %v6164_v61 = vsel %vm9587_vm4, %v6159_v47, %v6163_v63  ;;  %v6173_v58 = vrot.slane %v6172_v16, 4  ;;  %v5955_v6 = vrot.slane %v5953_v33, 5  ;;  %v5967_v18 = vshll.u32 %v8181_v48, 16  ;;  %v8207_v16 = vld [vmem:[%s9714_s20 + $0x124] sm:$0x1]  ;;  %8795 = vmatmul.mubr.msk.bf16.vlgmr.msra.gmra.mxu0 %vm1712_vm1, %v8189_v5 }
 0x161   : > { %v10486_v51 = vpop.f32.mrf.mxu0  ;;  %v10502_v29 = vpop.f32.mrf.mxu1  ;;  %v5961_v54 = vrot.slane %v5959_v56, 5  ;;  %v5966_v11 = vrot.slane %v5964_v62, 4  ;;  %v5973_v19 = vshll.u32 %v10543_v1, 16  ;;  %v6180_v53 = vshrl.u32 %v8204_v44, 16  ;;  %v8183_v48 = vld [vmem:[%s9714_s20 + $0xd8] sm:$0xf]  ;;  %8813 = vmatpush3.bf16.msra.mxu0 %v6420_v34 }
 0x162   : > { %v6178_v41 = vsel %vm9587_vm4, %v6173_v58, %v6177_v28  ;;  %v5956_v63 = vor.u32 %v5955_v6, %v5952_v26  ;;  %v5969_v47 = vrot.slane %v5967_v18, 5  ;;  %v6183_v33 = vshll.u32 %v8204_v44, 16 }
 0x163   : > { %v10504_v39 = vpop.f32.mrf.mxu0  ;;  %v10510_v24 = vpop.f32.mrf.mxu1  ;;  %v8214_v56 = vcombine.low %v6164_v61, %v6178_v41  ;;  %v5975_v62 = vrot.slane %v5973_v19, 5  ;;  %v6194_v58 = vshrl.u32 %v8206_v42, 16  ;;  %v6197_v41 = vshll.u32 %v8206_v42, 16  ;;  %v8185_v19 = vld [vmem:[%s9714_s20 + $0xe0] sm:$0xf] }
 0x164   : > { %v5970_v28 = vor.u32 %v5969_v47, %v5966_v11  ;;  %v6185_v26 = vrot.slane %v6183_v33, 5  ;;  %v6203_v5 = vshll.u32 %v8207_v16, 16  ;;  %v5981_v16 = vshll.u32 %v8183_v48, 16 }
 0x165   : > { %v10512_v37 = vpop.f32.mrf.mxu0  ;;  %v10518_v4 = vpop.f32.mrf.mxu1  ;;  %8805 = vmatmul.mubr.msk.bf16.vlgmr.msra.gmra.mxu1 %vm1712_vm1, %v8214_v56  ;;  %v6196_v11 = vrot.slane %v6194_v58, 4  ;;  %v6199_v47 = vrot.slane %v6197_v41, 5  ;;  %v8208_v56 = vld [vmem:[%s9714_s20 + $0x128] sm:$0xf] }
 0x166   : > { %8823 = vmatpush3.bf16.msra.mxu1 %v6539_v12  ;;  %v5971_v61 = vrot.slane %v5970_v28, 4  ;;  %v10598_v12 = vld [vmem:[%s9714_s20 + $0xe4] sm:$0x1] }
 0x167   : > { %v10520_v43 = vpop.f32.mrf.mxu0  ;;  %v6200_v58 = vor.u32 %v6199_v47, %v6196_v11  ;;  %v6001_v11 = vshll.u32 %v10598_v12, 16  ;;  %v8211_v47 = vld [vmem:[%s9714_s20 + $0x134] sm:$0x1] }
 0x169   : > { %v10532_v31 = vpop.f32.mrf.mxu0  ;;  %v10546_v50 = vpop.f32.mrf.mxu1 }
 0x16a   : > { %12111 = vst [vmem:[#allocation9_spill] sm:$0xff] %v10532_v31  ;;  %12112 = vst [vmem:[#allocation10_spill] sm:$0xff] %v10546_v50  ;;  %v10573_v31 = vld [vmem:[%s9714_s20 + $0xdc] sm:$0x1]  ;;  %v5957_v50 = vrot.slane %v5956_v63, 4 }
 0x16b   : > { %v10548_v10 = vpop.f32.mrf.mxu0  ;;  %v10557_v40 = vpop.f32.mrf.mxu1  ;;  %v10588_v63 = vld [vmem:[%s12039_s5 + $0x54] sm:$0xf]  ;;  %v5987_v33 = vshll.u32 %v10573_v31, 16 }
 0x16c   : > { %12113 = vst [vmem:[#allocation11_spill] sm:$0xff] %v10548_v10  ;;  %12114 = vst [vmem:[#allocation12_spill] sm:$0xff] %v10557_v40  ;;  %v6189_v40 = vshll.u32 %v8205_v57, 16  ;;  %v5962_v34 = vsel %vm9587_vm4, %v5957_v50, %v5961_v54  ;;  %v5978_v50 = vshrl.u32 %v8183_v48, 16  ;;  %8902 = vmatprep.subr.msk.bf16.mxu0 %vm1725_vm0, %v10588_v63 }
 0x16d   : > { %v10559_v7 = vpop.f32.mrf.mxu0  ;;  %v10567_v17 = vpop.f32.mrf.mxu1 }
 0x16e   : > { %12115 = vst [vmem:[#allocation13_spill] sm:$0xff] %v10559_v7  ;;  %v6182_v7 = vrot.slane %v6180_v53, 4  ;;  %v6191_v18 = vrot.slane %v6189_v40, 5  ;;  %v2125_v53 = vadd.f32 %v10402_v15, %v10396_v22  ;;  %v6205_v22 = vrot.slane %v6203_v5, 5 }
 0x16f   : > { %v10569_v10 = vpop.f32.mrf.mxu0  ;;  %v10575_v44 = vpop.f32.mrf.mxu1  ;;  %v5980_v41 = vrot.slane %v5978_v50, 4  ;;  %v5992_v5 = vshrl.u32 %v8185_v19, 16 }
 0x170   : > { %12116 = vst [vmem:[#allocation14_spill] sm:$0xff] %v10569_v10  ;;  %12117 = vst [vmem:[#allocation15_spill] sm:$0xff] %v10575_v44  ;;  %v6186_v57 = vor.u32 %v6185_v26, %v6182_v7  ;;  %v10595_v15 = vadd.f32 %v10364_v45, %v2125_v53  ;;  %v5976_v7 = vsel %vm9587_vm4, %v5971_v61, %v5975_v62  ;;  %v5995_v62 = vshll.u32 %v8185_v19, 16  ;;  %v8209_v61 = vld [vmem:[%s9714_s20 + $0x12c] sm:$0x1] }
 0x171   : > { %v10577_v6 = vpop.f32.mrf.mxu0  ;;  %v10590_v40 = vpop.f32.mrf.mxu1  ;;  %v8190_v45 = vcombine.low %v5962_v34, %v5976_v7  ;;  %v5994_v34 = vrot.slane %v5992_v5, 4  ;;  %v6003_v5 = vrot.slane %v6001_v11, 5 }
 0x172   : > { %12118 = vst [vmem:[#allocation16_spill] sm:$0xff] %v10577_v6  ;;  %12119 = vst [vmem:[#allocation17_spill] sm:$0xff] %v10590_v40  ;;  %v6187_v54 = vrot.slane %v6186_v57, 4  ;;  %v5989_v6 = vrot.slane %v5987_v33, 5  ;;  %v5997_v50 = vrot.slane %v5995_v62, 5 }
 0x173   : > { %v10592_v42 = vpop.f32.mrf.mxu0  ;;  %v10606_v28 = vpop.f32.mrf.mxu1  ;;  %8798 = vmatprep.mubr.msk.bf16.mxu0 %vm1712_vm1, %v8190_v45 }
 0x174   : > { %12120 = vst [vmem:[#allocation18_spill] sm:$0xff] %v10592_v42  ;;  %12121 = vst [vmem:[#allocation19_spill] sm:$0xff] %v10606_v28  ;;  %v6192_v53 = vsel %vm9587_vm4, %v6187_v54, %v6191_v18  ;;  %v5983_v42 = vrot.slane %v5981_v16, 5  ;;  %v10623_v18 = vld [vmem:[%s12039_s5 + $0x58] sm:$0xf]  ;;  %v6208_v16 = vshrl.u32 %v8208_v56, 16  ;;  %v5998_v62 = vor.u32 %v5997_v50, %v5994_v34 }
 0x175   : > { %v10608_v26 = vpop.f32.mrf.mxu0  ;;  %v10613_v48 = vpop.f32.mrf.mxu1  ;;  %v8210_v54 = vld [vmem:[%s9714_s20 + $0x130] sm:$0xf]  ;;  %8903 = vmatprep.subr.msk.bf16.mxu1 %vm1725_vm0, %v10623_v18  ;;  %v2126_v50 = vadd.f32 %v10443_v30, %v10408_v8  ;;  %v8224_v30 = vld [vmem:[%s9714_s20 + $0xc0] sm:$0xe] }
 0x176   : > { %12122 = vst [vmem:[#allocation20_spill] sm:$0xff] %v10608_v26  ;;  %12123 = vst [vmem:[#allocation21_spill] sm:$0xff] %v10613_v48  ;;  %v6201_v26 = vrot.slane %v6200_v58, 4  ;;  %v5984_v19 = vor.u32 %v5983_v42, %v5980_v41  ;;  %v6217_v48 = vshll.u32 %v8209_v61, 16  ;;  %v6210_v7 = vrot.slane %v6208_v16, 4 }
 0x177   : > { %v10615_v57 = vpop.f32.mrf.mxu0  ;;  %v10629_v33 = vpop.f32.mrf.mxu1  ;;  %v6225_v44 = vshll.u32 %v8210_v54, 16  ;;  %v8221_v61 = vld [vmem:[%s9714_s20 + $0xa8] sm:$0xe]  ;;  %v8222_v34 = vld [vmem:[%s9714_s20 + $0xb0] sm:$0xe]  ;;  %v10662_v8 = vadd.f32 %v10445_v35, %v2126_v50 }
 0x178   : > { %12124 = vst [vmem:[#allocation22_spill] sm:$0xff] %v10615_v57  ;;  %12125 = vst [vmem:[#allocation23_spill] sm:$0xff] %v10629_v33  ;;  %v6206_v58 = vsel %vm9587_vm4, %v6201_v26, %v6205_v22  ;;  %v6211_v57 = vshll.u32 %v8208_v56, 16  ;;  %v5985_v41 = vrot.slane %v5984_v19, 4  ;;  %v6219_v40 = vrot.slane %v6217_v48, 5 }
 0x179   : > { %v10631_v45 = vpop.f32.mrf.mxu0  ;;  %v8215_v42 = vcombine.low %v6192_v53, %v6206_v58  ;;  %v10636_v28 = vpop.f32.mrf.mxu1  ;;  %v5999_v56 = vrot.slane %v5998_v62, 4  ;;  %v6231_v26 = vshll.u32 %v8211_v47, 16  ;;  %v2123_v53 = vadd.f32 %v10426_v9, %v10400_v25  ;;  %v8223_v9 = vld [vmem:[%s9714_s20 + $0xb8] sm:$0xe] }
 0x17a   : > { %12126 = vst [vmem:[#allocation24_spill] sm:$0xff] %v10631_v45  ;;  %v6213_v33 = vrot.slane %v6211_v57, 5  ;;  %v6222_v45 = vshrl.u32 %v8210_v54, 16  ;;  %v5990_v22 = vsel %vm9587_vm4, %v5985_v41, %v5989_v6  ;;  %v6227_v19 = vrot.slane %v6225_v44, 5 }
 0x17b   : > { %v10638_v10 = vpop.f32.mrf.mxu0  ;;  %8808 = vmatprep.mubr.msk.bf16.mxu1 %vm1712_vm1, %v8215_v42  ;;  %v10647_v11 = vpop.f32.mrf.mxu1  ;;  %v6004_v6 = vsel %vm9587_vm4, %v5999_v56, %v6003_v5  ;;  %v6233_v47 = vrot.slane %v6231_v26, 5  ;;  %v2242_v16 = vadd.f32 %v10404_v32, %v2123_v53  ;;  %v2124_v25 = vadd.f32 %v10450_v49, %v10412_v38 }
 0x17c   : > { %v6214_v57 = vor.u32 %v6213_v33, %v6210_v7  ;;  %v6224_v48 = vrot.slane %v6222_v45, 4  ;;  %v8191_v7 = vcombine.low %v5990_v22, %v6004_v6  ;;  %v8229_v32 = vrot.slane %v8221_v61, 9  ;;  %v9015_v22 = vld [vmem:[%s9714_s20 + $0x10] ss:$8 sps:$4 sm:$0xff]  }
 0x17d   : > { %v10651_v54 = vpop.f32.mrf.mxu0  ;;  %v10659_v58 = vpop.f32.mrf.mxu1  ;;  %v10668_v5 = vadd.f32 %v10457_v60, %v2124_v25  ;;  %v6363_v38 = vrot.slane %v10416_v55, 5  ;;  %v8230_v49 = vrot.slane %v8222_v34, 9  ;;  %v6367_v62 = vrot.slane %v10422_v36, 5 }
 0x17e   : > { %v6215_v44 = vrot.slane %v6214_v57, 4  ;;  %v6228_v33 = vor.u32 %v6227_v19, %v6224_v48  ;;  %8799 = vmatmul.mubr.msk.bf16.gmra.mxu0 %vm1712_vm1, %v8191_v7  ;;  %v2359_v60 = vadd.f32 %v10459_v23, %v10438_v20  ;;  %v8231_v26 = vrot.slane %v8223_v9, 9  ;;  %v8226_v48 = vld [vmem:[%s9714_s20 + $0xd0] sm:$0xe] }
 0x17f   : > { %v10665_v45 = vpop.f32.mrf.mxu0  ;;  %v10671_v42 = vpop.f32.mrf.mxu1  ;;  %v6364_v55 = vsel %vm9861_vm7, %v8229_v32, %v6363_v38  ;;  %v8232_v53 = vrot.slane %v8224_v30, 9  ;;  %v6658_v61 = vsel %vm1725_vm0, %v10588_v63, 0  ;;  %v6368_v20 = vsel %vm9861_vm7, %v8230_v49, %v6367_v62  ;;  %v8280_v62 = vld [vmem:[%s9714_s20 + $0x10] sm:$0xf] }
 0x180   : > { %v6220_v41 = vsel %vm9587_vm4, %v6215_v44, %v6219_v40  ;;  %v6229_v35 = vrot.slane %v6228_v33, 4  ;;  %v8225_v40 = vld [vmem:[%s9714_s20 + $0xc8] sm:$0xe]  ;;  %v10694_v23 = vadd.f32 %v10484_v46, %v2359_v60  ;;  %v2357_v57 = vadd.f32 %v10470_v21, %v10441_v13  ;;  %v8227_v46 = vld [vmem:[%s9714_s20 + $0xd8] sm:$0xe] }
 0x181   : > { %v10680_v56 = vpop.f32.mrf.mxu0  ;;  %v10687_v34 = vpop.f32.mrf.mxu1  ;;  %v8238_v50 = vcombine.low %v6364_v55, %v6368_v20  ;;  %v12127_v6 = vrot.slane %v10455_v3, 5  ;;  %v12128_v25 = vrot.slane %v10477_v52, 5  ;;  %v10717_v21 = vsel %vm1725_vm0, %v10623_v18, 0  ;;  %v8228_v33 = vld [vmem:[%s9714_s20 + $0xe0] sm:$0xe]  ;;  %v12134_v55 = vld [vmem:[#allocation9_spill] sm:$0xff] }
 0x182   : > { %v6234_v36 = vsel %vm9587_vm4, %v6229_v35, %v6233_v47  ;;  %v10713_v13 = vadd.f32 %v10502_v29, %v2357_v57  ;;  %v2360_v3 = vadd.f32 %v10486_v51, %v10538_v14  ;;  %v2358_v52 = vadd.f32 %v10504_v39, %v10551_v2 }
 0x183   : > { %v10699_v19 = vpop.f32.mrf.mxu0  ;;  %v8216_v63 = vcombine.low %v6220_v41, %v6234_v36  ;;  %v6372_v47 = vsel %vm9861_vm7, %v8231_v26, %v12127_v6  ;;  %v6376_v9 = vsel %vm9861_vm7, %v8232_v53, %v12128_v25  ;;  %v10710_v7 = vpop.f32.mrf.mxu1  ;;  %8814 = vmatprep.mubr.msk.bf16.mxu0 %vm1712_vm1, %v8238_v50  ;;  %v8233_v30 = vrot.slane %v8225_v40, 9  ;;  %v10767_v53 = vld [vmem:[%s9714_s20 + $0x14] sm:$0x1]  ;;  %v8282_v40 = vld [vmem:[%s9714_s20 + $0x18] sm:$0xf] }
 0x184   : > { %12129 = vst [vmem:[#allocation25_spill] sm:$0xff] %v10710_v7  ;;  %v8239_v44 = vcombine.low %v6372_v47, %v6376_v9  ;;  %v6379_v29 = vrot.slane %v10527_v0, 5  ;;  %v8234_v32 = vrot.slane %v8226_v48, 9  ;;  %v10731_v51 = vadd.f32 %v10510_v24, %v2360_v3  ;;  %v9016_v0 = vld [vmem:[%s9714_s20 + $0x20] ss:$8 sps:$4 sm:$0xff]  }
 0x185   : > { %8809 = vmatmul.mubr.msk.bf16.gmra.mxu1 %vm1712_vm1, %v8216_v63  ;;  %v10727_v38 = vpop.f32.mrf.mxu1  ;;  %v6383_v14 = vrot.slane %v10543_v1, 5  ;;  %v2363_v18 = vadd.f32 %v10512_v37, %v10595_v15  ;;  %v8235_v49 = vrot.slane %v8227_v46, 9  ;;  %v10736_v39 = vpop.f32.mrf.mxu0  ;;  %v10740_v2 = vadd.f32 %v10518_v4, %v2358_v52  ;;  %v10749_v37 = vld [vmem:[%s12039_s5 + $0x5c] sm:$0xf]  ;;  %v9017_v15 = vld [vmem:[%s9714_s20 + $0x30] ss:$8 sps:$4 sm:$0xff]  }
 0x186   : > { %12130 = vst [vmem:[#allocation26_spill] sm:$0xff] %v10727_v38  ;;  %8824 = vmatprep.mubr.msk.bf16.mxu1 %vm1712_vm1, %v9015_v22  ;;  %v6380_v41 = vsel %vm9861_vm7, %v8233_v30, %v6379_v29  ;;  %v8236_v35 = vrot.slane %v8228_v33, 9  ;;  %v2361_v24 = vadd.f32 %v10520_v43, %v2242_v16  ;;  %8815 = vmatmul.mubr.msk.bf16.vlgmr.msra.gmra.mxu0 %vm1712_vm1, %v8239_v44  ;;  %v12132_v22 = vld [vmem:[#allocation10_spill] sm:$0xff]  ;;  %v12133_v43 = vrot.slane %v10573_v31, 5  ;;  %v12136_v48 = vld [vmem:[#allocation12_spill] sm:$0xff] }
 0x187   : > { %v10751_v1 = vpop.f32.mrf.mxu1  ;;  %v6384_v4 = vsel %vm9861_vm7, %v8234_v32, %v6383_v14  ;;  %v10758_v60 = vadd.f32 %v12132_v22, %v2363_v18  ;;  %v2364_v26 = vadd.f32 %v12134_v55, %v10662_v8  ;;  %v10770_v36 = vpop.f32.mrf.mxu0  ;;  %8833 = vmatpush3.bf16.msra.mxu0 %v6658_v61  ;;  %v12135_v57 = vrot.slane %v10598_v12, 5  ;;  %v12137_v8 = vld [vmem:[#allocation11_spill] sm:$0xff]  ;;  %v8284_v46 = vld [vmem:[%s9714_s20 + $0x20] sm:$0xf]  ;;  %v10793_v44 = vld [vmem:[%s9714_s20 + $0x24] sm:$0x1] }
 0x188   : > { %12131 = vst [vmem:[#allocation27_spill] sm:$0xff] %v10751_v1  ;;  %v6388_v16 = vsel %vm9861_vm7, %v8235_v49, %v12133_v43  ;;  %v8240_v20 = vcombine.low %v6380_v41, %v6384_v4  ;;  %v10777_v63 = vadd.f32 %v12136_v48, %v2361_v24  ;;  %v2362_v50 = vadd.f32 %v12137_v8, %v10668_v5  ;;  %v10782_v6 = vld [vmem:[%s9714_s20 + $0x1c] sm:$0x1]  ;;  %v9019_v52 = vld [vmem:[%s9714_s20 + $0x60] ss:$8 sps:$4 sm:$0xff]  }
 0x189   : > { %v6392_v31 = vsel %vm9861_vm7, %v8236_v35, %v12135_v57  ;;  %v10784_v47 = vpop.f32.mrf.mxu1  ;;  %v10787_v61 = vadd.f32 %v10567_v17, %v2364_v26  ;;  %v6750_v12 = vshrl.u32 %v8280_v62, 16  ;;  %v6753_v9 = vshll.u32 %v8280_v62, 16  ;;  %8904 = vmatprep.subr.msk.bf16.mxu0 %vm1725_vm0, %v10749_v37  ;;  %v10795_v3 = vpop.f32.mrf.mxu0  ;;  %v12139_v5 = vld [vmem:[#allocation15_spill] sm:$0xff]  ;;  %v8286_v32 = vld [vmem:[%s9714_s20 + $0x28] sm:$0xf] }
 0x18a   : > { %12138 = vst [vmem:[#allocation10_spill] sm:$0xff] %v10784_v47  ;;  %v8241_v25 = vcombine.low %v6388_v16, %v6392_v31  ;;  %8818 = vmatprep.mubr.msk.bf16.mxu0 %vm1712_vm1, %v8240_v20  ;;  %v10799_v33 = vadd.f32 %v12139_v5, %v2362_v50  ;;  %v6759_v17 = vshll.u32 %v10767_v53, 16  ;;  %v6764_v30 = vshrl.u32 %v8282_v40, 16  ;;  %v12141_v35 = vld [vmem:[#allocation13_spill] sm:$0xff]  ;;  %v8346_v62 = vld [vmem:[%s12039_s5 + $0x60] sm:$0xf] }
 0x18b   : > { %v6767_v29 = vshll.u32 %v8282_v40, 16  ;;  %v10804_v14 = vpop.f32.mrf.mxu1  ;;  %v6752_v18 = vrot.slane %v6750_v12, 4  ;;  %v6755_v49 = vrot.slane %v6753_v9, 5  ;;  %v6773_v41 = vshll.u32 %v10782_v6, 16  ;;  %v10812_v4 = vpop.f32.mrf.mxu0  ;;  %v10816_v55 = vld [vmem:[%s9714_s20 + $0x2c] sm:$0x1] }
 0x18c   : > { %12140 = vst [vmem:[#allocation9_spill] sm:$0xff] %v10804_v14  ;;  %v2708_v24 = vadd.f32 %v12141_v35, %v10694_v23  ;;  %v6761_v22 = vrot.slane %v6759_v17, 5  ;;  %v6766_v43 = vrot.slane %v6764_v30, 4  ;;  %v6778_v26 = vshrl.u32 %v8284_v46, 16  ;;  %v12143_v57 = vld [vmem:[#allocation17_spill] sm:$0xff] }
 0x18d   : > { %8825 = vmatmul.mubr.msk.bf16.vlgmr.msra.gmra.mxu1 %vm1712_vm1, %v9016_v0  ;;  %v6769_v16 = vrot.slane %v6767_v29, 5  ;;  %v10818_v40 = vpop.f32.mrf.mxu1  ;;  %v6756_v23 = vor.u32 %v6755_v49, %v6752_v18  ;;  %v6775_v20 = vrot.slane %v6773_v41, 5  ;;  %v6781_v48 = vshll.u32 %v8284_v46, 16  ;;  %v10825_v0 = vpop.f32.mrf.mxu0  ;;  %v9018_v29 = vld [vmem:[%s9714_s20 + $0x40] ss:$8 sps:$4 sm:$0xff]  }
 0x18e   : > { %12142 = vst [vmem:[#allocation12_spill] sm:$0xff] %v10818_v40  ;;  %8843 = vmatpush3.bf16.msra.mxu1 %v10717_v21  ;;  %8828 = vmatprep.mubr.msk.bf16.mxu1 %vm1712_vm1, %v9017_v15  ;;  %v10823_v31 = vadd.f32 %v12143_v57, %v2708_v24  ;;  %v6780_v50 = vrot.slane %v6778_v26, 4  ;;  %v6787_v12 = vshll.u32 %v10793_v44, 16  ;;  %v6792_v9 = vshrl.u32 %v8286_v32, 16  ;;  %v12147_v57 = vld [vmem:[#allocation14_spill] sm:$0xff] }
 0x18f   : > { %v6770_v8 = vor.u32 %v6769_v16, %v6766_v43  ;;  %8905 = vmatprep.subr.msk.bf16.mxu1 %vm1725_vm0, %v8346_v62  ;;  %v10829_v5 = vpop.f32.mrf.mxu1  ;;  %8819 = vmatmul.mubr.msk.bf16.gmra.mxu0 %vm1712_vm1, %v8241_v25  ;;  %v6757_v21 = vrot.slane %v6756_v23, 4  ;;  %v6783_v15 = vrot.slane %v6781_v48, 5  ;;  %v6795_v17 = vshll.u32 %v8286_v32, 16  ;;  %v10833_v46 = vpop.f32.mrf.mxu0  ;;  %v8288_v16 = vld [vmem:[%s9714_s20 + $0x30] sm:$0xf] }
 0x190   : > { %12144 = vst [vmem:[#allocation11_spill] sm:$0xff] %v10829_v5  ;;  %v6801_v30 = vshll.u32 %v10816_v55, 16  ;;  %12145 = vst [vmem:[#allocation15_spill] sm:$0xff] %v10833_v46  ;;  %8834 = vmatprep.mubr.msk.bf16.mxu0 %vm1712_vm1, %v9019_v52  ;;  %v6789_v49 = vrot.slane %v6787_v12, 5  ;;  %v6794_v41 = vrot.slane %v6792_v9, 4  ;;  %v7118_v35 = vsel %vm1725_vm0, %v10749_v37, 0 }
 0x191   : > { %v6771_v18 = vrot.slane %v6770_v8, 4  ;;  %v6762_v25 = vsel %vm9587_vm4, %v6757_v21, %v6761_v22  ;;  %v6784_v24 = vor.u32 %v6783_v15, %v6780_v50  ;;  %v6797_v32 = vrot.slane %v6795_v17, 5  ;;  %v10842_v26 = vpop.f32.mrf.mxu1  ;;  %v10844_v23 = vpop.f32.mrf.mxu0  ;;  %v12148_v22 = vld [vmem:[#allocation16_spill] sm:$0xff]  ;;  %v10856_v50 = vld [vmem:[%s9714_s20 + $0x34] sm:$0x1] }
 0x192   : > { %v6803_v43 = vrot.slane %v6801_v30, 5  ;;  %12146 = vst [vmem:[#allocation13_spill] sm:$0xff] %v10844_v23  ;;  %v2706_v48 = vadd.f32 %v12147_v57, %v10713_v13  ;;  %v10851_v37 = vsel %vm1725_vm0, %v8346_v62, 0  ;;  %v2709_v8 = vadd.f32 %v12148_v22, %v10731_v51  ;;  %v9020_v9 = vld [vmem:[%s9714_s20 + $0x70] ss:$8 sps:$4 sm:$0xff]   ;;  %v12153_v51 = vld [vmem:[#allocation21_spill] sm:$0xff] }
 0x193   : > { %v6776_v52 = vsel %vm9587_vm4, %v6771_v18, %v6775_v20  ;;  %v6785_v21 = vrot.slane %v6784_v24, 4  ;;  %v6798_v15 = vor.u32 %v6797_v32, %v6794_v41  ;;  %v12149_v17 = vld [vmem:[#allocation18_spill] sm:$0xff]  ;;  %v8290_v30 = vld [vmem:[%s9714_s20 + $0x38] sm:$0xf]  ;;  %v10862_v18 = vpop.f32.mrf.mxu1  ;;  %v10864_v13 = vpop.f32.mrf.mxu0  ;;  %v10875_v24 = vld [vmem:[%s9714_s20 + $0x3c] sm:$0x1] }
 0x194   : > { %v8297_v12 = vcombine.low %v6762_v25, %v6776_v52  ;;  %v2707_v20 = vadd.f32 %v12149_v17, %v10740_v2  ;;  %12150 = vst [vmem:[#allocation17_spill] sm:$0xff] %v10862_v18  ;;  %12151 = vst [vmem:[#allocation14_spill] sm:$0xff] %v10864_v13  ;;  %v12152_v62 = vld [vmem:[#allocation19_spill] sm:$0xff]  ;;  %v10871_v22 = vadd.f32 %v12153_v51, %v2709_v8  ;;  %v9021_v25 = vld [vmem:[%s9714_s20 + $0x80] ss:$8 sps:$4 sm:$0xff]   ;;  %v6806_v41 = vshrl.u32 %v8288_v16, 16 }
 0x195   : > { %8829 = vmatmul.mubr.msk.bf16.gmra.mxu1 %vm1712_vm1, %v9018_v29  ;;  %v10868_v57 = vadd.f32 %v12152_v62, %v2706_v48  ;;  %v6809_v32 = vshll.u32 %v8288_v16, 16  ;;  %v6790_v2 = vsel %vm9587_vm4, %v6785_v21, %v6789_v49  ;;  %v6799_v52 = vrot.slane %v6798_v15, 4  ;;  %v12154_v29 = vld [vmem:[#allocation23_spill] sm:$0xff]  ;;  %v10884_v8 = vpop.f32.mrf.mxu1  ;;  %v8292_v16 = vld [vmem:[%s9714_s20 + $0x40] sm:$0xf] }
 0x196   : > { %8844 = vmatprep.mubr.msk.bf16.mxu1 %vm1712_vm1, %v8297_v12  ;;  %v10881_v48 = vadd.f32 %v12154_v29, %v2707_v20  ;;  %v6815_v17 = vshll.u32 %v10856_v50, 16  ;;  %12155 = vst [vmem:[#allocation16_spill] sm:$0xff] %v10884_v8  ;;  %v6808_v62 = vrot.slane %v6806_v41, 4  ;;  %v6820_v5 = vshrl.u32 %v8290_v30, 16  ;;  %v10887_v12 = vpop.f32.mrf.mxu0  ;;  %v12157_v20 = vld [vmem:[#allocation20_spill] sm:$0xff] }
 0x197   : > { %v6811_v51 = vrot.slane %v6809_v32, 5  ;;  %v6823_v40 = vshll.u32 %v8290_v30, 16  ;;  %12156 = vst [vmem:[#allocation18_spill] sm:$0xff] %v10887_v12  ;;  %8835 = vmatmul.mubr.msk.bf16.vlgmr.msra.gmra.mxu0 %vm1712_vm1, %v9020_v9  ;;  %v6804_v49 = vsel %vm9587_vm4, %v6799_v52, %v6803_v43  ;;  %v6829_v15 = vshll.u32 %v10875_v24, 16  ;;  %v10896_v14 = vld [vmem:[%s9714_s20 + $0x44] sm:$0x1]  ;;  %v10899_v32 = vpop.f32.mrf.mxu1 }
 0x198   : > { %v6817_v21 = vrot.slane %v6815_v17, 5  ;;  %v2712_v29 = vadd.f32 %v12157_v20, %v10758_v60  ;;  %v8294_v41 = vld [vmem:[%s9714_s20 + $0x48] sm:$0xf]  ;;  %12158 = vst [vmem:[#allocation19_spill] sm:$0xff] %v10899_v32  ;;  %v8298_v30 = vcombine.low %v6790_v2, %v6804_v49  ;;  %8853 = vmatpush3.bf16.msra.mxu0 %v7118_v35  ;;  %8838 = vmatprep.mubr.msk.bf16.mxu0 %vm1712_vm1, %v9021_v25  ;;  %v6822_v12 = vrot.slane %v6820_v5, 4  ;;  %v10910_v35 = vld [vmem:[%s10192_s29 + $0x11] sm:$0xff]  ;;  %v10912_v49 = vpop.f32.mrf.mxu0 }
 0x199   : > { %v6812_v9 = vor.u32 %v6811_v51, %v6808_v62  ;;  %v6825_v43 = vrot.slane %v6823_v40, 5  ;;  %v10903_v52 = vld [vmem:[%s9714_s20 + $0x4c] sm:$0x1]  ;;  %v6831_v17 = vrot.slane %v6829_v15, 5  ;;  %v6834_v60 = vshrl.u32 %v8292_v16, 16  ;;  %12159 = vst [vmem:[#allocation21_spill] sm:$0xff] %v10912_v49  ;;  %v10916_v51 = vpop.f32.mrf.mxu1 }
 0x19a   : > { %v10906_v47 = vadd.f32 %v10636_v28, %v2712_v29  ;;  %v6837_v20 = vshll.u32 %v8292_v16, 16  ;;  %v6843_v32 = vshll.u32 %v10896_v14, 16  ;;  %v6848_v2 = vshrl.u32 %v8294_v41, 16  ;;  %v9022_v25 = vld [vmem:[%s9714_s20 + $0x90] ss:$8 sps:$4 sm:$0xff]   ;;  %12160 = vst [vmem:[#allocation23_spill] sm:$0xff] %v10916_v51 }
 0x19b   : > { %v6813_v8 = vrot.slane %v6812_v9, 4  ;;  %v6826_v18 = vor.u32 %v6825_v43, %v6822_v12  ;;  %v6836_v40 = vrot.slane %v6834_v60, 4  ;;  %v6851_v62 = vshll.u32 %v8294_v41, 16  ;;  %v12161_v41 = vld [vmem:[#allocation22_spill] sm:$0xff]  ;;  %v1328_v51 = vld [vmem:[%s10192_s29] sm:$0xff]  ;;  %v10929_v13 = vpop.f32.mrf.mxu1 }
 0x19c   : > { %v6839_v5 = vrot.slane %v6837_v20, 5  ;;  %v6857_v28 = vshll.u32 %v10903_v52, 16  ;;  %v6845_v15 = vrot.slane %v6843_v32, 5  ;;  %v6850_v29 = vrot.slane %v6848_v2, 4  ;;  %v10925_v49 = vld [vmem:[%s10192_s29 + $0x130] sm:$0xff]  ;;  %12163 = vst [vmem:[#allocation22_spill] sm:$0xff] %v10929_v13 }
 0x19d   : > { %8845 = vmatmul.mubr.msk.bf16.vlgmr.msra.gmra.mxu1 %vm1712_vm1, %v8298_v30  ;;  %v6818_v16 = vsel %vm9587_vm4, %v6813_v8, %v6817_v21  ;;  %v6827_v12 = vrot.slane %v6826_v18, 4  ;;  %v6853_v43 = vrot.slane %v6851_v62, 5  ;;  %v2710_v20 = vadd.f32 %v12161_v41, %v10777_v63  ;;  %12162 = vst [vmem:[#allocation20_spill] sm:$0xff] %v10925_v49  ;;  %v7632_v30 = vld [vmem:[%s10192_s29 + $0x90] sm:$0xff]  ;;  %v10937_v2 = vld [vmem:[%s9714_s20 + $0x60] sm:$0xf]  ;;  %v10945_v41 = vpop.f32.mrf.mxu1 }
 0x19e   : > { %8863 = vmatpush3.bf16.msra.mxu1 %v10851_v37  ;;  %v6840_v9 = vor.u32 %v6839_v5, %v6836_v40  ;;  %v6859_v60 = vrot.slane %v6857_v28, 5  ;;  %v12164_v8 = vlaneseq  ;;  %v12165_v37 = vld [vmem:[#allocation8_spill] sm:$0xff]  ;;  %v10939_v40 = vpop.f32.mrf.mxu0  ;;  %12167 = vst [vmem:[#allocation28_spill] sm:$0xff] %v10945_v41  ;;  %v1395_v1 = vadd.f32 %v7632_v30, %v1328_v51 }
 0x19f   : > { %v6832_v18 = vsel %vm9587_vm4, %v6827_v12, %v6831_v17  ;;  %v1443_v32 = vadd.f32 %v10910_v35, %v12165_v37  ;;  %12166 = vst [vmem:[#allocation8_spill] sm:$0xff] %v10939_v40  ;;  %8839 = vmatmul.mubr.msk.bf16.gmra.mxu0 %vm1712_vm1, %v9022_v25  ;;  %v6854_v62 = vor.u32 %v6853_v43, %v6850_v29  ;;  %v12169_v37 = vld [vmem:[#allocation24_spill] sm:$0xff]  ;;  %v10960_v43 = vpop.f32.mrf.mxu1  ;;  %v8330_v40 = vld [vmem:[%s9714_s20 + $0x10] sm:$0xe] }
 0x1a0   : > { %v1327_v21 = vshrl.u32 %v12164_v8, 7  ;;  %v8299_v63 = vcombine.low %v6818_v16, %v6832_v18  ;;  %v6841_v5 = vrot.slane %v6840_v9, 4  ;;  %v10943_v28 = vadd.f32 %v10647_v11, %v2710_v20  ;;  %v10949_v8 = vld [vmem:[%s10192_s29 + $0x1c0] sm:$0xff]  ;;  %12170 = vst [vmem:[#allocation24_spill] sm:$0xff] %v10960_v43  ;;  %v10962_v51 = vpop.f32.mrf.mxu0 }
 0x1a1   : > { %v1478_v12 = vadd.f32 %v10925_v49, %v1443_v32  ;;  %12168 = vst [vmem:[#allocation29_spill] sm:$0xff] %v10949_v8  ;;  %v2713_v13 = vadd.f32 %v12169_v37, %v10787_v61  ;;  %v1405_v16 = vld [vmem:[%s10192_s29 + $0x1] sm:$0xff]  ;;  %v6855_v11 = vrot.slane %v6854_v62, 4  ;;  %v2711_v29 = vadd.f32 %v10638_v10, %v10799_v33  ;;  %12171 = vst [vmem:[#allocation30_spill] sm:$0xff] %v10962_v51  ;;  %v10972_v33 = vld [vmem:[%s10192_s29 + $0x131] sm:$0xff] }
 0x1a2   : > { %v1336_v17 = vmul.u32 2, %v1327_v21  ;;  %8848 = vmatprep.mubr.msk.bf16.mxu1 %vm1712_vm1, %v8299_v63  ;;  %v6846_v25 = vsel %vm9587_vm4, %v6841_v5, %v6845_v15  ;;  %v6980_v9 = vshrl.u32 %v10937_v2, 16  ;;  %v12172_v15 = vmov 0  ;;  %12175 = vst [vmem:[#allocation32_spill] sm:$0xff] %v10972_v33  ;;  %v10978_v63 = vld [vmem:[%s10192_s29 + $0xa0] sm:$0xff]  ;;  %v10985_v5 = vpop.f32.mrf.mxu1 }
 0x1a3   : > { %v6860_v30 = vsel %vm9587_vm4, %v6855_v11, %v6859_v60  ;;  %v1513_v10 = vadd.f32 %v10949_v8, %v1478_v12  ;;  %v10975_v18 = vadd.f32 %v10659_v58, %v2713_v13  ;;  %v1442_v21 = vadd.f32 %v1405_v16, %v1395_v1  ;;  %12177 = vst [vmem:[#allocation34_spill] sm:$0xff] %v10985_v5  ;;  %v11002_v12 = vld [vmem:[%s10192_s29 + $0xb0] sm:$0xff]  ;;  %v11067_v49 = vld [vmem:[%s10192_s29 + $0x121] sm:$0xff] }
 0x1a4   : > { %v1337_v20 = vadd.s32 4294967295, %v1336_v17  ;;  %vm1367_vm8 = vcmp.ge.s32.totalorder %v1336_v17, 0  ;;  %vm1370_vm9 = vcmp.lt.s32.totalorder %v1336_v17, 16  ;;  %v1413_v61 = vadd.s32 1, %v1336_v17  ;;  %v10999_v17 = vld [vmem:[%s10192_s29 + $0x20] sm:$0xff]  ;;  %v11030_v13 = vpop.f32.mrf.mxu1  ;;  %12193 = vst [vmem:[#allocation46_spill] sm:$0xff] %v11067_v49 }
 0x1a5   : > { %vm10966_vm10 = vmand %vm1367_vm8, %vm1370_vm9  ;;  %v8300_v32 = vcombine.low %v6846_v25, %v6860_v30  ;;  %v12178_v62 = vmov 0  ;;  %v9097_v58 = vmov 0.0   ;;  %v12181_v16 = vmov 0  ;;  %v11026_v30 = vld [vmem:[%s10192_s29 + $0x120] sm:$0xff]  ;;  %12187 = vst [vmem:[#allocation40_spill] sm:$0xff] %v11030_v13 }
 0x1a6   : > { %v12173_v15 = vsel %vm10966_vm10, 4294967295, %v12172_v15  ;;  %vm1338_vm11 = vcmp.ge.s32.totalorder %v1337_v20, 0  ;;  %vm1341_vm12 = vcmp.lt.s32.totalorder %v1337_v20, 16  ;;  %v10983_v60 = vsel %vm10966_vm10, %v10978_v63, -inf  ;;  %12185 = vst [vmem:[#allocation38_spill] sm:$0xff] %v11026_v30  ;;  %v12242_v59 = vld [vmem:[#allocation8_spill] sm:$0xff] }
 0x1a7   : > { %12174 = vst [vmem:[#allocation31_spill] sm:$0xff] %v12173_v15  ;;  %12176 = vst [vmem:[#allocation33_spill] sm:$0xff] %v10983_v60  ;;  %v10993_v1 = vsel %vm10966_vm10, 1.0, %v9097_v58  ;;  %vm1414_vm14 = vcmp.ge.s32.totalorder %v1413_v61, 0  ;;  %vm1417_vm15 = vcmp.lt.s32.totalorder %v1413_v61, 16  ;;  %8849 = vmatmul.mubr.msk.bf16.gmra.mxu1 %vm1712_vm1, %v8300_v32  ;;  %v1547_v11 = vadd.f32 %v10972_v33, %v1513_v10  ;;  %v11023_v61 = vld [vmem:[%s10192_s29 + $0x21] sm:$0xff]  ;;  %v11028_v32 = vpop.f32.mrf.mxu0 }
 0x1a8   : > { %vm10987_vm13 = vmand %vm1338_vm11, %vm1341_vm12  ;;  %12186 = vst [vmem:[#allocation39_spill] sm:$0xff] %v11028_v32  ;;  %v11047_v60 = vld [vmem:[%s10192_s29 + $0x1b0] sm:$0xff]  ;;  %v11054_v5 = vsel %vm10966_vm10, %v11002_v12, -inf  ;;  %v8307_v33 = vld [vmem:[%s9714_s20 + $0x68] sm:$0xf]  ;;  %v1477_v41 = vadd.f32 %v11026_v30, %v1442_v21  ;;  %v11083_v51 = vadd.f32 %v10671_v42, %v2711_v29  ;;  %v6983_v21 = vshll.u32 %v10937_v2, 16  ;;  %v11086_v30 = vpop.f32.mrf.mxu1 }
 0x1a9   : > { %v12179_v62 = vsel %vm10987_vm13, 4294967295, %v12178_v62  ;;  %v11007_v37 = vsel %vm10987_vm13, 1.0, %v9097_v58  ;;  %vm11009_vm0 = vmand %vm1414_vm14, %vm1417_vm15  ;;  %v11020_v20 = vsel %vm10987_vm13, %v10999_v17, -inf  ;;  %12189 = vst [vmem:[#allocation42_spill] sm:$0xff] %v11047_v60  ;;  %v1582_v13 = vadd.f32 %v10999_v17, %v1547_v11  ;;  %v8308_v32 = vld [vmem:[%s9714_s20 + $0x6c] sm:$0x1] }
 0x1aa   : > { %12180 = vst [vmem:[#allocation35_spill] sm:$0xff] %v12179_v62  ;;  %v12182_v16 = vsel %vm11009_vm0, 4294967295, %v12181_v16  ;;  %12184 = vst [vmem:[#allocation37_spill] sm:$0xff] %v11020_v20  ;;  %v1404_v25 = vadd.f32 %v10993_v1, %v11007_v37  ;;  %v11037_v10 = vsel %vm11009_vm0, %v10910_v35, -inf  ;;  %v11041_v8 = vsel %vm11009_vm0, 1.0, %v9097_v58  ;;  %v9028_v58 = vld [vmem:[%s10192_s29 + $0x10] sm:$0xff]  ;;  %v11079_v62 = vpop.f32.mrf.mxu0 }
 0x1ab   : > { %12183 = vst [vmem:[#allocation36_spill] sm:$0xff] %v12182_v16  ;;  %12188 = vst [vmem:[#allocation41_spill] sm:$0xff] %v11037_v10  ;;  %v8306_v20 = vld [vmem:[%s9714_s20 + $0x64] sm:$0x1]  ;;  %v11059_v10 = vsel %vm11009_vm0, %v11023_v61, -inf  ;;  %v11064_v43 = vsel %vm10987_vm13, %v9028_v58, -inf }
 0x1ac   : > { %12190 = vst [vmem:[#allocation43_spill] sm:$0xff] %v11054_v5  ;;  %12191 = vst [vmem:[#allocation44_spill] sm:$0xff] %v11059_v10  ;;  %v1451_v11 = vadd.f32 %v11041_v8, %v1404_v25  ;;  %v6982_v25 = vrot.slane %v6980_v9, 4  ;;  %v1512_v10 = vadd.f32 %v11047_v60, %v1477_v41  ;;  %v6989_v16 = vshll.u32 %v8306_v20, 16  ;;  %v8331_v9 = vld [vmem:[%s9714_s20 + $0x18] sm:$0xe]  ;;  %v11103_v20 = vpop.f32.mrf.mxu0 }
 0x1ad   : > { %12192 = vst [vmem:[#allocation45_spill] sm:$0xff] %v11064_v43  ;;  %12194 = vst [vmem:[#allocation47_spill] sm:$0xff] %v11079_v62  ;;  %v1617_v43 = vadd.f32 %v11002_v12, %v1582_v13  ;;  %v6994_v15 = vshrl.u32 %v8307_v33, 16  ;;  %v6985_v13 = vrot.slane %v6983_v21, 5  ;;  %v6997_v42 = vshll.u32 %v8307_v33, 16  ;;  %v11101_v41 = vld [vmem:[%s10192_s29 + $0xc0] sm:$0xff] }
 0x1ae   : > { %12195 = vst [vmem:[#allocation48_spill] sm:$0xff] %v11086_v30  ;;  %v1486_v5 = vadd.f32 %v11007_v37, %v1451_v11  ;;  %v7003_v29 = vshll.u32 %v8308_v32, 16  ;;  %v1546_v30 = vadd.f32 %v11067_v49, %v1512_v10  ;;  %v6991_v23 = vrot.slane %v6989_v16, 5  ;;  %v11098_v11 = vld [vmem:[%s10192_s29 + $0x30] sm:$0xff]  ;;  %v11105_v32 = vpop.f32.mrf.mxu1 }
 0x1af   : > { %v11092_v62 = vadd.f32 %v11023_v61, %v1617_v43  ;;  %v6996_v38 = vrot.slane %v6994_v15, 4  ;;  %12196 = vst [vmem:[#allocation49_spill] sm:$0xff] %v11098_v11  ;;  %v6986_v60 = vor.u32 %v6985_v13, %v6982_v25  ;;  %v6999_v43 = vrot.slane %v6997_v42, 5  ;;  %v11110_v10 = vld [vmem:[%s10192_s29 + $0x31] sm:$0xff] }
 0x1b0   : > { %v1521_v2 = vadd.f32 %v10993_v1, %v1486_v5  ;;  %v7005_v46 = vrot.slane %v7003_v29, 5  ;;  %v8338_v33 = vrot.slane %v8330_v40, 9  ;;  %v1581_v21 = vadd.f32 %v9028_v58, %v1546_v30  ;;  %v11120_v30 = vld [vmem:[%s10192_s29 + $0x150] sm:$0xff]  ;;  %v11123_v58 = vpop.f32.mrf.mxu0  ;;  %v11133_v29 = vld [vmem:[%s12038_s4] ss:$0 sm:$0xff] }
 0x1b1   : > { %v7219_v16 = vrot.slane %v10767_v53, 5  ;;  %v8339_v15 = vrot.slane %v8331_v9, 9  ;;  %v6987_v49 = vrot.slane %v6986_v60, 4  ;;  %v7000_v7 = vor.u32 %v6999_v43, %v6996_v38  ;;  %12197 = vst [vmem:[#allocation50_spill] sm:$0xff] %v11120_v30  ;;  %v8309_v60 = vld [vmem:[%s9714_s20 + $0x70] sm:$0xf] }
 0x1b2   : > { %v1555_v5 = vadd.f32 %v11041_v8, %v1521_v2  ;;  %v7223_v25 = vrot.slane %v10782_v6, 5  ;;  %v1398_v13 = vadd.f32 %v11101_v41, %v11098_v11  ;;  %v1616_v42 = vadd.f32 %v10978_v63, %v1581_v21  ;;  %v8310_v9 = vld [vmem:[%s9714_s20 + $0x74] sm:$0x1]  ;;  %v11136_v2 = vpop.f32.mrf.mxu1 }
 0x1b3   : > { %v7220_v53 = vsel %vm9861_vm7, %v8338_v33, %v7219_v16  ;;  %v6992_v38 = vsel %vm9587_vm4, %v6987_v49, %v6991_v23  ;;  %v7001_v6 = vrot.slane %v7000_v7, 4  ;;  %12198 = vst [vmem:[#allocation51_spill] sm:$0xff] %v11136_v2  ;;  %v11143_v49 = vld [vmem:[%s10192_s29 + $0x1e0] sm:$0xff]  ;;  %v3057_v33 = vadd.f32 %v10651_v54, %v10823_v31  ;;  %v8312_v31 = vld [vmem:[%s9714_s20 + $0x7c] sm:$0x1] }
 0x1b4   : > { %v1590_v40 = vadd.f32 %v11007_v37, %v1555_v5  ;;  %9023 = vrcp.f32 %v1555_v5  ;;  %v7224_v37 = vsel %vm9861_vm7, %v8339_v15, %v7223_v25  ;;  %v1445_v63 = vadd.f32 %v11110_v10, %v1398_v13  ;;  %12199 = vst [vmem:[#allocation52_spill] sm:$0xff] %v11143_v49  ;;  %v8311_v5 = vld [vmem:[%s9714_s20 + $0x78] sm:$0xf]  ;;  %v11151_v25 = vpop.f32.mrf.mxu1 }
 0x1b5   : > { %v11140_v23 = vadd.f32 %v1616_v42, %v10910_v35  ;;  %v8347_v7 = vcombine.low %v7220_v53, %v7224_v37  ;;  %v7006_v21 = vsel %vm9587_vm4, %v7001_v6, %v7005_v46  ;;  %v7008_v15 = vshrl.u32 %v8309_v60, 16  ;;  %12200 = vst [vmem:[#allocation53_spill] sm:$0xff] %v11151_v25  ;;  %v8332_v46 = vld [vmem:[%s9714_s20 + $0x20] sm:$0xe]  ;;  %v11163_v53 = vpop.f32.mrf.mxu0  ;;  %v8335_v2 = vld [vmem:[%s9714_s20 + $0x38] sm:$0xe] }
 0x1b6   : > { %v1625_v43 = vadd.f32 %v10993_v1, %v1590_v40  ;;  %v1480_v16 = vadd.f32 %v11120_v30, %v1445_v63  ;;  %v7011_v1 = vshll.u32 %v8309_v60, 16  ;;  %v8322_v13 = vcombine.low %v6992_v38, %v7006_v21  ;;  %v11156_v40 = vld [vmem:[%s10192_s29 + $0x151] sm:$0xff]  ;;  %v11167_v38 = vpop.f32.mrf.mxu1 }
 0x1b7   : > { %8864 = vmatprep.mubr.msk.bf16.mxu1 %vm1712_vm1, %v8347_v7  ;;  %12201 = vst [vmem:[#allocation54_spill] sm:$0xff] %v11156_v40  ;;  %v11159_v54 = vadd.f32 %v11133_v29, %v3057_v33  ;;  %v7017_v42 = vshll.u32 %v8310_v9, 16  ;;  %v7010_v6 = vrot.slane %v7008_v15, 4  ;;  %v7022_v63 = vshrl.u32 %v8311_v5, 16  ;;  %12202 = vst [vmem:[#allocation55_spill] sm:$0xff] %v11167_v38  ;;  %v11171_v33 = vpop.f32.mrf.mxu0 }
 0x1b8   : > { %v1659_v35 = vadd.f32 %v11041_v8, %v1625_v43  ;;  %v1515_v60 = vadd.f32 %v11143_v49, %v1480_v16  ;;  %v7013_v37 = vrot.slane %v7011_v1, 5  ;;  %v8333_v8 = vld [vmem:[%s9714_s20 + $0x28] sm:$0xe]  ;;  %8854 = vmatprep.mubr.msk.bf16.mxu0 %vm1712_vm1, %v8322_v13  ;;  %v7025_v7 = vshll.u32 %v8311_v5, 16  ;;  %v11175_v16 = vld [vmem:[%s10192_s29 + $0x40] sm:$0xff]  ;;  %v11177_v30 = vpop.f32.mrf.mxu1 }
 0x1b9   : > { %v7019_v9 = vrot.slane %v7017_v42, 5  ;;  %12203 = vst [vmem:[#allocation56_spill] sm:$0xff] %v11175_v16  ;;  %v7024_v1 = vrot.slane %v7022_v63, 4  ;;  %v7031_v49 = vshll.u32 %v8312_v31, 16  ;;  %12204 = vst [vmem:[#allocation57_spill] sm:$0xff] %v11177_v30  ;;  %v8340_v38 = vrot.slane %v8332_v46, 9  ;;  %v11186_v25 = vpop.f32.mrf.mxu0 }
 0x1ba   : > { %9025 = vrcp.f32 %v1659_v35  ;;  %v1549_v21 = vadd.f32 %v11156_v40, %v1515_v60  ;;  %v7014_v15 = vor.u32 %v7013_v37, %v7010_v6  ;;  %v7027_v35 = vrot.slane %v7025_v7, 5  ;;  %v11181_v42 = vld [vmem:[%s10192_s29 + $0x50] sm:$0xff]  ;;  %v11184_v5 = vld [vmem:[%s10192_s29 + $0xe0] sm:$0xff]  ;;  %v11190_v63 = vpop.f32.mrf.mxu1 }
 0x1bb   : > { %v7227_v13 = vrot.slane %v10793_v44, 5  ;;  %v8341_v43 = vrot.slane %v8333_v8, 9  ;;  %v7033_v37 = vrot.slane %v7031_v49, 5  ;;  %v7231_v31 = vrot.slane %v10816_v55, 5  ;;  %12205 = vst [vmem:[#allocation58_spill] sm:$0xff] %v11190_v63  ;;  %v11193_v46 = vld [vmem:[%s10192_s29 + $0xd0] sm:$0xff]  ;;  %v11204_v49 = vpop.f32.mrf.mxu0 }
 0x1bc   : > { %v1584_v60 = vadd.f32 %v11175_v16, %v1549_v21  ;;  %v7015_v6 = vrot.slane %v7014_v15, 4  ;;  %12206 = vst [vmem:[#allocation59_spill] sm:$0xff] %v11193_v46  ;;  %v7028_v44 = vor.u32 %v7027_v35, %v7024_v1  ;;  %v1397_v7 = vadd.f32 %v11002_v12, %v10999_v17  ;;  %v11202_v15 = vld [vmem:[%s10192_s29 + $0x51] sm:$0xff]  ;;  %v11212_v35 = vld [vmem:[%s10192_s29 + $0x140] sm:$0xff] }
 0x1bd   : > { %v7228_v8 = vsel %vm9861_vm7, %v8340_v38, %v7227_v13  ;;  %v3055_v21 = vadd.f32 %v10665_v45, %v10868_v57  ;;  %v7232_v38 = vsel %vm9861_vm7, %v8341_v43, %v7231_v31  ;;  %12207 = vst [vmem:[#allocation60_spill] sm:$0xff] %v11212_v35  ;;  %v1400_v17 = vadd.f32 %v11184_v5, %v11181_v42  ;;  %v11216_v45 = vpop.f32.mrf.mxu1  ;;  %v11219_v57 = vld [vmem:[%s10192_s29 + $0x41] sm:$0xff]  ;;  %v11226_v43 = vpop.f32.mrf.mxu0  ;;  %v11230_v63 = vld [vmem:[%s10192_s29 + $0x1d0] sm:$0xff] }
 0x1be   : > { %v1619_v55 = vadd.f32 %v11193_v46, %v1584_v60  ;;  %v7020_v1 = vsel %vm9587_vm4, %v7015_v6, %v7019_v9  ;;  %12208 = vst [vmem:[#allocation61_spill] sm:$0xff] %v11216_v45  ;;  %12209 = vst [vmem:[#allocation62_spill] sm:$0xff] %v11219_v57  ;;  %v7029_v12 = vrot.slane %v7028_v44, 4  ;;  %v8348_v13 = vcombine.low %v7228_v8, %v7232_v38  ;;  %v7647_v9 = vld [vmem:[%s10192_s29 + $0x170] sm:$0xff] }
 0x1bf   : > { %v1444_v60 = vadd.f32 %v11023_v61, %v1397_v7  ;;  %v11223_v40 = vadd.f32 %v11133_v29, %v3055_v21  ;;  %12210 = vst [vmem:[#allocation63_spill] sm:$0xff] %v11230_v63  ;;  %v1447_v44 = vadd.f32 %v11202_v15, %v1400_v17  ;;  %v3058_v61 = vadd.f32 %v10680_v56, %v10871_v22  ;;  %v8313_v7 = vld [vmem:[%s9714_s20 + $0x80] sm:$0xf]  ;;  %v11238_v21 = vpop.f32.mrf.mxu1  ;;  %v7663_v17 = vld [vmem:[%s10192_s29 + $0x171] sm:$0xff] }
 0x1c0   : > { %v1653_v31 = vadd.f32 %v11219_v57, %v1619_v55  ;;  %v1399_v8 = vadd.f32 %v11193_v46, %v11175_v16  ;;  %12211 = vst [vmem:[#allocation64_spill] sm:$0xff] %v11238_v21  ;;  %v7034_v45 = vsel %vm9587_vm4, %v7029_v12, %v7033_v37  ;;  %8865 = vmatmul.mubr.msk.bf16.vlgmr.msra.gmra.mxu1 %vm1712_vm1, %v8348_v13  ;;  %v7655_v56 = vld [vmem:[%s10192_s29 + $0x200] sm:$0xff]  ;;  %v11251_v16 = vpop.f32.mrf.mxu0 }
 0x1c1   : > { %v9024_v6 = vpop.eup %9023  ;;  %v1479_v55 = vadd.f32 %v11212_v35, %v1444_v60  ;;  %v11248_v22 = vld [vmem:[%s10192_s29 + $0x160] sm:$0xff]  ;;  %v8323_v21 = vcombine.low %v7020_v1, %v7034_v45  ;;  %v11257_v37 = vadd.f32 %v11133_v29, %v3058_v61  ;;  %v11260_v13 = vpop.f32.mrf.mxu1  ;;  %v11266_v35 = vld [vmem:[%s10192_s29 + $0x1f0] sm:$0xff]  ;;  %v3056_v1 = vadd.f32 %v10699_v19, %v10881_v48  ;;  %v8315_v45 = vld [vmem:[%s9714_s20 + $0x88] sm:$0xf] }
 0x1c2   : > { %v1664_v38 = vmul.f32 %v9024_v6, %v11140_v23  ;;  %12212 = vst [vmem:[#allocation65_spill] sm:$0xff] %v11248_v22  ;;  %v8314_v46 = vld [vmem:[%s9714_s20 + $0x84] sm:$0x1]  ;;  %v1482_v6 = vadd.f32 %v7647_v9, %v1447_v44  ;;  %v1446_v12 = vadd.f32 %v11219_v57, %v1399_v8  ;;  %12214 = vst [vmem:[#allocation67_spill] sm:$0xff] %v11260_v13  ;;  %v7036_v9 = vshrl.u32 %v8313_v7, 16  ;;  %v11271_v61 = vpop.f32.mrf.mxu0 }
 0x1c3   : > { %v11254_v23 = vld [vmem:[%s10192_s29 + $0x141] sm:$0xff]  ;;  %v1514_v60 = vadd.f32 %v11230_v63, %v1479_v55  ;;  %12215 = vst [vmem:[#allocation68_spill] sm:$0xff] %v11266_v35  ;;  %v7039_v44 = vshll.u32 %v8313_v7, 16  ;;  %12216 = vst [vmem:[#allocation69_spill] sm:$0xff] %v11271_v61  ;;  %8855 = vmatmul.mubr.msk.bf16.vlgmr.msra.gmra.mxu0 %vm1712_vm1, %v8323_v21  ;;  %v7045_v57 = vshll.u32 %v8314_v46, 16  ;;  %v11276_v63 = vpop.f32.mrf.mxu1  ;;  %v11286_v7 = vadd.f32 %v11133_v29, %v3056_v1 }
 0x1c4   : > { %12213 = vst [vmem:[#allocation66_spill] sm:$0xff] %v11254_v23  ;;  %7446 = vrot.lane.b32.xlu0 %v1664_v38, %s9098_s9  ;;  %v1517_v8 = vadd.f32 %v7655_v56, %v1482_v6  ;;  %v1481_v55 = vadd.f32 %v11248_v22, %v1446_v12  ;;  %12217 = vst [vmem:[#allocation70_spill] sm:$0xff] %v11276_v63  ;;  %v11280_v19 = vld [vmem:[%s10192_s29 + $0x60] sm:$0xff]  ;;  %v7038_v21 = vrot.slane %v7036_v9, 4  ;;  %v11288_v6 = vpop.f32.mrf.mxu0  ;;  %v8316_v22 = vld [vmem:[%s9714_s20 + $0x8c] sm:$0x1] }
 0x1c5   : > { %v1548_v13 = vadd.f32 %v11254_v23, %v1514_v60  ;;  %12218 = vst [vmem:[#allocation71_spill] sm:$0xff] %v11280_v19  ;;  %v11283_v48 = vld [vmem:[%s10192_s29 + $0x161] sm:$0xff]  ;;  %v7041_v56 = vrot.slane %v7039_v44, 5  ;;  %12220 = vst [vmem:[#allocation73_spill] sm:$0xff] %v11288_v6  ;;  %v11294_v60 = vrot.slane %v7045_v57, 5  ;;  %v7050_v23 = vshrl.u32 %v8315_v45, 16 }
 0x1c6   : > { %12219 = vst [vmem:[#allocation72_spill] sm:$0xff] %v11283_v48  ;;  %v1551_v12 = vadd.f32 %v7663_v17, %v1517_v8  ;;  %v1516_v46 = vadd.f32 %v11266_v35, %v1481_v55  ;;  %v8334_v63 = vld [vmem:[%s9714_s20 + $0x30] sm:$0xe]  ;;  %v11305_v8 = vpop.f32.mrf.mxu0  ;;  %v11307_v55 = vpop.f32.mrf.mxu1  ;;  %v7059_v17 = vshll.u32 %v8316_v22, 16 }
 0x1c7   : > { %v11290_v38 = vpop.eup %9025  ;;  %v1583_v44 = vadd.f32 %v1548_v13, %v11098_v11  ;;  %v11302_v6 = vld [vmem:[%s10192_s29 + $0xf0] sm:$0xff]  ;;  %12222 = vst [vmem:[#allocation75_spill] sm:$0xff] %v11305_v8  ;;  %v7042_v30 = vor.u32 %v7041_v56, %v7038_v21  ;;  %v7052_v61 = vrot.slane %v7050_v23, 4  ;;  %v7053_v13 = vshll.u32 %v8315_v45, 16 }
 0x1c8   : > { %12221 = vst [vmem:[#allocation74_spill] sm:$0xff] %v11290_v38  ;;  %v1665_v1 = vmul.f32 %v11290_v38, %v11092_v62  ;;  %v1667_v9 = vmul.f32 %v11290_v38, %v1653_v31  ;;  %v1586_v57 = vadd.f32 %v11280_v19, %v1551_v12  ;;  %v1550_v35 = vadd.f32 %v11283_v48, %v1516_v46  ;;  %v11315_v31 = vld [vmem:[%s10192_s29 + $0x61] sm:$0xff]  ;;  %v11317_v8 = vpop.f32.mrf.mxu0  ;;  %v8317_v19 = vld [vmem:[%s9714_s20 + $0x90] sm:$0xf] }
 0x1c9   : > { %v1618_v62 = vadd.f32 %v11101_v41, %v1583_v44  ;;  %12223 = vst [vmem:[#allocation76_spill] sm:$0xff] %v11315_v31  ;;  %v8342_v11 = vrot.slane %v8334_v63, 9  ;;  %v7043_v21 = vrot.slane %v7042_v30, 4  ;;  %v7235_v23 = vrot.slane %v10856_v50, 5  ;;  %v11326_v63 = vpop.f32.mrf.mxu1 }
 0x1ca   : > { %7448 = vrot.lane.b32.xlu1 %v1665_v1, %s9098_s9  ;;  %v1621_v12 = vadd.f32 %v11302_v6, %v1586_v57  ;;  %v1585_v46 = vadd.f32 %v1550_v35, %v11181_v42  ;;  %v7055_v1 = vrot.slane %v7053_v13, 5  ;;  %v7061_v48 = vrot.slane %v7059_v17, 5  ;;  %v11324_v45 = vpop.f32.mrf.mxu0  ;;  %v8318_v42 = vld [vmem:[%s9714_s20 + $0x94] sm:$0x1] }
 0x1cb   : > { %v1652_v56 = vadd.f32 %v1618_v62, %v11110_v10  ;;  %v8343_v44 = vrot.slane %v8335_v2, 9  ;;  %v7048_v30 = vsel %vm9587_vm4, %v7043_v21, %v11294_v60  ;;  %v7236_v50 = vsel %vm9861_vm7, %v8342_v11, %v7235_v23  ;;  %v8319_v11 = vld [vmem:[%s9714_s20 + $0x98] sm:$0xf]  ;;  %v11353_v21 = vpop.f32.mrf.mxu1 }
 0x1cc   : > { %v1655_v22 = vadd.f32 %v11315_v31, %v1621_v12  ;;  %v1620_v57 = vadd.f32 %v11184_v5, %v1585_v46  ;;  %v7056_v35 = vor.u32 %v7055_v1, %v7052_v61  ;;  %v7239_v17 = vrot.slane %v10875_v24, 5  ;;  %v11341_v5 = vpop.f32.mrf.mxu0 }
 0x1cd   : > { %v1666_v2 = vmul.f32 %v11290_v38, %v1652_v56  ;;  %v3061_v62 = vadd.f32 %v10736_v39, %v10906_v47  ;;  %v7064_v12 = vshrl.u32 %v8317_v19, 16  ;;  %v7067_v46 = vshll.u32 %v8317_v19, 16  ;;  %v8320_v39 = vld [vmem:[%s9714_s20 + $0x9c] sm:$0x1] }
 0x1ce   : > { %7452 = vrot.lane.b32.xlu1 %v1667_v9, %s9098_s9  ;;  %v1669_v13 = vmul.f32 %v11290_v38, %v1655_v22  ;;  %v1654_v60 = vadd.f32 %v1620_v57, %v11202_v15  ;;  %v7057_v9 = vrot.slane %v7056_v35, 4  ;;  %v7240_v24 = vsel %vm9861_vm7, %v8343_v44, %v7239_v17  ;;  %v11355_v23 = vpop.f32.mrf.mxu0  ;;  %v8336_v22 = vld [vmem:[%s9714_s20 + $0x40] sm:$0xe]  ;;  %v8337_v57 = vld [vmem:[%s9714_s20 + $0x48] sm:$0xe]  ;;  %s9099_s20 = smov 8  }
 0x1cf   : > { %7450 = vrot.lane.b32.xlu0 %v1666_v2, %s9098_s9  ;;  %v11350_v61 = vadd.f32 %v11133_v29, %v3061_v62  ;;  %v7073_v47 = vshll.u32 %v8318_v42, 16  ;;  %v8349_v56 = vcombine.low %v7236_v50, %v7240_v24  ;;  %v7066_v1 = vrot.slane %v7064_v12, 4  ;;  %v11367_v24 = vpop.f32.mrf.mxu1 }
 0x1d0   : > { %v1668_v15 = vmul.f32 %v11290_v38, %v1654_v60  ;;  %v7069_v19 = vrot.slane %v7067_v46, 5  ;;  %v7062_v44 = vsel %vm9587_vm4, %v7057_v9, %v7061_v48  ;;  %v7078_v42 = vshrl.u32 %v8319_v11, 16  ;;  %v11369_v48 = vpop.f32.mrf.mxu0 }
 0x1d1   : > { %v3084_v2 = vmax.f32 %v11350_v61, 0.0  ;;  %v7075_v35 = vrot.slane %v7073_v47, 5  ;;  %v8324_v17 = vcombine.low %v7048_v30, %v7062_v44  ;;  %8868 = vmatprep.mubr.msk.bf16.mxu1 %vm1712_vm1, %v8349_v56  ;;  %v7081_v31 = vshll.u32 %v8319_v11, 16  ;;  %v12226_v44 = vld [vmem:[#allocation25_spill] sm:$0xff]  ;;  %v12254_v61 = vld [vmem:[#allocation51_spill] sm:$0xff] }
 0x1d2   : > { %7456 = vrot.lane.b32.xlu1 %v1669_v13, %s9098_s9  ;;  %v7070_v62 = vor.u32 %v7069_v19, %v7066_v1  ;;  %v7087_v60 = vshll.u32 %v8320_v39, 16  ;;  %v7080_v50 = vrot.slane %v7078_v42, 4  ;;  %v8344_v12 = vrot.slane %v8336_v22, 9  ;;  %v12229_v42 = vld [vmem:[#allocation13_spill] sm:$0xff] }
 0x1d3   : > { %7454 = vrot.lane.b32.xlu0 %v1668_v15, %s9098_s9  ;;  %v7243_v46 = vrot.slane %v10896_v14, 5  ;;  %v8345_v13 = vrot.slane %v8337_v57, 9  ;;  %8858 = vmatprep.mubr.msk.bf16.mxu0 %vm1712_vm1, %v8324_v17  ;;  %v7083_v30 = vrot.slane %v7081_v31, 5  ;;  %v7247_v56 = vrot.slane %v10903_v52, 5 }
 0x1d4   : > { %v7071_v9 = vrot.slane %v7070_v62, 4  ;;  %v7089_v47 = vrot.slane %v7087_v60, 5  ;;  %v12224_v11 = vmax.f32 %v11159_v54, 0.0  ;;  %v3059_v39 = vadd.f32 %v10770_v36, %v10943_v28 }
 0x1d5   : > { %v7244_v14 = vsel %vm9861_vm7, %v8344_v12, %v7243_v46  ;;  %v3062_v15 = vadd.f32 %v10795_v3, %v10975_v18  ;;  %v3060_v31 = vadd.f32 %v10812_v4, %v11083_v51  ;;  %v7084_v1 = vor.u32 %v7083_v30, %v7080_v50  ;;  %v11396_v51 = vpop.f32.mrf.mxu1  ;;  %v11398_v18 = vpop.f32.mrf.mxu0  ;;  %v12231_v50 = vld [vmem:[#allocation27_spill] sm:$0xff]  ;;  %v12232_v12 = vld [vmem:[#allocation14_spill] sm:$0xff]  ;;  %v12234_v30 = vld [vmem:[#allocation16_spill] sm:$0xff] }
 0x1d6   : > { %7386 = vrot.lane.b32.xlu1 %v12224_v11, %s9099_s20  ;;  %v7076_v52 = vsel %vm9587_vm4, %v7071_v9, %v7075_v35  ;;  %v7248_v54 = vsel %vm9861_vm7, %v8345_v13, %v7247_v56  ;;  %v3284_v19 = vadd.f32 %v10825_v0, %v10687_v34  ;;  %v12225_v36 = vmax.f32 %v11223_v40, 0.0  ;;  %v12227_v34 = vld [vmem:[#allocation15_spill] sm:$0xff]  ;;  %v12228_v35 = vld [vmem:[#allocation26_spill] sm:$0xff]  ;;  %v12233_v13 = vld [vmem:[#allocation17_spill] sm:$0xff] }
 0x1d7   : > { %v8350_v22 = vcombine.low %v7244_v14, %v7248_v54  ;;  %v3074_v3 = vadd.f32 %v11133_v29, %v3059_v39  ;;  %v3077_v28 = vadd.f32 %v11133_v29, %v3062_v15  ;;  %v3075_v4 = vadd.f32 %v11133_v29, %v3060_v31  ;;  %v12235_v11 = vld [vmem:[#allocation10_spill] sm:$0xff]  ;;  %v12238_v31 = vld [vmem:[#allocation19_spill] sm:$0xff]  ;;  %v12239_v54 = vld [vmem:[#allocation9_spill] sm:$0xff] }
 0x1d8   : > { %7382 = vrot.lane.b32.xlu0 %v12225_v36, %s9099_s20  ;;  %v7085_v27 = vrot.slane %v7084_v1, 4  ;;  %v3530_v57 = vadd.f32 %v10842_v26, %v3284_v19  ;;  %v3276_v0 = vadd.f32 %v12227_v34, %v12226_v44  ;;  %v3287_v40 = vadd.f32 %v12229_v42, %v12228_v35  ;;  %v12236_v14 = vld [vmem:[#allocation18_spill] sm:$0xff]  ;;  %v12240_v19 = vld [vmem:[#allocation21_spill] sm:$0xff]  ;;  %v12241_v36 = vld [vmem:[#allocation12_spill] sm:$0xff] }
 0x1d9   : > { %8869 = vmatmul.mubr.msk.bf16.gmra.mxu1 %vm1712_vm1, %v8350_v22  ;;  %v3082_v17 = vmax.f32 %v3074_v3, 0.0  ;;  %v12230_v62 = vmax.f32 %v11257_v37, 0.0  ;;  %v3085_v29 = vmax.f32 %v3077_v28, 0.0  ;;  %v3083_v60 = vmax.f32 %v3075_v4, 0.0  ;;  %v8707_v3 = vpop.f32.mrf.mxu1  ;;  %v4359_v28 = vpop.f32.mrf.mxu0  ;;  %v12243_v4 = vld [vmem:[#allocation23_spill] sm:$0xff]  ;;  %v12245_v34 = vld [vmem:[#allocation30_spill] sm:$0xff] }
 0x1da   : > { %v3279_v46 = vadd.f32 %v12232_v12, %v12231_v50  ;;  %v7090_v26 = vsel %vm9587_vm4, %v7085_v27, %v7089_v47  ;;  %v3528_v9 = vadd.f32 %v12233_v13, %v3276_v0  ;;  %v3531_v56 = vadd.f32 %v12234_v30, %v3287_v40  ;;  %v12244_v44 = vld [vmem:[#allocation11_spill] sm:$0xff]  ;;  %v12248_v40 = vld [vmem:[#allocation22_spill] sm:$0xff]  ;;  %v12249_v50 = vld [vmem:[#allocation28_spill] sm:$0xff] }
 0x1db   : > { %7388 = vrot.lane.b32.xlu1 %v12230_v62, %s9099_s20  ;;  %v3300_v39 = vadd.f32 %v12236_v14, %v12235_v11  ;;  %v8325_v15 = vcombine.low %v7076_v52, %v7090_v26  ;;  %v12237_v37 = vmax.f32 %v11286_v7, 0.0  ;;  %v3292_v22 = vadd.f32 %v12240_v19, %v12239_v54  ;;  %v12246_v52 = vld [vmem:[#allocation39_spill] sm:$0xff]  ;;  %v12250_v26 = vld [vmem:[#allocation24_spill] sm:$0xff]  ;;  %v12251_v30 = vld [vmem:[#allocation34_spill] sm:$0xff] }
 0x1dc   : > { %v3529_v1 = vadd.f32 %v12238_v31, %v3279_v46  ;;  %v3303_v47 = vadd.f32 %v12242_v59, %v12241_v36  ;;  %v3295_v0 = vadd.f32 %v12245_v34, %v12244_v44  ;;  %v3760_v35 = vadd.f32 %v12246_v52, %v3530_v57  ;;  %v12247_v42 = vld [vmem:[#allocation47_spill] sm:$0xff]  ;;  %v12252_v14 = vld [vmem:[#allocation40_spill] sm:$0xff]  ;;  %v8700_v31 = vpop.f32.mrf.mxu0  ;;  %v12257_v59 = vld [vmem:[#allocation69_spill] sm:$0xff] }
 0x1dd   : > { %7384 = vrot.lane.b32.xlu0 %v12237_v37, %s9099_s20  ;;  %v3534_v27 = vadd.f32 %v12243_v4, %v3300_v39  ;;  %v3758_v7 = vadd.f32 %v12247_v42, %v3528_v9  ;;  %8859 = vmatmul.mubr.msk.bf16.gmra.mxu0 %vm1712_vm1, %v8325_v15  ;;  %v3532_v62 = vadd.f32 %v12248_v40, %v3292_v22  ;;  %v12253_v9 = vld [vmem:[#allocation48_spill] sm:$0xff]  ;;  %v12255_v22 = vld [vmem:[#allocation53_spill] sm:$0xff]  ;;  %v12256_v36 = vld [vmem:[#allocation55_spill] sm:$0xff]  ;;  %vm7496_vm4 = vcmask 392192  }
 0x1de   : > { %v3535_v12 = vadd.f32 %v12249_v50, %v3303_v47  ;;  %v3761_v46 = vadd.f32 %v11103_v20, %v3531_v56  ;;  %v3533_v13 = vadd.f32 %v12250_v26, %v3295_v0  ;;  %v3921_v11 = vadd.f32 %v12251_v30, %v3760_v35  ;;  %v4589_v56 = vpop.f32.mrf.mxu1  ;;  %v4372_v47 = vpop.f32.mrf.mxu0  ;;  %v12258_v4 = vld [vmem:[#allocation57_spill] sm:$0xff]  ;;  %v12263_v52 = vld [vmem:[#allocation75_spill] sm:$0xff]  ;;  %v12265_v30 = vld [vmem:[#allocation70_spill] sm:$0xff] }
 0x1df   : > { %7396 = vrot.lane.b32.xlu1 %v3085_v29, %s9099_s20  ;;  %v3919_v39 = vadd.f32 %v12252_v14, %v3758_v7  ;;  %v3759_v57 = vadd.f32 %v11123_v58, %v3529_v1  ;;  %v3764_v15 = vadd.f32 %v11163_v53, %v3534_v27  ;;  %v3762_v37 = vadd.f32 %v11171_v33, %v3532_v62  ;;  %v12264_v50 = vld [vmem:[#allocation67_spill] sm:$0xff] }
 0x1e0   : > { %v3922_v29 = vadd.f32 %v12253_v9, %v3761_v46  ;;  %v3765_v20 = vadd.f32 %v11186_v25, %v3535_v12  ;;  %v3763_v19 = vadd.f32 %v11204_v49, %v3533_v13  ;;  %v4040_v58 = vadd.f32 %v11226_v43, %v3921_v11  ;;  %v12260_v49 = vld [vmem:[#allocation61_spill] sm:$0xff]  ;;  %v8710_v40 = vpop.f32.mrf.mxu1  ;;  %v8701_v62 = vpop.f32.mrf.mxu0 }
 0x1e1   : > { %7394 = vrot.lane.b32.xlu0 %v3084_v2, %s9099_s20  ;;  %v3920_v54 = vadd.f32 %v11105_v32, %v3759_v57  ;;  %v4038_v1 = vadd.f32 %v11251_v16, %v3919_v39  ;;  %v3925_v2 = vadd.f32 %v12254_v61, %v3764_v15  ;;  %v3923_v53 = vadd.f32 %v12255_v22, %v3762_v37  ;;  %v12259_v32 = vld [vmem:[#allocation58_spill] sm:$0xff]  ;;  %v12261_v43 = vld [vmem:[#allocation73_spill] sm:$0xff]  ;;  %v12262_v16 = vld [vmem:[#allocation64_spill] sm:$0xff] }
 0x1e2   : > { %v3926_v33 = vadd.f32 %v12256_v36, %v3765_v20  ;;  %v4041_v25 = vadd.f32 %v12257_v59, %v3922_v29  ;;  %v3924_v27 = vadd.f32 %v12258_v4, %v3763_v19  ;;  %v4159_v44 = vadd.f32 %v12259_v32, %v4040_v58  ;;  %v4602_v39 = vpop.f32.mrf.mxu1  ;;  %v12267_v22 = vld [vmem:[#allocation37_spill] sm:$0xff]  ;;  %v12270_v59 = vld [vmem:[#allocation44_spill] sm:$0xff] }
 0x1e3   : > { %7392 = vrot.lane.b32.xlu1 %v3083_v60, %s9099_s20  ;;  %v4157_v34 = vadd.f32 %v12260_v49, %v4038_v1  ;;  %v4039_v0 = vadd.f32 %v12261_v43, %v3920_v54  ;;  %v4044_v35 = vadd.f32 %v12263_v52, %v3925_v2  ;;  %v4042_v42 = vadd.f32 %v11317_v8, %v3923_v53  ;;  %v12275_v49 = vld [vmem:[#allocation49_spill] sm:$0xff] }
 0x1e4   : > { %v4160_v60 = vadd.f32 %v12262_v16, %v4041_v25  ;;  %v4045_v7 = vadd.f32 %v11324_v45, %v3926_v33  ;;  %v4043_v46 = vadd.f32 %v11341_v5, %v3924_v27  ;;  %v4389_v26 = vadd.f32 %v11355_v23, %v4159_v44  ;;  %v4375_v45 = vpop.f32.mrf.mxu0  ;;  %v8711_v20 = vpop.f32.mrf.mxu1  ;;  %v12271_v25 = vld [vmem:[#allocation63_spill] sm:$0xff]  ;;  %v12273_v27 = vld [vmem:[#allocation66_spill] sm:$0xff] }
 0x1e5   : > { %7390 = vrot.lane.b32.xlu0 %v3082_v17, %s9099_s20  ;;  %v4158_v12 = vadd.f32 %v12264_v50, %v4039_v0  ;;  %v4387_v13 = vadd.f32 %v11369_v48, %v4157_v34  ;;  %v4163_v17 = vadd.f32 %v12265_v30, %v4044_v35  ;;  %v4161_v11 = vadd.f32 %v11307_v55, %v4042_v42  ;;  %v12278_v50 = vld [vmem:[#allocation50_spill] sm:$0xff]  ;;  %v12281_v30 = vld [vmem:[#allocation52_spill] sm:$0xff] }
 0x1e6   : > { %v4164_v14 = vadd.f32 %v11326_v63, %v4045_v7  ;;  %v4390_v8 = vadd.f32 %v11398_v18, %v4160_v60  ;;  %v4162_v57 = vadd.f32 %v11353_v21, %v4043_v46  ;;  %v4619_v9 = vadd.f32 %v11367_v24, %v4389_v26  ;;  %v8716_v54 = vpop.f32.mrf.mxu0  ;;  %v4605_v61 = vpop.f32.mrf.mxu1  ;;  %v12266_v21 = vld [vmem:[#allocation43_spill] sm:$0xff]  ;;  %v12277_v7 = vld [vmem:[#allocation38_spill] sm:$0xff] }
 0x1e7   : > { %v4617_v5 = vadd.f32 %v11396_v51, %v4387_v13  ;;  %v4388_v29 = vadd.f32 %v4359_v28, %v4158_v12  ;;  %v4393_v15 = vadd.f32 %v8700_v31, %v4163_v17  ;;  %v4391_v48 = vadd.f32 %v4372_v47, %v4161_v11  ;;  %v12268_v28 = vld [vmem:[#allocation60_spill] sm:$0xff]  ;;  %v12279_v26 = vld [vmem:[#allocation42_spill] sm:$0xff] }
 0x1e8   : > { %v4620_v23 = vadd.f32 %v8707_v3, %v4390_v8  ;;  %v4394_v37 = vadd.f32 %v8701_v62, %v4164_v14  ;;  %v4392_v19 = vadd.f32 %v4375_v45, %v4162_v57  ;;  %v4777_v63 = vadd.f32 %v8716_v54, %v4619_v9  ;;  %v4744_v2 = vpop.f32.mrf.mxu0  ;;  %v8726_v36 = vpop.f32.mrf.mxu1  ;;  %v12282_v45 = vld [vmem:[#allocation54_spill] sm:$0xff]  ;;  %v12283_v9 = vld [vmem:[#allocation56_spill] sm:$0xff] }
 0x1e9   : > { %v4618_v55 = vadd.f32 %v4589_v56, %v4388_v29  ;;  %v4623_v58 = vadd.f32 %v8710_v40, %v4393_v15  ;;  %v4621_v18 = vadd.f32 %v4602_v39, %v4391_v48  ;;  %v1389_v24 = vmax.f32 %v12267_v22, %v12266_v21  ;;  %v12284_v15 = vld [vmem:[#allocation46_spill] sm:$0xff] }
 0x1ea   : > { %v4624_v1 = vadd.f32 %v8711_v20, %v4394_v37  ;;  %v4622_v53 = vadd.f32 %v4605_v61, %v4392_v19  ;;  %v4775_v51 = vadd.f32 %v4744_v2, %v4617_v5  ;;  %v1463_v31 = vsel %vm10987_vm13, %v12268_v28, -inf  ;;  %v8717_v33 = vpop.f32.mrf.mxu0  ;;  %v4863_v52 = vpop.f32.mrf.mxu1  ;;  %v12286_v20 = vld [vmem:[#allocation59_spill] sm:$0xff]  ;;  %v12287_v2 = vld [vmem:[#allocation62_spill] sm:$0xff] }
 0x1eb   : > { %v1436_v56 = vmax.f32 %v1389_v24, %v12270_v59  ;;  %v1498_v4 = vsel %vm10966_vm10, %v12271_v25, -inf  ;;  %v1532_v44 = vsel %vm11009_vm0, %v12273_v27, -inf  ;;  %v1567_v34 = vsel %vm10987_vm13, %v12275_v49, -inf }
 0x1ec   : > { %v11490_v43 = vadd.f32 %v8726_v36, %v4777_v63  ;;  %v4778_v0 = vadd.f32 %v8717_v33, %v4620_v23  ;;  %v1602_v16 = vsel %vm10966_vm10, %v11101_v41, -inf  ;;  %v11498_v60 = vsel %vm11009_vm0, %v11110_v10, -inf  ;;  %v4747_v35 = vpop.f32.mrf.mxu0  ;;  %v8727_v11 = vpop.f32.mrf.mxu1 }
 0x1ed   : > { %12276 = vst [vmem:[#allocation25_spill] sm:$0xff] %v11498_v60  ;;  %v1471_v42 = vmax.f32 %v1436_v56, %v1463_v31  ;;  %v1461_v40 = vsel %vm10987_vm13, %v12277_v7, -inf  ;;  %v1390_v62 = vmax.f32 %v1567_v34, %v1602_v16  ;;  %v1464_v12 = vsel %vm10987_vm13, %v12278_v50, -inf  ;;  %v12291_v56 = vld [vmem:[#allocation71_spill] sm:$0xff] }
 0x1ee   : > { %v11506_v46 = vadd.f32 %v4863_v52, %v4775_v51  ;;  %v4776_v41 = vadd.f32 %v4747_v35, %v4618_v55  ;;  %v12280_v10 = vsel %vm10966_vm10, %v12279_v26, -inf  ;;  %v1499_v17 = vsel %vm10966_vm10, %v12281_v30, -inf  ;;  %v8720_v14 = vpop.f32.mrf.mxu0  ;;  %v4866_v55 = vpop.f32.mrf.mxu1  ;;  %v12290_v51 = vld [vmem:[#allocation45_spill] sm:$0xff]  ;;  %v12297_v26 = vld [vmem:[#allocation20_spill] sm:$0xff] }
 0x1ef   : > { %v1504_v13 = vmax.f32 %v1461_v40, %v12280_v10  ;;  %v1506_v8 = vmax.f32 %v1471_v42, %v1498_v4  ;;  %v1437_v39 = vmax.f32 %v1390_v62, %v11498_v60  ;;  %v1533_v57 = vsel %vm11009_vm0, %v12282_v45, -inf  ;;  %v11589_v45 = vld [vmem:[%s10192_s29 + $0x70] sm:$0xff] }
 0x1f0   : > { %v11522_v5 = vsel %vm10987_vm13, %v12283_v9, -inf  ;;  %v11524_v29 = vadd.f32 %v8727_v11, %v4778_v0  ;;  %v4781_v23 = vadd.f32 %v8720_v14, %v4623_v58  ;;  %v12285_v48 = vsel %vm11009_vm0, %v12284_v15, -inf  ;;  %v4760_v19 = vpop.f32.mrf.mxu0  ;;  %v12289_v58 = vld [vmem:[#allocation33_spill] sm:$0xff]  ;;  %v8730_v4 = vpop.f32.mrf.mxu1 }
 0x1f1   : > { %v1538_v37 = vmax.f32 %v1504_v13, %v12285_v48  ;;  %v11533_v54 = vsel %vm10966_vm10, %v12286_v20, -inf  ;;  %v1540_v63 = vmax.f32 %v1506_v8, %v1532_v44  ;;  %v1472_v61 = vmax.f32 %v1437_v39, %v1464_v12  ;;  %v12293_v0 = vld [vmem:[#allocation41_spill] sm:$0xff]  ;;  %v12299_v13 = vld [vmem:[#allocation76_spill] sm:$0xff] }
 0x1f2   : > { %v11538_v24 = vsel %vm11009_vm0, %v12287_v2, -inf  ;;  %v1388_v28 = vmax.f32 %v12290_v51, %v12289_v58  ;;  %v11542_v31 = vadd.f32 %v4866_v55, %v4776_v41  ;;  %v4779_v36 = vadd.f32 %v4760_v19, %v4621_v18  ;;  %v8721_v27 = vpop.f32.mrf.mxu0  ;;  %v4879_v62 = vpop.f32.mrf.mxu1  ;;  %v11586_v39 = vld [vmem:[%s10192_s29 + $0x181] sm:$0xff] }
 0x1f3   : > { %12288 = vst [vmem:[#allocation15_spill] sm:$0xff] %v11538_v24  ;;  %v1573_v33 = vmax.f32 %v1538_v37, %v12290_v51  ;;  %v11548_v25 = vsel %vm10987_vm13, %v12291_v56, -inf  ;;  %v1575_v44 = vmax.f32 %v1540_v63, %v1567_v34  ;;  %v1507_v49 = vmax.f32 %v1472_v61, %v1499_v17  ;;  %v11564_v34 = vld [vmem:[%s10192_s29 + $0x180] sm:$0xff]  ;;  %v11578_v17 = vld [vmem:[%s10192_s29 + $0x210] sm:$0xff]  ;;  %12302 = vst [vmem:[#allocation10_spill] sm:$0xff] %v11586_v39 }
 0x1f4   : > { %12292 = vst [vmem:[#allocation26_spill] sm:$0xff] %v11548_v25  ;;  %v1435_v52 = vmax.f32 %v1388_v28, %v12293_v0  ;;  %v11554_v35 = vsel %vm10966_vm10, %v11302_v6, -inf  ;;  %v11556_v18 = vadd.f32 %v8730_v4, %v4781_v23  ;;  %v4782_v42 = vadd.f32 %v8721_v27, %v4624_v1  ;;  %v4763_v50 = vpop.f32.mrf.mxu0  ;;  %12301 = vst [vmem:[#allocation16_spill] sm:$0xff] %v11578_v17  ;;  %v11602_v55 = vld [vmem:[%s10192_s29 + $0x100] sm:$0xff] }
 0x1f5   : > { %12294 = vst [vmem:[#allocation13_spill] sm:$0xff] %v11554_v35  ;;  %v11559_v7 = vmax.f32 %v1573_v33, %v12289_v58  ;;  %v1393_v40 = vmax.f32 %v11548_v25, %v11554_v35  ;;  %v11566_v12 = vmax.f32 %v1575_v44, %v1602_v16  ;;  %v1541_v41 = vmax.f32 %v1507_v49, %v1533_v57  ;;  %v8731_v57 = vpop.f32.mrf.mxu1  ;;  %v11609_v58 = vld [vmem:[%s10192_s29 + $0x71] sm:$0xff]  ;;  %v12306_v33 = vld [vmem:[#allocation32_spill] sm:$0xff] }
 0x1f6   : > { %v12298_v10 = vsel %vm10987_vm13, %v12297_v26, -inf  ;;  %v11575_v30 = vsel %vm11009_vm0, %v12299_v13, -inf  ;;  %v11580_v11 = vadd.f32 %v4879_v62, %v4779_v36  ;;  %v4780_v14 = vadd.f32 %v4763_v50, %v4622_v53  ;;  %v8736_v9 = vpop.f32.mrf.mxu0  ;;  %v12303_v53 = vld [vmem:[#allocation29_spill] sm:$0xff]  ;;  %v11625_v49 = vld [vmem:[%s10192_s29 + $0x190] sm:$0xff] }
 0x1f7   : > { %12295 = vst [vmem:[#allocation27_spill] sm:$0xff] %v11559_v7  ;;  %12296 = vst [vmem:[#allocation14_spill] sm:$0xff] %v11566_v12  ;;  %v1470_v1 = vmax.f32 %v1435_v52, %v12298_v10  ;;  %v1440_v8 = vmax.f32 %v1393_v40, %v11575_v30  ;;  %v1576_v15 = vmax.f32 %v1541_v41, %v11522_v5  ;;  %v12304_v48 = vsel %vm10966_vm10, %v12303_v53, -inf  ;;  %v4882_v51 = vpop.f32.mrf.mxu1  ;;  %v11649_v53 = vld [vmem:[%s10192_s29 + $0x191] sm:$0xff] }
 0x1f8   : > { %12300 = vst [vmem:[#allocation17_spill] sm:$0xff] %v11575_v30  ;;  %v1467_v20 = vsel %vm10987_vm13, %v11564_v34, -inf  ;;  %v4901_v19 = vadd.f32 %v8731_v57, %v4782_v42  ;;  %v5015_v63 = vadd.f32 %v8736_v9, %v11490_v43  ;;  %v1502_v2 = vsel %vm10966_vm10, %v11578_v17, -inf  ;;  %v4982_v28 = vpop.f32.mrf.mxu0  ;;  %12308 = vst [vmem:[#allocation19_spill] sm:$0xff] %v11625_v49 }
 0x1f9   : > { %v1505_v37 = vmax.f32 %v1470_v1, %v12304_v48  ;;  %v1475_v61 = vmax.f32 %v1440_v8, %v1467_v20  ;;  %v11612_v36 = vmax.f32 %v1576_v15, %v11533_v54  ;;  %v12307_v4 = vsel %vm11009_vm0, %v12306_v33, -inf  ;;  %v8746_v50 = vpop.f32.mrf.mxu1  ;;  %12311 = vst [vmem:[#allocation12_spill] sm:$0xff] %v11649_v53 }
 0x1fa   : > { %v1536_v43 = vsel %vm11009_vm0, %v11586_v39, -inf  ;;  %v1571_v44 = vsel %vm10987_vm13, %v11589_v45, -inf  ;;  %v4899_v52 = vadd.f32 %v4882_v51, %v4780_v14  ;;  %v5013_v42 = vadd.f32 %v4982_v28, %v11506_v46  ;;  %v8737_v41 = vpop.f32.mrf.mxu0  ;;  %v11640_v46 = vld [vmem:[%s10192_s29 + $0x220] sm:$0xff] }
 0x1fb   : > { %12305 = vst [vmem:[#allocation18_spill] sm:$0xff] %v11612_v36  ;;  %v1539_v27 = vmax.f32 %v1505_v37, %v12307_v4  ;;  %v1510_v40 = vmax.f32 %v1475_v61, %v1502_v2  ;;  %v1606_v62 = vsel %vm10966_vm10, %v11602_v55, -inf  ;;  %v11637_v1 = vsel %vm11009_vm0, %v11609_v58, -inf  ;;  %12310 = vst [vmem:[#allocation21_spill] sm:$0xff] %v11640_v46  ;;  %v11662_v51 = vld [vmem:[%s10192_s29 + $0x80] sm:$0xff] }
 0x1fc   : > { %12309 = vst [vmem:[#allocation9_spill] sm:$0xff] %v11637_v1  ;;  %v1394_v14 = vmax.f32 %v1571_v44, %v1606_v62  ;;  %v11642_v8 = vadd.f32 %v8746_v50, %v5015_v63  ;;  %v5016_v57 = vadd.f32 %v8737_v41, %v11524_v29  ;;  %v1468_v15 = vsel %vm10987_vm13, %v11625_v49, -inf  ;;  %v4985_v48 = vpop.f32.mrf.mxu0  ;;  %12313 = vst [vmem:[#allocation23_spill] sm:$0xff] %v11662_v51 }
 0x1fd   : > { %v1574_v10 = vmax.f32 %v1539_v27, %v12267_v22  ;;  %v1544_v9 = vmax.f32 %v1510_v40, %v1536_v43  ;;  %v5212_v22 = vpop.f32.mrf.mxu1  ;;  %v5014_v63 = vadd.f32 %v4985_v48, %v11542_v31  ;;  %v1503_v29 = vsel %vm10966_vm10, %v11640_v46, -inf }
 0x1fe   : > { %v1441_v20 = vmax.f32 %v1394_v14, %v11637_v1  ;;  %v11655_v61 = vadd.f32 %v5212_v22, %v5013_v42  ;;  %v8740_v33 = vpop.f32.mrf.mxu0  ;;  %v1537_v27 = vsel %vm11009_vm0, %v11649_v53, -inf  ;;  %v1391_v42 = vmax.f32 %v11522_v5, %v11533_v54  ;;  %v11680_v14 = vld [vmem:[%s10192_s29 + $0x110] sm:$0xff] }
 0x1ff   : > { %v11652_v37 = vmax.f32 %v1574_v10, %v12266_v21  ;;  %v1579_v2 = vmax.f32 %v1544_v9, %v1571_v44  ;;  %v8747_v28 = vpop.f32.mrf.mxu1  ;;  %v5019_v31 = vadd.f32 %v8740_v33, %v11556_v18  ;;  %v1572_v10 = vsel %vm10987_vm13, %v11662_v51, -inf  ;;  %12315 = vst [vmem:[#allocation30_spill] sm:$0xff] %v11680_v14  ;;  %v12316_v9 = vld [vmem:[#allocation65_spill] sm:$0xff] }
 0x200   : > { %v1476_v4 = vmax.f32 %v1441_v20, %v1468_v15  ;;  %v11669_v43 = vadd.f32 %v8747_v28, %v5016_v57  ;;  %v4998_v50 = vpop.f32.mrf.mxu0  ;;  %v1465_v57 = vsel %vm10987_vm13, %v12316_v9, -inf  ;;  %v1438_v54 = vmax.f32 %v1391_v42, %v11538_v24  ;;  %v11692_v20 = vld [vmem:[%s10192_s29 + $0x81] sm:$0xff] }
 0x201   : > { %12312 = vst [vmem:[#allocation8_spill] sm:$0xff] %v11652_v37  ;;  %v11672_v44 = vmax.f32 %v1579_v2, %v1606_v62  ;;  %v5215_v40 = vpop.f32.mrf.mxu1  ;;  %v5017_v62 = vadd.f32 %v4998_v50, %v11580_v11  ;;  %12317 = vst [vmem:[#allocation39_spill] sm:$0xff] %v11692_v20  ;;  %v12318_v2 = vld [vmem:[#allocation68_spill] sm:$0xff]  ;;  %v1607_v11 = vsel %vm10966_vm10, %v11680_v14, -inf }
 0x202   : > { %v1511_v41 = vmax.f32 %v1476_v4, %v1503_v29  ;;  %v11685_v18 = vadd.f32 %v5215_v40, %v5014_v63  ;;  %v8741_v22 = vpop.f32.mrf.mxu0  ;;  %v1500_v29 = vsel %vm10966_vm10, %v12318_v2, -inf  ;;  %v1473_v63 = vmax.f32 %v1438_v54, %v1465_v57  ;;  %v12319_v42 = vld [vmem:[#allocation72_spill] sm:$0xff] }
 0x203   : > { %12314 = vst [vmem:[#allocation11_spill] sm:$0xff] %v11672_v44  ;;  %v8750_v15 = vpop.f32.mrf.mxu1  ;;  %v5020_v33 = vadd.f32 %v8741_v22, %v4901_v19  ;;  %v1641_v2 = vsel %vm11009_vm0, %v11692_v20, -inf }
 0x204   : > { %v1545_v48 = vmax.f32 %v1511_v41, %v1537_v27  ;;  %v5249_v28 = vadd.f32 %v8750_v15, %v5019_v31  ;;  %v5001_v40 = vpop.f32.mrf.mxu0  ;;  %v1534_v27 = vsel %vm11009_vm0, %v12319_v42, -inf  ;;  %v1508_v31 = vmax.f32 %v1473_v63, %v1500_v29 }
 0x205   : > { %v5228_v4 = vpop.f32.mrf.mxu1  ;;  %v5018_v9 = vadd.f32 %v5001_v40, %v4899_v52 }
 0x206   : > { %v1580_v50 = vmax.f32 %v1545_v48, %v1572_v10  ;;  %v5247_v41 = vadd.f32 %v5228_v4, %v5017_v62  ;;  %v11706_v5 = vmax.f32 %v1508_v31, %v1534_v27  ;;  %v11710_v48 = vpop.f32.mrf.mxu0 }
 0x207   : > { %v8751_v19 = vpop.f32.mrf.mxu1 }
 0x208   : > { %v1615_v15 = vmax.f32 %v1580_v50, %v1607_v11  ;;  %v5250_v22 = vadd.f32 %v8751_v19, %v5020_v33  ;;  %12320 = vst [vmem:[#allocation47_spill] sm:$0xff] %v11706_v5  ;;  %v11714_v62 = vpop.f32.mrf.mxu0 }
 0x209   : > { %v5231_v57 = vpop.f32.mrf.mxu1 }
 0x20a   : > { %v11708_v54 = vmax.f32 %v1615_v15, %v1641_v2  ;;  %v5248_v10 = vadd.f32 %v5231_v57, %v5018_v9  ;;  %v11718_v4 = vpop.f32.mrf.mxu0 }
 0x20b   : > { %v11712_v21 = vpop.f32.mrf.mxu1 }
 0x20c   : > { %12321 = vst [vmem:[#allocation22_spill] sm:$0xff] %v11708_v54  ;;  %v11724_v33 = vpop.f32.mrf.mxu0 }
 0x20d   : > { %v11716_v52 = vpop.f32.mrf.mxu1 }
 0x20e   : > { %v8760_v40 = vpop.f32.mrf.mxu0 }
 0x20f   : > { %v11720_v29 = vpop.f32.mrf.mxu1  ;;  %v5479_v50 = vadd.f32 %v8760_v40, %v5249_v28 }
 0x210   : > { %v5458_v27 = vpop.f32.mrf.mxu0 }
 0x211   : > { %v11722_v11 = vpop.f32.mrf.mxu1  ;;  %v5477_v2 = vadd.f32 %v5458_v27, %v5247_v41 }
 0x212   : > { %v8761_v19 = vpop.f32.mrf.mxu0 }
 0x213   : > { %v8770_v63 = vpop.f32.mrf.mxu1  ;;  %v5480_v57 = vadd.f32 %v8761_v19, %v5250_v22 }
 0x214   : > { %v5637_v9 = vadd.f32 %v8770_v63, %v5479_v50  ;;  %v5461_v16 = vpop.f32.mrf.mxu0 }
 0x215   : > { %v5616_v42 = vpop.f32.mrf.mxu1  ;;  %v5478_v54 = vadd.f32 %v5461_v16, %v5248_v10 }
 0x216   : > { %v5635_v15 = vadd.f32 %v5616_v42, %v5477_v2  ;;  %v11728_v44 = vpop.f32.mrf.mxu0 }
 0x217   : > { %v8771_v31 = vpop.f32.mrf.mxu1 }
 0x218   : > { %v5638_v23 = vadd.f32 %v8771_v31, %v5480_v57  ;;  %v11732_v28 = vpop.f32.mrf.mxu0 }
 0x219   : > { %v5619_v26 = vpop.f32.mrf.mxu1 }
 0x21a   : > { %v5636_v30 = vadd.f32 %v5619_v26, %v5478_v54  ;;  %v11736_v41 = vpop.f32.mrf.mxu0 }
 0x21b   : > { %v11726_v1 = vpop.f32.mrf.mxu1 }
 0x21c   : > { %v11740_v22 = vpop.f32.mrf.mxu0 }
 0x21d   : > { %v11730_v35 = vpop.f32.mrf.mxu1 }
 0x21e   : > { %v8780_v42 = vpop.f32.mrf.mxu0 }
 0x21f   : > { %v11734_v40 = vpop.f32.mrf.mxu1  ;;  %v5756_v16 = vadd.f32 %v8780_v42, %v5637_v9 }
 0x220   : > { %v5735_v27 = vpop.f32.mrf.mxu0 }
 0x221   : > { %v11738_v63 = vpop.f32.mrf.mxu1  ;;  %v5754_v26 = vadd.f32 %v5735_v27, %v5635_v15 }
 0x222   : > { %v8781_v54 = vpop.f32.mrf.mxu0 }
 0x223   : > { %v8790_v50 = vpop.f32.mrf.mxu1  ;;  %v5757_v57 = vadd.f32 %v8781_v54, %v5638_v23 }
 0x224   : > { %v11742_v2 = vadd.f32 %v8790_v50, %v5756_v16  ;;  %v5738_v25 = vpop.f32.mrf.mxu0 }
 0x225   : > { %v5854_v10 = vpop.f32.mrf.mxu1  ;;  %v5755_v59 = vadd.f32 %v5738_v25, %v5636_v30 }
 0x226   : > { %v11744_v19 = vadd.f32 %v5854_v10, %v5754_v26  ;;  %v8796_v36 = vpop.f32.mrf.mxu0 }
 0x227   : > { %v8791_v31 = vpop.f32.mrf.mxu1 }
 0x228   : > { %v11746_v5 = vadd.f32 %v8791_v31, %v5757_v57  ;;  %v6068_v0 = vpop.f32.mrf.mxu0 }
 0x229   : > { %v5857_v37 = vpop.f32.mrf.mxu1 }
 0x22a   : > { %v11748_v24 = vadd.f32 %v5857_v37, %v5755_v59  ;;  %v8797_v42 = vpop.f32.mrf.mxu0 }
 0x22b   : > { %v8806_v9 = vpop.f32.mrf.mxu1 }
 0x22c   : > { %12322 = vst [vmem:[#allocation28_spill] sm:$0xff] %v11748_v24  ;;  %v6071_v50 = vpop.f32.mrf.mxu0 }
 0x22d   : > { %v6298_v7 = vpop.f32.mrf.mxu1 }
 0x22f   : > { %v8807_v16 = vpop.f32.mrf.mxu1 }
 0x231   : > { %v11752_v27 = vpop.f32.mrf.mxu1 }
 0x23e   : > { %v11750_v15 = vpop.f32.mrf.mxu0 }
 0x240   : > { %v11754_v10 = vpop.f32.mrf.mxu0 }
 0x242   : > { %v11756_v23 = vpop.f32.mrf.mxu0 }
 0x244   : > { %v11760_v25 = vpop.f32.mrf.mxu0 }
 0x245   : > { %v11758_v26 = vpop.f32.mrf.mxu1  ;;  %12323 = vst [vmem:[#allocation24_spill] sm:$0xff] %v11760_v25 }
 0x246   : > { %v8816_v30 = vpop.f32.mrf.mxu0 }
 0x247   : > { %v11762_v59 = vpop.f32.mrf.mxu1 }
 0x248   : > { %12324 = vst [vmem:[#allocation34_spill] sm:$0xff] %v11762_v59  ;;  %v6456_v54 = vpop.f32.mrf.mxu0 }
 0x249   : > { %v11764_v37 = vpop.f32.mrf.mxu1 }
 0x24a   : > { %12325 = vst [vmem:[#allocation40_spill] sm:$0xff] %v11764_v37  ;;  %v8817_v57 = vpop.f32.mrf.mxu0 }
 0x24b   : > { %v11766_v31 = vpop.f32.mrf.mxu1 }
 0x24c   : > { %12326 = vst [vmem:[#allocation48_spill] sm:$0xff] %v11766_v31  ;;  %v6459_v12 = vpop.f32.mrf.mxu0 }
 0x24d   : > { %v8826_v32 = vpop.f32.mrf.mxu1 }
 0x24f   : > { %v6575_v60 = vpop.f32.mrf.mxu1  ;;  %v11768_v20 = vpop.f32.mrf.mxu0 }
 0x250   : > { %12327 = vst [vmem:[#allocation51_spill] sm:$0xff] %v11768_v20  ;;  %v5475_v20 = vadd.f32 %v11710_v48, %v11642_v8 }
 0x251   : > { %v8827_v47 = vpop.f32.mrf.mxu1  ;;  %v11772_v14 = vpop.f32.mrf.mxu0 }
 0x252   : > { %12329 = vst [vmem:[#allocation55_spill] sm:$0xff] %v11772_v14 }
 0x253   : > { %v6578_v3 = vpop.f32.mrf.mxu1  ;;  %v11778_v46 = vpop.f32.mrf.mxu0 }
 0x254   : > { %12332 = vst [vmem:[#allocation58_spill] sm:$0xff] %v11778_v46 }
 0x255   : > { %v11770_v38 = vpop.f32.mrf.mxu1  ;;  %v11782_v31 = vpop.f32.mrf.mxu0 }
 0x256   : > { %12328 = vst [vmem:[#allocation53_spill] sm:$0xff] %v11770_v38  ;;  %12334 = vst [vmem:[#allocation73_spill] sm:$0xff] %v11782_v31  ;;  %v5473_v38 = vadd.f32 %v11714_v62, %v11655_v61  ;;  %v5474_v31 = vadd.f32 %v11724_v33, %v11685_v18 }
 0x257   : > { %v11774_v51 = vpop.f32.mrf.mxu1  ;;  %v8836_v17 = vpop.f32.mrf.mxu0 }
 0x258   : > { %12330 = vst [vmem:[#allocation69_spill] sm:$0xff] %v11774_v51  ;;  %v5633_v51 = vadd.f32 %v11712_v21, %v5475_v20  ;;  %v5632_v62 = vadd.f32 %v11722_v11, %v5474_v31 }
 0x259   : > { %v11776_v53 = vpop.f32.mrf.mxu1  ;;  %v6694_v25 = vpop.f32.mrf.mxu0 }
 0x25a   : > { %12331 = vst [vmem:[#allocation57_spill] sm:$0xff] %v11776_v53  ;;  %v5476_v53 = vadd.f32 %v11718_v4, %v11669_v43  ;;  %v5752_v24 = vadd.f32 %v11728_v44, %v5633_v51  ;;  %v5751_v18 = vadd.f32 %v11740_v22, %v5632_v62 }
 0x25b   : > { %v11780_v39 = vpop.f32.mrf.mxu1  ;;  %v8837_v46 = vpop.f32.mrf.mxu0 }
 0x25c   : > { %12333 = vst [vmem:[#allocation61_spill] sm:$0xff] %v11780_v39  ;;  %v5631_v39 = vadd.f32 %v11716_v52, %v5473_v38  ;;  %v5634_v8 = vadd.f32 %v11720_v29, %v5476_v53  ;;  %v5871_v21 = vadd.f32 %v11726_v1, %v5752_v24  ;;  %v5870_v4 = vadd.f32 %v11738_v63, %v5751_v18 }
 0x25d   : > { %v8846_v49 = vpop.f32.mrf.mxu1  ;;  %v6697_v61 = vpop.f32.mrf.mxu0 }
 0x25e   : > { %v5750_v48 = vadd.f32 %v11732_v28, %v5631_v39  ;;  %v5753_v43 = vadd.f32 %v11736_v41, %v5634_v8  ;;  %v6101_v52 = vadd.f32 %v8796_v36, %v5871_v21  ;;  %v6100_v33 = vadd.f32 %v6071_v50, %v5870_v4 }
 0x25f   : > { %v6924_v37 = vpop.f32.mrf.mxu1  ;;  %v11804_v51 = vpop.f32.mrf.mxu0 }
 0x260   : > { %v5869_v38 = vadd.f32 %v11730_v35, %v5750_v48  ;;  %v5872_v53 = vadd.f32 %v11734_v40, %v5753_v43  ;;  %v6331_v29 = vadd.f32 %v8806_v9, %v6101_v52  ;;  %v6330_v40 = vadd.f32 %v11752_v27, %v6100_v33 }
 0x261   : > { %v8847_v14 = vpop.f32.mrf.mxu1  ;;  %v11810_v1 = vpop.f32.mrf.mxu0 }
 0x262   : > { %v6099_v44 = vadd.f32 %v6068_v0, %v5869_v38  ;;  %v6102_v24 = vadd.f32 %v8797_v42, %v5872_v53  ;;  %v6489_v28 = vadd.f32 %v8816_v30, %v6331_v29  ;;  %v6488_v9 = vadd.f32 %v6459_v12, %v6330_v40 }
 0x263   : > { %v6927_v59 = vpop.f32.mrf.mxu1  ;;  %v11814_v22 = vpop.f32.mrf.mxu0 }
 0x264   : > { %v6329_v11 = vadd.f32 %v6298_v7, %v6099_v44  ;;  %v6332_v41 = vadd.f32 %v8807_v16, %v6102_v24  ;;  %v6608_v0 = vadd.f32 %v8826_v32, %v6489_v28  ;;  %v6607_v62 = vadd.f32 %v6578_v3, %v6488_v9  ;;  %v11824_v32 = vld [vmem:[%s12040_s6] ss:$0 sm:$0xff]  ;;  %v12338_v9 = vld [vmem:[#allocation51_spill] sm:$0xff] }
 0x265   : > { %v11819_v48 = vpop.f32.mrf.mxu0  ;;  %v1401_v3 = vadd.f32 %v11302_v6, %v12291_v56  ;;  %v1402_v56 = vadd.f32 %v11602_v55, %v11589_v45 }
 0x266   : > { %v6487_v36 = vadd.f32 %v6456_v54, %v6329_v11  ;;  %v6490_v31 = vadd.f32 %v8817_v57, %v6332_v41  ;;  %v6727_v42 = vadd.f32 %v8836_v17, %v6608_v0  ;;  %v6726_v18 = vadd.f32 %v6697_v61, %v6607_v62  ;;  %v12335_v0 = vld [vmem:[#allocation34_spill] sm:$0xff] }
 0x267   : > { %v11800_v20 = vpop.f32.mrf.mxu1  ;;  %v1448_v6 = vadd.f32 %v12299_v13, %v1401_v3  ;;  %v1449_v40 = vadd.f32 %v11609_v58, %v1402_v56  ;;  %v12348_v3 = vld [vmem:[#allocation10_spill] sm:$0xff] }
 0x268   : > { %v6606_v63 = vadd.f32 %v6575_v60, %v6487_v36  ;;  %v6609_v7 = vadd.f32 %v8827_v47, %v6490_v31  ;;  %v6957_v21 = vadd.f32 %v8846_v49, %v6727_v42  ;;  %v6956_v49 = vadd.f32 %v6927_v59, %v6726_v18  ;;  %v12345_v18 = vld [vmem:[#allocation58_spill] sm:$0xff] }
 0x269   : > { %v11807_v39 = vpop.f32.mrf.mxu1  ;;  %v6103_v59 = vadd.f32 %v11754_v10, %v11744_v19  ;;  %v1483_v13 = vadd.f32 %v11564_v34, %v1448_v6  ;;  %v12336_v19 = vld [vmem:[#allocation28_spill] sm:$0xff] }
 0x26a   : > { %v6725_v50 = vadd.f32 %v6694_v25, %v6606_v63  ;;  %v6728_v16 = vadd.f32 %v8837_v46, %v6609_v7  ;;  %v12337_v10 = vld [vmem:[#allocation24_spill] sm:$0xff] }
 0x26b   : > { %v11812_v35 = vpop.f32.mrf.mxu1  ;;  %v6333_v31 = vadd.f32 %v12335_v0, %v6103_v59  ;;  %v6104_v63 = vadd.f32 %v12337_v10, %v12336_v19 }
 0x26c   : > { %v6955_v38 = vadd.f32 %v6924_v37, %v6725_v50  ;;  %v6958_v12 = vadd.f32 %v8847_v14, %v6728_v16  ;;  %v6105_v14 = vadd.f32 %v11750_v15, %v11742_v2  ;;  %v6106_v15 = vadd.f32 %v11756_v23, %v11746_v5  ;;  %v12341_v23 = vld [vmem:[#allocation16_spill] sm:$0xff] }
 0x26d   : > { %v11817_v8 = vpop.f32.mrf.mxu1  ;;  %v1518_v62 = vadd.f32 %v12341_v23, %v1483_v13  ;;  %v12343_v16 = vld [vmem:[#allocation48_spill] sm:$0xff]  ;;  %v12353_v13 = vld [vmem:[#allocation23_spill] sm:$0xff]  ;;  %v12355_v23 = vld [vmem:[#allocation74_spill] sm:$0xff] }
 0x26e   : > { %v6335_v2 = vadd.f32 %v11758_v26, %v6105_v14  ;;  %v12339_v26 = vld [vmem:[#allocation40_spill] sm:$0xff] }
 0x26f   : > { %v6336_v50 = vadd.f32 %v12339_v26, %v6106_v15  ;;  %v12354_v26 = vld [vmem:[#allocation30_spill] sm:$0xff] }
 0x270   : > { %v6493_v42 = vadd.f32 %v12338_v9, %v6335_v2 }
 0x280   : > { %v8866_v30 = vpop.f32.mrf.mxu1 }
 0x282   : > { %v7312_v43 = vpop.f32.mrf.mxu1 }
 0x283   : > { %v8856_v54 = vpop.f32.mrf.mxu0 }
 0x284   : > { %v7187_v27 = vadd.f32 %v8856_v54, %v6957_v21  ;;  %v8867_v25 = vpop.f32.mrf.mxu1  ;;  %v12342_v21 = vld [vmem:[#allocation19_spill] sm:$0xff]  ;;  %v6334_v54 = vadd.f32 %v12343_v16, %v6104_v63 }
 0x285   : > { %v7154_v60 = vpop.f32.mrf.mxu0  ;;  %v1484_v34 = vadd.f32 %v12342_v21, %v1449_v40  ;;  %v12356_v21 = vld [vmem:[#allocation39_spill] sm:$0xff] }
 0x286   : > { %v7345_v17 = vadd.f32 %v8866_v30, %v7187_v27  ;;  %v7185_v57 = vadd.f32 %v7154_v60, %v6955_v38  ;;  %v7315_v24 = vpop.f32.mrf.mxu1  ;;  %v12340_v30 = vld [vmem:[#allocation55_spill] sm:$0xff]  ;;  %v6494_v27 = vadd.f32 %v12345_v18, %v6336_v50  ;;  %v12346_v60 = vld [vmem:[#allocation69_spill] sm:$0xff] }
 0x287   : > { %v8857_v47 = vpop.f32.mrf.mxu0  ;;  %v6491_v5 = vadd.f32 %v12340_v30, %v6333_v31 }
 0x288   : > { %v7360_v46 = vadd.f32 %v11824_v32, %v7345_v17  ;;  %v7343_v37 = vadd.f32 %v7312_v43, %v7185_v57  ;;  %v7188_v61 = vadd.f32 %v8857_v47, %v6958_v12  ;;  %v12344_v43 = vld [vmem:[#allocation53_spill] sm:$0xff] }
 0x289   : > { %v7157_v52 = vpop.f32.mrf.mxu0  ;;  %v6612_v38 = vadd.f32 %v12344_v43, %v6493_v42  ;;  %v6610_v12 = vadd.f32 %v12346_v60, %v6491_v5  ;;  %v12347_v17 = vld [vmem:[#allocation73_spill] sm:$0xff] }
 0x28a   : > { %v7368_v53 = vmax.f32 %v7360_v46, 0.0  ;;  %v7358_v44 = vadd.f32 %v11824_v32, %v7343_v37  ;;  %v7346_v4 = vadd.f32 %v8867_v25, %v7188_v61  ;;  %v7186_v29 = vadd.f32 %v7157_v52, %v6956_v49  ;;  %v12349_v46 = vld [vmem:[#allocation21_spill] sm:$0xff] }
 0x28b   : > { %v6492_v57 = vadd.f32 %v12347_v17, %v6334_v54  ;;  %v6731_v47 = vadd.f32 %v11804_v51, %v6612_v38  ;;  %v1552_v49 = vadd.f32 %v12348_v3, %v1518_v62  ;;  %v1519_v37 = vadd.f32 %v12349_v46, %v1484_v34  ;;  %v12350_v61 = vld [vmem:[#allocation57_spill] sm:$0xff]  ;;  %v12352_v51 = vld [vmem:[#allocation12_spill] sm:$0xff]  ;;  %v7449_v54 = vpop.permute.xlu1 %7448 }
 0x28c   : > { %v7361_v11 = vadd.f32 %v11824_v32, %v7346_v4  ;;  %v7344_v33 = vadd.f32 %v7315_v24, %v7186_v29  ;;  %7418 = vrot.lane.b32.xlu0 %v7368_v53, %s9100_s16  ;;  %v7366_v28 = vmax.f32 %v7358_v44, 0.0  ;;  %v6613_v52 = vadd.f32 %v12350_v61, %v6494_v27  ;;  %v12351_v44 = vld [vmem:[#allocation61_spill] sm:$0xff]  ;;  %v9030_v61 = vld [vmem:[%s10192_s29 + $0xe0] sm:$0xff] }
 0x28d   : > { %v6729_v53 = vadd.f32 %v11810_v1, %v6610_v12  ;;  %v6611_v4 = vadd.f32 %v12351_v44, %v6492_v57  ;;  %v6961_v29 = vadd.f32 %v11800_v20, %v6731_v47  ;;  %v1553_v6 = vadd.f32 %v12352_v51, %v1519_v37  ;;  %v12359_v44 = vld [vmem:[#allocation14_spill] sm:$0xff] }
 0x28e   : > { %v7369_v41 = vmax.f32 %v7361_v11, 0.0  ;;  %v7359_v36 = vadd.f32 %v11824_v32, %v7344_v33  ;;  %v6732_v14 = vadd.f32 %v11814_v22, %v6613_v52  ;;  %v1587_v33 = vadd.f32 %v11589_v45, %v1552_v49  ;;  %v9029_v49 = vld [vmem:[%s10192_s29 + $0x50] sm:$0xff] }
 0x28f   : > { %v6959_v56 = vadd.f32 %v11807_v39, %v6729_v53  ;;  %v6730_v59 = vadd.f32 %v11819_v48, %v6611_v4  ;;  %v1588_v40 = vadd.f32 %v12353_v13, %v1553_v6  ;;  %v7453_v38 = vpop.permute.xlu1 %7452  ;;  %v1569_v37 = vsel %vm10987_vm13, %v9029_v49, -inf  ;;  %v12360_v4 = vld [vmem:[#allocation25_spill] sm:$0xff]  ;;  %v9031_v6 = vld [vmem:[%s10192_s29 + $0x51] sm:$0xff] }
 0x290   : > { %7420 = vrot.lane.b32.xlu1 %v7369_v41, %s9100_s16  ;;  %7414 = vrot.lane.b32.xlu0 %v7366_v28, %s9100_s16  ;;  %v7367_v7 = vmax.f32 %v7359_v36, 0.0  ;;  %v6962_v1 = vadd.f32 %v11812_v35, %v6732_v14  ;;  %v1622_v22 = vadd.f32 %v11602_v55, %v1587_v33  ;;  %v1604_v53 = vsel %vm10966_vm10, %v9030_v61, -inf  ;;  %v12375_v49 = vld [vmem:[#allocation17_spill] sm:$0xff] }
 0x291   : > { %v6960_v45 = vadd.f32 %v11817_v8, %v6730_v59  ;;  %v1623_v8 = vadd.f32 %v12354_v26, %v1588_v40  ;;  %v1392_v33 = vmax.f32 %v1569_v37, %v1604_v53  ;;  %v1638_v59 = vsel %vm11009_vm0, %v9031_v6, -inf }
 0x292   : > { %v1656_v55 = vadd.f32 %v11609_v58, %v1622_v22 }
 0x293   : > { %v1657_v34 = vadd.f32 %v12356_v21, %v1623_v8  ;;  %v11894_v27 = vpop.permute.xlu1 %7456 }
 0x294   : > { %7416 = vrot.lane.b32.xlu1 %v7367_v7, %s9100_s16  ;;  %v1670_v62 = vmul.f32 %v12355_v23, %v1656_v55 }
 0x295   : > { %v1671_v58 = vmul.f32 %v12355_v23, %v1657_v34  ;;  %v12372_v34 = vld [vmem:[#allocation47_spill] sm:$0xff] }
 0x297   : > { %v7387_v12 = vpop.permute.xlu1 %7386 }
 0x299   : > { %v8870_v25 = vpop.f32.mrf.mxu1 }
 0x29b   : > { %v7328_v11 = vpop.f32.mrf.mxu1  ;;  %v7389_v57 = vpop.permute.xlu1 %7388 }
 0x29d   : > { %v8860_v24 = vpop.f32.mrf.mxu0  ;;  %v8871_v20 = vpop.f32.mrf.mxu1 }
 0x29e   : > { %v7191_v28 = vadd.f32 %v8860_v24, %v6961_v29  ;;  %v12361_v29 = vmax.f32 %v12359_v44, %v12360_v4  ;;  %v12376_v44 = vld [vmem:[#allocation11_spill] sm:$0xff]  ;;  %v12377_v4 = vld [vmem:[#allocation9_spill] sm:$0xff] }
 0x29f   : > { %v7170_v41 = vpop.f32.mrf.mxu0  ;;  %v7331_v9 = vpop.f32.mrf.mxu1 }
 0x2a0   : > { %v7349_v36 = vadd.f32 %v8870_v25, %v7191_v28  ;;  %v7189_v2 = vadd.f32 %v7170_v41, %v6959_v56  ;;  %v11896_v25 = vpop.permute.xlu1 %7396  ;;  %v7472_v14 = vsel %vm1712_vm1, %v12361_v29, %v7387_v12  ;;  %v12363_v41 = vld [vmem:[#allocation27_spill] sm:$0xff]  ;;  %v12374_v12 = vld [vmem:[#allocation13_spill] sm:$0xff]  ;;  %v12378_v29 = vmax.f32 %v12376_v44, %v12377_v4 }
 0x2a1   : > { %v8861_v15 = vpop.f32.mrf.mxu0 }
 0x2a2   : > { %v7364_v0 = vadd.f32 %v11824_v32, %v7349_v36  ;;  %v7347_v31 = vadd.f32 %v7328_v11, %v7189_v2  ;;  %v7192_v39 = vadd.f32 %v8861_v15, %v6962_v1  ;;  %v12364_v1 = vld [vmem:[#allocation41_spill] sm:$0xff]  ;;  %v12366_v15 = vld [vmem:[#allocation18_spill] sm:$0xff] }
 0x2a3   : > { %v7173_v19 = vpop.f32.mrf.mxu0  ;;  %v12365_v36 = vmax.f32 %v12363_v41, %v12364_v1 }
 0x2a4   : > { %v7372_v48 = vmax.f32 %v7364_v0, 0.0  ;;  %v7362_v10 = vadd.f32 %v11824_v32, %v7347_v31  ;;  %v7350_v63 = vadd.f32 %v8871_v20, %v7192_v39  ;;  %v7190_v35 = vadd.f32 %v7173_v19, %v6960_v45  ;;  %v7393_v24 = vpop.permute.xlu1 %7392  ;;  %v12367_v20 = vld [vmem:[#allocation15_spill] sm:$0xff]  ;;  %v9032_v19 = vld [vmem:[%s10192_s29 + $0x170] sm:$0xff] }
 0x2a5   : > { %v12368_v22 = vmax.f32 %v12366_v15, %v12367_v20  ;;  %v1439_v0 = vmax.f32 %v1392_v33, %v1638_v59 }
 0x2a6   : > { %v7365_v42 = vadd.f32 %v11824_v32, %v7350_v63  ;;  %v7348_v7 = vadd.f32 %v7331_v9, %v7190_v35  ;;  %7426 = vrot.lane.b32.xlu0 %v7372_v48, %s9100_s16  ;;  %v7370_v50 = vmax.f32 %v7362_v10, 0.0  ;;  %v1466_v48 = vsel %vm10987_vm13, %v9032_v19, -inf  ;;  %v12369_v35 = vld [vmem:[#allocation8_spill] sm:$0xff] }
 0x2a7   : > { %v7473_v13 = vsel %vm1712_vm1, %v12368_v22, %v7389_v57  ;;  %v12370_v9 = vld [vmem:[#allocation44_spill] sm:$0xff]  ;;  %v1474_v26 = vmax.f32 %v1439_v0, %v1466_v48 }
 0x2a8   : > { %v7373_v30 = vmax.f32 %v7365_v42, 0.0  ;;  %v7363_v5 = vadd.f32 %v11824_v32, %v7348_v7  ;;  %v7447_v32 = vpop.permute.xlu0 %7446  ;;  %v12371_v42 = vmax.f32 %v12369_v35, %v12370_v9 }
 0x2aa   : > { %7428 = vrot.lane.b32.xlu1 %v7373_v30, %s9100_s16  ;;  %7422 = vrot.lane.b32.xlu0 %v7370_v50, %s9100_s16  ;;  %v7371_v16 = vmax.f32 %v7363_v5, 0.0  ;;  %v9033_v50 = vld [vmem:[%s10192_s29 + $0x200] sm:$0xff] }
 0x2ab   : > { %v1501_v30 = vsel %vm10966_vm10, %v9033_v50, -inf }
 0x2ac   : > { %v7451_v43 = vpop.permute.xlu0 %7450  ;;  %v1509_v23 = vmax.f32 %v1474_v26, %v1501_v30 }
 0x2ae   : > { %7424 = vrot.lane.b32.xlu1 %v7371_v16, %s9100_s16  ;;  %7458 = vrot.lane.b32.xlu0 %v1670_v62, %s9098_s9  ;;  %v9034_v62 = vld [vmem:[%s10192_s29 + $0x171] sm:$0xff]  ;;  %v1577_v16 = vmax.f32 %v12372_v34, %v1569_v37  ;;  %s8361_s29 = sshll.u32 %s7622_s28, 10 }
 0x2af   : > { %v1535_v21 = vsel %vm11009_vm0, %v9034_v62, -inf  ;;  %s11984_s28 = scalar_lea.hbm %s12041_s7, %s8361_s29 }
 0x2b0   : > { %v11892_v18 = vpop.permute.xlu0 %7454 }
 0x2b2   : > { %7460 = vrot.lane.b32.xlu1 %v1671_v58, %s9098_s9  ;;  %v1543_v58 = vmax.f32 %v1509_v23, %v1535_v21  ;;  %s9101_s9 = smov [#allocation5]  }
 0x2b3   : > { %s9039_s14 = sshll.u32 %s9101_s9, 4  ;;  %s9040_s14 = int_to_ptr.vmem [resolvable:$false] %s9039_s14 }
 0x2b4   : > { %v7383_v60 = vpop.permute.xlu0 %7382  ;;  %s9041_s15 = scalar_lea.vmem %s9040_s14, 2048  ;;  %p9042_p2 = scmp.lt.s32.totalorder %s11987_s11, %s9040_s14 }
 0x2b5   : > { %v7470_v2 = vsel %vm1712_vm1, %v12365_v36, %v7383_v60  ;;  %p9043_p3 = scmp.lt.s32.totalorder %s9041_s15, %s9035_s18 }
 0x2b7   : > { %p9044_p4 = por %p9043_p3, %p9042_p2 }
 0x2b8   : > { %v7385_v17 = vpop.permute.xlu0 %7384 }
 0x2b9   : > { %v7471_v7 = vsel %vm1712_vm1, %v12371_v42, %v7385_v17  ;;  %p9045_p5 = pnand %p9044_p4, %p9038_p1 }
 0x2bc   : > { %v7395_v47 = vpop.permute.xlu0 %7394 }
 0x2c0   : > { %v7391_v3 = vpop.permute.xlu0 %7390 }
 0x2fe   : > { %v7419_v11 = vpop.permute.xlu0 %7418 }
 0x2ff   : > { %v7481_v51 = vsel %vm7478_vm2, %v7472_v14, %v7419_v11  ;;  %v7476_v14 = vsel %vm1712_vm1, %v12378_v29, %v7395_v47 }
 0x300   : > { %v7490_v28 = vsel %vm7487_vm3, %v7481_v51, %v7451_v43  ;;  %v12373_v43 = vld [vmem:[#allocation26_spill] sm:$0xff] }
 0x301   : > { %7499 = vst.msk [vmem:[%s11914_s19 + $0x10] sm:$0xff] %vm7496_vm4, %v7490_v28 }
 0x302   : > { %v7421_v40 = vpop.permute.xlu1 %7420  ;;  %v7415_v45 = vpop.permute.xlu0 %7414 }
 0x303   : > { %v7482_v31 = vsel %vm7478_vm2, %v7473_v13, %v7421_v40  ;;  %v7479_v39 = vsel %vm7478_vm2, %v7470_v2, %v7415_v45 }
 0x304   : > { %v7491_v10 = vsel %vm7487_vm3, %v7482_v31, %v7453_v38  ;;  %v7488_v63 = vsel %vm7487_vm3, %v7479_v39, %v7447_v32  ;;  %v1612_v32 = vmax.f32 %v1577_v16, %v1604_v53  ;;  %v1578_v38 = vmax.f32 %v1543_v58, %v12373_v43 }
 0x305   : > { %7500 = vst.msk [vmem:[%s11914_s19 + $0x18] sm:$0xff] %vm7496_vm4, %v7491_v10  ;;  %7497 = vst.msk [vmem:[%s11914_s19] sm:$0xff] %vm7496_vm4, %v7488_v63 }
 0x306   : > { %v7417_v55 = vpop.permute.xlu1 %7416  ;;  %v1646_v60 = vmax.f32 %v1612_v32, %v1638_v59  ;;  %v1613_v17 = vmax.f32 %v1578_v38, %v12374_v12 }
 0x307   : > { %v7480_v8 = vsel %vm7478_vm2, %v7471_v7, %v7417_v55 }
 0x308   : > { %v7489_v5 = vsel %vm7487_vm3, %v7480_v8, %v7449_v54  ;;  %v7474_v54 = vsel %vm1712_vm1, %v1646_v60, %v7391_v3  ;;  %v1647_v46 = vmax.f32 %v1613_v17, %v12375_v49 }
 0x309   : > { %7498 = vst.msk [vmem:[%s11914_s19 + $0x8] sm:$0xff] %vm7496_vm4, %v7489_v5 }
 0x30a   : > { %v7475_v3 = vsel %vm1712_vm1, %v1647_v46, %v7393_v24  ;;  %v12379_v24 = vld [vmem:[#allocation22_spill] sm:$0xff] }
 0x30b   : > { %v7477_v56 = vsel %vm1712_vm1, %v12379_v24, %v11896_v25 }
 0x318   : > { %v7427_v57 = vpop.permute.xlu0 %7426 }
 0x319   : > { %v7485_v11 = vsel %vm7478_vm2, %v7476_v14, %v7427_v57 }
 0x31c   : > { %v7429_v61 = vpop.permute.xlu1 %7428  ;;  %v7423_v52 = vpop.permute.xlu0 %7422 }
 0x31d   : > { %v7483_v37 = vsel %vm7478_vm2, %v7474_v54, %v7423_v52  ;;  %v7486_v59 = vsel %vm7478_vm2, %v7477_v56, %v7429_v61 }
 0x31e   : > { %v7492_v53 = vsel %vm7487_vm3, %v7483_v37, %v11892_v18 }
 0x31f   : > { %7501 = vst.msk [vmem:[%s11914_s19 + $0x20] sm:$0xff] %vm7496_vm4, %v7492_v53 }
 0x320   : > { %v7425_v33 = vpop.permute.xlu1 %7424  ;;  %v7459_v51 = vpop.permute.xlu0 %7458 }
 0x321   : > { %v7484_v6 = vsel %vm7478_vm2, %v7475_v3, %v7425_v33  ;;  %v7494_v18 = vsel %vm7487_vm3, %v7485_v11, %v7459_v51 }
 0x322   : > { %v7493_v47 = vsel %vm7487_vm3, %v7484_v6, %v11894_v27  ;;  %7503 = vst.msk [vmem:[%s11914_s19 + $0x30] sm:$0xff] %vm7496_vm4, %v7494_v18 }
 0x323   : > { %7502 = vst.msk [vmem:[%s11914_s19 + $0x28] sm:$0xff] %vm7496_vm4, %v7493_v47 }
 0x324   : > { %v7461_v28 = vpop.permute.xlu1 %7460 }
 0x325   : > { %v7495_v27 = vsel %vm7487_vm3, %v7486_v59, %v7461_v28 }
 0x326   : > { %7504 = vst.msk [vmem:[%s11914_s19 + $0x38] sm:$0xff] %vm7496_vm4, %v7495_v27 }
 0x327   : > { %9048 = shalt.err (!%p9045_p5)
}
 0x328   : > { %s9049_s16 = scalar_lea.hbm %s11984_s28, 1024  ;;  %s9053_s29 = scalar_lea.hbm %s12041_s7, 2048 }
 0x329   : > { %p9050_p7 = scmp.ne.s32.totalorder %s11984_s28, %s9049_s16  ;;  %p9054_p12 = scmp.lt.s32.totalorder %s11984_s28, %s12041_s7 }
 0x32a   : > { %p9055_p13 = scmp.lt.s32.totalorder %s9053_s29, %s9049_s16 }
 0x32b   : > { %p9051_p10 = pnand %p9050_p7, %p9185_p6 }
 0x32c   : > { %p9056_p0 = por %p9055_p13, %p9054_p12 }
 0x32d   : > { %p9052_p11 = pneg %p9051_p10 }
 0x32f   : > { %p9057_p1 = pnand %p9056_p0, %p9052_p11 }
 0x331   : > { %9060 = shalt.err (!%p9057_p1)
}
 0x332   : > { %s9102_s18 = smov 128  }
 0x333   : > { %8915 = dma.vmem_to_hbm [thread:$0]  (%p9185_p6), %s11987_s11, 1024, %s11984_s28, %s7506_s23, %s9102_s18, %s9102_s18, %s9099_s20  }
 0x334 PF: > { %s7534_s9 = sand.u32 1, %s9083_s24   ;;  %p8918_p2 = pnand %p7625_p9, %p9189_p8 }
 0x335   : > { %s7535_s14 = scalar_lea.sflag [#allocation6], %s7534_s9 }
 0x336   : > { %p8919_p3 = pneg %p8918_p2 }
 0x338   : > { %9078 = dma.done.wait (%p8919_p3), %s7535_s14, 1024  }
 0x339   : > { %9080 = vsyncadd (%p8919_p3), %s7535_s14, 4294966272  ;;  %p17_p4 = scmp.ge.s32.totalorder %s9166_s30, 4   ;;  %s12380_s24 = smov %s9087_s25 }
 0x33a   : > { %s12381_s25 = smov %s9091_s26  ;;  %s12382_s26 = smov %s9179_s10 }
 0x33b   : > { %s12383_s27 = smov %s9166_s30  ;;  %19 = sbr.rel (!%p17_p4) target bundleno = 3 (0x3), region = 275 }
 0x340   :  { %7540 = vsyncpa [#allocation6], 1 }
 0x341   :  { %7542 = vsyncpa [#allocation6 + $0x1], 1 }

</bundles_post_ra>
